<compile_context>
chip_gen: v7x
topology: tpu7x:2x2x1
jax: 0.10.0
libtpu: 0.0.40
codegen_flags: <defaults>
</compile_context>

<pallas_src>
import functools

import jax
import jax.numpy as jnp
from jax import lax
from jax.experimental import pallas as pl
from jax.experimental.pallas import tpu as pltpu


def residual_block_kernel(x_ref, w1_ref, b1_ref, w2_ref, b2_ref, o_ref, pad_ref, *, K, P):
    Nb, H, WC = x_ref.shape
    Hp = H + 2 * P
    mm_dtype = pad_ref.dtype

    # Zero only the top/bottom halo rows.  The W-direction "padding" lives inside the
    # banded weight matrices, so the interior store below is a plain lane-dense write
    # covering everything else.  Per-step (not program_id-gated): scratch is per-core.
    if P > 0:
        pad_ref[:, 0:P, :] = jnp.zeros((Nb, P, WC), mm_dtype)
        pad_ref[:, P + H:Hp, :] = jnp.zeros((Nb, P, WC), mm_dtype)

    def conv(w_ref, b_ref):
        # K row-shifted lane-dense matmuls, f32 accumulation on the MXU.
        acc = jnp.zeros((Nb * H, WC), jnp.float32)
        for kh in range(K):  # K is tiny and static
            a = pad_ref[:, kh:kh + H, :].reshape(Nb * H, WC)
            acc = acc + jnp.dot(a, w_ref[kh], preferred_element_type=jnp.float32)
        return acc + b_ref[...]          # folded (conv bias + BN) per-channel bias

    # ---- conv1 -> BN -> ReLU ----
    pad_ref[:, P:P + H, :] = x_ref[...].astype(mm_dtype)
    y1 = jnp.maximum(conv(w1_ref, b1_ref), 0.0)

    # ---- conv2 -> BN (reuse the same padded scratch) ----
    pad_ref[:, P:P + H, :] = y1.reshape(Nb, H, WC).astype(mm_dtype)
    y2 = conv(w2_ref, b2_ref)

    # ---- residual add + final ReLU, lane-dense (W*C)-wide store ----
    out = jnp.maximum(y2 + x_ref[...].reshape(Nb * H, WC), 0.0)
    o_ref[...] = out.reshape(Nb, H, WC).astype(o_ref.dtype)


def _default_batch_block(N):
    # grid=1 on single-TensorCore chips (v5e/v6e); >= 2 parallel steps only where a chip
    # has 2 TensorCores (v7x) so the "parallel" batch axis can split across cores.
    try:
        kind = jax.devices()[0].device_kind.lower()
    except Exception:
        kind = ""
    if "v7" in kind and N >= 2 and N % 2 == 0:
        return N // 2
    return N


def residual_block(x_nchw, params, eps=1e-5, matmul_dtype=jnp.bfloat16, batch_block=None):
    """x_nchw: (N, C, H, W) float32, like the PyTorch module input."""
    N, C, H, W = x_nchw.shape
    K = params["w1"].shape[0]
    assert K % 2 == 1, "filter_size must be odd for symmetric SAME padding"
    P = (K - 1) // 2
    Hp = H + 2 * P
    WC = W * C

    if batch_block is None:
        batch_block = _default_batch_block(N)
    Nb = batch_block
    assert N % Nb == 0, "batch_block must divide the batch size"

    # NCHW -> NHWC -> lane-dense (N, H, W*C): channels + width packed on the lane axis.
    x = jnp.transpose(x_nchw, (0, 2, 3, 1)).astype(jnp.float32).reshape(N, H, WC)

    # BN(eval) fold:  BN(conv(x)+cb) = s*conv_nobias(x) + (beta + s*(cb - mean)),
    # with s = gamma / sqrt(var + eps).  s is folded into the conv weights below.
    def fold(gamma, beta, mean, var, conv_bias):
        s = gamma / jnp.sqrt(var + eps)
        b = beta + s * (conv_bias - mean)
        return s.astype(jnp.float32), b.astype(jnp.float32)

    # Banded weights: big[kh] is (W*C, W*C) mapping lane-dense input row (kh tap) to the
    # lane-dense output row.  big[kh][w_in*C+ci, w_out*C+co] = w[kh,kw,ci,co]*s[co] where
    # w_in = w_out + kw - P; out-of-range taps are simply absent (implicit zero padding).
    def build_banded(w_hwio, s):
        w_s = (w_hwio.astype(jnp.float32) * s[None, None, None, :])
        big = jnp.zeros((K, W, C, W, C), jnp.float32)
        for kw in range(K):
            S = jnp.eye(W, k=-(kw - P), dtype=jnp.float32)   # S[w_in, w_out]
            big = big + S[None, :, None, :, None] * w_s[:, kw][:, None, :, None, :]
        return big.reshape(K, WC, WC).astype(matmul_dtype)

    s1, b1c = fold(params["g1"], params["be1"], params["m1"], params["v1"], params["cb1"])
    s2, b2c = fold(params["g2"], params["be2"], params["m2"], params["v2"], params["cb2"])
    w1 = build_banded(params["w1"], s1)
    w2 = build_banded(params["w2"], s2)
    b1 = jnp.tile(b1c, W).reshape(1, WC)   # per-channel bias tiled to the lane-dense layout
    b2 = jnp.tile(b2c, W).reshape(1, WC)

    # Explicit VMEM budget with headroom (review: re-derive for 64 MiB/TC v7x).
    mm_bytes = jnp.dtype(matmul_dtype).itemsize
    est = (4 * Nb * H * WC * 4                  # x + out blocks, double-buffered
           + 4 * K * WC * WC * mm_bytes         # two banded weight tensors (x2 buffers)
           + 4 * WC * 4                         # biases
           + Nb * Hp * WC * mm_bytes)           # padded scratch
    vmem_limit = int(min(max(2 * est, 32 << 20), 100 << 20))

    out = pl.pallas_call(
        functools.partial(residual_block_kernel, K=K, P=P),
        out_shape=jax.ShapeDtypeStruct((N, H, WC), jnp.float32),
        grid_spec=pltpu.PrefetchScalarGridSpec(
            num_scalar_prefetch=0,
            grid=(N // Nb,),
            in_specs=[
                pl.BlockSpec((Nb, H, WC), lambda n: (n, 0, 0)),    # x (lane-dense)
                pl.BlockSpec((K, WC, WC), lambda n: (0, 0, 0)),    # banded w1 (BN-scaled)
                pl.BlockSpec((1, WC), lambda n: (0, 0)),           # bias1 (tiled)
                pl.BlockSpec((K, WC, WC), lambda n: (0, 0, 0)),    # banded w2 (BN-scaled)
                pl.BlockSpec((1, WC), lambda n: (0, 0)),           # bias2 (tiled)
            ],
            out_specs=pl.BlockSpec((Nb, H, WC), lambda n: (n, 0, 0)),
            scratch_shapes=[pltpu.VMEM((Nb, Hp, WC), matmul_dtype)],  # H-padded activation
        ),
        compiler_params=pltpu.CompilerParams(
            dimension_semantics=("parallel",),
            vmem_limit_bytes=vmem_limit),
    )(x, w1, b1, w2, b2)

    return jnp.transpose(out.reshape(N, H, W, C), (0, 3, 1, 2))  # back to NCHW


def reference_forward(x_nchw, params, eps=1e-5):
    """Pure-JAX reference (mirrors the PyTorch module with eval-mode BN)."""
    x = jnp.transpose(x_nchw, (0, 2, 3, 1)).astype(jnp.float32)

    def conv(y, w, b):
        out = lax.conv_general_dilated(
            y, w, window_strides=(1, 1), padding="SAME",
            dimension_numbers=("NHWC", "HWIO", "NHWC"))
        return out + b

    def bn(y, g, be, m, v):
        return g * (y - m) / jnp.sqrt(v + eps) + be

    y1 = jnp.maximum(
        bn(conv(x, params["w1"], params["cb1"]),
           params["g1"], params["be1"], params["m1"], params["v1"]), 0.0)
    y2 = bn(conv(y1, params["w2"], params["cb2"]),
            params["g2"], params["be2"], params["m2"], params["v2"])
    out = jnp.maximum(y2 + x, 0.0)
    return jnp.transpose(out, (0, 3, 1, 2))


def make_params(key, num_filters, filter_size):
    C, K = num_filters, filter_size
    ks = jax.random.split(key, 12)
    return {
        "w1": 0.1 * jax.random.normal(ks[0], (K, K, C, C), jnp.float32),   # HWIO
        "cb1": 0.1 * jax.random.normal(ks[1], (C,), jnp.float32),
        "g1": jax.random.uniform(ks[2], (C,), jnp.float32, 0.5, 1.5),
        "be1": 0.1 * jax.random.normal(ks[3], (C,), jnp.float32),
        "m1": 0.1 * jax.random.normal(ks[4], (C,), jnp.float32),
        "v1": jax.random.uniform(ks[5], (C,), jnp.float32, 0.5, 1.5),
        "w2": 0.1 * jax.random.normal(ks[6], (K, K, C, C), jnp.float32),
        "cb2": 0.1 * jax.random.normal(ks[7], (C,), jnp.float32),
        "g2": jax.random.uniform(ks[8], (C,), jnp.float32, 0.5, 1.5),
        "be2": 0.1 * jax.random.normal(ks[9], (C,), jnp.float32),
        "m2": 0.1 * jax.random.normal(ks[10], (C,), jnp.float32),
        "v2": jax.random.uniform(ks[11], (C,), jnp.float32, 0.5, 1.5),
    }


if __name__ == "__main__":
    filter_size = 3
    N, C, H, W = 2, 32, 16, 16     # batch=2, num_filters=32, spatial=16

    key = jax.random.PRNGKey(0)
    kx, kp = jax.random.split(key)
    x = jax.random.normal(kx, (N, C, H, W), jnp.float32)   # NCHW, like PyTorch
    params = make_params(kp, C, filter_size)

    ref = jax.block_until_ready(reference_forward(x, params))

    # 1) f32 MXU path: tight check against the XLA reference.
    out_f32 = jax.block_until_ready(residual_block(x, params, matmul_dtype=jnp.float32))
    assert out_f32.shape == (N, C, H, W)
    assert jnp.allclose(out_f32, ref, rtol=1e-4, atol=1e-4), "f32 kernel mismatch vs reference"

    # 2) Default bf16 MXU fast path (v6e/v7x native): bf16 matmul inputs, f32 accumulation
    #    and f32 epilogue.  Loose tolerance because the reference convs run in f32.
    out_bf16 = jax.block_until_ready(residual_block(x, params))
    assert jnp.allclose(out_bf16, ref, rtol=5e-2, atol=1e-1), "bf16 kernel mismatch vs reference"

    # 3) Explicit 2-step grid (batch_block=1): exercises the per-step halo re-zero and the
    #    per-core scratch path used when the batch axis is split across TensorCores.
    out_split = jax.block_until_ready(
        residual_block(x, params, matmul_dtype=jnp.float32, batch_block=1))
    assert jnp.allclose(out_split, ref, rtol=1e-4, atol=1e-4), "split-batch kernel mismatch"

    print("KERNEL_OK")
</pallas_src>

<mosaic_0001>
module attributes {stable_mosaic.version = 11 : i64} {
  func.func @residual_block_kernel(%arg0: i32, %arg1: memref<2x16x512xf32, #tpu.memory_space<vmem>>, %arg2: memref<3x512x512xf32, #tpu.memory_space<vmem>>, %arg3: memref<1x512xf32, #tpu.memory_space<vmem>>, %arg4: memref<3x512x512xf32, #tpu.memory_space<vmem>>, %arg5: memref<1x512xf32, #tpu.memory_space<vmem>>, %arg6: memref<2x16x512xf32, #tpu.memory_space<vmem>>, %arg7: memref<2x18x512xf32, #tpu.memory_space<vmem>>) attributes {dimension_semantics = [#tpu.dimension_semantics<parallel>], iteration_bounds = array<i64: 1>, scalar_prefetch = 0 : i64, scratch_operands = 1 : i64, tpu.core_type = #tpu.core_type<tc>, window_params = [{transform_indices = @transform_0, window_bounds = array<i64: 2, 16, 512>}, {pipeline_mode = #tpu.pipeline_mode<synchronous>, transform_indices = @transform_1, window_bounds = array<i64: 3, 512, 512>}, {pipeline_mode = #tpu.pipeline_mode<synchronous>, transform_indices = @transform_2, window_bounds = array<i64: 1, 512>}, {pipeline_mode = #tpu.pipeline_mode<synchronous>, transform_indices = @transform_3, window_bounds = array<i64: 3, 512, 512>}, {pipeline_mode = #tpu.pipeline_mode<synchronous>, transform_indices = @transform_4, window_bounds = array<i64: 1, 512>}, {transform_indices = @transform_5, window_bounds = array<i64: 2, 16, 512>}]} {
    %cst = arith.constant 0.000000e+00 : f32
    %0 = vector.broadcast %cst : f32 to vector<2x1x512xf32>
    %c0 = arith.constant 0 : index
    %c0_0 = arith.constant 0 : index
    %c0_1 = arith.constant 0 : index
    %1 = vector.load %arg7[%c0, %c0_0, %c0_1] : memref<2x18x512xf32, #tpu.memory_space<vmem>>, vector<2x1x512xf32>
    tpu.vector_store %arg7[%c0, %c0_0, %c0_1], %0 {strides = array<i32>} : memref<2x18x512xf32, #tpu.memory_space<vmem>>, vector<2x1x512xf32>,
    %cst_2 = arith.constant 0.000000e+00 : f32
    %2 = vector.broadcast %cst_2 : f32 to vector<2x1x512xf32>
    %c0_3 = arith.constant 0 : index
    %c17 = arith.constant 17 : index
    %c0_4 = arith.constant 0 : index
    %3 = vector.load %arg7[%c0_3, %c17, %c0_4] : memref<2x18x512xf32, #tpu.memory_space<vmem>>, vector<2x1x512xf32>
    tpu.vector_store %arg7[%c0_3, %c17, %c0_4], %2 {strides = array<i32>} : memref<2x18x512xf32, #tpu.memory_space<vmem>>, vector<2x1x512xf32>,
    %c0_5 = arith.constant 0 : index
    %c0_6 = arith.constant 0 : index
    %c0_7 = arith.constant 0 : index
    %4 = vector.load %arg1[%c0_5, %c0_6, %c0_7] : memref<2x16x512xf32, #tpu.memory_space<vmem>>, vector<2x16x512xf32>
    %c0_8 = arith.constant 0 : index
    %c1 = arith.constant 1 : index
    %c0_9 = arith.constant 0 : index
    %5 = vector.load %arg7[%c0_8, %c1, %c0_9] : memref<2x18x512xf32, #tpu.memory_space<vmem>>, vector<2x16x512xf32>
    tpu.vector_store %arg7[%c0_8, %c1, %c0_9], %4 {strides = array<i32>} : memref<2x18x512xf32, #tpu.memory_space<vmem>>, vector<2x16x512xf32>,
    %cst_10 = arith.constant 0.000000e+00 : f32
    %6 = vector.broadcast %cst_10 : f32 to vector<32x512xf32>
    %c0_11 = arith.constant 0 : index
    %c0_12 = arith.constant 0 : index
    %c0_13 = arith.constant 0 : index
    %7 = vector.load %arg7[%c0_11, %c0_12, %c0_13] : memref<2x18x512xf32, #tpu.memory_space<vmem>>, vector<2x16x512xf32>
    %8 = vector.shape_cast %7 : vector<2x16x512xf32> to vector<32x512xf32>
    %c0_14 = arith.constant 0 : index
    %c0_15 = arith.constant 0 : index
    %c0_16 = arith.constant 0 : index
    %9 = vector.load %arg2[%c0_14, %c0_15, %c0_16] : memref<3x512x512xf32, #tpu.memory_space<vmem>>, vector<1x512x512xf32>
    %10 = vector.shape_cast %9 : vector<1x512x512xf32> to vector<512x512xf32>
    %cst_17 = arith.constant dense<0.000000e+00> : vector<32x512xf32>
    %11 = tpu.matmul %8, %10, %cst_17 {dimension_numbers = #tpu.dot_dimension_numbers<[1], [0], [0], [1], [0, 0, 1, 1], [], []>} : vector<32x512xf32>, vector<512x512xf32>, vector<32x512xf32> -> vector<32x512xf32>
    %12 = arith.addf %6, %11 : vector<32x512xf32>
    %c0_18 = arith.constant 0 : index
    %c1_19 = arith.constant 1 : index
    %c0_20 = arith.constant 0 : index
    %13 = vector.load %arg7[%c0_18, %c1_19, %c0_20] : memref<2x18x512xf32, #tpu.memory_space<vmem>>, vector<2x16x512xf32>
    %14 = vector.shape_cast %13 : vector<2x16x512xf32> to vector<32x512xf32>
    %c1_21 = arith.constant 1 : index
    %c0_22 = arith.constant 0 : index
    %c0_23 = arith.constant 0 : index
    %15 = vector.load %arg2[%c1_21, %c0_22, %c0_23] : memref<3x512x512xf32, #tpu.memory_space<vmem>>, vector<1x512x512xf32>
    %16 = vector.shape_cast %15 : vector<1x512x512xf32> to vector<512x512xf32>
    %cst_24 = arith.constant dense<0.000000e+00> : vector<32x512xf32>
    %17 = tpu.matmul %14, %16, %cst_24 {dimension_numbers = #tpu.dot_dimension_numbers<[1], [0], [0], [1], [0, 0, 1, 1], [], []>} : vector<32x512xf32>, vector<512x512xf32>, vector<32x512xf32> -> vector<32x512xf32>
    %18 = arith.addf %12, %17 : vector<32x512xf32>
    %c0_25 = arith.constant 0 : index
    %c2 = arith.constant 2 : index
    %c0_26 = arith.constant 0 : index
    %19 = vector.load %arg7[%c0_25, %c2, %c0_26] : memref<2x18x512xf32, #tpu.memory_space<vmem>>, vector<2x16x512xf32>
    %20 = vector.shape_cast %19 : vector<2x16x512xf32> to vector<32x512xf32>
    %c2_27 = arith.constant 2 : index
    %c0_28 = arith.constant 0 : index
    %c0_29 = arith.constant 0 : index
    %21 = vector.load %arg2[%c2_27, %c0_28, %c0_29] : memref<3x512x512xf32, #tpu.memory_space<vmem>>, vector<1x512x512xf32>
    %22 = vector.shape_cast %21 : vector<1x512x512xf32> to vector<512x512xf32>
    %cst_30 = arith.constant dense<0.000000e+00> : vector<32x512xf32>
    %23 = tpu.matmul %20, %22, %cst_30 {dimension_numbers = #tpu.dot_dimension_numbers<[1], [0], [0], [1], [0, 0, 1, 1], [], []>} : vector<32x512xf32>, vector<512x512xf32>, vector<32x512xf32> -> vector<32x512xf32>
    %24 = arith.addf %18, %23 : vector<32x512xf32>
    %c0_31 = arith.constant 0 : index
    %c0_32 = arith.constant 0 : index
    %25 = vector.load %arg3[%c0_31, %c0_32] : memref<1x512xf32, #tpu.memory_space<vmem>>, vector<1x512xf32>
    %26 = vector.broadcast %25 : vector<1x512xf32> to vector<32x512xf32>
    %27 = arith.addf %24, %26 : vector<32x512xf32>
    %cst_33 = arith.constant 0.000000e+00 : f32
    %28 = vector.broadcast %cst_33 : f32 to vector<32x512xf32>
    %29 = arith.maximumf %27, %28 : vector<32x512xf32>
    %30 = vector.shape_cast %29 : vector<32x512xf32> to vector<2x16x512xf32>
    %c0_34 = arith.constant 0 : index
    %c1_35 = arith.constant 1 : index
    %c0_36 = arith.constant 0 : index
    %31 = vector.load %arg7[%c0_34, %c1_35, %c0_36] : memref<2x18x512xf32, #tpu.memory_space<vmem>>, vector<2x16x512xf32>
    tpu.vector_store %arg7[%c0_34, %c1_35, %c0_36], %30 {strides = array<i32>} : memref<2x18x512xf32, #tpu.memory_space<vmem>>, vector<2x16x512xf32>,
    %cst_37 = arith.constant 0.000000e+00 : f32
    %32 = vector.broadcast %cst_37 : f32 to vector<32x512xf32>
    %c0_38 = arith.constant 0 : index
    %c0_39 = arith.constant 0 : index
    %c0_40 = arith.constant 0 : index
    %33 = vector.load %arg7[%c0_38, %c0_39, %c0_40] : memref<2x18x512xf32, #tpu.memory_space<vmem>>, vector<2x16x512xf32>
    %34 = vector.shape_cast %33 : vector<2x16x512xf32> to vector<32x512xf32>
    %c0_41 = arith.constant 0 : index
    %c0_42 = arith.constant 0 : index
    %c0_43 = arith.constant 0 : index
    %35 = vector.load %arg4[%c0_41, %c0_42, %c0_43] : memref<3x512x512xf32, #tpu.memory_space<vmem>>, vector<1x512x512xf32>
    %36 = vector.shape_cast %35 : vector<1x512x512xf32> to vector<512x512xf32>
    %cst_44 = arith.constant dense<0.000000e+00> : vector<32x512xf32>
    %37 = tpu.matmul %34, %36, %cst_44 {dimension_numbers = #tpu.dot_dimension_numbers<[1], [0], [0], [1], [0, 0, 1, 1], [], []>} : vector<32x512xf32>, vector<512x512xf32>, vector<32x512xf32> -> vector<32x512xf32>
    %38 = arith.addf %32, %37 : vector<32x512xf32>
    %c0_45 = arith.constant 0 : index
    %c1_46 = arith.constant 1 : index
    %c0_47 = arith.constant 0 : index
    %39 = vector.load %arg7[%c0_45, %c1_46, %c0_47] : memref<2x18x512xf32, #tpu.memory_space<vmem>>, vector<2x16x512xf32>
    %40 = vector.shape_cast %39 : vector<2x16x512xf32> to vector<32x512xf32>
    %c1_48 = arith.constant 1 : index
    %c0_49 = arith.constant 0 : index
    %c0_50 = arith.constant 0 : index
    %41 = vector.load %arg4[%c1_48, %c0_49, %c0_50] : memref<3x512x512xf32, #tpu.memory_space<vmem>>, vector<1x512x512xf32>
    %42 = vector.shape_cast %41 : vector<1x512x512xf32> to vector<512x512xf32>
    %cst_51 = arith.constant dense<0.000000e+00> : vector<32x512xf32>
    %43 = tpu.matmul %40, %42, %cst_51 {dimension_numbers = #tpu.dot_dimension_numbers<[1], [0], [0], [1], [0, 0, 1, 1], [], []>} : vector<32x512xf32>, vector<512x512xf32>, vector<32x512xf32> -> vector<32x512xf32>
    %44 = arith.addf %38, %43 : vector<32x512xf32>
    %c0_52 = arith.constant 0 : index
    %c2_53 = arith.constant 2 : index
    %c0_54 = arith.constant 0 : index
    %45 = vector.load %arg7[%c0_52, %c2_53, %c0_54] : memref<2x18x512xf32, #tpu.memory_space<vmem>>, vector<2x16x512xf32>
    %46 = vector.shape_cast %45 : vector<2x16x512xf32> to vector<32x512xf32>
    %c2_55 = arith.constant 2 : index
    %c0_56 = arith.constant 0 : index
    %c0_57 = arith.constant 0 : index
    %47 = vector.load %arg4[%c2_55, %c0_56, %c0_57] : memref<3x512x512xf32, #tpu.memory_space<vmem>>, vector<1x512x512xf32>
    %48 = vector.shape_cast %47 : vector<1x512x512xf32> to vector<512x512xf32>
    %cst_58 = arith.constant dense<0.000000e+00> : vector<32x512xf32>
    %49 = tpu.matmul %46, %48, %cst_58 {dimension_numbers = #tpu.dot_dimension_numbers<[1], [0], [0], [1], [0, 0, 1, 1], [], []>} : vector<32x512xf32>, vector<512x512xf32>, vector<32x512xf32> -> vector<32x512xf32>
    %50 = arith.addf %44, %49 : vector<32x512xf32>
    %c0_59 = arith.constant 0 : index
    %c0_60 = arith.constant 0 : index
    %51 = vector.load %arg5[%c0_59, %c0_60] : memref<1x512xf32, #tpu.memory_space<vmem>>, vector<1x512xf32>
    %52 = vector.broadcast %51 : vector<1x512xf32> to vector<32x512xf32>
    %53 = arith.addf %50, %52 : vector<32x512xf32>
    %c0_61 = arith.constant 0 : index
    %c0_62 = arith.constant 0 : index
    %c0_63 = arith.constant 0 : index
    %54 = vector.load %arg1[%c0_61, %c0_62, %c0_63] : memref<2x16x512xf32, #tpu.memory_space<vmem>>, vector<2x16x512xf32>
    %55 = vector.shape_cast %54 : vector<2x16x512xf32> to vector<32x512xf32>
    %56 = arith.addf %53, %55 : vector<32x512xf32>
    %cst_64 = arith.constant 0.000000e+00 : f32
    %57 = vector.broadcast %cst_64 : f32 to vector<32x512xf32>
    %58 = arith.maximumf %56, %57 : vector<32x512xf32>
    %59 = vector.shape_cast %58 : vector<32x512xf32> to vector<2x16x512xf32>
    %c0_65 = arith.constant 0 : index
    %c0_66 = arith.constant 0 : index
    %c0_67 = arith.constant 0 : index
    %60 = vector.load %arg6[%c0_65, %c0_66, %c0_67] : memref<2x16x512xf32, #tpu.memory_space<vmem>>, vector<2x16x512xf32>
    tpu.vector_store %arg6[%c0_65, %c0_66, %c0_67], %59 {strides = array<i32>} : memref<2x16x512xf32, #tpu.memory_space<vmem>>, vector<2x16x512xf32>,
    return
  }
  func.func @transform_0(%arg0: i32) -> (i32, i32, i32) {
    %c0_i32 = arith.constant 0 : i32
    %c0_i32_0 = arith.constant 0 : i32
    %c0_i32_1 = arith.constant 0 : i32
    return %arg0, %c0_i32, %c0_i32_0 : i32, i32, i32
  }
  func.func @transform_1(%arg0: i32) -> (i32, i32, i32) {
    %c0_i32 = arith.constant 0 : i32
    %c0_i32_0 = arith.constant 0 : i32
    %c0_i32_1 = arith.constant 0 : i32
    %c0_i32_2 = arith.constant 0 : i32
    return %c0_i32, %c0_i32_0, %c0_i32_1 : i32, i32, i32
  }
  func.func @transform_2(%arg0: i32) -> (i32, i32) {
    %c0_i32 = arith.constant 0 : i32
    %c0_i32_0 = arith.constant 0 : i32
    %c0_i32_1 = arith.constant 0 : i32
    return %c0_i32, %c0_i32_0 : i32, i32
  }
  func.func @transform_3(%arg0: i32) -> (i32, i32, i32) {
    %c0_i32 = arith.constant 0 : i32
    %c0_i32_0 = arith.constant 0 : i32
    %c0_i32_1 = arith.constant 0 : i32
    %c0_i32_2 = arith.constant 0 : i32
    return %c0_i32, %c0_i32_0, %c0_i32_1 : i32, i32, i32
  }
  func.func @transform_4(%arg0: i32) -> (i32, i32) {
    %c0_i32 = arith.constant 0 : i32
    %c0_i32_0 = arith.constant 0 : i32
    %c0_i32_1 = arith.constant 0 : i32
    return %c0_i32, %c0_i32_0 : i32, i32
  }
  func.func @transform_5(%arg0: i32) -> (i32, i32, i32) {
    %c0_i32 = arith.constant 0 : i32
    %c0_i32_0 = arith.constant 0 : i32
    %c0_i32_1 = arith.constant 0 : i32
    return %arg0, %c0_i32, %c0_i32_0 : i32, i32, i32
  }
}

</mosaic_0001>

<bundles_post_ra>
// kernel: tpu_custom_call.1
= control target key start
LH: loop header
LB: loop body
LE: loop exit
PB: predicated region body
PF: predicated region fallthrough
CT: control target
= control target key end

     0   :  { %10 = vsyncpa [#allocation4], 0  ;;  %s6891_s0 = inlined_call_operand.hbm [shape: f32[2,16,512], index: 0, kind: input, shape index: {}]   ;;  %s6892_s1 = inlined_call_operand.hbm [shape: f32[3,512,512], index: 1, kind: input, shape index: {}]   ;;  %s6893_s2 = inlined_call_operand.hbm [shape: f32[1,512], index: 2, kind: input, shape index: {}]   ;;  %s6894_s3 = inlined_call_operand.hbm [shape: f32[3,512,512], index: 3, kind: input, shape index: {}]   ;;  %s6895_s4 = inlined_call_operand.hbm [shape: f32[1,512], index: 4, kind: input, shape index: {}]   ;;  %s6896_s5 = inlined_call_operand.hbm [shape: f32[2,16,512], index: 5, kind: output, shape index: {}]  }
   0x1   :  { %11 = vsyncpa [#allocation7], 0 }
   0x2   :  { %12 = vsyncpa [#allocation10], 0 }
   0x3   :  { %13 = vsyncpa [#allocation5], 0  ;;  %s6437_s18 = smov [#allocation6]   ;;  %s6438_s20 = smov [#allocation9]  }
   0x4   :  { %s31_s19 = sshll.u32 %s6437_s18, 4  ;;  %s53_s21 = sshll.u32 %s6438_s20, 4  ;;  %s32_s19 = int_to_ptr.vmem [resolvable:$true] %s31_s19  ;;  %s6476_s21 = int_to_ptr.vmem [resolvable:$true] %s53_s21 }
   0x5   :  { %s6297_s24 = scalar_lea.hbm %s6892_s1, 98304 }
   0x6   :  { %p6298_p0 = scmp.ne.s32.totalorder %s6892_s1, %s6297_s24  ;;  %p6301_p1 = scmp.lt.u32.totalorder %s6297_s24, %s6892_s1 }
   0x8   :  { %p6303_p2 = pnand %p6301_p1, %p6298_p0 }
   0xa   :  { %6306 = shalt.err (!%p6303_p2)
}
   0xb   :  { %s6307_s29 = scalar_lea.vmem %s32_s19, 98304  ;;  %p6312_p4 = scmp.lt.s32.totalorder %s32_s19, %s32_s19 }
   0xc   :  { %p6308_p3 = scmp.ne.s32.totalorder %s32_s19, %s6307_s29  ;;  %p6313_p5 = scmp.lt.s32.totalorder %s6307_s29, %s6307_s29 }
   0xe   :  { %p6314_p6 = por %p6313_p5, %p6312_p4 }
  0x10   :  { %p6315_p7 = pnand %p6314_p6, %p6308_p3 }
  0x12   :  { %6318 = shalt.err (!%p6315_p7)
}
  0x13   :  { %s6439_s30 = smov 512   ;;  %s6440_s6 = smov 32  }
  0x14   :  { %37 = dma.hbm_to_vmem [thread:$0]  %s6892_s1, 98304, %s32_s19, [#allocation7], %s6439_s30, %s6439_s30, %s6440_s6  }
  0x15   :  { %s6319_s11 = scalar_lea.hbm %s6894_s3, 98304 }
  0x16   :  { %p6320_p8 = scmp.ne.s32.totalorder %s6894_s3, %s6319_s11  ;;  %p6323_p9 = scmp.lt.u32.totalorder %s6319_s11, %s6894_s3 }
  0x18   :  { %p6325_p10 = pnand %p6323_p9, %p6320_p8 }
  0x1a   :  { %6328 = shalt.err (!%p6325_p10)
}
  0x1b   :  { %s6329_s16 = scalar_lea.vmem %s6476_s21, 98304  ;;  %p6334_p12 = scmp.lt.s32.totalorder %s6476_s21, %s6476_s21 }
  0x1c   :  { %p6330_p11 = scmp.ne.s32.totalorder %s6476_s21, %s6329_s16  ;;  %p6335_p13 = scmp.lt.s32.totalorder %s6329_s16, %s6329_s16 }
  0x1e   :  { %p6336_p0 = por %p6335_p13, %p6334_p12 }
  0x20   :  { %p6337_p1 = pnand %p6336_p0, %p6330_p11 }
  0x22   :  { %6340 = shalt.err (!%p6337_p1)
}
  0x23   :  { %59 = dma.hbm_to_vmem [thread:$0]  %s6894_s3, 98304, %s6476_s21, [#allocation10], %s6439_s30, %s6439_s30, %s6440_s6  }
  0x24   :  { %s6441_s18 = smov [#allocation3]   ;;  %s6442_s20 = smov [#allocation8]  }
  0x25   :  { %s19_s19 = sshll.u32 %s6441_s18, 4  ;;  %s44_s22 = sshll.u32 %s6442_s20, 4  ;;  %s20_s19 = int_to_ptr.vmem [resolvable:$true] %s19_s19  ;;  %s45_s22 = int_to_ptr.vmem [resolvable:$true] %s44_s22 }
  0x26   :  { %s6341_s25 = scalar_lea.hbm %s6891_s0, 2048 }
  0x27   :  { %p6342_p2 = scmp.ne.s32.totalorder %s6891_s0, %s6341_s25  ;;  %p6345_p3 = scmp.lt.u32.totalorder %s6341_s25, %s6891_s0 }
  0x29   :  { %p6347_p4 = pnand %p6345_p3, %p6342_p2 }
  0x2b   :  { %6350 = shalt.err (!%p6347_p4)
}
  0x2c   :  { %s6351_s3 = scalar_lea.vmem %s20_s19, 2048  ;;  %p6356_p6 = scmp.lt.s32.totalorder %s20_s19, %s20_s19 }
  0x2d   :  { %p6352_p5 = scmp.ne.s32.totalorder %s20_s19, %s6351_s3  ;;  %p6357_p7 = scmp.lt.s32.totalorder %s6351_s3, %s6351_s3 }
  0x2f   :  { %p6358_p8 = por %p6357_p7, %p6356_p6 }
  0x31   :  { %p6359_p9 = pnand %p6358_p8, %p6352_p5 }
  0x33   :  { %6362 = shalt.err (!%p6359_p9)
}
  0x34   :  { %25 = dma.hbm_to_vmem [thread:$0]  %s6891_s0, 2048, %s20_s19, [#allocation4], %s6439_s30, %s6439_s30, %s6440_s6  }
  0x35   :  { %s6363_s10 = scalar_lea.hbm %s6893_s2, 64 }
  0x36   :  { %p6364_p10 = scmp.ne.s32.totalorder %s6893_s2, %s6363_s10  ;;  %p6367_p11 = scmp.lt.u32.totalorder %s6363_s10, %s6893_s2 }
  0x38   :  { %p6369_p12 = pnand %p6367_p11, %p6364_p10 }
  0x3a   :  { %6372 = shalt.err (!%p6369_p12)
}
  0x3b   :  { %s6373_s15 = scalar_lea.vmem %s45_s22, 64  ;;  %p6378_p0 = scmp.lt.s32.totalorder %s45_s22, %s45_s22 }
  0x3c   :  { %p6374_p13 = scmp.ne.s32.totalorder %s45_s22, %s6373_s15  ;;  %p6379_p1 = scmp.lt.s32.totalorder %s6373_s15, %s6373_s15 }
  0x3e   :  { %p6380_p2 = por %p6379_p1, %p6378_p0 }
  0x40   :  { %p6381_p3 = pnand %p6380_p2, %p6374_p13 }
  0x42   :  { %6384 = shalt.err (!%p6381_p3)
}
  0x43   :  { %47 = dma.hbm_to_vmem [thread:$0]  %s6893_s2, 64, %s45_s22, [#allocation7]  }
  0x44   :  { %s6443_s1 = smov [#allocation11]   ;;  %s6385_s20 = scalar_lea.hbm %s6895_s4, 64 }
  0x45   :  { %s66_s17 = sshll.u32 %s6443_s1, 4  ;;  %p6386_p4 = scmp.ne.s32.totalorder %s6895_s4, %s6385_s20  ;;  %s67_s17 = int_to_ptr.vmem [resolvable:$true] %s66_s17 }
  0x46   :  { %p6389_p5 = scmp.lt.u32.totalorder %s6385_s20, %s6895_s4 }
  0x48   :  { %p6391_p6 = pnand %p6389_p5, %p6386_p4 }
  0x4a   :  { %6394 = shalt.err (!%p6391_p6)
}
  0x4b   :  { %s6395_s27 = scalar_lea.vmem %s67_s17, 64  ;;  %p6400_p8 = scmp.lt.s32.totalorder %s67_s17, %s67_s17 }
  0x4c   :  { %p6396_p7 = scmp.ne.s32.totalorder %s67_s17, %s6395_s27  ;;  %p6401_p9 = scmp.lt.s32.totalorder %s6395_s27, %s6395_s27 }
  0x4e   :  { %p6402_p10 = por %p6401_p9, %p6400_p8 }
  0x50   :  { %p6403_p11 = pnand %p6402_p10, %p6396_p7 }
  0x52   :  { %6406 = shalt.err (!%p6403_p11)
}
  0x53   :  { %69 = dma.hbm_to_vmem [thread:$0]  %s6895_s4, 64, %s67_s17, [#allocation10]  }
  0x54   :  { %6429 = dma.done.wait [#allocation4], 2048  }
  0x55   :  { %6430 = vsyncadd [#allocation4], 4294965248 }
  0x56   :  { %6431 = dma.done.wait [#allocation7], 98368  }
  0x57   :  { %6432 = vsyncadd [#allocation7], 4294868928 }
  0x58   :  { %6433 = dma.done.wait [#allocation10], 98368  }
  0x59   :  { %6434 = vsyncadd [#allocation10], 4294868928  ;;  %v576_v0 = vld [vmem:[#allocation6 + $0x808] sm:$0xff]  ;;  %v578_v2 = vld [vmem:[#allocation6 + $0x818] sm:$0xff]  ;;  %vm132_vm0 = vcmask 1040384   ;;  %vm517_vm1 = vcmask 1046528  }
  0x5a   :  { %v580_v1 = vld [vmem:[#allocation6 + $0x828] sm:$0xff]  ;;  %v582_v4 = vld [vmem:[#allocation6 + $0x838] sm:$0xff]  ;;  %v575_v5 = vld [vmem:[#allocation6 + $0x800] sm:$0xff]  ;;  %vm1575_vm3 = vcmask 1045504   ;;  %s6445_s4 = smov [#allocation12]  }
  0x5b   :  { %v4578_v3 = vpack.c.bf16 %v580_v1, %v576_v0  ;;  %v579_v6 = vld [vmem:[#allocation6 + $0x820] sm:$0xff]  ;;  %v4706_v7 = vpack.c.bf16 %v582_v4, %v578_v2  ;;  %v577_v9 = vld [vmem:[#allocation6 + $0x810] sm:$0xff]  ;;  %v584_v11 = vld [vmem:[#allocation6 + $0x848] sm:$0xff]  ;;  %s4564_s28 = sshll.u32 %s6445_s4, 4  ;;  %s4565_s28 = int_to_ptr.vmem [resolvable:$true] %s4564_s28 }
  0x5c   :  { %v4580_v8 = vpack.c.bf16 %v579_v6, %v575_v5  ;;  %v581_v10 = vld [vmem:[#allocation6 + $0x830] sm:$0xff]  ;;  %v588_v13 = vld [vmem:[#allocation6 + $0x868] sm:$0xff]  ;;  %v586_v14 = vld [vmem:[#allocation6 + $0x858] sm:$0xff]  ;;  %s6407_s29 = scalar_lea.vmem %s4565_s28, 2048  ;;  %p6412_p13 = scmp.lt.s32.totalorder %s4565_s28, %s4565_s28 }
  0x5d   :  { %4579 = vmatprep.subr.bf16.mxu0 %v4578_v3  ;;  %v4708_v12 = vpack.c.bf16 %v581_v10, %v577_v9  ;;  %v590_v15 = vld [vmem:[#allocation6 + $0x878] sm:$0xff]  ;;  %4707 = vmatprep.subr.bf16.mxu1 %v4706_v7  ;;  %v4582_v16 = vpack.c.bf16 %v588_v13, %v584_v11  ;;  %v583_v18 = vld [vmem:[#allocation6 + $0x840] sm:$0xff]  ;;  %v585_v20 = vld [vmem:[#allocation6 + $0x850] sm:$0xff]  ;;  %p6408_p12 = scmp.ne.s32.totalorder %s4565_s28, %s6407_s29  ;;  %p6413_p0 = scmp.lt.s32.totalorder %s6407_s29, %s6407_s29 }
  0x5e   :  { %4581 = vmatpush1.bf16.msra.mxu0 %v4580_v8  ;;  %v4710_v17 = vpack.c.bf16 %v590_v15, %v586_v14  ;;  %v587_v19 = vld [vmem:[#allocation6 + $0x860] sm:$0xff]  ;;  %v589_v22 = vld [vmem:[#allocation6 + $0x870] sm:$0xff]  ;;  %v592_v23 = vld [vmem:[#allocation6 + $0x888] sm:$0xff] }
  0x5f   :  { %4709 = vmatpush1.bf16.msra.mxu1 %v4708_v12  ;;  %v4584_v21 = vpack.c.bf16 %v587_v19, %v583_v18  ;;  %v596_v24 = vld [vmem:[#allocation6 + $0x8a8] sm:$0xff]  ;;  %4583 = vmatprep.subr.bf16.mxu0 %v4582_v16  ;;  %v4712_v25 = vpack.c.bf16 %v589_v22, %v585_v20  ;;  %v594_v27 = vld [vmem:[#allocation6 + $0x898] sm:$0xff]  ;;  %v591_v29 = vld [vmem:[#allocation6 + $0x880] sm:$0xff]  ;;  %p6414_p1 = por %p6413_p0, %p6412_p13 }
  0x60   :  { %4711 = vmatprep.subr.bf16.mxu1 %v4710_v17  ;;  %v4586_v26 = vpack.c.bf16 %v596_v24, %v592_v23  ;;  %v598_v28 = vld [vmem:[#allocation6 + $0x8b8] sm:$0xff]  ;;  %v595_v31 = vld [vmem:[#allocation6 + $0x8a0] sm:$0xff]  ;;  %v593_v32 = vld [vmem:[#allocation6 + $0x890] sm:$0xff] }
  0x61   :  { %v4714_v30 = vpack.c.bf16 %v598_v28, %v594_v27  ;;  %v597_v33 = vld [vmem:[#allocation6 + $0x8b0] sm:$0xff]  ;;  %v4588_v34 = vpack.c.bf16 %v595_v31, %v591_v29  ;;  %v600_v35 = vld [vmem:[#allocation6 + $0x8c8] sm:$0xff]  ;;  %v602_v37 = vld [vmem:[#allocation6 + $0x8d8] sm:$0xff]  ;;  %p6415_p2 = pnand %p6414_p1, %p6408_p12 }
  0x62   :  { %4585 = vmatpush1.bf16.msra.mxu0 %v4584_v21  ;;  %v604_v36 = vld [vmem:[#allocation6 + $0x8e8] sm:$0xff]  ;;  %v4716_v38 = vpack.c.bf16 %v597_v33, %v593_v32  ;;  %v606_v40 = vld [vmem:[#allocation6 + $0x8f8] sm:$0xff]  ;;  %v599_v41 = vld [vmem:[#allocation6 + $0x8c0] sm:$0xff] }
  0x63   :  { %4713 = vmatpush1.bf16.msra.mxu1 %v4712_v25  ;;  %4587 = vmatprep.subr.bf16.mxu0 %v4586_v26  ;;  %v4590_v39 = vpack.c.bf16 %v604_v36, %v600_v35  ;;  %v603_v42 = vld [vmem:[#allocation6 + $0x8e0] sm:$0xff]  ;;  %v4718_v43 = vpack.c.bf16 %v606_v40, %v602_v37  ;;  %v601_v44 = vld [vmem:[#allocation6 + $0x8d0] sm:$0xff]  ;;  %v608_v46 = vld [vmem:[#allocation6 + $0x908] sm:$0xff] }
  0x64   :  { %4715 = vmatprep.subr.bf16.mxu1 %v4714_v30  ;;  %v605_v45 = vld [vmem:[#allocation6 + $0x8f0] sm:$0xff]  ;;  %v612_v47 = vld [vmem:[#allocation6 + $0x928] sm:$0xff]  ;;  %v610_v48 = vld [vmem:[#allocation6 + $0x918] sm:$0xff]  ;;  %v4592_v50 = vpack.c.bf16 %v603_v42, %v599_v41 }
  0x65   :  { %v614_v49 = vld [vmem:[#allocation6 + $0x938] sm:$0xff]  ;;  %v4720_v51 = vpack.c.bf16 %v605_v45, %v601_v44  ;;  %v4594_v52 = vpack.c.bf16 %v612_v47, %v608_v46  ;;  %v607_v53 = vld [vmem:[#allocation6 + $0x900] sm:$0xff]  ;;  %v609_v55 = vld [vmem:[#allocation6 + $0x910] sm:$0xff] }
  0x66   :  { %4589 = vmatpush1.bf16.msra.mxu0 %v4588_v34  ;;  %v611_v54 = vld [vmem:[#allocation6 + $0x920] sm:$0xff]  ;;  %v4722_v56 = vpack.c.bf16 %v614_v49, %v610_v48  ;;  %v613_v57 = vld [vmem:[#allocation6 + $0x930] sm:$0xff]  ;;  %v616_v58 = vld [vmem:[#allocation6 + $0x948] sm:$0xff] }
  0x67   :  { %4717 = vmatpush1.bf16.msra.mxu1 %v4716_v38  ;;  %4591 = vmatprep.subr.bf16.mxu0 %v4590_v39  ;;  %v620_v59 = vld [vmem:[#allocation6 + $0x968] sm:$0xff]  ;;  %v618_v60 = vld [vmem:[#allocation6 + $0x958] sm:$0xff]  ;;  %v4596_v62 = vpack.c.bf16 %v611_v54, %v607_v53  ;;  %v4724_v63 = vpack.c.bf16 %v613_v57, %v609_v55  ;;  %v615_v1 = vld [vmem:[#allocation6 + $0x940] sm:$0xff] }
  0x68   :  { %4719 = vmatprep.subr.bf16.mxu1 %v4718_v43  ;;  %v622_v61 = vld [vmem:[#allocation6 + $0x978] sm:$0xff]  ;;  %v4598_v0 = vpack.c.bf16 %v620_v59, %v616_v58  ;;  %v619_v2 = vld [vmem:[#allocation6 + $0x960] sm:$0xff]  ;;  %v617_v3 = vld [vmem:[#allocation6 + $0x950] sm:$0xff] }
  0x69   :  { %v4726_v4 = vpack.c.bf16 %v622_v61, %v618_v60  ;;  %v621_v5 = vld [vmem:[#allocation6 + $0x970] sm:$0xff]  ;;  %v624_v6 = vld [vmem:[#allocation6 + $0x988] sm:$0xff]  ;;  %v626_v8 = vld [vmem:[#allocation6 + $0x998] sm:$0xff]  ;;  %v4600_v10 = vpack.c.bf16 %v619_v2, %v615_v1 }
  0x6a   :  { %4593 = vmatpush1.bf16.msra.mxu0 %v4592_v50  ;;  %v628_v7 = vld [vmem:[#allocation6 + $0x9a8] sm:$0xff]  ;;  %v630_v9 = vld [vmem:[#allocation6 + $0x9b8] sm:$0xff]  ;;  %v4728_v11 = vpack.c.bf16 %v621_v5, %v617_v3  ;;  %v623_v13 = vld [vmem:[#allocation6 + $0x980] sm:$0xff] }
  0x6b   :  { %4721 = vmatpush1.bf16.msra.mxu1 %v4720_v51  ;;  %4595 = vmatprep.subr.bf16.mxu0 %v4594_v52  ;;  %v4602_v12 = vpack.c.bf16 %v628_v7, %v624_v6  ;;  %v627_v14 = vld [vmem:[#allocation6 + $0x9a0] sm:$0xff]  ;;  %v625_v15 = vld [vmem:[#allocation6 + $0x990] sm:$0xff]  ;;  %v4730_v16 = vpack.c.bf16 %v630_v9, %v626_v8  ;;  %v632_v18 = vld [vmem:[#allocation6 + $0x9c8] sm:$0xff] }
  0x6c   :  { %4723 = vmatprep.subr.bf16.mxu1 %v4722_v56  ;;  %v629_v17 = vld [vmem:[#allocation6 + $0x9b0] sm:$0xff]  ;;  %v636_v19 = vld [vmem:[#allocation6 + $0x9e8] sm:$0xff]  ;;  %v634_v20 = vld [vmem:[#allocation6 + $0x9d8] sm:$0xff]  ;;  %v4604_v22 = vpack.c.bf16 %v627_v14, %v623_v13 }
  0x6d   :  { %v638_v21 = vld [vmem:[#allocation6 + $0x9f8] sm:$0xff]  ;;  %v4732_v23 = vpack.c.bf16 %v629_v17, %v625_v15  ;;  %v4606_v24 = vpack.c.bf16 %v636_v19, %v632_v18  ;;  %v631_v25 = vld [vmem:[#allocation6 + $0x9c0] sm:$0xff]  ;;  %v633_v27 = vld [vmem:[#allocation6 + $0x9d0] sm:$0xff] }
  0x6e   :  { %4597 = vmatpush1.bf16.msra.mxu0 %v4596_v62  ;;  %v635_v26 = vld [vmem:[#allocation6 + $0x9e0] sm:$0xff]  ;;  %v4734_v28 = vpack.c.bf16 %v638_v21, %v634_v20  ;;  %v637_v29 = vld [vmem:[#allocation6 + $0x9f0] sm:$0xff]  ;;  %v640_v30 = vld [vmem:[#allocation6 + $0xa08] sm:$0xff] }
  0x6f   :  { %4725 = vmatpush1.bf16.msra.mxu1 %v4724_v63  ;;  %4599 = vmatprep.subr.bf16.mxu0 %v4598_v0  ;;  %v644_v31 = vld [vmem:[#allocation6 + $0xa28] sm:$0xff]  ;;  %v642_v32 = vld [vmem:[#allocation6 + $0xa18] sm:$0xff]  ;;  %v4608_v34 = vpack.c.bf16 %v635_v26, %v631_v25  ;;  %v4736_v35 = vpack.c.bf16 %v637_v29, %v633_v27  ;;  %v639_v37 = vld [vmem:[#allocation6 + $0xa00] sm:$0xff] }
  0x70   :  { %4727 = vmatprep.subr.bf16.mxu1 %v4726_v4  ;;  %v646_v33 = vld [vmem:[#allocation6 + $0xa38] sm:$0xff]  ;;  %v4610_v36 = vpack.c.bf16 %v644_v31, %v640_v30  ;;  %v643_v38 = vld [vmem:[#allocation6 + $0xa20] sm:$0xff]  ;;  %v641_v39 = vld [vmem:[#allocation6 + $0xa10] sm:$0xff] }
  0x71   :  { %v4738_v40 = vpack.c.bf16 %v646_v33, %v642_v32  ;;  %v645_v41 = vld [vmem:[#allocation6 + $0xa30] sm:$0xff]  ;;  %v648_v42 = vld [vmem:[#allocation6 + $0xa48] sm:$0xff]  ;;  %v650_v44 = vld [vmem:[#allocation6 + $0xa58] sm:$0xff]  ;;  %v4612_v46 = vpack.c.bf16 %v643_v38, %v639_v37 }
  0x72   :  { %4601 = vmatpush1.bf16.msra.mxu0 %v4600_v10  ;;  %v652_v43 = vld [vmem:[#allocation6 + $0xa68] sm:$0xff]  ;;  %v654_v45 = vld [vmem:[#allocation6 + $0xa78] sm:$0xff]  ;;  %v4740_v47 = vpack.c.bf16 %v645_v41, %v641_v39  ;;  %v647_v49 = vld [vmem:[#allocation6 + $0xa40] sm:$0xff] }
  0x73   :  { %4729 = vmatpush1.bf16.msra.mxu1 %v4728_v11  ;;  %4603 = vmatprep.subr.bf16.mxu0 %v4602_v12  ;;  %v4614_v48 = vpack.c.bf16 %v652_v43, %v648_v42  ;;  %v651_v50 = vld [vmem:[#allocation6 + $0xa60] sm:$0xff]  ;;  %v649_v51 = vld [vmem:[#allocation6 + $0xa50] sm:$0xff]  ;;  %v4742_v52 = vpack.c.bf16 %v654_v45, %v650_v44  ;;  %v656_v54 = vld [vmem:[#allocation6 + $0xa88] sm:$0xff] }
  0x74   :  { %4731 = vmatprep.subr.bf16.mxu1 %v4730_v16  ;;  %v653_v53 = vld [vmem:[#allocation6 + $0xa70] sm:$0xff]  ;;  %v660_v55 = vld [vmem:[#allocation6 + $0xaa8] sm:$0xff]  ;;  %v658_v56 = vld [vmem:[#allocation6 + $0xa98] sm:$0xff]  ;;  %v4616_v58 = vpack.c.bf16 %v651_v50, %v647_v49 }
  0x75   :  { %v662_v57 = vld [vmem:[#allocation6 + $0xab8] sm:$0xff]  ;;  %v4744_v59 = vpack.c.bf16 %v653_v53, %v649_v51  ;;  %v4618_v60 = vpack.c.bf16 %v660_v55, %v656_v54  ;;  %v655_v61 = vld [vmem:[#allocation6 + $0xa80] sm:$0xff]  ;;  %v657_v63 = vld [vmem:[#allocation6 + $0xa90] sm:$0xff] }
  0x76   :  { %4605 = vmatpush1.bf16.msra.mxu0 %v4604_v22  ;;  %v659_v62 = vld [vmem:[#allocation6 + $0xaa0] sm:$0xff]  ;;  %v4746_v0 = vpack.c.bf16 %v662_v57, %v658_v56  ;;  %v661_v1 = vld [vmem:[#allocation6 + $0xab0] sm:$0xff]  ;;  %v664_v2 = vld [vmem:[#allocation6 + $0xac8] sm:$0xff] }
  0x77   :  { %4733 = vmatpush1.bf16.msra.mxu1 %v4732_v23  ;;  %4607 = vmatprep.subr.bf16.mxu0 %v4606_v24  ;;  %v668_v3 = vld [vmem:[#allocation6 + $0xae8] sm:$0xff]  ;;  %v666_v4 = vld [vmem:[#allocation6 + $0xad8] sm:$0xff]  ;;  %v4620_v6 = vpack.c.bf16 %v659_v62, %v655_v61  ;;  %v663_v7 = vld [vmem:[#allocation6 + $0xac0] sm:$0xff]  ;;  %v4748_v8 = vpack.c.bf16 %v661_v1, %v657_v63 }
  0x78   :  { %4735 = vmatprep.subr.bf16.mxu1 %v4734_v28  ;;  %v670_v5 = vld [vmem:[#allocation6 + $0xaf8] sm:$0xff]  ;;  %v4622_v9 = vpack.c.bf16 %v668_v3, %v664_v2  ;;  %v667_v10 = vld [vmem:[#allocation6 + $0xae0] sm:$0xff]  ;;  %v665_v11 = vld [vmem:[#allocation6 + $0xad0] sm:$0xff] }
  0x79   :  { %v669_v12 = vld [vmem:[#allocation6 + $0xaf0] sm:$0xff]  ;;  %v4750_v13 = vpack.c.bf16 %v670_v5, %v666_v4  ;;  %v672_v14 = vld [vmem:[#allocation6 + $0xb08] sm:$0xff]  ;;  %v674_v17 = vld [vmem:[#allocation6 + $0xb18] sm:$0xff]  ;;  %v4624_v21 = vpack.c.bf16 %v667_v10, %v663_v7 }
  0x7a   :  { %4609 = vmatpush1.bf16.msra.mxu0 %v4608_v34  ;;  %v676_v15 = vld [vmem:[#allocation6 + $0xb28] sm:$0xff]  ;;  %v678_v18 = vld [vmem:[#allocation6 + $0xb38] sm:$0xff]  ;;  %v671_v22 = vld [vmem:[#allocation6 + $0xb00] sm:$0xff]  ;;  %v4752_v25 = vpack.c.bf16 %v669_v12, %v665_v11  ;;  %v85_v11 = vlaneseq }
  0x7b   :  { %4737 = vmatpush1.bf16.msra.mxu1 %v4736_v35  ;;  %4611 = vmatprep.subr.bf16.mxu0 %v4610_v36  ;;  %v101_v16 = vld [vmem:[#allocation3 + $0x8] sm:$0xff]  ;;  %v6552_v24 = vld [vmem:[#allocation3] sm:$0xff]  ;;  %v4626_v26 = vpack.c.bf16 %v676_v15, %v672_v14  ;;  %v673_v28 = vld [vmem:[#allocation6 + $0xb10] sm:$0xff]  ;;  %v4754_v31 = vpack.c.bf16 %v678_v18, %v674_v17 }
  0x7c   :  { %4739 = vmatprep.subr.bf16.mxu1 %v4738_v40  ;;  %v105_v19 = vld [vmem:[#allocation3 + $0x28] sm:$0xff]  ;;  %v134_v20 = vrot.slane %v101_v16, 7  ;;  %v675_v27 = vld [vmem:[#allocation6 + $0xb20] sm:$0xff]  ;;  %v133_v30 = vrot.slane %v6552_v24, 7  ;;  %v677_v32 = vld [vmem:[#allocation6 + $0xb30] sm:$0xff]  ;;  %vm87_vm2 = vcmp.lt.s32.totalorder %v85_v11, 512 }
  0x7d   :  { %v139_v23 = vrot.slane %v105_v19, 7  ;;  %v6554_v29 = vld [vmem:[#allocation3 + $0x20] sm:$0xff]  ;;  %v680_v33 = vld [vmem:[#allocation6 + $0xb48] sm:$0xff]  ;;  %v682_v36 = vld [vmem:[#allocation6 + $0xb58] sm:$0xff]  ;;  %v4628_v38 = vpack.c.bf16 %v675_v27, %v671_v22  ;;  %v4756_v40 = vpack.c.bf16 %v677_v32, %v673_v28 }
  0x7e   :  { %4613 = vmatpush1.bf16.msra.mxu0 %v4612_v46  ;;  %182 = vst [vmem:[#allocation2 + $0x8] sm:$0xfe] %v134_v20  ;;  %v684_v34 = vld [vmem:[#allocation6 + $0xb68] sm:$0xff]  ;;  %v137_v35 = vrot.slane %v6554_v29, 7  ;;  %v686_v37 = vld [vmem:[#allocation6 + $0xb78] sm:$0xff]  ;;  %v679_v42 = vld [vmem:[#allocation6 + $0xb40] sm:$0xff] }
  0x7f   :  { %4741 = vmatpush1.bf16.msra.mxu1 %v4740_v47  ;;  %4615 = vmatprep.subr.bf16.mxu0 %v4614_v48  ;;  %190 = vst [vmem:[#allocation2 + $0x48] sm:$0x1] %v139_v23  ;;  %181 = vst [vmem:[#allocation2] sm:$0xfe] %v133_v30  ;;  %v6559_v39 = vsel %vm132_vm0, %v134_v20, %v139_v23  ;;  %v4630_v41 = vpack.c.bf16 %v684_v34, %v680_v33  ;;  %v683_v43 = vld [vmem:[#allocation6 + $0xb60] sm:$0xff]  ;;  %v681_v44 = vld [vmem:[#allocation6 + $0xb50] sm:$0xff] }
  0x80   :  { %4743 = vmatprep.subr.bf16.mxu1 %v4742_v52  ;;  %189 = vst [vmem:[#allocation2 + $0x40] sm:$0x1] %v137_v35  ;;  %v4758_v45 = vpack.c.bf16 %v686_v37, %v682_v36  ;;  %v685_v46 = vld [vmem:[#allocation6 + $0xb70] sm:$0xff]  ;;  %v688_v47 = vld [vmem:[#allocation6 + $0xb88] sm:$0xff]  ;;  %v690_v49 = vld [vmem:[#allocation6 + $0xb98] sm:$0xff]  ;;  %v522_v51 = vrot.slane %v6559_v39, 1  ;;  %v4632_v52 = vpack.c.bf16 %v683_v43, %v679_v42 }
  0x81   :  { %v692_v48 = vld [vmem:[#allocation6 + $0xba8] sm:$0xff]  ;;  %v694_v50 = vld [vmem:[#allocation6 + $0xbb8] sm:$0xff]  ;;  %v4760_v54 = vpack.c.bf16 %v685_v46, %v681_v44  ;;  %v687_v56 = vld [vmem:[#allocation6 + $0xb80] sm:$0xff] }
  0x82   :  { %4617 = vmatpush1.bf16.msra.mxu0 %v4616_v58  ;;  %v4634_v55 = vpack.c.bf16 %v692_v48, %v688_v47  ;;  %v691_v57 = vld [vmem:[#allocation6 + $0xba0] sm:$0xff]  ;;  %v689_v58 = vld [vmem:[#allocation6 + $0xb90] sm:$0xff]  ;;  %v696_v62 = vld [vmem:[#allocation6 + $0xbc8] sm:$0xff] }
  0x83   :  { %4745 = vmatpush1.bf16.msra.mxu1 %v4744_v59  ;;  %4619 = vmatprep.subr.bf16.mxu0 %v4618_v60  ;;  %v4762_v60 = vpack.c.bf16 %v694_v50, %v690_v49  ;;  %v693_v61 = vld [vmem:[#allocation6 + $0xbb0] sm:$0xff]  ;;  %v700_v63 = vld [vmem:[#allocation6 + $0xbe8] sm:$0xff]  ;;  %v702_v1 = vld [vmem:[#allocation6 + $0xbf8] sm:$0xff]  ;;  %v4636_v3 = vpack.c.bf16 %v691_v57, %v687_v56 }
  0x84   :  { %4747 = vmatprep.subr.bf16.mxu1 %v4746_v0  ;;  %v698_v0 = vld [vmem:[#allocation6 + $0xbd8] sm:$0xff]  ;;  %v695_v4 = vld [vmem:[#allocation6 + $0xbc0] sm:$0xff]  ;;  %v4764_v5 = vpack.c.bf16 %v693_v61, %v689_v58  ;;  %v704_v14 = vld [vmem:[#allocation6 + $0xc08] sm:$0xff] }
  0x85   :  { %v478_v53 = vld [vmem:[#allocation2 + $0x8] sm:$0xfe]  ;;  %v699_v7 = vld [vmem:[#allocation6 + $0xbe0] sm:$0xff]  ;;  %v4766_v12 = vpack.c.bf16 %v702_v1, %v698_v0  ;;  %v706_v16 = vld [vmem:[#allocation6 + $0xc18] sm:$0xff] }
  0x86   :  { %4621 = vmatpush1.bf16.msra.mxu0 %v4620_v6  ;;  %v521_v59 = vrot.slane %v478_v53, 1  ;;  %v4638_v6 = vpack.c.bf16 %v700_v63, %v696_v62  ;;  %v477_v10 = vld [vmem:[#allocation2] sm:$0xfe]  ;;  %v708_v15 = vld [vmem:[#allocation6 + $0xc28] sm:$0xff]  ;;  %v710_v17 = vld [vmem:[#allocation6 + $0xc38] sm:$0xff]  ;;  %v4640_v18 = vpack.c.bf16 %v699_v7, %v695_v4 }
  0x87   :  { %4749 = vmatpush1.bf16.msra.mxu1 %v4748_v8  ;;  %4623 = vmatprep.subr.bf16.mxu0 %v4622_v9  ;;  %v697_v8 = vld [vmem:[#allocation6 + $0xbd0] sm:$0xff]  ;;  %v6566_v9 = vsel %vm132_vm0, %v133_v30, %v137_v35  ;;  %v518_v19 = vrot.slane %v477_v10, 1  ;;  %v4642_v23 = vpack.c.bf16 %v708_v15, %v704_v14  ;;  %v703_v24 = vld [vmem:[#allocation6 + $0xc00] sm:$0xff]  ;;  %v4770_v27 = vpack.c.bf16 %v710_v17, %v706_v16  ;;  %v712_v29 = vld [vmem:[#allocation6 + $0xc48] sm:$0xff] }
  0x88   :  { %4751 = vmatprep.subr.bf16.mxu1 %v4750_v13  ;;  %v523_v2 = vsel %vm517_vm1, %v521_v59, %v522_v51  ;;  %v701_v13 = vld [vmem:[#allocation6 + $0xbf0] sm:$0xff]  ;;  %v519_v20 = vrot.slane %v6566_v9, 1  ;;  %v716_v30 = vld [vmem:[#allocation6 + $0xc68] sm:$0xff]  ;;  %v718_v32 = vld [vmem:[#allocation6 + $0xc78] sm:$0xff] }
  0x89   :  { %895 = vmatprep.mubr.f32.mxu0 %v523_v2  ;;  %1073 = vmatprep.mubr.f32.mxu1 %v523_v2  ;;  %v4768_v22 = vpack.c.bf16 %v701_v13, %v697_v8  ;;  %v709_v28 = vld [vmem:[#allocation6 + $0xc30] sm:$0xff]  ;;  %v4646_v36 = vpack.c.bf16 %v716_v30, %v712_v29  ;;  %v711_v37 = vld [vmem:[#allocation6 + $0xc40] sm:$0xff]  ;;  %v720_v43 = vld [vmem:[#allocation6 + $0xc88] sm:$0xff] }
  0x8a   :  { %4625 = vmatpush1.bf16.msra.mxu0 %v4624_v21  ;;  %v6444_v21 = vmov 0.0   ;;  %v520_v33 = vsel %vm517_vm1, %v518_v19, %v519_v20  ;;  %v717_v42 = vld [vmem:[#allocation6 + $0xc70] sm:$0xff]  ;;  %v724_v44 = vld [vmem:[#allocation6 + $0xca8] sm:$0xff]  ;;  %v726_v46 = vld [vmem:[#allocation6 + $0xcb8] sm:$0xff] }
  0x8b   :  { %4753 = vmatpush1.bf16.msra.mxu1 %v4752_v25  ;;  %4627 = vmatprep.subr.bf16.mxu0 %v4626_v26  ;;  %89 = vst.msk [vmem:[#allocation2] ss:$8 sm:$0xf] %vm87_vm2, %v6444_v21  ;;  %92 = vst.msk [vmem:[#allocation2 + $0x60] ss:$8 sm:$0xf] %vm87_vm2, %v6444_v21  ;;  %v4650_v49 = vpack.c.bf16 %v724_v44, %v720_v43 }
  0x8c   :  { %4755 = vmatprep.subr.bf16.mxu1 %v4754_v31  ;;  %95 = vst.msk [vmem:[#allocation2 + $0x41] ss:$8 sm:$0xf] %vm87_vm2, %v6444_v21  ;;  %98 = vst.msk [vmem:[#allocation2 + $0xa1] ss:$8 sm:$0xf] %vm87_vm2, %v6444_v21 }
  0x8d   :  { %v707_v25 = vld [vmem:[#allocation6 + $0xc20] sm:$0xff]  ;;  %v705_v26 = vld [vmem:[#allocation6 + $0xc10] sm:$0xff]  ;;  %v714_v31 = vld [vmem:[#allocation6 + $0xc58] sm:$0xff] }
  0x8e   :  { %4629 = vmatpush1.bf16.msra.mxu0 %v4628_v38  ;;  %v4644_v34 = vpack.c.bf16 %v707_v25, %v703_v24  ;;  %v4772_v35 = vpack.c.bf16 %v709_v28, %v705_v26  ;;  %v715_v38 = vld [vmem:[#allocation6 + $0xc60] sm:$0xff]  ;;  %v721_v53 = vld [vmem:[#allocation6 + $0xc90] sm:$0xff]  ;;  %v728_v56 = vld [vmem:[#allocation6 + $0xcc8] sm:$0xff] }
  0x8f   :  { %4757 = vmatpush1.bf16.msra.mxu1 %v4756_v40  ;;  %4631 = vmatprep.subr.bf16.mxu0 %v4630_v41  ;;  %v713_v40 = vld [vmem:[#allocation6 + $0xc50] sm:$0xff]  ;;  %v4774_v41 = vpack.c.bf16 %v718_v32, %v714_v31  ;;  %v4648_v47 = vpack.c.bf16 %v715_v38, %v711_v37  ;;  %v719_v50 = vld [vmem:[#allocation6 + $0xc80] sm:$0xff]  ;;  %v732_v57 = vld [vmem:[#allocation6 + $0xce8] sm:$0xff] }
  0x90   :  { %4759 = vmatprep.subr.bf16.mxu1 %v4758_v45  ;;  %v722_v45 = vld [vmem:[#allocation6 + $0xc98] sm:$0xff]  ;;  %v4776_v48 = vpack.c.bf16 %v717_v42, %v713_v40  ;;  %v4654_v62 = vpack.c.bf16 %v732_v57, %v728_v56  ;;  %v727_v63 = vld [vmem:[#allocation6 + $0xcc0] sm:$0xff]  ;;  %v729_v1 = vld [vmem:[#allocation6 + $0xcd0] sm:$0xff] }
  0x91   :  { %v730_v58 = vld [vmem:[#allocation6 + $0xcd8] sm:$0xff]  ;;  %v731_v0 = vld [vmem:[#allocation6 + $0xce0] sm:$0xff]  ;;  %v736_v4 = vld [vmem:[#allocation6 + $0xd08] sm:$0xff] }
  0x92   :  { %4633 = vmatpush1.bf16.msra.mxu0 %v4632_v52  ;;  %v723_v52 = vld [vmem:[#allocation6 + $0xca0] sm:$0xff]  ;;  %v734_v59 = vld [vmem:[#allocation6 + $0xcf8] sm:$0xff]  ;;  %v4656_v8 = vpack.c.bf16 %v731_v0, %v727_v63  ;;  %v737_v15 = vld [vmem:[#allocation6 + $0xd10] sm:$0xff] }
  0x93   :  { %4761 = vmatpush1.bf16.msra.mxu1 %v4760_v54  ;;  %4635 = vmatprep.subr.bf16.mxu0 %v4634_v55  ;;  %v4778_v54 = vpack.c.bf16 %v726_v46, %v722_v45  ;;  %v725_v55 = vld [vmem:[#allocation6 + $0xcb0] sm:$0xff]  ;;  %v4782_v2 = vpack.c.bf16 %v734_v59, %v730_v58  ;;  %v742_v7 = vld [vmem:[#allocation6 + $0xd38] sm:$0xff]  ;;  %v735_v13 = vld [vmem:[#allocation6 + $0xd00] sm:$0xff] }
  0x94   :  { %4763 = vmatprep.subr.bf16.mxu1 %v4762_v60  ;;  %v4652_v60 = vpack.c.bf16 %v723_v52, %v719_v50  ;;  %v4780_v61 = vpack.c.bf16 %v725_v55, %v721_v53  ;;  %v739_v14 = vld [vmem:[#allocation6 + $0xd20] sm:$0xff]  ;;  %v741_v17 = vld [vmem:[#allocation6 + $0xd30] sm:$0xff]  ;;  %v748_v19 = vld [vmem:[#allocation6 + $0xd68] sm:$0xff] }
  0x95   :  { %v746_v21 = vld [vmem:[#allocation6 + $0xd58] sm:$0xff]  ;;  %v4660_v24 = vpack.c.bf16 %v739_v14, %v735_v13  ;;  %v743_v25 = vld [vmem:[#allocation6 + $0xd40] sm:$0xff]  ;;  %v4788_v28 = vpack.c.bf16 %v741_v17, %v737_v15  ;;  %v745_v30 = vld [vmem:[#allocation6 + $0xd50] sm:$0xff] }
  0x96   :  { %4637 = vmatpush1.bf16.msra.mxu0 %v4636_v3  ;;  %v733_v3 = vld [vmem:[#allocation6 + $0xcf0] sm:$0xff]  ;;  %v747_v26 = vld [vmem:[#allocation6 + $0xd60] sm:$0xff]  ;;  %v109_v38 = vld [vmem:[#allocation3 + $0x48] sm:$0xff] }
  0x97   :  { %4765 = vmatpush1.bf16.msra.mxu1 %v4764_v5  ;;  %4639 = vmatprep.subr.bf16.mxu0 %v4638_v6  ;;  %v740_v5 = vld [vmem:[#allocation6 + $0xd28] sm:$0xff]  ;;  %v738_v6 = vld [vmem:[#allocation6 + $0xd18] sm:$0xff]  ;;  %v4784_v10 = vpack.c.bf16 %v733_v3, %v729_v1  ;;  %v749_v31 = vld [vmem:[#allocation6 + $0xd70] sm:$0xff]  ;;  %v146_v43 = vrot.slane %v109_v38, 7  ;;  %v4664_v44 = vpack.c.bf16 %v747_v26, %v743_v25 }
  0x98   :  { %4767 = vmatprep.subr.bf16.mxu1 %v4766_v12  ;;  %v4658_v12 = vpack.c.bf16 %v740_v5, %v736_v4  ;;  %v4786_v16 = vpack.c.bf16 %v742_v7, %v738_v6  ;;  %v481_v32 = vld [vmem:[#allocation2 + $0x40] sm:$0x1]  ;;  %v754_v40 = vld [vmem:[#allocation6 + $0xd98] sm:$0xff]  ;;  %v113_v42 = vld [vmem:[#allocation3 + $0x68] sm:$0xff] }
  0x99   :  { %v530_v37 = vrot.slane %v481_v32, 1  ;;  %v751_v45 = vld [vmem:[#allocation6 + $0xd80] sm:$0xff]  ;;  %v753_v52 = vld [vmem:[#allocation6 + $0xd90] sm:$0xff]  ;;  %194 = vst [vmem:[#allocation2 + $0x68] sm:$0xfe] %v146_v43  ;;  %v760_v57 = vld [vmem:[#allocation6 + $0xdc8] sm:$0xff] }
  0x9a   :  { %4641 = vmatpush1.bf16.msra.mxu0 %v4640_v18  ;;  %v744_v18 = vld [vmem:[#allocation6 + $0xd48] sm:$0xff]  ;;  %v755_v50 = vld [vmem:[#allocation6 + $0xda0] sm:$0xff]  ;;  %v757_v56 = vld [vmem:[#allocation6 + $0xdb0] sm:$0xff] }
  0x9b   :  { %4769 = vmatpush1.bf16.msra.mxu1 %v4768_v22  ;;  %4643 = vmatprep.subr.bf16.mxu0 %v4642_v23  ;;  %v750_v22 = vld [vmem:[#allocation6 + $0xd78] sm:$0xff]  ;;  %v482_v23 = vld [vmem:[#allocation2 + $0x48] sm:$0x1]  ;;  %v4662_v29 = vpack.c.bf16 %v748_v19, %v744_v18  ;;  %v531_v46 = vsel %vm517_vm1, %v519_v20, %v530_v37  ;;  %v112_v53 = vld [vmem:[#allocation3 + $0x60] sm:$0xff] }
  0x9c   :  { %4771 = vmatprep.subr.bf16.mxu1 %v4770_v27  ;;  %v532_v27 = vrot.slane %v482_v23, 1  ;;  %v764_v58 = vld [vmem:[#allocation6 + $0xde8] sm:$0xff]  ;;  %v149_v59 = vrot.slane %v112_v53, 7  ;;  %v762_v20 = vld [vmem:[#allocation6 + $0xdd8] sm:$0xff]  ;;  %v763_v63 = vld [vmem:[#allocation6 + $0xde0] sm:$0xff] }
  0x9d   :  { %896 = vmatmul.mubr.f32.vlgmr.msra.gmra.mrb[0].mxu0 %v520_v33  ;;  %v761_v0 = vld [vmem:[#allocation6 + $0xdd0] sm:$0xff]  ;;  %v4670_v3 = vpack.c.bf16 %v764_v58, %v760_v57  ;;  %v103_v5 = vld [vmem:[#allocation3 + $0x18] sm:$0xff]  ;;  %v771_v23 = vld [vmem:[#allocation6 + $0xe20] sm:$0xff] }
  0x9e   :  { %4645 = vmatpush1.bf16.msra.mxu0 %v4644_v34  ;;  %1074 = vmatmul.mubr.f32.vlgmr.msra.gmra.mrb[0].mxu1 %v520_v33  ;;  %v4790_v33 = vpack.c.bf16 %v750_v22, %v746_v21  ;;  %v752_v34 = vld [vmem:[#allocation6 + $0xd88] sm:$0xff]  ;;  %201 = vst [vmem:[#allocation2 + $0xa0] sm:$0x1] %v149_v59  ;;  %v765_v4 = vld [vmem:[#allocation6 + $0xdf0] sm:$0xff]  ;;  %v107_v6 = vld [vmem:[#allocation3 + $0x38] sm:$0xff]  ;;  %v136_v14 = vrot.slane %v103_v5, 7 }
  0x9f   :  { %4773 = vmatpush1.bf16.msra.mxu1 %v4772_v35  ;;  %4647 = vmatprep.subr.bf16.mxu0 %v4646_v36  ;;  %v756_v35 = vld [vmem:[#allocation6 + $0xda8] sm:$0xff]  ;;  %v533_v36 = vsel %vm517_vm1, %v522_v51, %v532_v27  ;;  %v4792_v51 = vpack.c.bf16 %v749_v31, %v745_v30  ;;  %v143_v15 = vrot.slane %v107_v6, 7  ;;  %v6586_v18 = vld [vmem:[#allocation3 + $0x10] sm:$0xff]  ;;  %v767_v22 = vld [vmem:[#allocation6 + $0xe00] sm:$0xff]  ;;  %v4800_v27 = vpack.c.bf16 %v765_v4, %v761_v0 }
  0xa0   :  { %4775 = vmatprep.subr.bf16.mxu1 %v4774_v41  ;;  %v758_v41 = vld [vmem:[#allocation6 + $0xdb8] sm:$0xff]  ;;  %901 = vmatprep.mubr.f32.mxu0 %v533_v36  ;;  %v6588_v19 = vld [vmem:[#allocation3 + $0x30] sm:$0xff]  ;;  %184 = vst [vmem:[#allocation2 + $0x18] sm:$0xfe] %v136_v14  ;;  %v135_v25 = vrot.slane %v6586_v18, 7  ;;  %v784_v57 = vld [vmem:[#allocation6 + $0xe88] sm:$0xff] }
  0xa1   :  { %1079 = vmatprep.mubr.f32.mxu1 %v533_v36  ;;  %v4794_v55 = vpack.c.bf16 %v758_v41, %v754_v40  ;;  %902 = vmatmul.mubr.f32.gmra.mrb[2].mxu0 %v531_v46  ;;  %192 = vst [vmem:[#allocation2 + $0x58] sm:$0x1] %v143_v15  ;;  %v141_v26 = vrot.slane %v6588_v19, 7  ;;  %v773_v30 = vld [vmem:[#allocation6 + $0xe30] sm:$0xff]  ;;  %v780_v36 = vld [vmem:[#allocation6 + $0xe68] sm:$0xff]  ;;  %v778_v40 = vld [vmem:[#allocation6 + $0xe58] sm:$0xff] }
  0xa2   :  { %4649 = vmatpush1.bf16.msra.mxu0 %v4648_v47  ;;  %v151_v47 = vrot.slane %v113_v42, 7  ;;  %1080 = vmatmul.mubr.f32.gmra.mrb[2].mxu1 %v531_v46  ;;  %183 = vst [vmem:[#allocation2 + $0x10] sm:$0xfe] %v135_v25  ;;  %v782_v41 = vld [vmem:[#allocation6 + $0xe78] sm:$0xff]  ;;  %v4676_v46 = vpack.c.bf16 %v771_v23, %v767_v22  ;;  %v788_v58 = vld [vmem:[#allocation6 + $0xea8] sm:$0xff]  ;;  %v783_v4 = vld [vmem:[#allocation6 + $0xe80] sm:$0xff] }
  0xa3   :  { %4777 = vmatpush1.bf16.msra.mxu1 %v4776_v48  ;;  %4651 = vmatprep.subr.bf16.mxu0 %v4650_v49  ;;  %v108_v48 = vld [vmem:[#allocation3 + $0x40] sm:$0xff]  ;;  %v4666_v49 = vpack.c.bf16 %v756_v35, %v752_v34  ;;  %v776_v35 = vld [vmem:[#allocation6 + $0xe48] sm:$0xff]  ;;  %191 = vst [vmem:[#allocation2 + $0x50] sm:$0x1] %v141_v26  ;;  %v785_v6 = vld [vmem:[#allocation6 + $0xe90] sm:$0xff] }
  0xa4   :  { %4779 = vmatprep.subr.bf16.mxu1 %v4778_v54  ;;  %v145_v54 = vrot.slane %v108_v48, 7  ;;  %202 = vst [vmem:[#allocation2 + $0xa8] sm:$0x1] %v151_v47  ;;  %v6580_v1 = vsel %vm132_vm0, %v146_v43, %v151_v47  ;;  %v787_v5 = vld [vmem:[#allocation6 + $0xea0] sm:$0xff] }
  0xa5   :  { %v542_v17 = vrot.slane %v6580_v1, 1  ;;  %v791_v23 = vld [vmem:[#allocation6 + $0xec0] sm:$0xff] }
  0xa6   :  { %4653 = vmatpush1.bf16.msra.mxu0 %v4652_v60  ;;  %v766_v60 = vld [vmem:[#allocation6 + $0xdf8] sm:$0xff]  ;;  %193 = vst [vmem:[#allocation2 + $0x60] sm:$0xfe] %v145_v54  ;;  %v6583_v13 = vsel %vm132_vm0, %v145_v54, %v149_v59 }
  0xa7   :  { %4781 = vmatpush1.bf16.msra.mxu1 %v4780_v61  ;;  %4655 = vmatprep.subr.bf16.mxu0 %v4654_v62  ;;  %v4668_v61 = vpack.c.bf16 %v755_v50, %v751_v45  ;;  %v759_v62 = vld [vmem:[#allocation6 + $0xdc0] sm:$0xff]  ;;  %v4798_v7 = vpack.c.bf16 %v766_v60, %v762_v20  ;;  %v539_v32 = vrot.slane %v6583_v13, 1  ;;  %v6599_v45 = vsel %vm132_vm0, %v136_v14, %v143_v15  ;;  %v786_v20 = vld [vmem:[#allocation6 + $0xe98] sm:$0xff] }
  0xa8   :  { %4783 = vmatprep.subr.bf16.mxu1 %v4782_v2  ;;  %v4796_v2 = vpack.c.bf16 %v757_v56, %v753_v52  ;;  %v4672_v21 = vpack.c.bf16 %v763_v63, %v759_v62  ;;  %v779_v50 = vld [vmem:[#allocation6 + $0xe60] sm:$0xff]  ;;  %v777_v52 = vld [vmem:[#allocation6 + $0xe50] sm:$0xff]  ;;  %v528_v59 = vrot.slane %v6599_v45, 1  ;;  %v790_v60 = vld [vmem:[#allocation6 + $0xeb8] sm:$0xff] }
  0xa9   :  { %v781_v56 = vld [vmem:[#allocation6 + $0xe70] sm:$0xff]  ;;  %v794_v15 = vld [vmem:[#allocation6 + $0xed8] sm:$0xff] }
  0xaa   :  { %4657 = vmatpush1.bf16.msra.mxu0 %v4656_v8  ;;  %v768_v8 = vld [vmem:[#allocation6 + $0xe08] sm:$0xff] }
  0xab   :  { %4785 = vmatpush1.bf16.msra.mxu1 %v4784_v10  ;;  %4659 = vmatprep.subr.bf16.mxu0 %v4658_v12  ;;  %v772_v10 = vld [vmem:[#allocation6 + $0xe28] sm:$0xff]  ;;  %v770_v12 = vld [vmem:[#allocation6 + $0xe18] sm:$0xff] }
  0xac   :  { %4787 = vmatprep.subr.bf16.mxu1 %v4786_v16  ;;  %v774_v16 = vld [vmem:[#allocation6 + $0xe38] sm:$0xff] }
  0xad   :  { %v4802_v34 = vpack.c.bf16 %v774_v16, %v770_v12  ;;  %v485_v37 = vld [vmem:[#allocation2 + $0x60] sm:$0xfe]  ;;  %v796_v12 = vld [vmem:[#allocation6 + $0xee8] sm:$0xff]  ;;  %v798_v16 = vld [vmem:[#allocation6 + $0xef8] sm:$0xff] }
  0xae   :  { %4661 = vmatpush1.bf16.msra.mxu0 %v4660_v24  ;;  %v486_v24 = vld [vmem:[#allocation2 + $0x68] sm:$0xfe]  ;;  %v538_v43 = vrot.slane %v485_v37, 1  ;;  %v799_v37 = vld [vmem:[#allocation6 + $0xf00] sm:$0xff] }
  0xaf   :  { %4789 = vmatpush1.bf16.msra.mxu1 %v4788_v28  ;;  %4663 = vmatprep.subr.bf16.mxu0 %v4662_v29  ;;  %v4674_v28 = vpack.c.bf16 %v772_v10, %v768_v8  ;;  %v769_v29 = vld [vmem:[#allocation6 + $0xe10] sm:$0xff]  ;;  %v541_v31 = vrot.slane %v486_v24, 1  ;;  %v792_v10 = vld [vmem:[#allocation6 + $0xec8] sm:$0xff]  ;;  %v795_v24 = vld [vmem:[#allocation6 + $0xee0] sm:$0xff] }
  0xb0   :  { %4791 = vmatprep.subr.bf16.mxu1 %v4790_v33  ;;  %v490_v33 = vld [vmem:[#allocation2 + $0xa8] sm:$0x1]  ;;  %v4804_v47 = vpack.c.bf16 %v773_v30, %v769_v29  ;;  %v540_v53 = vsel %vm517_vm1, %v538_v43, %v539_v32  ;;  %v789_v8 = vld [vmem:[#allocation6 + $0xeb0] sm:$0xff]  ;;  %v4686_v22 = vpack.c.bf16 %v796_v12, %v792_v10  ;;  %v823_v12 = vld [vmem:[#allocation6 + $0xfc0] sm:$0xff] }
  0xb1   :  { %v552_v38 = vrot.slane %v490_v33, 1  ;;  %v543_v42 = vsel %vm517_vm1, %v541_v31, %v542_v17  ;;  %v797_v29 = vld [vmem:[#allocation6 + $0xef0] sm:$0xff]  ;;  %v800_v30 = vld [vmem:[#allocation6 + $0xf08] sm:$0xff]  ;;  %v806_v33 = vld [vmem:[#allocation6 + $0xf38] sm:$0xff] }
  0xb2   :  { %4665 = vmatpush1.bf16.msra.mxu0 %v4664_v44  ;;  %v489_v44 = vld [vmem:[#allocation2 + $0xa0] sm:$0x1]  ;;  %907 = vmatprep.mubr.f32.mxu0 %v543_v42  ;;  %v804_v31 = vld [vmem:[#allocation6 + $0xf28] sm:$0xff] }
  0xb3   :  { %4793 = vmatpush1.bf16.msra.mxu1 %v4792_v51  ;;  %4667 = vmatprep.subr.bf16.mxu0 %v4666_v49  ;;  %v550_v48 = vrot.slane %v489_v44, 1  ;;  %v4678_v51 = vpack.c.bf16 %v780_v36, %v776_v35  ;;  %v775_v49 = vld [vmem:[#allocation6 + $0xe40] sm:$0xff]  ;;  %v553_v54 = vsel %vm517_vm1, %v542_v17, %v552_v38  ;;  %v4684_v17 = vpack.c.bf16 %v787_v5, %v783_v4  ;;  %v808_v43 = vld [vmem:[#allocation6 + $0xf48] sm:$0xff]  ;;  %v821_v4 = vld [vmem:[#allocation6 + $0xfb0] sm:$0xff] }
  0xb4   :  { %4795 = vmatprep.subr.bf16.mxu1 %v4794_v55  ;;  %v4806_v55 = vpack.c.bf16 %v782_v41, %v778_v40  ;;  %1085 = vmatprep.mubr.f32.mxu1 %v543_v42  ;;  %v4680_v62 = vpack.c.bf16 %v779_v50, %v775_v49  ;;  %v4690_v36 = vpack.c.bf16 %v804_v31, %v800_v30  ;;  %v803_v38 = vld [vmem:[#allocation6 + $0xf20] sm:$0xff]  ;;  %v801_v40 = vld [vmem:[#allocation6 + $0xf10] sm:$0xff]  ;;  %v812_v44 = vld [vmem:[#allocation6 + $0xf68] sm:$0xff] }
  0xb5   :  { %908 = vmatmul.mubr.f32.gmra.mrb[4].mxu0 %v540_v53  ;;  %1086 = vmatmul.mubr.f32.gmra.mrb[4].mxu1 %v540_v53  ;;  %v551_v63 = vsel %vm517_vm1, %v539_v32, %v550_v48  ;;  %v802_v32 = vld [vmem:[#allocation6 + $0xf18] sm:$0xff]  ;;  %v805_v42 = vld [vmem:[#allocation6 + $0xf30] sm:$0xff]  ;;  %v4692_v48 = vpack.c.bf16 %v803_v38, %v799_v37  ;;  %v4694_v49 = vpack.c.bf16 %v812_v44, %v808_v43  ;;  %v807_v50 = vld [vmem:[#allocation6 + $0xf40] sm:$0xff] }
  0xb6   :  { %4669 = vmatpush1.bf16.msra.mxu0 %v4668_v61  ;;  %v480_v61 = vld [vmem:[#allocation2 + $0x18] sm:$0xfe]  ;;  %913 = vmatprep.mubr.f32.mxu0 %v553_v54  ;;  %v4818_v41 = vpack.c.bf16 %v806_v33, %v802_v32  ;;  %v809_v53 = vld [vmem:[#allocation6 + $0xf50] sm:$0xff]  ;;  %v824_v5 = vld [vmem:[#allocation6 + $0xfc8] sm:$0xff] }
  0xb7   :  { %4797 = vmatpush1.bf16.msra.mxu1 %v4796_v2  ;;  %4671 = vmatprep.subr.bf16.mxu0 %v4670_v3  ;;  %v527_v0 = vrot.slane %v480_v61, 1  ;;  %v4808_v2 = vpack.c.bf16 %v781_v56, %v777_v52  ;;  %v4682_v3 = vpack.c.bf16 %v788_v58, %v784_v57  ;;  %v811_v52 = vld [vmem:[#allocation6 + $0xf60] sm:$0xff]  ;;  %v816_v56 = vld [vmem:[#allocation6 + $0xf88] sm:$0xff]  ;;  %v818_v58 = vld [vmem:[#allocation6 + $0xf98] sm:$0xff] }
  0xb8   :  { %4799 = vmatprep.subr.bf16.mxu1 %v4798_v7  ;;  %v4810_v7 = vpack.c.bf16 %v790_v60, %v786_v20  ;;  %1091 = vmatprep.mubr.f32.mxu1 %v553_v54  ;;  %v820_v57 = vld [vmem:[#allocation6 + $0xfa8] sm:$0xff]  ;;  %v822_v20 = vld [vmem:[#allocation6 + $0xfb8] sm:$0xff]  ;;  %v4696_v60 = vpack.c.bf16 %v811_v52, %v807_v50  ;;  %v231_v50 = vld [vmem:[#allocation6 + $0x50] sm:$0xff] }
  0xb9   :  { %v529_v14 = vsel %vm517_vm1, %v527_v0, %v528_v59  ;;  %914 = vmatmul.mubr.f32.gmra.mrb[6].mxu0 %v551_v63  ;;  %1092 = vmatmul.mubr.f32.gmra.mrb[6].mxu1 %v551_v63  ;;  %v815_v63 = vld [vmem:[#allocation6 + $0xf80] sm:$0xff]  ;;  %v228_v30 = vld [vmem:[#allocation6 + $0x38] sm:$0xff]  ;;  %v230_v37 = vld [vmem:[#allocation6 + $0x48] sm:$0xff] }
  0xba   :  { %4673 = vmatpush1.bf16.msra.mxu0 %v4672_v21  ;;  %984 = vmatprep.mubr.f32.mxu0 %v529_v14  ;;  %v4812_v21 = vpack.c.bf16 %v789_v8, %v785_v6  ;;  %v819_v0 = vld [vmem:[#allocation6 + $0xfa0] sm:$0xff]  ;;  %v828_v6 = vld [vmem:[#allocation6 + $0xfe8] sm:$0xff]  ;;  %v830_v8 = vld [vmem:[#allocation6 + $0xff8] sm:$0xff] }
  0xbb   :  { %4801 = vmatpush1.bf16.msra.mxu1 %v4800_v27  ;;  %4675 = vmatprep.subr.bf16.mxu0 %v4674_v28  ;;  %v793_v27 = vld [vmem:[#allocation6 + $0xed0] sm:$0xff]  ;;  %v4814_v28 = vpack.c.bf16 %v798_v16, %v794_v15  ;;  %v4700_v10 = vpack.c.bf16 %v819_v0, %v815_v63  ;;  %v4702_v15 = vpack.c.bf16 %v828_v6, %v824_v5  ;;  %v827_v16 = vld [vmem:[#allocation6 + $0xfe0] sm:$0xff]  ;;  %v234_v38 = vld [vmem:[#allocation6 + $0x68] sm:$0xff] }
  0xbc   :  { %4803 = vmatprep.subr.bf16.mxu1 %v4802_v34  ;;  %1162 = vmatprep.mubr.f32.mxu1 %v529_v14  ;;  %v4688_v34 = vpack.c.bf16 %v795_v24, %v791_v23  ;;  %v4816_v35 = vpack.c.bf16 %v797_v29, %v793_v27  ;;  %v829_v24 = vld [vmem:[#allocation6 + $0xff0] sm:$0xff]  ;;  %v222_v27 = vld [vmem:[#allocation6 + $0x8] sm:$0xff]  ;;  %v224_v29 = vld [vmem:[#allocation6 + $0x18] sm:$0xff]  ;;  %v4704_v31 = vpack.c.bf16 %v827_v16, %v823_v12 }
  0xbd   :  { %v235_v52 = vld [vmem:[#allocation6 + $0x70] sm:$0xff]  ;;  %v246_v16 = vld [vmem:[#allocation6 + $0xc8] sm:$0xff] }
  0xbe   :  { %4677 = vmatpush1.bf16.msra.mxu0 %v4676_v46  ;;  %v810_v46 = vld [vmem:[#allocation6 + $0xf58] sm:$0xff]  ;;  %v110_v5 = vld [vmem:[#allocation3 + $0x50] sm:$0xff]  ;;  %v4968_v6 = vpack.c.bf16 %v235_v52, %v231_v50  ;;  %v262_v52 = vld [vmem:[#allocation6 + $0x148] sm:$0xff] }
  0xbf   :  { %4805 = vmatpush1.bf16.msra.mxu1 %v4804_v47  ;;  %4679 = vmatprep.subr.bf16.mxu0 %v4678_v51  ;;  %v814_v47 = vld [vmem:[#allocation6 + $0xf78] sm:$0xff]  ;;  %v4820_v51 = vpack.c.bf16 %v805_v42, %v801_v40  ;;  %v114_v12 = vld [vmem:[#allocation3 + $0x70] sm:$0xff] }
  0xc0   :  { %4807 = vmatprep.subr.bf16.mxu1 %v4806_v55  ;;  %v4822_v54 = vpack.c.bf16 %v814_v47, %v810_v46  ;;  %v813_v55 = vld [vmem:[#allocation6 + $0xf70] sm:$0xff]  ;;  %v232_v40 = vld [vmem:[#allocation6 + $0x58] sm:$0xff]  ;;  %v229_v46 = vld [vmem:[#allocation6 + $0x40] sm:$0xff] }
  0xc1   :  { %v4824_v61 = vpack.c.bf16 %v813_v55, %v809_v53  ;;  %v484_v42 = vld [vmem:[#allocation2 + $0x58] sm:$0x1]  ;;  %v233_v47 = vld [vmem:[#allocation6 + $0x60] sm:$0xff]  ;;  %v483_v53 = vld [vmem:[#allocation2 + $0x50] sm:$0x1] }
  0xc2   :  { %4681 = vmatpush1.bf16.msra.mxu0 %v4680_v62  ;;  %v4698_v62 = vpack.c.bf16 %v820_v57, %v816_v56  ;;  %v238_v55 = vld [vmem:[#allocation6 + $0x88] sm:$0xff]  ;;  %v534_v57 = vrot.slane %v483_v53, 1  ;;  %v4840_v0 = vpack.c.bf16 %v233_v47, %v229_v46  ;;  %v255_v46 = vld [vmem:[#allocation6 + $0x110] sm:$0xff] }
  0xc3   :  { %4809 = vmatpush1.bf16.msra.mxu1 %v4808_v2  ;;  %4683 = vmatprep.subr.bf16.mxu0 %v4682_v3  ;;  %v817_v2 = vld [vmem:[#allocation6 + $0xf90] sm:$0xff]  ;;  %v4826_v3 = vpack.c.bf16 %v822_v20, %v818_v58  ;;  %v242_v56 = vld [vmem:[#allocation6 + $0xa8] sm:$0xff]  ;;  %v111_v58 = vld [vmem:[#allocation3 + $0x58] sm:$0xff] }
  0xc4   :  { %4811 = vmatprep.subr.bf16.mxu1 %v4810_v7  ;;  %v826_v7 = vld [vmem:[#allocation6 + $0xfd8] sm:$0xff]  ;;  %v4828_v14 = vpack.c.bf16 %v821_v4, %v817_v2  ;;  %v148_v63 = vrot.slane %v111_v58, 7  ;;  %v237_v2 = vld [vmem:[#allocation6 + $0x80] sm:$0xff]  ;;  %v259_v47 = vld [vmem:[#allocation6 + $0x130] sm:$0xff] }
  0xc5   :  { %v4830_v23 = vpack.c.bf16 %v830_v8, %v826_v7  ;;  %v240_v20 = vld [vmem:[#allocation6 + $0x98] sm:$0xff]  ;;  %v4842_v7 = vpack.c.bf16 %v242_v56, %v238_v55  ;;  %v241_v8 = vld [vmem:[#allocation6 + $0xa0] sm:$0xff]  ;;  %v266_v53 = vld [vmem:[#allocation6 + $0x168] sm:$0xff] }
  0xc6   :  { %4685 = vmatpush1.bf16.msra.mxu0 %v4684_v17  ;;  %v825_v17 = vld [vmem:[#allocation6 + $0xfd0] sm:$0xff]  ;;  %196 = vst [vmem:[#allocation2 + $0x78] sm:$0xfe] %v148_v63  ;;  %v264_v56 = vld [vmem:[#allocation6 + $0x158] sm:$0xff] }
  0xc7   :  { %4813 = vmatpush1.bf16.msra.mxu1 %v4812_v21  ;;  %4687 = vmatprep.subr.bf16.mxu0 %v4686_v22  ;;  %v6613_v21 = vsel %vm132_vm0, %v135_v25, %v141_v26  ;;  %v479_v22 = vld [vmem:[#allocation2 + $0x10] sm:$0xfe]  ;;  %v4832_v19 = vpack.c.bf16 %v829_v24, %v825_v17  ;;  %v225_v25 = vld [vmem:[#allocation6 + $0x20] sm:$0xff]  ;;  %v250_v17 = vld [vmem:[#allocation6 + $0xe8] sm:$0xff] }
  0xc8   :  { %4815 = vmatprep.subr.bf16.mxu1 %v4814_v28  ;;  %v226_v28 = vld [vmem:[#allocation6 + $0x28] sm:$0xff]  ;;  %v524_v32 = vrot.slane %v479_v22, 1  ;;  %v525_v33 = vrot.slane %v6613_v21, 1  ;;  %v223_v26 = vld [vmem:[#allocation6 + $0x10] sm:$0xff]  ;;  %v153_v22 = vrot.slane %v114_v12, 7  ;;  %v252_v24 = vld [vmem:[#allocation6 + $0xf8] sm:$0xff] }
  0xc9   :  { %v4834_v18 = vpack.c.bf16 %v226_v28, %v222_v27  ;;  %v4844_v27 = vpack.c.bf16 %v241_v8, %v237_v2  ;;  %v261_v2 = vld [vmem:[#allocation6 + $0x140] sm:$0xff]  ;;  %v267_v8 = vld [vmem:[#allocation6 + $0x170] sm:$0xff]  ;;  %v274_v12 = vld [vmem:[#allocation6 + $0x1a8] sm:$0xff] }
  0xca   :  { %4689 = vmatpush1.bf16.msra.mxu0 %v4688_v34  ;;  %v221_v34 = vld [vmem:[#allocation6] sm:$0xff]  ;;  %v526_v43 = vsel %vm517_vm1, %v524_v32, %v525_v33  ;;  %203 = vst [vmem:[#allocation2 + $0xb0] sm:$0x1] %v153_v22 }
  0xcb   :  { %4817 = vmatpush1.bf16.msra.mxu1 %v4816_v35  ;;  %4691 = vmatprep.subr.bf16.mxu0 %v4690_v36  ;;  %v4962_v35 = vpack.c.bf16 %v228_v30, %v224_v29  ;;  %v227_v36 = vld [vmem:[#allocation6 + $0x30] sm:$0xff]  ;;  %v4836_v44 = vpack.c.bf16 %v225_v25, %v221_v34  ;;  %v4846_v30 = vpack.c.bf16 %v250_v17, %v246_v16  ;;  %v249_v32 = vld [vmem:[#allocation6 + $0xe0] sm:$0xff]  ;;  %v254_v34 = vld [vmem:[#allocation6 + $0x108] sm:$0xff] }
  0xcc   :  { %4819 = vmatprep.subr.bf16.mxu1 %v4818_v41  ;;  %v236_v41 = vld [vmem:[#allocation6 + $0x78] sm:$0xff]  ;;  %v258_v25 = vld [vmem:[#allocation6 + $0x128] sm:$0xff]  ;;  %v269_v16 = vld [vmem:[#allocation6 + $0x180] sm:$0xff] }
  0xce   :  { %4693 = vmatpush1.bf16.msra.mxu0 %v4692_v48  ;;  %v536_v48 = vrot.slane %v484_v42, 1  ;;  %v488_v42 = vld [vmem:[#allocation2 + $0x78] sm:$0xfe] }
  0xcf   :  { %4821 = vmatpush1.bf16.msra.mxu1 %v4820_v51  ;;  %4695 = vmatprep.subr.bf16.mxu0 %v4694_v49  ;;  %v4964_v51 = vpack.c.bf16 %v227_v36, %v223_v26  ;;  %v4838_v49 = vpack.c.bf16 %v234_v38, %v230_v37  ;;  %v260_v36 = vld [vmem:[#allocation6 + $0x138] sm:$0xff] }
  0xd0   :  { %4823 = vmatprep.subr.bf16.mxu1 %v4822_v54  ;;  %v4966_v54 = vpack.c.bf16 %v236_v41, %v232_v40  ;;  %v253_v40 = vld [vmem:[#allocation6 + $0x100] sm:$0xff] }
  0xd1   :  { %v257_v41 = vld [vmem:[#allocation6 + $0x120] sm:$0xff] }
  0xd2   :  { %4697 = vmatpush1.bf16.msra.mxu0 %v4696_v60  ;;  %v244_v60 = vld [vmem:[#allocation6 + $0xb8] sm:$0xff] }
  0xd3   :  { %4825 = vmatpush1.bf16.msra.mxu1 %v4824_v61  ;;  %4699 = vmatprep.subr.bf16.mxu0 %v4698_v62  ;;  %v537_v61 = vsel %vm517_vm1, %v528_v59, %v536_v48  ;;  %v115_v62 = vld [vmem:[#allocation3 + $0x78] sm:$0xff]  ;;  %v4970_v59 = vpack.c.bf16 %v244_v60, %v240_v20  ;;  %v547_v48 = vrot.slane %v488_v42, 1  ;;  %v491_v60 = vld [vmem:[#allocation2 + $0xb0] sm:$0x1]  ;;  %v286_v42 = vld [vmem:[#allocation6 + $0x208] sm:$0xff] }
  0xd4   :  { %4827 = vmatprep.subr.bf16.mxu1 %v4826_v3  ;;  %v535_v3 = vsel %vm517_vm1, %v525_v33, %v534_v57  ;;  %v155_v4 = vrot.slane %v115_v62, 7  ;;  %v247_v33 = vld [vmem:[#allocation6 + $0xd0] sm:$0xff]  ;;  %v268_v57 = vld [vmem:[#allocation6 + $0x178] sm:$0xff]  ;;  %v4980_v62 = vpack.c.bf16 %v259_v47, %v255_v46 }
  0xd5   :  { %v292_v46 = vld [vmem:[#allocation6 + $0x238] sm:$0xff] }
  0xd6   :  { %4701 = vmatpush1.bf16.msra.mxu0 %v4700_v10  ;;  %v239_v10 = vld [vmem:[#allocation6 + $0x90] sm:$0xff]  ;;  %204 = vst [vmem:[#allocation2 + $0xb8] sm:$0x1] %v155_v4  ;;  %v6622_v28 = vsel %vm132_vm0, %v148_v63, %v155_v4  ;;  %v554_v63 = vrot.slane %v491_v60, 1 }
  0xd7   :  { %4829 = vmatpush1.bf16.msra.mxu1 %v4828_v14  ;;  %4703 = vmatprep.subr.bf16.mxu0 %v4702_v15  ;;  %v147_v14 = vrot.slane %v110_v5, 7  ;;  %v243_v15 = vld [vmem:[#allocation6 + $0xb0] sm:$0xff]  ;;  %v548_v37 = vrot.slane %v6622_v28, 1 }
  0xd8   :  { %4831 = vmatprep.subr.bf16.mxu1 %v4830_v23  ;;  %v248_v23 = vld [vmem:[#allocation6 + $0xd8] sm:$0xff]  ;;  %v4972_v29 = vpack.c.bf16 %v243_v15, %v239_v10  ;;  %v263_v4 = vld [vmem:[#allocation6 + $0x150] sm:$0xff]  ;;  %v270_v10 = vld [vmem:[#allocation6 + $0x188] sm:$0xff] }
  0xd9   :  { %195 = vst [vmem:[#allocation2 + $0x70] sm:$0xfe] %v147_v14  ;;  %v6625_v26 = vsel %vm132_vm0, %v147_v14, %v153_v22  ;;  %v549_v58 = vsel %vm517_vm1, %v547_v48, %v548_v37  ;;  %v272_v14 = vld [vmem:[#allocation6 + $0x198] sm:$0xff]  ;;  %v4984_v22 = vpack.c.bf16 %v267_v8, %v263_v4  ;;  %v302_v4 = vld [vmem:[#allocation6 + $0x288] sm:$0xff] }
  0xda   :  { %4705 = vmatpush1.bf16.msra.mxu0 %v4704_v31  ;;  %v245_v31 = vld [vmem:[#allocation6 + $0xc0] sm:$0xff] }
  0xdb   :  { %4833 = vmatpush1.bf16.msra.mxu1 %v4832_v19  ;;  %4835 = vmatprep.subr.bf16.mxu0 %v4834_v18  ;;  %v4974_v19 = vpack.c.bf16 %v252_v24, %v248_v23  ;;  %v251_v18 = vld [vmem:[#allocation6 + $0xf0] sm:$0xff]  ;;  %v4848_v38 = vpack.c.bf16 %v249_v32, %v245_v31  ;;  %v4858_v23 = vpack.c.bf16 %v274_v12, %v270_v10  ;;  %v273_v24 = vld [vmem:[#allocation6 + $0x1a0] sm:$0xff]  ;;  %v278_v32 = vld [vmem:[#allocation6 + $0x1c8] sm:$0xff] }
  0xdc   :  { %4963 = vmatprep.subr.bf16.mxu1 %v4962_v35  ;;  %v256_v35 = vld [vmem:[#allocation6 + $0x118] sm:$0xff]  ;;  %v275_v31 = vld [vmem:[#allocation6 + $0x1b0] sm:$0xff] }
  0xdd   :  { %985 = vmatmul.mubr.f32.vlgmr.msra.gmra.mrb[0].mxu0 %v526_v43  ;;  %v4978_v50 = vpack.c.bf16 %v260_v36, %v256_v35  ;;  %v277_v36 = vld [vmem:[#allocation6 + $0x1c0] sm:$0xff] }
  0xde   :  { %1163 = vmatmul.mubr.f32.vlgmr.msra.gmra.mrb[0].mxu1 %v526_v43  ;;  %4837 = vmatpush1.bf16.msra.mxu0 %v4836_v44  ;;  %v4976_v43 = vpack.c.bf16 %v251_v18, %v247_v33  ;;  %v4850_v44 = vpack.c.bf16 %v258_v25, %v254_v34  ;;  %v282_v33 = vld [vmem:[#allocation6 + $0x1e8] sm:$0xff]  ;;  %v284_v18 = vld [vmem:[#allocation6 + $0x1f8] sm:$0xff]  ;;  %v4860_v34 = vpack.c.bf16 %v273_v24, %v269_v16 }
  0xdf   :  { %4965 = vmatpush1.bf16.msra.mxu1 %v4964_v51  ;;  %4839 = vmatprep.subr.bf16.mxu0 %v4838_v49  ;;  %v545_v51 = vrot.slane %v6625_v26, 1  ;;  %v492_v49 = vld [vmem:[#allocation2 + $0xb8] sm:$0x1]  ;;  %v4862_v35 = vpack.c.bf16 %v282_v33, %v278_v32  ;;  %v309_v32 = vld [vmem:[#allocation6 + $0x2c0] sm:$0xff] }
  0xe0   :  { %4967 = vmatprep.subr.bf16.mxu1 %v4966_v54  ;;  %990 = vmatprep.mubr.f32.mxu0 %v537_v61  ;;  %v487_v54 = vld [vmem:[#allocation2 + $0x70] sm:$0xfe]  ;;  %v556_v55 = vrot.slane %v492_v49, 1  ;;  %v285_v49 = vld [vmem:[#allocation6 + $0x200] sm:$0xff]  ;;  %v312_v24 = vld [vmem:[#allocation6 + $0x2d8] sm:$0xff] }
  0xe1   :  { %1168 = vmatprep.mubr.f32.mxu1 %v537_v61  ;;  %991 = vmatmul.mubr.f32.gmra.mrb[2].mxu0 %v535_v3  ;;  %v544_v20 = vrot.slane %v487_v54, 1  ;;  %v4852_v61 = vpack.c.bf16 %v257_v41, %v253_v40  ;;  %v555_v17 = vsel %vm517_vm1, %v545_v51, %v554_v63  ;;  %v283_v41 = vld [vmem:[#allocation6 + $0x1f0] sm:$0xff]  ;;  %v297_v63 = vld [vmem:[#allocation6 + $0x260] sm:$0xff] }
  0xe2   :  { %4841 = vmatpush1.bf16.msra.mxu0 %v4840_v0  ;;  %1169 = vmatmul.mubr.f32.gmra.mrb[2].mxu1 %v535_v3  ;;  %v4854_v0 = vpack.c.bf16 %v266_v53, %v262_v52  ;;  %v265_v3 = vld [vmem:[#allocation6 + $0x160] sm:$0xff]  ;;  %v287_v52 = vld [vmem:[#allocation6 + $0x210] sm:$0xff] }
  0xe3   :  { %4969 = vmatpush1.bf16.msra.mxu1 %v4968_v6  ;;  %4843 = vmatprep.subr.bf16.mxu0 %v4842_v7  ;;  %v546_v5 = vsel %vm517_vm1, %v544_v20, %v545_v51  ;;  %v557_v6 = vsel %vm517_vm1, %v548_v37, %v556_v55  ;;  %v4982_v7 = vpack.c.bf16 %v268_v57, %v264_v56  ;;  %v281_v37 = vld [vmem:[#allocation6 + $0x1e0] sm:$0xff]  ;;  %v291_v54 = vld [vmem:[#allocation6 + $0x230] sm:$0xff]  ;;  %v294_v55 = vld [vmem:[#allocation6 + $0x248] sm:$0xff] }
  0xe4   :  { %4971 = vmatprep.subr.bf16.mxu1 %v4970_v59  ;;  %996 = vmatprep.mubr.f32.mxu0 %v549_v58  ;;  %v276_v59 = vld [vmem:[#allocation6 + $0x1b8] sm:$0xff]  ;;  %v4856_v15 = vpack.c.bf16 %v265_v3, %v261_v2  ;;  %v4864_v47 = vpack.c.bf16 %v281_v37, %v277_v36  ;;  %v298_v56 = vld [vmem:[#allocation6 + $0x268] sm:$0xff]  ;;  %v4996_v60 = vpack.c.bf16 %v291_v54, %v287_v52  ;;  %v299_v3 = vld [vmem:[#allocation6 + $0x270] sm:$0xff] }
  0xe5   :  { %1174 = vmatprep.mubr.f32.mxu1 %v549_v58  ;;  %997 = vmatmul.mubr.f32.gmra.mrb[4].mxu0 %v546_v5  ;;  %v296_v57 = vld [vmem:[#allocation6 + $0x258] sm:$0xff]  ;;  %v313_v33 = vld [vmem:[#allocation6 + $0x2e0] sm:$0xff] }
  0xe6   :  { %4845 = vmatpush1.bf16.msra.mxu0 %v4844_v27  ;;  %1175 = vmatmul.mubr.f32.gmra.mrb[4].mxu1 %v546_v5  ;;  %v271_v27 = vld [vmem:[#allocation6 + $0x190] sm:$0xff]  ;;  %v300_v58 = vld [vmem:[#allocation6 + $0x278] sm:$0xff]  ;;  %v306_v5 = vld [vmem:[#allocation6 + $0x2a8] sm:$0xff] }
  0xe7   :  { %4973 = vmatpush1.bf16.msra.mxu1 %v4972_v29  ;;  %4847 = vmatprep.subr.bf16.mxu0 %v4846_v30  ;;  %v206_v29 = vld [vmem:[#allocation2 + $0x8] sm:$0xff]  ;;  %v4986_v30 = vpack.c.bf16 %v276_v59, %v272_v14  ;;  %v4988_v25 = vpack.c.bf16 %v275_v31, %v271_v27  ;;  %v4998_v2 = vpack.c.bf16 %v300_v58, %v296_v57  ;;  %v301_v14 = vld [vmem:[#allocation6 + $0x280] sm:$0xff]  ;;  %v316_v27 = vld [vmem:[#allocation6 + $0x2f8] sm:$0xff] }
  0xe8   :  { %4975 = vmatprep.subr.bf16.mxu1 %v4974_v19  ;;  %1002 = vmatprep.mubr.f32.mxu0 %v557_v6  ;;  %v280_v19 = vld [vmem:[#allocation6 + $0x1d8] sm:$0xff]  ;;  %v4874_v12 = vpack.c.bf16 %v306_v5, %v302_v4  ;;  %v305_v59 = vld [vmem:[#allocation6 + $0x2a0] sm:$0xff]  ;;  %v327_v57 = vld [vmem:[#allocation6 + $0x350] sm:$0xff] }
  0xe9   :  { %1180 = vmatprep.mubr.f32.mxu1 %v557_v6  ;;  %1003 = vmatmul.mubr.f32.gmra.mrb[6].mxu0 %v555_v17  ;;  %v4990_v40 = vpack.c.bf16 %v284_v18, %v280_v19  ;;  %v304_v6 = vld [vmem:[#allocation6 + $0x298] sm:$0xff]  ;;  %v311_v19 = vld [vmem:[#allocation6 + $0x2d0] sm:$0xff]  ;;  %v5006_v18 = vpack.c.bf16 %v316_v27, %v312_v24  ;;  %v333_v4 = vld [vmem:[#allocation6 + $0x380] sm:$0xff] }
  0xea   :  { %4849 = vmatpush1.bf16.msra.mxu0 %v4848_v38  ;;  %1181 = vmatmul.mubr.f32.gmra.mrb[6].mxu1 %v555_v17  ;;  %v279_v38 = vld [vmem:[#allocation6 + $0x1d0] sm:$0xff]  ;;  %v320_v36 = vld [vmem:[#allocation6 + $0x318] sm:$0xff]  ;;  %v337_v5 = vld [vmem:[#allocation6 + $0x3a0] sm:$0xff] }
  0xeb   :  { %4977 = vmatpush1.bf16.msra.mxu1 %v4976_v43  ;;  %4851 = vmatprep.subr.bf16.mxu0 %v4850_v44  ;;  %v290_v43 = vld [vmem:[#allocation6 + $0x228] sm:$0xff]  ;;  %v288_v44 = vld [vmem:[#allocation6 + $0x218] sm:$0xff]  ;;  %v4992_v48 = vpack.c.bf16 %v283_v41, %v279_v38  ;;  %v307_v17 = vld [vmem:[#allocation6 + $0x2b0] sm:$0xff]  ;;  %v4880_v38 = vpack.c.bf16 %v313_v33, %v309_v32 }
  0xec   :  { %4979 = vmatprep.subr.bf16.mxu1 %v4978_v50  ;;  %1251 = vmatprep.mubr.f32.mxu0 %v206_v29  ;;  %v4866_v51 = vpack.c.bf16 %v290_v43, %v286_v42  ;;  %v289_v50 = vld [vmem:[#allocation6 + $0x220] sm:$0xff]  ;;  %v4994_v53 = vpack.c.bf16 %v292_v46, %v288_v44  ;;  %v324_v37 = vld [vmem:[#allocation6 + $0x338] sm:$0xff]  ;;  %v319_v44 = vld [vmem:[#allocation6 + $0x310] sm:$0xff] }
  0xed   :  { %1429 = vmatprep.mubr.f32.mxu1 %v206_v29  ;;  %v4868_v20 = vpack.c.bf16 %v289_v50, %v285_v49  ;;  %v4876_v29 = vpack.c.bf16 %v305_v59, %v301_v14  ;;  %v317_v42 = vld [vmem:[#allocation6 + $0x300] sm:$0xff]  ;;  %v5010_v46 = vpack.c.bf16 %v324_v37, %v320_v36  ;;  %v328_v49 = vld [vmem:[#allocation6 + $0x358] sm:$0xff]  ;;  %v343_v24 = vld [vmem:[#allocation6 + $0x3d0] sm:$0xff] }
  0xee   :  { %4853 = vmatpush1.bf16.msra.mxu0 %v4852_v61  ;;  %v4870_v61 = vpack.c.bf16 %v298_v56, %v294_v55  ;;  %v321_v43 = vld [vmem:[#allocation6 + $0x320] sm:$0xff]  ;;  %v332_v50 = vld [vmem:[#allocation6 + $0x378] sm:$0xff]  ;;  %v351_v36 = vld [vmem:[#allocation6 + $0x410] sm:$0xff] }
  0xef   :  { %4981 = vmatpush1.bf16.msra.mxu1 %v4980_v62  ;;  %4855 = vmatprep.subr.bf16.mxu0 %v4854_v0  ;;  %v293_v62 = vld [vmem:[#allocation6 + $0x240] sm:$0xff]  ;;  %v295_v0 = vld [vmem:[#allocation6 + $0x250] sm:$0xff]  ;;  %v4884_v52 = vpack.c.bf16 %v321_v43, %v317_v42  ;;  %v5014_v58 = vpack.c.bf16 %v332_v50, %v328_v49  ;;  %v344_v14 = vld [vmem:[#allocation6 + $0x3d8] sm:$0xff] }
  0xf0   :  { %4983 = vmatprep.subr.bf16.mxu1 %v4982_v7  ;;  %v308_v7 = vld [vmem:[#allocation6 + $0x2b8] sm:$0xff]  ;;  %v4872_v8 = vpack.c.bf16 %v297_v63, %v293_v62  ;;  %v5000_v10 = vpack.c.bf16 %v299_v3, %v295_v0  ;;  %v325_v55 = vld [vmem:[#allocation6 + $0x340] sm:$0xff]  ;;  %v359_v50 = vld [vmem:[#allocation6 + $0x450] sm:$0xff] }
  0xf1   :  { %v5002_v16 = vpack.c.bf16 %v308_v7, %v304_v6  ;;  %v329_v56 = vld [vmem:[#allocation6 + $0x360] sm:$0xff]  ;;  %v336_v62 = vld [vmem:[#allocation6 + $0x398] sm:$0xff]  ;;  %v335_v6 = vld [vmem:[#allocation6 + $0x390] sm:$0xff] }
  0xf2   :  { %4857 = vmatpush1.bf16.msra.mxu0 %v4856_v15  ;;  %v303_v15 = vld [vmem:[#allocation6 + $0x290] sm:$0xff]  ;;  %v340_v63 = vld [vmem:[#allocation6 + $0x3b8] sm:$0xff]  ;;  %v4888_v0 = vpack.c.bf16 %v329_v56, %v325_v55  ;;  %v361_v49 = vld [vmem:[#allocation6 + $0x460] sm:$0xff] }
  0xf3   :  { %4985 = vmatpush1.bf16.msra.mxu1 %v4984_v22  ;;  %4859 = vmatprep.subr.bf16.mxu0 %v4858_v23  ;;  %v310_v22 = vld [vmem:[#allocation6 + $0x2c8] sm:$0xff]  ;;  %v5018_v7 = vpack.c.bf16 %v340_v63, %v336_v62  ;;  %v348_v59 = vld [vmem:[#allocation6 + $0x3f8] sm:$0xff]  ;;  %v369_v62 = vld [vmem:[#allocation6 + $0x4a0] sm:$0xff] }
  0xf4   :  { %4987 = vmatprep.subr.bf16.mxu1 %v4986_v30  ;;  %v314_v23 = vld [vmem:[#allocation6 + $0x2e8] sm:$0xff]  ;;  %v5004_v30 = vpack.c.bf16 %v307_v17, %v303_v15  ;;  %v4892_v15 = vpack.c.bf16 %v337_v5, %v333_v4  ;;  %v5022_v27 = vpack.c.bf16 %v348_v59, %v344_v14  ;;  %v352_v32 = vld [vmem:[#allocation6 + $0x418] sm:$0xff]  ;;  %v367_v63 = vld [vmem:[#allocation6 + $0x490] sm:$0xff] }
  0xf5   :  { %v4878_v31 = vpack.c.bf16 %v314_v23, %v310_v22  ;;  %v341_v22 = vld [vmem:[#allocation6 + $0x3c0] sm:$0xff]  ;;  %v356_v33 = vld [vmem:[#allocation6 + $0x438] sm:$0xff]  ;;  %v370_v55 = vld [vmem:[#allocation6 + $0x4a8] sm:$0xff] }
  0xf6   :  { %4861 = vmatpush1.bf16.msra.mxu0 %v4860_v34  ;;  %v315_v34 = vld [vmem:[#allocation6 + $0x2f0] sm:$0xff]  ;;  %v345_v23 = vld [vmem:[#allocation6 + $0x3e0] sm:$0xff]  ;;  %v5026_v37 = vpack.c.bf16 %v356_v33, %v352_v32  ;;  %v360_v42 = vld [vmem:[#allocation6 + $0x458] sm:$0xff] }
  0xf7   :  { %4989 = vmatpush1.bf16.msra.mxu1 %v4988_v25  ;;  %4863 = vmatprep.subr.bf16.mxu0 %v4862_v35  ;;  %v318_v25 = vld [vmem:[#allocation6 + $0x308] sm:$0xff]  ;;  %v364_v43 = vld [vmem:[#allocation6 + $0x478] sm:$0xff]  ;;  %v373_v59 = vld [vmem:[#allocation6 + $0x4c0] sm:$0xff] }
  0xf8   :  { %4991 = vmatprep.subr.bf16.mxu1 %v4990_v40  ;;  %v322_v35 = vld [vmem:[#allocation6 + $0x328] sm:$0xff]  ;;  %v5008_v40 = vpack.c.bf16 %v315_v34, %v311_v19  ;;  %v4896_v19 = vpack.c.bf16 %v345_v23, %v341_v22  ;;  %v368_v56 = vld [vmem:[#allocation6 + $0x498] sm:$0xff]  ;;  %v379_v22 = vld [vmem:[#allocation6 + $0x4f0] sm:$0xff] }
  0xf9   :  { %v4882_v41 = vpack.c.bf16 %v322_v35, %v318_v25  ;;  %v349_v25 = vld [vmem:[#allocation6 + $0x400] sm:$0xff]  ;;  %v378_v4 = vld [vmem:[#allocation6 + $0x4e8] sm:$0xff]  ;;  %v376_v5 = vld [vmem:[#allocation6 + $0x4d8] sm:$0xff] }
  0xfa   :  { %4865 = vmatpush1.bf16.msra.mxu0 %v4864_v47  ;;  %v323_v47 = vld [vmem:[#allocation6 + $0x330] sm:$0xff]  ;;  %v353_v35 = vld [vmem:[#allocation6 + $0x420] sm:$0xff]  ;;  %v382_v23 = vld [vmem:[#allocation6 + $0x508] sm:$0xff] }
  0xfb   :  { %4993 = vmatpush1.bf16.msra.mxu1 %v4992_v48  ;;  %4867 = vmatprep.subr.bf16.mxu0 %v4866_v51  ;;  %v326_v48 = vld [vmem:[#allocation6 + $0x348] sm:$0xff]  ;;  %v381_v33 = vld [vmem:[#allocation6 + $0x500] sm:$0xff] }
  0xfc   :  { %4995 = vmatprep.subr.bf16.mxu1 %v4994_v53  ;;  %v330_v51 = vld [vmem:[#allocation6 + $0x368] sm:$0xff]  ;;  %v5012_v53 = vpack.c.bf16 %v323_v47, %v319_v44  ;;  %v205_v44 = vld [vmem:[#allocation2] sm:$0xff] }
  0xfd   :  { %v4886_v54 = vpack.c.bf16 %v330_v51, %v326_v48  ;;  %v357_v51 = vld [vmem:[#allocation6 + $0x440] sm:$0xff] }
  0xfe   :  { %4869 = vmatpush1.bf16.msra.mxu0 %v4868_v20  ;;  %v331_v20 = vld [vmem:[#allocation6 + $0x370] sm:$0xff] }
  0xff   :  { %4997 = vmatpush1.bf16.msra.mxu1 %v4996_v60  ;;  %4871 = vmatprep.subr.bf16.mxu0 %v4870_v61  ;;  %v334_v60 = vld [vmem:[#allocation6 + $0x388] sm:$0xff] }
 0x100   :  { %4999 = vmatprep.subr.bf16.mxu1 %v4998_v2  ;;  %v338_v61 = vld [vmem:[#allocation6 + $0x3a8] sm:$0xff]  ;;  %v5016_v2 = vpack.c.bf16 %v331_v20, %v327_v57  ;;  %v372_v57 = vld [vmem:[#allocation6 + $0x4b8] sm:$0xff] }
 0x101   :  { %v4890_v3 = vpack.c.bf16 %v338_v61, %v334_v60  ;;  %v365_v61 = vld [vmem:[#allocation6 + $0x480] sm:$0xff] }
 0x102   :  { %4873 = vmatpush1.bf16.msra.mxu0 %v4872_v8  ;;  %v339_v8 = vld [vmem:[#allocation6 + $0x3b0] sm:$0xff] }
 0x103   :  { %5001 = vmatpush1.bf16.msra.mxu1 %v5000_v10  ;;  %4875 = vmatprep.subr.bf16.mxu0 %v4874_v12  ;;  %v342_v10 = vld [vmem:[#allocation6 + $0x3c8] sm:$0xff] }
 0x104   :  { %5003 = vmatprep.subr.bf16.mxu1 %v5002_v16  ;;  %v346_v12 = vld [vmem:[#allocation6 + $0x3e8] sm:$0xff]  ;;  %v5020_v16 = vpack.c.bf16 %v339_v8, %v335_v6  ;;  %v380_v6 = vld [vmem:[#allocation6 + $0x4f8] sm:$0xff]  ;;  %v4908_v8 = vpack.c.bf16 %v369_v62, %v365_v61  ;;  %v403_v61 = vld [vmem:[#allocation6 + $0x5b0] sm:$0xff] }
 0x105   :  { %v4894_v17 = vpack.c.bf16 %v346_v12, %v342_v10  ;;  %v213_v10 = vld [vmem:[#allocation2 + $0x60] sm:$0xff]  ;;  %v406_v62 = vld [vmem:[#allocation6 + $0x5c8] sm:$0xff] }
 0x106   :  { %4877 = vmatpush1.bf16.msra.mxu0 %v4876_v29  ;;  %v347_v29 = vld [vmem:[#allocation6 + $0x3f0] sm:$0xff] }
 0x107   :  { %5005 = vmatpush1.bf16.msra.mxu1 %v5004_v30  ;;  %4879 = vmatprep.subr.bf16.mxu0 %v4878_v31  ;;  %v350_v30 = vld [vmem:[#allocation6 + $0x408] sm:$0xff] }
 0x108   :  { %5007 = vmatprep.subr.bf16.mxu1 %v5006_v18  ;;  %v354_v31 = vld [vmem:[#allocation6 + $0x428] sm:$0xff]  ;;  %v5024_v18 = vpack.c.bf16 %v347_v29, %v343_v24  ;;  %v388_v29 = vld [vmem:[#allocation6 + $0x538] sm:$0xff] }
 0x109   :  { %v4898_v34 = vpack.c.bf16 %v354_v31, %v350_v30  ;;  %v386_v24 = vld [vmem:[#allocation6 + $0x528] sm:$0xff] }
 0x10a   :  { %4881 = vmatpush1.bf16.msra.mxu0 %v4880_v38  ;;  %v355_v38 = vld [vmem:[#allocation6 + $0x430] sm:$0xff]  ;;  %v4914_v32 = vpack.c.bf16 %v386_v24, %v382_v23  ;;  %v413_v24 = vld [vmem:[#allocation6 + $0x600] sm:$0xff] }
 0x10b   :  { %5009 = vmatpush1.bf16.msra.mxu1 %v5008_v40  ;;  %4883 = vmatprep.subr.bf16.mxu0 %v4882_v41  ;;  %v358_v40 = vld [vmem:[#allocation6 + $0x448] sm:$0xff]  ;;  %v5028_v47 = vpack.c.bf16 %v355_v38, %v351_v36  ;;  %v396_v38 = vld [vmem:[#allocation6 + $0x578] sm:$0xff] }
 0x10c   :  { %5011 = vmatprep.subr.bf16.mxu1 %v5010_v46  ;;  %v362_v41 = vld [vmem:[#allocation6 + $0x468] sm:$0xff]  ;;  %v4900_v46 = vpack.c.bf16 %v353_v35, %v349_v25  ;;  %v387_v25 = vld [vmem:[#allocation6 + $0x530] sm:$0xff] }
 0x10d   :  { %v4902_v48 = vpack.c.bf16 %v362_v41, %v358_v40  ;;  %v390_v35 = vld [vmem:[#allocation6 + $0x548] sm:$0xff]  ;;  %v208_v40 = vld [vmem:[#allocation2 + $0x18] sm:$0xff] }
 0x10e   :  { %4885 = vmatpush1.bf16.msra.mxu0 %v4884_v52  ;;  %v5030_v52 = vpack.c.bf16 %v364_v43, %v360_v42  ;;  %v394_v36 = vld [vmem:[#allocation6 + $0x568] sm:$0xff] }
 0x10f   :  { %5013 = vmatpush1.bf16.msra.mxu1 %v5012_v53  ;;  %4887 = vmatprep.subr.bf16.mxu0 %v4886_v54  ;;  %v363_v53 = vld [vmem:[#allocation6 + $0x470] sm:$0xff]  ;;  %v366_v54 = vld [vmem:[#allocation6 + $0x488] sm:$0xff]  ;;  %v4918_v43 = vpack.c.bf16 %v394_v36, %v390_v35  ;;  %v421_v36 = vld [vmem:[#allocation6 + $0x640] sm:$0xff] }
 0x110   :  { %5015 = vmatprep.subr.bf16.mxu1 %v5014_v58  ;;  %v4904_v58 = vpack.c.bf16 %v361_v49, %v357_v51  ;;  %v5032_v20 = vpack.c.bf16 %v363_v53, %v359_v50  ;;  %v4906_v60 = vpack.c.bf16 %v370_v55, %v366_v54  ;;  %v395_v51 = vld [vmem:[#allocation6 + $0x570] sm:$0xff]  ;;  %v398_v49 = vld [vmem:[#allocation6 + $0x588] sm:$0xff]  ;;  %v404_v53 = vld [vmem:[#allocation6 + $0x5b8] sm:$0xff] }
 0x111   :  { %v402_v50 = vld [vmem:[#allocation6 + $0x5a8] sm:$0xff] }
 0x112   :  { %4889 = vmatpush1.bf16.msra.mxu0 %v4888_v0  ;;  %v5034_v0 = vpack.c.bf16 %v372_v57, %v368_v56  ;;  %v4922_v56 = vpack.c.bf16 %v402_v50, %v398_v49  ;;  %v397_v57 = vld [vmem:[#allocation6 + $0x580] sm:$0xff] }
 0x113   :  { %5017 = vmatpush1.bf16.msra.mxu1 %v5016_v2  ;;  %4891 = vmatprep.subr.bf16.mxu0 %v4890_v3  ;;  %v371_v2 = vld [vmem:[#allocation6 + $0x4b0] sm:$0xff]  ;;  %v374_v3 = vld [vmem:[#allocation6 + $0x4c8] sm:$0xff]  ;;  %v429_v49 = vld [vmem:[#allocation6 + $0x680] sm:$0xff] }
 0x114   :  { %5019 = vmatprep.subr.bf16.mxu1 %v5018_v7  ;;  %v214_v7 = vld [vmem:[#allocation2 + $0x68] sm:$0xff]  ;;  %v5036_v12 = vpack.c.bf16 %v371_v2, %v367_v63  ;;  %v4910_v14 = vpack.c.bf16 %v378_v4, %v374_v3  ;;  %v412_v2 = vld [vmem:[#allocation6 + $0x5f8] sm:$0xff]  ;;  %v433_v50 = vld [vmem:[#allocation6 + $0x6a0] sm:$0xff] }
 0x115   :  { %v410_v63 = vld [vmem:[#allocation6 + $0x5e8] sm:$0xff] }
 0x116   :  { %4893 = vmatpush1.bf16.msra.mxu0 %v4892_v15  ;;  %v377_v15 = vld [vmem:[#allocation6 + $0x4e0] sm:$0xff] }
 0x117   :  { %5021 = vmatpush1.bf16.msra.mxu1 %v5020_v16  ;;  %4895 = vmatprep.subr.bf16.mxu0 %v4894_v17  ;;  %v375_v16 = vld [vmem:[#allocation6 + $0x4d0] sm:$0xff]  ;;  %v5038_v17 = vpack.c.bf16 %v380_v6, %v376_v5  ;;  %v4912_v30 = vpack.c.bf16 %v377_v15, %v373_v59  ;;  %v4926_v5 = vpack.c.bf16 %v410_v63, %v406_v62  ;;  %v405_v6 = vld [vmem:[#allocation6 + $0x5c0] sm:$0xff]  ;;  %v418_v59 = vld [vmem:[#allocation6 + $0x628] sm:$0xff] }
 0x118   :  { %5023 = vmatprep.subr.bf16.mxu1 %v5022_v27  ;;  %v384_v27 = vld [vmem:[#allocation6 + $0x518] sm:$0xff]  ;;  %v5040_v31 = vpack.c.bf16 %v379_v22, %v375_v16  ;;  %v437_v62 = vld [vmem:[#allocation6 + $0x6c0] sm:$0xff] }
 0x119   :  { %v416_v15 = vld [vmem:[#allocation6 + $0x618] sm:$0xff]  ;;  %v441_v63 = vld [vmem:[#allocation6 + $0x6e0] sm:$0xff] }
 0x11a   :  { %4897 = vmatpush1.bf16.msra.mxu0 %v4896_v19  ;;  %v385_v19 = vld [vmem:[#allocation6 + $0x520] sm:$0xff]  ;;  %v420_v16 = vld [vmem:[#allocation6 + $0x638] sm:$0xff] }
 0x11b   :  { %5025 = vmatpush1.bf16.msra.mxu1 %v5024_v18  ;;  %4899 = vmatprep.subr.bf16.mxu0 %v4898_v34  ;;  %v383_v18 = vld [vmem:[#allocation6 + $0x510] sm:$0xff]  ;;  %v5042_v34 = vpack.c.bf16 %v388_v29, %v384_v27  ;;  %v4916_v41 = vpack.c.bf16 %v385_v19, %v381_v33  ;;  %v417_v27 = vld [vmem:[#allocation6 + $0x620] sm:$0xff]  ;;  %v426_v33 = vld [vmem:[#allocation6 + $0x668] sm:$0xff] }
 0x11c   :  { %5027 = vmatprep.subr.bf16.mxu1 %v5026_v37  ;;  %v392_v37 = vld [vmem:[#allocation6 + $0x558] sm:$0xff]  ;;  %v5044_v42 = vpack.c.bf16 %v387_v25, %v383_v18  ;;  %v415_v29 = vld [vmem:[#allocation6 + $0x610] sm:$0xff] }
 0x11d   :  { %1252 = vmatmul.mubr.f32.vlgmr.msra.gmra.mrb[0].mxu0 %v205_v44  ;;  %v424_v19 = vld [vmem:[#allocation6 + $0x658] sm:$0xff] }
 0x11e   :  { %4901 = vmatpush1.bf16.msra.mxu0 %v4900_v46  ;;  %1430 = vmatmul.mubr.f32.vlgmr.msra.gmra.mrb[0].mxu1 %v205_v44  ;;  %v389_v44 = vld [vmem:[#allocation6 + $0x540] sm:$0xff]  ;;  %v428_v18 = vld [vmem:[#allocation6 + $0x678] sm:$0xff] }
 0x11f   :  { %5029 = vmatpush1.bf16.msra.mxu1 %v5028_v47  ;;  %4903 = vmatprep.subr.bf16.mxu0 %v4902_v48  ;;  %v393_v46 = vld [vmem:[#allocation6 + $0x560] sm:$0xff]  ;;  %v391_v47 = vld [vmem:[#allocation6 + $0x550] sm:$0xff]  ;;  %v5046_v48 = vpack.c.bf16 %v396_v38, %v392_v37 }
 0x120   :  { %5031 = vmatprep.subr.bf16.mxu1 %v5030_v52  ;;  %1257 = vmatprep.mubr.f32.mxu0 %v6559_v39  ;;  %v400_v52 = vld [vmem:[#allocation6 + $0x598] sm:$0xff]  ;;  %v4920_v54 = vpack.c.bf16 %v393_v46, %v389_v44  ;;  %v5048_v55 = vpack.c.bf16 %v395_v51, %v391_v47  ;;  %v425_v37 = vld [vmem:[#allocation6 + $0x660] sm:$0xff]  ;;  %v423_v38 = vld [vmem:[#allocation6 + $0x650] sm:$0xff] }
 0x121   :  { %1435 = vmatprep.mubr.f32.mxu1 %v6559_v39  ;;  %1258 = vmatmul.mubr.f32.gmra.mrb[2].mxu0 %v6566_v9  ;;  %v432_v44 = vld [vmem:[#allocation6 + $0x698] sm:$0xff]  ;;  %v4936_v47 = vpack.c.bf16 %v425_v37, %v421_v36 }
 0x122   :  { %4905 = vmatpush1.bf16.msra.mxu0 %v4904_v58  ;;  %1436 = vmatmul.mubr.f32.gmra.mrb[2].mxu1 %v6566_v9  ;;  %v401_v58 = vld [vmem:[#allocation6 + $0x5a0] sm:$0xff]  ;;  %v436_v46 = vld [vmem:[#allocation6 + $0x6b8] sm:$0xff] }
 0x123   :  { %5033 = vmatpush1.bf16.msra.mxu1 %v5032_v20  ;;  %4907 = vmatprep.subr.bf16.mxu0 %v4906_v60  ;;  %v399_v20 = vld [vmem:[#allocation6 + $0x590] sm:$0xff]  ;;  %v5050_v60 = vpack.c.bf16 %v404_v53, %v400_v52  ;;  %v4924_v3 = vpack.c.bf16 %v401_v58, %v397_v57  ;;  %v5066_v53 = vpack.c.bf16 %v436_v46, %v432_v44  ;;  %v440_v57 = vld [vmem:[#allocation6 + $0x6d8] sm:$0xff] }
 0x124   :  { %5035 = vmatprep.subr.bf16.mxu1 %v5034_v0  ;;  %1263 = vmatprep.mubr.f32.mxu0 %v214_v7  ;;  %v408_v0 = vld [vmem:[#allocation6 + $0x5d8] sm:$0xff]  ;;  %v5052_v4 = vpack.c.bf16 %v403_v61, %v399_v20  ;;  %v431_v52 = vld [vmem:[#allocation6 + $0x690] sm:$0xff]  ;;  %v4940_v20 = vpack.c.bf16 %v433_v50, %v429_v49 }
 0x125   :  { %1441 = vmatprep.mubr.f32.mxu1 %v214_v7  ;;  %1264 = vmatmul.mubr.f32.gmra.mrb[4].mxu0 %v213_v10  ;;  %v409_v7 = vld [vmem:[#allocation6 + $0x5e0] sm:$0xff]  ;;  %v444_v58 = vld [vmem:[#allocation6 + $0x6f8] sm:$0xff]  ;;  %v463_v44 = vld [vmem:[#allocation6 + $0x790] sm:$0xff] }
 0x126   :  { %4909 = vmatpush1.bf16.msra.mxu0 %v4908_v8  ;;  %1442 = vmatmul.mubr.f32.gmra.mrb[4].mxu1 %v213_v10  ;;  %v407_v8 = vld [vmem:[#allocation6 + $0x5d0] sm:$0xff]  ;;  %v5054_v10 = vpack.c.bf16 %v412_v2, %v408_v0  ;;  %v5070_v2 = vpack.c.bf16 %v444_v58, %v440_v57  ;;  %v464_v36 = vld [vmem:[#allocation6 + $0x798] sm:$0xff] }
 0x127   :  { %5037 = vmatpush1.bf16.msra.mxu1 %v5036_v12  ;;  %4911 = vmatprep.subr.bf16.mxu0 %v4910_v14  ;;  %v411_v12 = vld [vmem:[#allocation6 + $0x5f0] sm:$0xff]  ;;  %v414_v14 = vld [vmem:[#allocation6 + $0x608] sm:$0xff]  ;;  %v468_v37 = vld [vmem:[#allocation6 + $0x7b8] sm:$0xff] }
 0x128   :  { %5039 = vmatprep.subr.bf16.mxu1 %v5038_v17  ;;  %1269 = vmatprep.mubr.f32.mxu0 %v6580_v1  ;;  %v4928_v17 = vpack.c.bf16 %v409_v7, %v405_v6  ;;  %v5056_v22 = vpack.c.bf16 %v411_v12, %v407_v8  ;;  %v4930_v23 = vpack.c.bf16 %v418_v59, %v414_v14  ;;  %v439_v0 = vld [vmem:[#allocation6 + $0x6d0] sm:$0xff]  ;;  %v448_v6 = vld [vmem:[#allocation6 + $0x718] sm:$0xff]  ;;  %v445_v14 = vld [vmem:[#allocation6 + $0x700] sm:$0xff] }
 0x129   :  { %1447 = vmatprep.mubr.f32.mxu1 %v6580_v1  ;;  %1270 = vmatmul.mubr.f32.gmra.mrb[6].mxu0 %v6583_v13  ;;  %v452_v7 = vld [vmem:[#allocation6 + $0x738] sm:$0xff]  ;;  %v4944_v8 = vpack.c.bf16 %v441_v63, %v437_v62  ;;  %v449_v59 = vld [vmem:[#allocation6 + $0x720] sm:$0xff]  ;;  %v5082_v46 = vpack.c.bf16 %v468_v37, %v464_v36  ;;  %v471_v57 = vld [vmem:[#allocation6 + $0x7d0] sm:$0xff] }
 0x12a   :  { %4913 = vmatpush1.bf16.msra.mxu0 %v4912_v30  ;;  %1448 = vmatmul.mubr.f32.gmra.mrb[6].mxu1 %v6583_v13  ;;  %v5058_v30 = vpack.c.bf16 %v420_v16, %v416_v15  ;;  %v447_v15 = vld [vmem:[#allocation6 + $0x710] sm:$0xff]  ;;  %v5074_v16 = vpack.c.bf16 %v452_v7, %v448_v6  ;;  %v472_v49 = vld [vmem:[#allocation6 + $0x7d8] sm:$0xff]  ;;  %v1653_v36 = vld [vmem:[#allocation6 + $0x10a0] sm:$0xff] }
 0x12b   :  { %5041 = vmatpush1.bf16.msra.mxu1 %v5040_v31  ;;  %4915 = vmatprep.subr.bf16.mxu0 %v4914_v32  ;;  %v419_v31 = vld [vmem:[#allocation6 + $0x630] sm:$0xff]  ;;  %v422_v32 = vld [vmem:[#allocation6 + $0x648] sm:$0xff]  ;;  %v476_v50 = vld [vmem:[#allocation6 + $0x7f8] sm:$0xff] }
 0x12c   :  { %5043 = vmatprep.subr.bf16.mxu1 %v5042_v34  ;;  %1340 = vmatprep.mubr.f32.mxu0 %v208_v40  ;;  %v4932_v34 = vpack.c.bf16 %v417_v27, %v413_v24  ;;  %v5060_v25 = vpack.c.bf16 %v419_v31, %v415_v29  ;;  %v4934_v35 = vpack.c.bf16 %v426_v33, %v422_v32  ;;  %v456_v24 = vld [vmem:[#allocation6 + $0x758] sm:$0xff]  ;;  %v453_v32 = vld [vmem:[#allocation6 + $0x740] sm:$0xff]  ;;  %v1635_v6 = vld [vmem:[#allocation6 + $0x1010] sm:$0xff] }
 0x12d   :  { %1518 = vmatprep.mubr.f32.mxu1 %v208_v40  ;;  %v5062_v40 = vpack.c.bf16 %v428_v18, %v424_v19  ;;  %v460_v27 = vld [vmem:[#allocation6 + $0x778] sm:$0xff]  ;;  %v4948_v29 = vpack.c.bf16 %v449_v59, %v445_v14  ;;  %v457_v33 = vld [vmem:[#allocation6 + $0x760] sm:$0xff]  ;;  %v455_v19 = vld [vmem:[#allocation6 + $0x750] sm:$0xff]  ;;  %v5086_v58 = vpack.c.bf16 %v476_v50, %v472_v49 }
 0x12e   :  { %4917 = vmatpush1.bf16.msra.mxu0 %v4916_v41  ;;  %v427_v41 = vld [vmem:[#allocation6 + $0x670] sm:$0xff]  ;;  %v5078_v18 = vpack.c.bf16 %v460_v27, %v456_v24  ;;  %v1636_v62 = vld [vmem:[#allocation6 + $0x1018] sm:$0xff]  ;;  %v1645_v24 = vld [vmem:[#allocation6 + $0x1060] sm:$0xff] }
 0x12f   :  { %5045 = vmatpush1.bf16.msra.mxu1 %v5044_v42  ;;  %4919 = vmatprep.subr.bf16.mxu0 %v4918_v43  ;;  %v430_v42 = vld [vmem:[#allocation6 + $0x688] sm:$0xff]  ;;  %v1640_v63 = vld [vmem:[#allocation6 + $0x1038] sm:$0xff]  ;;  %v1643_v27 = vld [vmem:[#allocation6 + $0x1050] sm:$0xff] }
 0x130   :  { %5047 = vmatprep.subr.bf16.mxu1 %v5046_v48  ;;  %v434_v43 = vld [vmem:[#allocation6 + $0x6a8] sm:$0xff]  ;;  %v5064_v48 = vpack.c.bf16 %v427_v41, %v423_v38  ;;  %v4952_v38 = vpack.c.bf16 %v457_v33, %v453_v32  ;;  %v5218_v7 = vpack.c.bf16 %v1640_v63, %v1636_v62  ;;  %v1644_v14 = vld [vmem:[#allocation6 + $0x1058] sm:$0xff]  ;;  %v1651_v37 = vld [vmem:[#allocation6 + $0x1090] sm:$0xff]  ;;  %v1580_v62 = vrot.slane %v6559_v39, 2 }
 0x131   :  { %v4938_v51 = vpack.c.bf16 %v434_v43, %v430_v42  ;;  %v461_v42 = vld [vmem:[#allocation6 + $0x780] sm:$0xff]  ;;  %v1648_v59 = vld [vmem:[#allocation6 + $0x1078] sm:$0xff]  ;;  %v1654_v32 = vld [vmem:[#allocation6 + $0x10a8] sm:$0xff] }
 0x132   :  { %4921 = vmatpush1.bf16.msra.mxu0 %v4920_v54  ;;  %v435_v54 = vld [vmem:[#allocation6 + $0x6b0] sm:$0xff]  ;;  %v465_v43 = vld [vmem:[#allocation6 + $0x7a0] sm:$0xff]  ;;  %v1652_v33 = vld [vmem:[#allocation6 + $0x1098] sm:$0xff] }
 0x133   :  { %5049 = vmatpush1.bf16.msra.mxu1 %v5048_v55  ;;  %4923 = vmatprep.subr.bf16.mxu0 %v4922_v56  ;;  %v438_v55 = vld [vmem:[#allocation6 + $0x6c8] sm:$0xff]  ;;  %v1781_v39 = vld [vmem:[#allocation6 + $0x14a0] sm:$0xff] }
 0x134   :  { %5051 = vmatprep.subr.bf16.mxu1 %v5050_v60  ;;  %v442_v56 = vld [vmem:[#allocation6 + $0x6e8] sm:$0xff]  ;;  %v5068_v60 = vpack.c.bf16 %v435_v54, %v431_v52  ;;  %v4956_v52 = vpack.c.bf16 %v465_v43, %v461_v42  ;;  %v1660_v43 = vld [vmem:[#allocation6 + $0x10d8] sm:$0xff] }
 0x135   :  { %v4942_v61 = vpack.c.bf16 %v442_v56, %v438_v55  ;;  %v469_v55 = vld [vmem:[#allocation6 + $0x7c0] sm:$0xff]  ;;  %v1662_v42 = vld [vmem:[#allocation6 + $0x10e8] sm:$0xff] }
 0x136   :  { %4925 = vmatpush1.bf16.msra.mxu0 %v4924_v3  ;;  %v443_v3 = vld [vmem:[#allocation6 + $0x6f0] sm:$0xff]  ;;  %v473_v56 = vld [vmem:[#allocation6 + $0x7e0] sm:$0xff] }
 0x137   :  { %5053 = vmatpush1.bf16.msra.mxu1 %v5052_v4  ;;  %4927 = vmatprep.subr.bf16.mxu0 %v4926_v5  ;;  %v446_v4 = vld [vmem:[#allocation6 + $0x708] sm:$0xff] }
 0x138   :  { %5055 = vmatprep.subr.bf16.mxu1 %v5054_v10  ;;  %v450_v5 = vld [vmem:[#allocation6 + $0x728] sm:$0xff]  ;;  %v5072_v10 = vpack.c.bf16 %v443_v3, %v439_v0  ;;  %v4960_v0 = vpack.c.bf16 %v473_v56, %v469_v55  ;;  %v1663_v56 = vld [vmem:[#allocation6 + $0x10f0] sm:$0xff] }
 0x139   :  { %v4946_v12 = vpack.c.bf16 %v450_v5, %v446_v4  ;;  %v1633_v4 = vld [vmem:[#allocation6 + $0x1000] sm:$0xff] }
 0x13a   :  { %4929 = vmatpush1.bf16.msra.mxu0 %v4928_v17  ;;  %v451_v17 = vld [vmem:[#allocation6 + $0x730] sm:$0xff]  ;;  %v1637_v5 = vld [vmem:[#allocation6 + $0x1020] sm:$0xff] }
 0x13b   :  { %5057 = vmatpush1.bf16.msra.mxu1 %v5056_v22  ;;  %4931 = vmatprep.subr.bf16.mxu0 %v4930_v23  ;;  %v454_v22 = vld [vmem:[#allocation6 + $0x748] sm:$0xff] }
 0x13c   :  { %5059 = vmatprep.subr.bf16.mxu1 %v5058_v30  ;;  %v458_v23 = vld [vmem:[#allocation6 + $0x768] sm:$0xff]  ;;  %v5076_v30 = vpack.c.bf16 %v451_v17, %v447_v15  ;;  %v207_v15 = vld [vmem:[#allocation2 + $0x10] sm:$0xff] }
 0x13d   :  { %v4950_v31 = vpack.c.bf16 %v458_v23, %v454_v22  ;;  %v1641_v23 = vld [vmem:[#allocation6 + $0x1040] sm:$0xff] }
 0x13e   :  { %4933 = vmatpush1.bf16.msra.mxu0 %v4932_v34  ;;  %v459_v34 = vld [vmem:[#allocation6 + $0x770] sm:$0xff] }
 0x13f   :  { %5061 = vmatpush1.bf16.msra.mxu1 %v5060_v25  ;;  %4935 = vmatprep.subr.bf16.mxu0 %v4934_v35  ;;  %v462_v25 = vld [vmem:[#allocation6 + $0x788] sm:$0xff] }
 0x140   :  { %5063 = vmatprep.subr.bf16.mxu1 %v5062_v40  ;;  %v466_v35 = vld [vmem:[#allocation6 + $0x7a8] sm:$0xff]  ;;  %v5080_v40 = vpack.c.bf16 %v459_v34, %v455_v19  ;;  %v1656_v19 = vld [vmem:[#allocation6 + $0x10b8] sm:$0xff] }
 0x141   :  { %v4954_v41 = vpack.c.bf16 %v466_v35, %v462_v25  ;;  %v1649_v35 = vld [vmem:[#allocation6 + $0x1080] sm:$0xff] }
 0x142   :  { %4937 = vmatpush1.bf16.msra.mxu0 %v4936_v47  ;;  %v467_v47 = vld [vmem:[#allocation6 + $0x7b0] sm:$0xff] }
 0x143   :  { %5065 = vmatpush1.bf16.msra.mxu1 %v5064_v48  ;;  %4939 = vmatprep.subr.bf16.mxu0 %v4938_v51  ;;  %v470_v48 = vld [vmem:[#allocation6 + $0x7c8] sm:$0xff] }
 0x144   :  { %5067 = vmatprep.subr.bf16.mxu1 %v5066_v53  ;;  %v474_v51 = vld [vmem:[#allocation6 + $0x7e8] sm:$0xff]  ;;  %v5084_v53 = vpack.c.bf16 %v467_v47, %v463_v44  ;;  %v1664_v44 = vld [vmem:[#allocation6 + $0x10f8] sm:$0xff]  ;;  %v5100_v47 = vpack.c.bf16 %v1653_v36, %v1649_v35  ;;  %v1685_v35 = vld [vmem:[#allocation6 + $0x11a0] sm:$0xff] }
 0x145   :  { %v4958_v54 = vpack.c.bf16 %v474_v51, %v470_v48  ;;  %v215_v48 = vld [vmem:[#allocation2 + $0x70] sm:$0xff]  ;;  %v1544_v51 = vld [vmem:[#allocation2 + $0x8] sm:$0xfc]  ;;  %v5230_v55 = vpack.c.bf16 %v1664_v44, %v1660_v43  ;;  %v1696_v43 = vld [vmem:[#allocation6 + $0x11f8] sm:$0xff] }
 0x146   :  { %4941 = vmatpush1.bf16.msra.mxu0 %v4940_v20  ;;  %v475_v20 = vld [vmem:[#allocation6 + $0x7f0] sm:$0xff] }
 0x147   :  { %5069 = vmatpush1.bf16.msra.mxu1 %v5068_v60  ;;  %4943 = vmatprep.subr.bf16.mxu0 %v4942_v61  ;;  %v1634_v60 = vld [vmem:[#allocation6 + $0x1008] sm:$0xff]  ;;  %v1683_v36 = vld [vmem:[#allocation6 + $0x1190] sm:$0xff] }
 0x148   :  { %5071 = vmatprep.subr.bf16.mxu1 %v5070_v2  ;;  %v1638_v61 = vld [vmem:[#allocation6 + $0x1028] sm:$0xff]  ;;  %v5088_v2 = vpack.c.bf16 %v475_v20, %v471_v57  ;;  %v1668_v20 = vld [vmem:[#allocation6 + $0x1118] sm:$0xff] }
 0x149   :  { %v5090_v3 = vpack.c.bf16 %v1638_v61, %v1634_v60  ;;  %v1666_v57 = vld [vmem:[#allocation6 + $0x1108] sm:$0xff]  ;;  %v1672_v60 = vld [vmem:[#allocation6 + $0x1138] sm:$0xff]  ;;  %v1579_v61 = vrot.slane %v1544_v51, 2  ;;  %v1693_v51 = vld [vmem:[#allocation6 + $0x11e0] sm:$0xff] }
 0x14a   :  { %4945 = vmatpush1.bf16.msra.mxu0 %v4944_v8  ;;  %v1639_v8 = vld [vmem:[#allocation6 + $0x1030] sm:$0xff] }
 0x14b   :  { %5073 = vmatpush1.bf16.msra.mxu1 %v5072_v10  ;;  %4947 = vmatprep.subr.bf16.mxu0 %v4946_v12  ;;  %v1642_v10 = vld [vmem:[#allocation6 + $0x1048] sm:$0xff]  ;;  %v5220_v17 = vpack.c.bf16 %v1639_v8, %v1635_v6  ;;  %v5234_v6 = vpack.c.bf16 %v1672_v60, %v1668_v20  ;;  %v1697_v60 = vld [vmem:[#allocation6 + $0x1200] sm:$0xff] }
 0x14c   :  { %5075 = vmatprep.subr.bf16.mxu1 %v5074_v16  ;;  %v1646_v12 = vld [vmem:[#allocation6 + $0x1068] sm:$0xff]  ;;  %v5092_v16 = vpack.c.bf16 %v1637_v5, %v1633_v4  ;;  %v1669_v4 = vld [vmem:[#allocation6 + $0x1120] sm:$0xff]  ;;  %v1667_v5 = vld [vmem:[#allocation6 + $0x1110] sm:$0xff] }
 0x14d   :  { %v5094_v22 = vpack.c.bf16 %v1646_v12, %v1642_v10  ;;  %v1674_v8 = vld [vmem:[#allocation6 + $0x1148] sm:$0xff]  ;;  %v1676_v12 = vld [vmem:[#allocation6 + $0x1158] sm:$0xff] }
 0x14e   :  { %4949 = vmatpush1.bf16.msra.mxu0 %v4948_v29  ;;  %v5222_v29 = vpack.c.bf16 %v1648_v59, %v1644_v14  ;;  %v1678_v10 = vld [vmem:[#allocation6 + $0x1168] sm:$0xff]  ;;  %v1680_v14 = vld [vmem:[#allocation6 + $0x1178] sm:$0xff]  ;;  %v1581_v59 = vsel %vm1575_vm3, %v1579_v61, %v1580_v62  ;;  %v1701_v61 = vld [vmem:[#allocation6 + $0x1220] sm:$0xff] }
 0x14f   :  { %5077 = vmatpush1.bf16.msra.mxu1 %v5076_v30  ;;  %4951 = vmatprep.subr.bf16.mxu0 %v4950_v31  ;;  %v1647_v30 = vld [vmem:[#allocation6 + $0x1070] sm:$0xff]  ;;  %v1650_v31 = vld [vmem:[#allocation6 + $0x1088] sm:$0xff] }
 0x150   :  { %5079 = vmatprep.subr.bf16.mxu1 %v5078_v18  ;;  %v5096_v18 = vpack.c.bf16 %v1645_v24, %v1641_v23  ;;  %v5224_v34 = vpack.c.bf16 %v1647_v30, %v1643_v27  ;;  %v5098_v25 = vpack.c.bf16 %v1654_v32, %v1650_v31  ;;  %v1677_v23 = vld [vmem:[#allocation6 + $0x1160] sm:$0xff]  ;;  %v1675_v24 = vld [vmem:[#allocation6 + $0x1150] sm:$0xff]  ;;  %v5238_v27 = vpack.c.bf16 %v1680_v14, %v1676_v12  ;;  %v1682_v30 = vld [vmem:[#allocation6 + $0x1188] sm:$0xff] }
 0x151   :  { %v1686_v31 = vld [vmem:[#allocation6 + $0x11a8] sm:$0xff]  ;;  %v1684_v32 = vld [vmem:[#allocation6 + $0x1198] sm:$0xff]  ;;  %v1705_v12 = vld [vmem:[#allocation6 + $0x1240] sm:$0xff] }
 0x152   :  { %4953 = vmatpush1.bf16.msra.mxu0 %v4952_v38  ;;  %v5226_v38 = vpack.c.bf16 %v1656_v19, %v1652_v33  ;;  %v1688_v33 = vld [vmem:[#allocation6 + $0x11b8] sm:$0xff]  ;;  %v1709_v14 = vld [vmem:[#allocation6 + $0x1260] sm:$0xff] }
 0x153   :  { %5081 = vmatpush1.bf16.msra.mxu1 %v5080_v40  ;;  %4955 = vmatprep.subr.bf16.mxu0 %v4954_v41  ;;  %v1655_v40 = vld [vmem:[#allocation6 + $0x10b0] sm:$0xff]  ;;  %v1658_v41 = vld [vmem:[#allocation6 + $0x10c8] sm:$0xff] }
 0x154   :  { %5083 = vmatprep.subr.bf16.mxu1 %v5082_v46  ;;  %v216_v46 = vld [vmem:[#allocation2 + $0x78] sm:$0xff]  ;;  %v5228_v49 = vpack.c.bf16 %v1655_v40, %v1651_v37  ;;  %v5102_v50 = vpack.c.bf16 %v1662_v42, %v1658_v41  ;;  %v5242_v37 = vpack.c.bf16 %v1688_v33, %v1684_v32  ;;  %v1690_v40 = vld [vmem:[#allocation6 + $0x11c8] sm:$0xff]  ;;  %v1717_v32 = vld [vmem:[#allocation6 + $0x12a0] sm:$0xff] }
 0x155   :  { %v1694_v41 = vld [vmem:[#allocation6 + $0x11e8] sm:$0xff]  ;;  %v1692_v42 = vld [vmem:[#allocation6 + $0x11d8] sm:$0xff]  ;;  %v1715_v33 = vld [vmem:[#allocation6 + $0x1290] sm:$0xff] }
 0x156   :  { %4957 = vmatpush1.bf16.msra.mxu0 %v4956_v52  ;;  %v1657_v52 = vld [vmem:[#allocation6 + $0x10c0] sm:$0xff] }
 0x157   :  { %5085 = vmatpush1.bf16.msra.mxu1 %v5084_v53  ;;  %4959 = vmatprep.subr.bf16.mxu0 %v4958_v54  ;;  %v1661_v53 = vld [vmem:[#allocation6 + $0x10e0] sm:$0xff]  ;;  %v1659_v54 = vld [vmem:[#allocation6 + $0x10d0] sm:$0xff] }
 0x158   :  { %5087 = vmatprep.subr.bf16.mxu1 %v5086_v58  ;;  %v1670_v58 = vld [vmem:[#allocation6 + $0x1128] sm:$0xff]  ;;  %v5104_v63 = vpack.c.bf16 %v1661_v53, %v1657_v52  ;;  %v1695_v52 = vld [vmem:[#allocation6 + $0x11f0] sm:$0xff] }
 0x159   :  { %v1698_v53 = vld [vmem:[#allocation6 + $0x1208] sm:$0xff] }
 0x15a   :  { %4961 = vmatpush1.bf16.msra.mxu0 %v4960_v0  ;;  %v5232_v0 = vpack.c.bf16 %v1663_v56, %v1659_v54  ;;  %v1702_v54 = vld [vmem:[#allocation6 + $0x1228] sm:$0xff]  ;;  %v1704_v56 = vld [vmem:[#allocation6 + $0x1238] sm:$0xff] }
 0x15b   :  { %5089 = vmatpush1.bf16.msra.mxu1 %v5088_v2  ;;  %5091 = vmatprep.subr.bf16.mxu0 %v5090_v3  ;;  %v5106_v2 = vpack.c.bf16 %v1670_v58, %v1666_v57  ;;  %v1665_v3 = vld [vmem:[#allocation6 + $0x1100] sm:$0xff]  ;;  %v5122_v20 = vpack.c.bf16 %v1702_v54, %v1698_v53 }
 0x15c   :  { %5219 = vmatprep.subr.bf16.mxu1 %v5218_v7  ;;  %v1671_v7 = vld [vmem:[#allocation6 + $0x1130] sm:$0xff]  ;;  %v1729_v54 = vld [vmem:[#allocation6 + $0x1300] sm:$0xff] }
 0x15d   :  { %1341 = vmatmul.mubr.f32.vlgmr.msra.gmra.mrb[0].mxu0 %v207_v15 }
 0x15e   :  { %1519 = vmatmul.mubr.f32.vlgmr.msra.gmra.mrb[0].mxu1 %v207_v15  ;;  %5093 = vmatpush1.bf16.msra.mxu0 %v5092_v16  ;;  %v5108_v15 = vpack.c.bf16 %v1669_v4, %v1665_v3  ;;  %v5236_v16 = vpack.c.bf16 %v1671_v7, %v1667_v5  ;;  %v1706_v3 = vld [vmem:[#allocation6 + $0x1248] sm:$0xff]  ;;  %v1708_v5 = vld [vmem:[#allocation6 + $0x1258] sm:$0xff]  ;;  %v5124_v7 = vpack.c.bf16 %v1701_v61, %v1697_v60 }
 0x15f   :  { %5221 = vmatpush1.bf16.msra.mxu1 %v5220_v17  ;;  %5095 = vmatprep.subr.bf16.mxu0 %v5094_v22  ;;  %v5110_v17 = vpack.c.bf16 %v1678_v10, %v1674_v8  ;;  %v1673_v22 = vld [vmem:[#allocation6 + $0x1140] sm:$0xff]  ;;  %v1710_v4 = vld [vmem:[#allocation6 + $0x1268] sm:$0xff]  ;;  %v1740_v61 = vld [vmem:[#allocation6 + $0x1358] sm:$0xff] }
 0x160   :  { %5223 = vmatprep.subr.bf16.mxu1 %v5222_v29  ;;  %1346 = vmatprep.mubr.f32.mxu0 %v6599_v45  ;;  %v1679_v29 = vld [vmem:[#allocation6 + $0x1170] sm:$0xff]  ;;  %v5112_v19 = vpack.c.bf16 %v1677_v23, %v1673_v22  ;;  %v5126_v10 = vpack.c.bf16 %v1710_v4, %v1706_v3  ;;  %v1718_v22 = vld [vmem:[#allocation6 + $0x12a8] sm:$0xff]  ;;  %v1716_v23 = vld [vmem:[#allocation6 + $0x1298] sm:$0xff] }
 0x161   :  { %1524 = vmatprep.mubr.f32.mxu1 %v6599_v45  ;;  %1347 = vmatmul.mubr.f32.gmra.mrb[2].mxu0 %v6613_v21  ;;  %v1742_v60 = vld [vmem:[#allocation6 + $0x1368] sm:$0xff]  ;;  %v1737_v4 = vld [vmem:[#allocation6 + $0x1340] sm:$0xff] }
 0x162   :  { %5097 = vmatpush1.bf16.msra.mxu0 %v5096_v18  ;;  %1525 = vmatmul.mubr.f32.gmra.mrb[2].mxu1 %v6613_v21  ;;  %v5240_v18 = vpack.c.bf16 %v1679_v29, %v1675_v24  ;;  %v1720_v24 = vld [vmem:[#allocation6 + $0x12b8] sm:$0xff] }
 0x163   :  { %5225 = vmatpush1.bf16.msra.mxu1 %v5224_v34  ;;  %5099 = vmatprep.subr.bf16.mxu0 %v5098_v25  ;;  %v5114_v34 = vpack.c.bf16 %v1686_v31, %v1682_v30  ;;  %v1681_v25 = vld [vmem:[#allocation6 + $0x1180] sm:$0xff] }
 0x164   :  { %5227 = vmatprep.subr.bf16.mxu1 %v5226_v38  ;;  %1352 = vmatprep.mubr.f32.mxu0 %v216_v46  ;;  %v1687_v38 = vld [vmem:[#allocation6 + $0x11b0] sm:$0xff]  ;;  %v5116_v44 = vpack.c.bf16 %v1685_v35, %v1681_v25  ;;  %v1713_v31 = vld [vmem:[#allocation6 + $0x1280] sm:$0xff]  ;;  %v1726_v25 = vld [vmem:[#allocation6 + $0x12e8] sm:$0xff] }
 0x165   :  { %1530 = vmatprep.mubr.f32.mxu1 %v216_v46  ;;  %1353 = vmatmul.mubr.f32.gmra.mrb[4].mxu0 %v215_v48  ;;  %v5244_v46 = vpack.c.bf16 %v1687_v38, %v1683_v36  ;;  %v1724_v35 = vld [vmem:[#allocation6 + $0x12d8] sm:$0xff] }
 0x166   :  { %5101 = vmatpush1.bf16.msra.mxu0 %v5100_v47  ;;  %1531 = vmatmul.mubr.f32.gmra.mrb[4].mxu1 %v215_v48  ;;  %v5118_v47 = vpack.c.bf16 %v1694_v41, %v1690_v40  ;;  %v1689_v48 = vld [vmem:[#allocation6 + $0x11c0] sm:$0xff]  ;;  %v1728_v36 = vld [vmem:[#allocation6 + $0x12f8] sm:$0xff] }
 0x167   :  { %5229 = vmatpush1.bf16.msra.mxu1 %v5228_v49  ;;  %5103 = vmatprep.subr.bf16.mxu0 %v5102_v50  ;;  %v1691_v49 = vld [vmem:[#allocation6 + $0x11d0] sm:$0xff]  ;;  %v5246_v50 = vpack.c.bf16 %v1696_v43, %v1692_v42  ;;  %v5120_v57 = vpack.c.bf16 %v1693_v51, %v1689_v48  ;;  %v1721_v41 = vld [vmem:[#allocation6 + $0x12c0] sm:$0xff]  ;;  %v1734_v48 = vld [vmem:[#allocation6 + $0x1328] sm:$0xff] }
 0x168   :  { %5231 = vmatprep.subr.bf16.mxu1 %v5230_v55  ;;  %1358 = vmatprep.mubr.f32.mxu0 %v6622_v28  ;;  %v1700_v55 = vld [vmem:[#allocation6 + $0x1218] sm:$0xff]  ;;  %v5248_v58 = vpack.c.bf16 %v1695_v52, %v1691_v49  ;;  %v1725_v42 = vld [vmem:[#allocation6 + $0x12e0] sm:$0xff]  ;;  %v1723_v43 = vld [vmem:[#allocation6 + $0x12d0] sm:$0xff] }
 0x169   :  { %1536 = vmatprep.mubr.f32.mxu1 %v6622_v28  ;;  %1359 = vmatmul.mubr.f32.gmra.mrb[6].mxu0 %v6625_v26  ;;  %v1732_v51 = vld [vmem:[#allocation6 + $0x1318] sm:$0xff] }
 0x16a   :  { %5105 = vmatpush1.bf16.msra.mxu0 %v5104_v63  ;;  %1537 = vmatmul.mubr.f32.gmra.mrb[6].mxu1 %v6625_v26  ;;  %v1699_v63 = vld [vmem:[#allocation6 + $0x1210] sm:$0xff]  ;;  %v1736_v49 = vld [vmem:[#allocation6 + $0x1338] sm:$0xff] }
 0x16b   :  { %5233 = vmatpush1.bf16.msra.mxu1 %v5232_v0  ;;  %5107 = vmatprep.subr.bf16.mxu0 %v5106_v2  ;;  %v5250_v0 = vpack.c.bf16 %v1704_v56, %v1700_v55  ;;  %v1703_v2 = vld [vmem:[#allocation6 + $0x1230] sm:$0xff]  ;;  %v1733_v55 = vld [vmem:[#allocation6 + $0x1320] sm:$0xff] }
 0x16c   :  { %5235 = vmatprep.subr.bf16.mxu1 %v5234_v6  ;;  %1953 = vmatprep.mubr.f32.mxu0 %v1581_v59  ;;  %v1712_v6 = vld [vmem:[#allocation6 + $0x1278] sm:$0xff]  ;;  %v5252_v8 = vpack.c.bf16 %v1703_v2, %v1699_v63  ;;  %v1731_v56 = vld [vmem:[#allocation6 + $0x1310] sm:$0xff] }
 0x16d   :  { %2131 = vmatprep.mubr.f32.mxu1 %v1581_v59  ;;  %v1707_v59 = vld [vmem:[#allocation6 + $0x1250] sm:$0xff]  ;;  %v1744_v63 = vld [vmem:[#allocation6 + $0x1378] sm:$0xff] }
 0x16e   :  { %5109 = vmatpush1.bf16.msra.mxu0 %v5108_v15  ;;  %v5254_v15 = vpack.c.bf16 %v1712_v6, %v1708_v5  ;;  %v1741_v5 = vld [vmem:[#allocation6 + $0x1360] sm:$0xff]  ;;  %v1739_v6 = vld [vmem:[#allocation6 + $0x1350] sm:$0xff] }
 0x16f   :  { %5237 = vmatpush1.bf16.msra.mxu1 %v5236_v16  ;;  %5111 = vmatprep.subr.bf16.mxu0 %v5110_v17  ;;  %v1711_v16 = vld [vmem:[#allocation6 + $0x1270] sm:$0xff]  ;;  %v1714_v17 = vld [vmem:[#allocation6 + $0x1288] sm:$0xff] }
 0x170   :  { %5239 = vmatprep.subr.bf16.mxu1 %v5238_v27  ;;  %v5128_v27 = vpack.c.bf16 %v1709_v14, %v1705_v12  ;;  %v5256_v29 = vpack.c.bf16 %v1711_v16, %v1707_v59  ;;  %v5130_v30 = vpack.c.bf16 %v1718_v22, %v1714_v17  ;;  %v1750_v12 = vld [vmem:[#allocation6 + $0x13a8] sm:$0xff]  ;;  %v1748_v14 = vld [vmem:[#allocation6 + $0x1398] sm:$0xff]  ;;  %v1745_v22 = vld [vmem:[#allocation6 + $0x1380] sm:$0xff] }
 0x171   :  { %v1752_v59 = vld [vmem:[#allocation6 + $0x13b8] sm:$0xff] }
 0x172   :  { %5113 = vmatpush1.bf16.msra.mxu0 %v5112_v19  ;;  %v5258_v19 = vpack.c.bf16 %v1720_v24, %v1716_v23  ;;  %v1749_v23 = vld [vmem:[#allocation6 + $0x13a0] sm:$0xff]  ;;  %v1747_v24 = vld [vmem:[#allocation6 + $0x1390] sm:$0xff] }
 0x173   :  { %5241 = vmatpush1.bf16.msra.mxu1 %v5240_v18  ;;  %5115 = vmatprep.subr.bf16.mxu0 %v5114_v34  ;;  %v1719_v18 = vld [vmem:[#allocation6 + $0x12b0] sm:$0xff]  ;;  %v1722_v34 = vld [vmem:[#allocation6 + $0x12c8] sm:$0xff] }
 0x174   :  { %5243 = vmatprep.subr.bf16.mxu1 %v5242_v37  ;;  %v5132_v37 = vpack.c.bf16 %v1717_v32, %v1713_v31  ;;  %v5260_v38 = vpack.c.bf16 %v1719_v18, %v1715_v33  ;;  %v5134_v40 = vpack.c.bf16 %v1726_v25, %v1722_v34  ;;  %v1758_v31 = vld [vmem:[#allocation6 + $0x13e8] sm:$0xff]  ;;  %v1756_v32 = vld [vmem:[#allocation6 + $0x13d8] sm:$0xff]  ;;  %v1753_v18 = vld [vmem:[#allocation6 + $0x13c0] sm:$0xff] }
 0x175   :  { %v1760_v33 = vld [vmem:[#allocation6 + $0x13f8] sm:$0xff] }
 0x176   :  { %5117 = vmatpush1.bf16.msra.mxu0 %v5116_v44  ;;  %v5262_v44 = vpack.c.bf16 %v1728_v36, %v1724_v35  ;;  %v1757_v35 = vld [vmem:[#allocation6 + $0x13e0] sm:$0xff]  ;;  %v1755_v36 = vld [vmem:[#allocation6 + $0x13d0] sm:$0xff] }
 0x177   :  { %5245 = vmatpush1.bf16.msra.mxu1 %v5244_v46  ;;  %5119 = vmatprep.subr.bf16.mxu0 %v5118_v47  ;;  %v1727_v46 = vld [vmem:[#allocation6 + $0x12f0] sm:$0xff]  ;;  %v1730_v47 = vld [vmem:[#allocation6 + $0x1308] sm:$0xff] }
 0x178   :  { %5247 = vmatprep.subr.bf16.mxu1 %v5246_v50  ;;  %v5136_v50 = vpack.c.bf16 %v1725_v42, %v1721_v41  ;;  %v5264_v52 = vpack.c.bf16 %v1727_v46, %v1723_v43  ;;  %v5138_v53 = vpack.c.bf16 %v1734_v48, %v1730_v47  ;;  %v1762_v41 = vld [vmem:[#allocation6 + $0x1408] sm:$0xff]  ;;  %v1764_v43 = vld [vmem:[#allocation6 + $0x1418] sm:$0xff]  ;;  %v5152_v46 = vpack.c.bf16 %v1757_v35, %v1753_v18 }
 0x179   :  { %v1766_v42 = vld [vmem:[#allocation6 + $0x1428] sm:$0xff]  ;;  %v1577_v48 = vrot.slane %v6566_v9, 2 }
 0x17a   :  { %5121 = vmatpush1.bf16.msra.mxu0 %v5120_v57  ;;  %v5266_v57 = vpack.c.bf16 %v1736_v49, %v1732_v51  ;;  %v1761_v51 = vld [vmem:[#allocation6 + $0x1400] sm:$0xff]  ;;  %v1548_v49 = vld [vmem:[#allocation2 + $0x48] sm:$0x3] }
 0x17b   :  { %5249 = vmatpush1.bf16.msra.mxu1 %v5248_v58  ;;  %5123 = vmatprep.subr.bf16.mxu0 %v5122_v20  ;;  %v1735_v58 = vld [vmem:[#allocation6 + $0x1330] sm:$0xff]  ;;  %v1738_v20 = vld [vmem:[#allocation6 + $0x1348] sm:$0xff] }
 0x17c   :  { %5251 = vmatprep.subr.bf16.mxu1 %v5250_v0  ;;  %v5140_v0 = vpack.c.bf16 %v1733_v55, %v1729_v54  ;;  %v5268_v2 = vpack.c.bf16 %v1735_v58, %v1731_v56  ;;  %v5142_v3 = vpack.c.bf16 %v1742_v60, %v1738_v20  ;;  %v1763_v54 = vld [vmem:[#allocation6 + $0x1410] sm:$0xff]  ;;  %v1547_v55 = vld [vmem:[#allocation2 + $0x40] sm:$0x3]  ;;  %v1770_v58 = vld [vmem:[#allocation6 + $0x1448] sm:$0xff] }
 0x17d   :  { %v1774_v20 = vld [vmem:[#allocation6 + $0x1468] sm:$0xff]  ;;  %v1772_v60 = vld [vmem:[#allocation6 + $0x1458] sm:$0xff] }
 0x17e   :  { %5125 = vmatpush1.bf16.msra.mxu0 %v5124_v7  ;;  %v5270_v7 = vpack.c.bf16 %v1744_v63, %v1740_v61  ;;  %v1776_v61 = vld [vmem:[#allocation6 + $0x1478] sm:$0xff]  ;;  %v1590_v63 = vrot.slane %v1548_v49, 2  ;;  %v1786_v35 = vld [vmem:[#allocation6 + $0x14c8] sm:$0xff]  ;;  %v1787_v49 = vld [vmem:[#allocation6 + $0x14d0] sm:$0xff] }
 0x17f   :  { %5253 = vmatpush1.bf16.msra.mxu1 %v5252_v8  ;;  %5127 = vmatprep.subr.bf16.mxu0 %v5126_v10  ;;  %v1743_v8 = vld [vmem:[#allocation6 + $0x1370] sm:$0xff]  ;;  %v1746_v10 = vld [vmem:[#allocation6 + $0x1388] sm:$0xff] }
 0x180   :  { %5255 = vmatprep.subr.bf16.mxu1 %v5254_v15  ;;  %v5144_v15 = vpack.c.bf16 %v1741_v5, %v1737_v4  ;;  %v5272_v16 = vpack.c.bf16 %v1743_v8, %v1739_v6  ;;  %v5146_v17 = vpack.c.bf16 %v1750_v12, %v1746_v10  ;;  %v1552_v4 = vld [vmem:[#allocation2 + $0x68] sm:$0xfc]  ;;  %v5158_v6 = vpack.c.bf16 %v1774_v20, %v1770_v58  ;;  %v1771_v8 = vld [vmem:[#allocation6 + $0x1450] sm:$0xff]  ;;  %v1551_v10 = vld [vmem:[#allocation2 + $0x60] sm:$0xfc] }
 0x181   :  { %v5286_v12 = vpack.c.bf16 %v1776_v61, %v1772_v60  ;;  %v1586_v20 = vrot.slane %v6599_v45, 2  ;;  %v2793_v45 = vld [vmem:[#allocation9 + $0x8a8] sm:$0xff] }
 0x182   :  { %5129 = vmatpush1.bf16.msra.mxu0 %v5128_v27  ;;  %v5274_v27 = vpack.c.bf16 %v1752_v59, %v1748_v14  ;;  %v1775_v14 = vld [vmem:[#allocation6 + $0x1470] sm:$0xff]  ;;  %v1778_v59 = vld [vmem:[#allocation6 + $0x1488] sm:$0xff] }
 0x183   :  { %5257 = vmatpush1.bf16.msra.mxu1 %v5256_v29  ;;  %5131 = vmatprep.subr.bf16.mxu0 %v5130_v30  ;;  %v1751_v29 = vld [vmem:[#allocation6 + $0x13b0] sm:$0xff]  ;;  %v1754_v30 = vld [vmem:[#allocation6 + $0x13c8] sm:$0xff] }
 0x184   :  { %5259 = vmatprep.subr.bf16.mxu1 %v5258_v19  ;;  %v5148_v19 = vpack.c.bf16 %v1749_v23, %v1745_v22  ;;  %v5276_v34 = vpack.c.bf16 %v1751_v29, %v1747_v24  ;;  %v5150_v25 = vpack.c.bf16 %v1758_v31, %v1754_v30  ;;  %v1591_v22 = vsel %vm1575_vm3, %v1580_v62, %v1590_v63  ;;  %v1777_v29 = vld [vmem:[#allocation6 + $0x1480] sm:$0xff] }
 0x185   :  { %v1599_v23 = vrot.slane %v1552_v4, 2  ;;  %v1600_v24 = vrot.slane %v6580_v1, 2  ;;  %v1596_v31 = vrot.slane %v1551_v10, 2  ;;  %v1555_v62 = vld [vmem:[#allocation2 + $0xa0] sm:$0x3]  ;;  %v1783_v1 = vld [vmem:[#allocation6 + $0x14b0] sm:$0xff] }
 0x186   :  { %5133 = vmatpush1.bf16.msra.mxu0 %v5132_v37  ;;  %v1543_v37 = vld [vmem:[#allocation2] sm:$0xfc]  ;;  %v1808_v10 = vld [vmem:[#allocation6 + $0x1578] sm:$0xff] }
 0x187   :  { %5261 = vmatpush1.bf16.msra.mxu1 %v5260_v38  ;;  %5135 = vmatprep.subr.bf16.mxu0 %v5134_v40  ;;  %v5278_v38 = vpack.c.bf16 %v1760_v33, %v1756_v32  ;;  %v1759_v40 = vld [vmem:[#allocation6 + $0x13f0] sm:$0xff]  ;;  %v1576_v47 = vrot.slane %v1543_v37, 2  ;;  %v1597_v32 = vrot.slane %v6583_v13, 2  ;;  %v1556_v33 = vld [vmem:[#allocation2 + $0xa8] sm:$0x3]  ;;  %v1788_v37 = vld [vmem:[#allocation6 + $0x14d8] sm:$0xff]  ;;  %v1601_v13 = vsel %vm1575_vm3, %v1599_v23, %v1600_v24 }
 0x188   :  { %5263 = vmatprep.subr.bf16.mxu1 %v5262_v44  ;;  %v1768_v44 = vld [vmem:[#allocation6 + $0x1438] sm:$0xff] }
 0x189   :  { %v5282_v56 = vpack.c.bf16 %v1768_v44, %v1764_v43  ;;  %v1578_v9 = vsel %vm1575_vm3, %v1576_v47, %v1577_v48  ;;  %v1608_v43 = vrot.slane %v1555_v62, 2  ;;  %v1546_v44 = vld [vmem:[#allocation2 + $0x18] sm:$0xfc] }
 0x18a   :  { %5137 = vmatpush1.bf16.msra.mxu0 %v5136_v50  ;;  %v5280_v50 = vpack.c.bf16 %v1759_v40, %v1755_v36  ;;  %v1790_v36 = vld [vmem:[#allocation6 + $0x14e8] sm:$0xff]  ;;  %v1610_v40 = vrot.slane %v1556_v33, 2  ;;  %v1585_v58 = vrot.slane %v1546_v44, 2 }
 0x18b   :  { %5265 = vmatpush1.bf16.msra.mxu1 %v5264_v52  ;;  %5139 = vmatprep.subr.bf16.mxu0 %v5138_v53  ;;  %v5154_v52 = vpack.c.bf16 %v1766_v42, %v1762_v41  ;;  %v1765_v53 = vld [vmem:[#allocation6 + $0x1420] sm:$0xff]  ;;  %v5164_v41 = vpack.c.bf16 %v1781_v39, %v1777_v29  ;;  %v1598_v42 = vsel %vm1575_vm3, %v1596_v31, %v1597_v32  ;;  %v1814_v29 = vld [vmem:[#allocation6 + $0x15a8] sm:$0xff]  ;;  %v1816_v31 = vld [vmem:[#allocation6 + $0x15b8] sm:$0xff] }
 0x18c   :  { %5267 = vmatprep.subr.bf16.mxu1 %v5266_v57  ;;  %v1767_v57 = vld [vmem:[#allocation6 + $0x1430] sm:$0xff]  ;;  %v5166_v47 = vpack.c.bf16 %v1790_v36, %v1786_v35  ;;  %v1609_v61 = vsel %vm1575_vm3, %v1597_v32, %v1608_v43  ;;  %v1813_v39 = vld [vmem:[#allocation6 + $0x15a0] sm:$0xff]  ;;  %v1822_v35 = vld [vmem:[#allocation6 + $0x15e8] sm:$0xff] }
 0x18d   :  { %v5284_v5 = vpack.c.bf16 %v1767_v57, %v1763_v54  ;;  %v1798_v54 = vld [vmem:[#allocation6 + $0x1528] sm:$0xff]  ;;  %v1611_v57 = vsel %vm1575_vm3, %v1600_v24, %v1610_v40  ;;  %v1807_v24 = vld [vmem:[#allocation6 + $0x1570] sm:$0xff]  ;;  %v1820_v36 = vld [vmem:[#allocation6 + $0x15d8] sm:$0xff] }
 0x18e   :  { %5141 = vmatpush1.bf16.msra.mxu0 %v5140_v0  ;;  %v5156_v0 = vpack.c.bf16 %v1765_v53, %v1761_v51  ;;  %v1789_v51 = vld [vmem:[#allocation6 + $0x14e0] sm:$0xff]  ;;  %v1794_v53 = vld [vmem:[#allocation6 + $0x1508] sm:$0xff]  ;;  %v1819_v43 = vld [vmem:[#allocation6 + $0x15d0] sm:$0xff] }
 0x18f   :  { %5269 = vmatpush1.bf16.msra.mxu1 %v5268_v2  ;;  %5143 = vmatprep.subr.bf16.mxu0 %v5142_v3  ;;  %v1769_v2 = vld [vmem:[#allocation6 + $0x1440] sm:$0xff]  ;;  %v1588_v3 = vrot.slane %v1547_v55, 2  ;;  %v1796_v55 = vld [vmem:[#allocation6 + $0x1518] sm:$0xff] }
 0x190   :  { %5271 = vmatprep.subr.bf16.mxu1 %v5270_v7  ;;  %v1773_v7 = vld [vmem:[#allocation6 + $0x1460] sm:$0xff] }
 0x191   :  { %v1589_v30 = vsel %vm1575_vm3, %v1577_v48, %v1588_v3  ;;  %v1785_v48 = vld [vmem:[#allocation6 + $0x14c0] sm:$0xff]  ;;  %v1795_v3 = vld [vmem:[#allocation6 + $0x1510] sm:$0xff] }
 0x192   :  { %5145 = vmatpush1.bf16.msra.mxu0 %v5144_v15  ;;  %v1782_v15 = vld [vmem:[#allocation6 + $0x14a8] sm:$0xff]  ;;  %v5168_v60 = vpack.c.bf16 %v1789_v51, %v1785_v48  ;;  %v1828_v51 = vld [vmem:[#allocation6 + $0x1618] sm:$0xff] }
 0x193   :  { %5273 = vmatpush1.bf16.msra.mxu1 %v5272_v16  ;;  %5147 = vmatprep.subr.bf16.mxu0 %v5146_v17  ;;  %v1780_v16 = vld [vmem:[#allocation6 + $0x1498] sm:$0xff]  ;;  %v5162_v18 = vpack.c.bf16 %v1782_v15, %v1778_v59  ;;  %v1830_v48 = vld [vmem:[#allocation6 + $0x1628] sm:$0xff] }
 0x194   :  { %5275 = vmatprep.subr.bf16.mxu1 %v5274_v27  ;;  %v1784_v17 = vld [vmem:[#allocation6 + $0x14b8] sm:$0xff]  ;;  %v5160_v27 = vpack.c.bf16 %v1773_v7, %v1769_v2  ;;  %v1797_v2 = vld [vmem:[#allocation6 + $0x1520] sm:$0xff]  ;;  %v1806_v7 = vld [vmem:[#allocation6 + $0x1568] sm:$0xff] }
 0x196   :  { %5149 = vmatpush1.bf16.msra.mxu0 %v5148_v19  ;;  %v5288_v19 = vpack.c.bf16 %v1775_v14, %v1771_v8  ;;  %v1804_v8 = vld [vmem:[#allocation6 + $0x1558] sm:$0xff] }
 0x197   :  { %5277 = vmatpush1.bf16.msra.mxu1 %v5276_v34  ;;  %5151 = vmatprep.subr.bf16.mxu0 %v5150_v25  ;;  %v1779_v34 = vld [vmem:[#allocation6 + $0x1490] sm:$0xff]  ;;  %v5290_v25 = vpack.c.bf16 %v1784_v17, %v1780_v16  ;;  %v1801_v16 = vld [vmem:[#allocation6 + $0x1540] sm:$0xff]  ;;  %v5302_v23 = vpack.c.bf16 %v1808_v10, %v1804_v8  ;;  %v1842_v10 = vld [vmem:[#allocation6 + $0x1688] sm:$0xff] }
 0x198   :  { %5279 = vmatprep.subr.bf16.mxu1 %v5278_v38  ;;  %v1792_v38 = vld [vmem:[#allocation6 + $0x14f8] sm:$0xff]  ;;  %v1805_v17 = vld [vmem:[#allocation6 + $0x1560] sm:$0xff]  ;;  %v1839_v8 = vld [vmem:[#allocation6 + $0x1670] sm:$0xff] }
 0x199   :  { %v5176_v32 = vpack.c.bf16 %v1805_v17, %v1801_v16 }
 0x19a   :  { %5153 = vmatpush1.bf16.msra.mxu0 %v5152_v46  ;;  %v5292_v46 = vpack.c.bf16 %v1783_v1, %v1779_v34  ;;  %v1811_v34 = vld [vmem:[#allocation6 + $0x1590] sm:$0xff]  ;;  %v1818_v1 = vld [vmem:[#allocation6 + $0x15c8] sm:$0xff] }
 0x19b   :  { %5281 = vmatpush1.bf16.msra.mxu1 %v5280_v50  ;;  %5155 = vmatprep.subr.bf16.mxu0 %v5154_v52  ;;  %v5294_v50 = vpack.c.bf16 %v1792_v38, %v1788_v37  ;;  %v1791_v52 = vld [vmem:[#allocation6 + $0x14f0] sm:$0xff]  ;;  %v1824_v37 = vld [vmem:[#allocation6 + $0x15f8] sm:$0xff]  ;;  %v5182_v40 = vpack.c.bf16 %v1822_v35, %v1818_v1 }
 0x19c   :  { %5283 = vmatprep.subr.bf16.mxu1 %v5282_v56  ;;  %v1800_v56 = vld [vmem:[#allocation6 + $0x1538] sm:$0xff]  ;;  %v5296_v63 = vpack.c.bf16 %v1791_v52, %v1787_v49  ;;  %v5310_v44 = vpack.c.bf16 %v1824_v37, %v1820_v36  ;;  %v1855_v35 = vld [vmem:[#allocation6 + $0x16f0] sm:$0xff]  ;;  %v1858_v36 = vld [vmem:[#allocation6 + $0x1708] sm:$0xff] }
 0x19d   :  { %1954 = vmatmul.mubr.f32.vlgmr.msra.gmra.mrb[0].mxu0 %v1578_v9  ;;  %v5298_v4 = vpack.c.bf16 %v1800_v56, %v1796_v55  ;;  %v1832_v49 = vld [vmem:[#allocation6 + $0x1638] sm:$0xff]  ;;  %v1829_v55 = vld [vmem:[#allocation6 + $0x1620] sm:$0xff]  ;;  %v1827_v56 = vld [vmem:[#allocation6 + $0x1610] sm:$0xff] }
 0x19e   :  { %5157 = vmatpush1.bf16.msra.mxu0 %v5156_v0  ;;  %2132 = vmatmul.mubr.f32.vlgmr.msra.gmra.mrb[0].mxu1 %v1578_v9  ;;  %v5170_v9 = vpack.c.bf16 %v1798_v54, %v1794_v53  ;;  %v1793_v0 = vld [vmem:[#allocation6 + $0x1500] sm:$0xff]  ;;  %v1862_v37 = vld [vmem:[#allocation6 + $0x1728] sm:$0xff] }
 0x19f   :  { %5285 = vmatpush1.bf16.msra.mxu1 %v5284_v5  ;;  %5159 = vmatprep.subr.bf16.mxu0 %v5158_v6  ;;  %v1799_v5 = vld [vmem:[#allocation6 + $0x1530] sm:$0xff]  ;;  %v1802_v6 = vld [vmem:[#allocation6 + $0x1548] sm:$0xff]  ;;  %v5172_v14 = vpack.c.bf16 %v1797_v2, %v1793_v0  ;;  %v1825_v54 = vld [vmem:[#allocation6 + $0x1600] sm:$0xff] }
 0x1a0   :  { %5287 = vmatprep.subr.bf16.mxu1 %v5286_v12  ;;  %1959 = vmatprep.mubr.f32.mxu0 %v1591_v22  ;;  %v1587_v12 = vsel %vm1575_vm3, %v1585_v58, %v1586_v20  ;;  %v5300_v59 = vpack.c.bf16 %v1799_v5, %v1795_v3  ;;  %v5174_v15 = vpack.c.bf16 %v1806_v7, %v1802_v6  ;;  %v1831_v58 = vld [vmem:[#allocation6 + $0x1630] sm:$0xff]  ;;  %v1837_v5 = vld [vmem:[#allocation6 + $0x1660] sm:$0xff] }
 0x1a1   :  { %2137 = vmatprep.mubr.f32.mxu1 %v1591_v22  ;;  %1960 = vmatmul.mubr.f32.gmra.mrb[2].mxu0 %v1589_v30  ;;  %v1803_v22 = vld [vmem:[#allocation6 + $0x1550] sm:$0xff]  ;;  %v5188_v0 = vpack.c.bf16 %v1829_v55, %v1825_v54  ;;  %v5316_v2 = vpack.c.bf16 %v1831_v58, %v1827_v56  ;;  %v1865_v56 = vld [vmem:[#allocation6 + $0x1740] sm:$0xff] }
 0x1a2   :  { %5161 = vmatpush1.bf16.msra.mxu0 %v5160_v27  ;;  %2138 = vmatmul.mubr.f32.gmra.mrb[2].mxu1 %v1589_v30  ;;  %v1810_v27 = vld [vmem:[#allocation6 + $0x1588] sm:$0xff]  ;;  %v1812_v30 = vld [vmem:[#allocation6 + $0x1598] sm:$0xff]  ;;  %v5304_v33 = vpack.c.bf16 %v1807_v24, %v1803_v22  ;;  %v1835_v6 = vld [vmem:[#allocation6 + $0x1650] sm:$0xff] }
 0x1a3   :  { %5289 = vmatpush1.bf16.msra.mxu1 %v5288_v19  ;;  %5163 = vmatprep.subr.bf16.mxu0 %v5162_v18  ;;  %v5178_v19 = vpack.c.bf16 %v1814_v29, %v1810_v27  ;;  %v1809_v18 = vld [vmem:[#allocation6 + $0x1580] sm:$0xff]  ;;  %v5306_v62 = vpack.c.bf16 %v1816_v31, %v1812_v30  ;;  %v5320_v16 = vpack.c.bf16 %v1839_v8, %v1835_v6  ;;  %v1843_v24 = vld [vmem:[#allocation6 + $0x1690] sm:$0xff]  ;;  %v1850_v30 = vld [vmem:[#allocation6 + $0x16c8] sm:$0xff] }
 0x1a4   :  { %5291 = vmatprep.subr.bf16.mxu1 %v5290_v25  ;;  %1965 = vmatprep.mubr.f32.mxu0 %v1601_v13  ;;  %v1815_v25 = vld [vmem:[#allocation6 + $0x15b0] sm:$0xff]  ;;  %v5180_v38 = vpack.c.bf16 %v1813_v39, %v1809_v18  ;;  %v1841_v22 = vld [vmem:[#allocation6 + $0x1680] sm:$0xff]  ;;  %v1854_v31 = vld [vmem:[#allocation6 + $0x16e8] sm:$0xff] }
 0x1a5   :  { %2143 = vmatprep.mubr.f32.mxu1 %v1601_v13  ;;  %1966 = vmatmul.mubr.f32.gmra.mrb[4].mxu0 %v1598_v42  ;;  %v5308_v13 = vpack.c.bf16 %v1815_v25, %v1811_v34  ;;  %v1847_v29 = vld [vmem:[#allocation6 + $0x16b0] sm:$0xff]  ;;  %v5198_v39 = vpack.c.bf16 %v1854_v31, %v1850_v30  ;;  %v1849_v34 = vld [vmem:[#allocation6 + $0x16c0] sm:$0xff] }
 0x1a6   :  { %5165 = vmatpush1.bf16.msra.mxu0 %v5164_v41  ;;  %2144 = vmatmul.mubr.f32.gmra.mrb[4].mxu1 %v1598_v42  ;;  %v1817_v41 = vld [vmem:[#allocation6 + $0x15c0] sm:$0xff]  ;;  %v5324_v18 = vpack.c.bf16 %v1847_v29, %v1843_v24  ;;  %v1851_v25 = vld [vmem:[#allocation6 + $0x16d0] sm:$0xff] }
 0x1a7   :  { %5293 = vmatpush1.bf16.msra.mxu1 %v5292_v46  ;;  %5167 = vmatprep.subr.bf16.mxu0 %v5166_v47  ;;  %v1821_v42 = vld [vmem:[#allocation6 + $0x15e0] sm:$0xff]  ;;  %v1823_v46 = vld [vmem:[#allocation6 + $0x15f0] sm:$0xff]  ;;  %v1826_v47 = vld [vmem:[#allocation6 + $0x1608] sm:$0xff] }
 0x1a8   :  { %5295 = vmatprep.subr.bf16.mxu1 %v5294_v50  ;;  %1971 = vmatprep.mubr.f32.mxu0 %v1611_v57  ;;  %v5184_v50 = vpack.c.bf16 %v1821_v42, %v1817_v41  ;;  %v5312_v52 = vpack.c.bf16 %v1823_v46, %v1819_v43  ;;  %v5186_v53 = vpack.c.bf16 %v1830_v48, %v1826_v47  ;;  %v1857_v43 = vld [vmem:[#allocation6 + $0x1700] sm:$0xff]  ;;  %v1859_v46 = vld [vmem:[#allocation6 + $0x1710] sm:$0xff] }
 0x1a9   :  { %2149 = vmatprep.mubr.f32.mxu1 %v1611_v57  ;;  %1972 = vmatmul.mubr.f32.gmra.mrb[6].mxu0 %v1609_v61  ;;  %v5314_v57 = vpack.c.bf16 %v1832_v49, %v1828_v51  ;;  %v5328_v41 = vpack.c.bf16 %v1855_v35, %v1851_v25  ;;  %v5202_v42 = vpack.c.bf16 %v1862_v37, %v1858_v36  ;;  %v1863_v48 = vld [vmem:[#allocation6 + $0x1730] sm:$0xff]  ;;  %v1866_v51 = vld [vmem:[#allocation6 + $0x1748] sm:$0xff]  ;;  %v1873_v6 = vld [vmem:[#allocation6 + $0x1780] sm:$0xff] }
 0x1aa   :  { %5169 = vmatpush1.bf16.msra.mxu0 %v5168_v60  ;;  %2150 = vmatmul.mubr.f32.gmra.mrb[6].mxu1 %v1609_v61  ;;  %v1834_v60 = vld [vmem:[#allocation6 + $0x1648] sm:$0xff]  ;;  %v5332_v54 = vpack.c.bf16 %v1863_v48, %v1859_v46  ;;  %v1867_v58 = vld [vmem:[#allocation6 + $0x1750] sm:$0xff] }
 0x1ab   :  { %5297 = vmatpush1.bf16.msra.mxu1 %v5296_v63  ;;  %5171 = vmatprep.subr.bf16.mxu0 %v5170_v9  ;;  %v1838_v61 = vld [vmem:[#allocation6 + $0x1668] sm:$0xff]  ;;  %v1836_v63 = vld [vmem:[#allocation6 + $0x1658] sm:$0xff]  ;;  %v1875_v8 = vld [vmem:[#allocation6 + $0x1790] sm:$0xff] }
 0x1ac   :  { %5299 = vmatprep.subr.bf16.mxu1 %v5298_v4  ;;  %2042 = vmatprep.mubr.f32.mxu0 %v1587_v12  ;;  %v1840_v9 = vld [vmem:[#allocation6 + $0x1678] sm:$0xff]  ;;  %v5190_v3 = vpack.c.bf16 %v1838_v61, %v1834_v60  ;;  %v1833_v4 = vld [vmem:[#allocation6 + $0x1640] sm:$0xff]  ;;  %v1870_v49 = vld [vmem:[#allocation6 + $0x1768] sm:$0xff] }
 0x1ad   :  { %2220 = vmatprep.mubr.f32.mxu1 %v1587_v12  ;;  %v5318_v7 = vpack.c.bf16 %v1840_v9, %v1836_v63  ;;  %v1846_v12 = vld [vmem:[#allocation6 + $0x16a8] sm:$0xff]  ;;  %v5206_v55 = vpack.c.bf16 %v1870_v49, %v1866_v51  ;;  %v1871_v61 = vld [vmem:[#allocation6 + $0x1770] sm:$0xff]  ;;  %v2787_v49 = vld [vmem:[#allocation9 + $0x878] sm:$0xff] }
 0x1ae   :  { %5173 = vmatpush1.bf16.msra.mxu0 %v5172_v14  ;;  %v1844_v14 = vld [vmem:[#allocation6 + $0x1698] sm:$0xff]  ;;  %v5194_v17 = vpack.c.bf16 %v1846_v12, %v1842_v10  ;;  %v1874_v63 = vld [vmem:[#allocation6 + $0x1788] sm:$0xff]  ;;  %v1879_v12 = vld [vmem:[#allocation6 + $0x17b0] sm:$0xff] }
 0x1af   :  { %5301 = vmatpush1.bf16.msra.mxu1 %v5300_v59  ;;  %5175 = vmatprep.subr.bf16.mxu0 %v5174_v15  ;;  %v1848_v59 = vld [vmem:[#allocation6 + $0x16b8] sm:$0xff]  ;;  %v5192_v15 = vpack.c.bf16 %v1837_v5, %v1833_v4  ;;  %v1878_v9 = vld [vmem:[#allocation6 + $0x17a8] sm:$0xff]  ;;  %v5336_v4 = vpack.c.bf16 %v1871_v61, %v1867_v58  ;;  %v5340_v24 = vpack.c.bf16 %v1879_v12, %v1875_v8  ;;  %v1883_v29 = vld [vmem:[#allocation6 + $0x17d0] sm:$0xff] }
 0x1b0   :  { %5303 = vmatprep.subr.bf16.mxu1 %v5302_v23  ;;  %v1845_v23 = vld [vmem:[#allocation6 + $0x16a0] sm:$0xff]  ;;  %v5322_v27 = vpack.c.bf16 %v1848_v59, %v1844_v14  ;;  %v5210_v5 = vpack.c.bf16 %v1878_v9, %v1874_v63  ;;  %v1882_v14 = vld [vmem:[#allocation6 + $0x17c8] sm:$0xff]  ;;  %v1887_v30 = vld [vmem:[#allocation6 + $0x17f0] sm:$0xff] }
 0x1b1   :  { %v1886_v59 = vld [vmem:[#allocation6 + $0x17e8] sm:$0xff]  ;;  %v1545_v31 = vld [vmem:[#allocation2 + $0x10] sm:$0xfc]  ;;  %v5344_v35 = vpack.c.bf16 %v1887_v30, %v1883_v29  ;;  %v1549_v37 = vld [vmem:[#allocation2 + $0x50] sm:$0x3] }
 0x1b2   :  { %5177 = vmatpush1.bf16.msra.mxu0 %v5176_v32  ;;  %v1852_v32 = vld [vmem:[#allocation6 + $0x16d8] sm:$0xff]  ;;  %v1582_v25 = vrot.slane %v1545_v31, 2  ;;  %v2781_v46 = vld [vmem:[#allocation9 + $0x848] sm:$0xff]  ;;  %v1592_v51 = vrot.slane %v1549_v37, 2  ;;  %v2784_v61 = vld [vmem:[#allocation9 + $0x860] sm:$0xff] }
 0x1b3   :  { %5305 = vmatpush1.bf16.msra.mxu1 %v5304_v33  ;;  %5179 = vmatprep.subr.bf16.mxu0 %v5178_v19  ;;  %v1856_v33 = vld [vmem:[#allocation6 + $0x16f8] sm:$0xff]  ;;  %v5196_v19 = vpack.c.bf16 %v1845_v23, %v1841_v22  ;;  %v1881_v22 = vld [vmem:[#allocation6 + $0x17c0] sm:$0xff]  ;;  %v1557_v8 = vld [vmem:[#allocation2 + $0xb0] sm:$0x3] }
 0x1b4   :  { %5307 = vmatprep.subr.bf16.mxu1 %v5306_v62  ;;  %v1853_v62 = vld [vmem:[#allocation6 + $0x16e0] sm:$0xff]  ;;  %v5326_v1 = vpack.c.bf16 %v1856_v33, %v1852_v32  ;;  %v1550_v33 = vld [vmem:[#allocation2 + $0x58] sm:$0x3] }
 0x1b5   :  { %v1885_v23 = vld [vmem:[#allocation6 + $0x17e0] sm:$0xff]  ;;  %v1594_v36 = vrot.slane %v1550_v33, 2  ;;  %v2782_v63 = vld [vmem:[#allocation9 + $0x850] sm:$0xff] }
 0x1b6   :  { %5181 = vmatpush1.bf16.msra.mxu0 %v5180_v38  ;;  %v1860_v38 = vld [vmem:[#allocation6 + $0x1718] sm:$0xff] }
 0x1b7   :  { %5309 = vmatpush1.bf16.msra.mxu1 %v5308_v13  ;;  %5183 = vmatprep.subr.bf16.mxu0 %v5182_v40  ;;  %v1864_v13 = vld [vmem:[#allocation6 + $0x1738] sm:$0xff]  ;;  %v5200_v40 = vpack.c.bf16 %v1853_v62, %v1849_v34  ;;  %v5216_v62 = vpack.c.bf16 %v1885_v23, %v1881_v22  ;;  %v2797_v22 = vld [vmem:[#allocation9 + $0x8c8] sm:$0xff] }
 0x1b8   :  { %5311 = vmatprep.subr.bf16.mxu1 %v5310_v44  ;;  %v1861_v44 = vld [vmem:[#allocation6 + $0x1720] sm:$0xff]  ;;  %v5330_v47 = vpack.c.bf16 %v1864_v13, %v1860_v38  ;;  %v1554_v38 = vld [vmem:[#allocation2 + $0x78] sm:$0xfc]  ;;  %v2801_v23 = vld [vmem:[#allocation9 + $0x8e8] sm:$0xff] }
 0x1b9   :  { %v2779_v34 = vld [vmem:[#allocation9 + $0x838] sm:$0xff] }
 0x1ba   :  { %5185 = vmatpush1.bf16.msra.mxu0 %v5184_v50  ;;  %v1868_v50 = vld [vmem:[#allocation6 + $0x1758] sm:$0xff] }
 0x1bb   :  { %5313 = vmatpush1.bf16.msra.mxu1 %v5312_v52  ;;  %5187 = vmatprep.subr.bf16.mxu0 %v5186_v53  ;;  %v1872_v52 = vld [vmem:[#allocation6 + $0x1778] sm:$0xff]  ;;  %v5204_v53 = vpack.c.bf16 %v1861_v44, %v1857_v43 }
 0x1bc   :  { %5315 = vmatprep.subr.bf16.mxu1 %v5314_v57  ;;  %v1869_v57 = vld [vmem:[#allocation6 + $0x1760] sm:$0xff]  ;;  %v5334_v60 = vpack.c.bf16 %v1872_v52, %v1868_v50  ;;  %v2774_v43 = vld [vmem:[#allocation9 + $0x810] sm:$0xff]  ;;  %v1595_v50 = vsel %vm1575_vm3, %v1586_v20, %v1594_v36  ;;  %v1605_v52 = vrot.slane %v1554_v38, 2 }
 0x1bd   :  { %v2778_v44 = vld [vmem:[#allocation9 + $0x830] sm:$0xff]  ;;  %v2799_v29 = vld [vmem:[#allocation9 + $0x8d8] sm:$0xff] }
 0x1be   :  { %5189 = vmatpush1.bf16.msra.mxu0 %v5188_v0  ;;  %v1876_v0 = vld [vmem:[#allocation6 + $0x1798] sm:$0xff] }
 0x1bf   :  { %5317 = vmatpush1.bf16.msra.mxu1 %v5316_v2  ;;  %5191 = vmatprep.subr.bf16.mxu0 %v5190_v3  ;;  %v1880_v2 = vld [vmem:[#allocation6 + $0x17b8] sm:$0xff]  ;;  %v5208_v3 = vpack.c.bf16 %v1869_v57, %v1865_v56  ;;  %v5476_v57 = vpack.c.bf16 %v2778_v44, %v2774_v43  ;;  %v2808_v43 = vld [vmem:[#allocation9 + $0x920] sm:$0xff] }
 0x1c0   :  { %5319 = vmatprep.subr.bf16.mxu1 %v5318_v7  ;;  %v1877_v7 = vld [vmem:[#allocation6 + $0x17a0] sm:$0xff]  ;;  %v5338_v10 = vpack.c.bf16 %v1880_v2, %v1876_v0  ;;  %v2786_v0 = vld [vmem:[#allocation9 + $0x870] sm:$0xff]  ;;  %v2789_v2 = vld [vmem:[#allocation9 + $0x888] sm:$0xff] }
 0x1c1   :  { %v5480_v12 = vpack.c.bf16 %v2786_v0, %v2782_v63  ;;  %v2803_v30 = vld [vmem:[#allocation9 + $0x8f8] sm:$0xff]  ;;  %v2806_v44 = vld [vmem:[#allocation9 + $0x910] sm:$0xff] }
 0x1c2   :  { %5193 = vmatpush1.bf16.msra.mxu0 %v5192_v15  ;;  %v1884_v15 = vld [vmem:[#allocation6 + $0x17d8] sm:$0xff] }
 0x1c3   :  { %5321 = vmatpush1.bf16.msra.mxu1 %v5320_v16  ;;  %5195 = vmatprep.subr.bf16.mxu0 %v5194_v17  ;;  %v1888_v16 = vld [vmem:[#allocation6 + $0x17f8] sm:$0xff]  ;;  %v5212_v17 = vpack.c.bf16 %v1877_v7, %v1873_v6 }
 0x1c4   :  { %5323 = vmatprep.subr.bf16.mxu1 %v5322_v27  ;;  %v5214_v27 = vpack.c.bf16 %v1886_v59, %v1882_v14  ;;  %v5342_v32 = vpack.c.bf16 %v1888_v16, %v1884_v15  ;;  %v5354_v14 = vpack.c.bf16 %v2793_v45, %v2789_v2  ;;  %v2788_v59 = vld [vmem:[#allocation9 + $0x880] sm:$0xff]  ;;  %v2790_v16 = vld [vmem:[#allocation9 + $0x890] sm:$0xff]  ;;  %v2807_v37 = vld [vmem:[#allocation9 + $0x918] sm:$0xff] }
 0x1c5   :  { %v2792_v15 = vld [vmem:[#allocation9 + $0x8a0] sm:$0xff]  ;;  %v2811_v38 = vld [vmem:[#allocation9 + $0x938] sm:$0xff] }
 0x1c6   :  { %5197 = vmatpush1.bf16.msra.mxu0 %v5196_v19  ;;  %v2773_v19 = vld [vmem:[#allocation9 + $0x808] sm:$0xff]  ;;  %v2823_v63 = vld [vmem:[#allocation9 + $0x998] sm:$0xff] }
 0x1c7   :  { %5325 = vmatpush1.bf16.msra.mxu1 %v5324_v18  ;;  %5199 = vmatprep.subr.bf16.mxu0 %v5198_v39  ;;  %v2777_v18 = vld [vmem:[#allocation9 + $0x828] sm:$0xff]  ;;  %v2775_v39 = vld [vmem:[#allocation9 + $0x818] sm:$0xff] }
 0x1c8   :  { %5327 = vmatprep.subr.bf16.mxu1 %v5326_v1  ;;  %v1583_v1 = vrot.slane %v6613_v21, 2  ;;  %v5346_v13 = vpack.c.bf16 %v2777_v18, %v2773_v19  ;;  %v2783_v21 = vld [vmem:[#allocation9 + $0x858] sm:$0xff]  ;;  %v5358_v19 = vpack.c.bf16 %v2801_v23, %v2797_v22  ;;  %v2796_v18 = vld [vmem:[#allocation9 + $0x8c0] sm:$0xff]  ;;  %v2834_v22 = vld [vmem:[#allocation9 + $0x9f0] sm:$0xff] }
 0x1c9   :  { %v5478_v9 = vpack.c.bf16 %v2787_v49, %v2783_v21  ;;  %v2815_v21 = vld [vmem:[#allocation9 + $0x958] sm:$0xff]  ;;  %v2837_v23 = vld [vmem:[#allocation9 + $0xa08] sm:$0xff] }
 0x1ca   :  { %5201 = vmatpush1.bf16.msra.mxu0 %v5200_v40  ;;  %v5474_v40 = vpack.c.bf16 %v2779_v34, %v2775_v39  ;;  %v1584_v48 = vsel %vm1575_vm3, %v1582_v25, %v1583_v1  ;;  %v1593_v20 = vsel %vm1575_vm3, %v1583_v1, %v1592_v51  ;;  %v2800_v39 = vld [vmem:[#allocation9 + $0x8e0] sm:$0xff]  ;;  %v2798_v34 = vld [vmem:[#allocation9 + $0x8d0] sm:$0xff]  ;;  %v2805_v1 = vld [vmem:[#allocation9 + $0x908] sm:$0xff] }
 0x1cb   :  { %5329 = vmatpush1.bf16.msra.mxu1 %v5328_v41  ;;  %5203 = vmatprep.subr.bf16.mxu0 %v5202_v42  ;;  %v2772_v41 = vld [vmem:[#allocation9 + $0x800] sm:$0xff]  ;;  %v2802_v25 = vld [vmem:[#allocation9 + $0x8f0] sm:$0xff]  ;;  %v2817_v51 = vld [vmem:[#allocation9 + $0x968] sm:$0xff] }
 0x1cc   :  { %5331 = vmatprep.subr.bf16.mxu1 %v5330_v47  ;;  %v2776_v42 = vld [vmem:[#allocation9 + $0x820] sm:$0xff]  ;;  %v2785_v47 = vld [vmem:[#allocation9 + $0x868] sm:$0xff]  ;;  %v2819_v49 = vld [vmem:[#allocation9 + $0x978] sm:$0xff] }
 0x1cd   :  { %v5348_v56 = vpack.c.bf16 %v2776_v42, %v2772_v41  ;;  %v5350_v58 = vpack.c.bf16 %v2785_v47, %v2781_v46  ;;  %v2804_v42 = vld [vmem:[#allocation9 + $0x900] sm:$0xff]  ;;  %v5490_v46 = vpack.c.bf16 %v2811_v38, %v2807_v37  ;;  %v2810_v47 = vld [vmem:[#allocation9 + $0x930] sm:$0xff] }
 0x1ce   :  { %5205 = vmatpush1.bf16.msra.mxu0 %v5204_v53  ;;  %v1606_v53 = vrot.slane %v6622_v28, 2 }
 0x1cf   :  { %5333 = vmatpush1.bf16.msra.mxu1 %v5332_v54  ;;  %5207 = vmatprep.subr.bf16.mxu0 %v5206_v55  ;;  %v1553_v54 = vld [vmem:[#allocation2 + $0x70] sm:$0xfc]  ;;  %v1558_v55 = vld [vmem:[#allocation2 + $0xb8] sm:$0x3] }
 0x1d0   :  { %5335 = vmatprep.subr.bf16.mxu1 %v5334_v60  ;;  %v2780_v60 = vld [vmem:[#allocation9 + $0x840] sm:$0xff]  ;;  %v1602_v28 = vrot.slane %v1553_v54, 2  ;;  %v1607_v6 = vsel %vm1575_vm3, %v1605_v52, %v1606_v53  ;;  %v1614_v7 = vrot.slane %v1558_v55, 2  ;;  %v5492_v52 = vpack.c.bf16 %v2810_v47, %v2806_v44  ;;  %v2853_v47 = vld [vmem:[#allocation9 + $0xa88] sm:$0xff] }
 0x1d1   :  { %v2812_v54 = vld [vmem:[#allocation9 + $0x940] sm:$0xff] }
 0x1d2   :  { %5209 = vmatpush1.bf16.msra.mxu0 %v5208_v3  ;;  %v1603_v3 = vrot.slane %v6625_v26, 2  ;;  %v2794_v26 = vld [vmem:[#allocation9 + $0x8b0] sm:$0xff]  ;;  %v1615_v31 = vsel %vm1575_vm3, %v1606_v53, %v1614_v7  ;;  %v2816_v55 = vld [vmem:[#allocation9 + $0x960] sm:$0xff]  ;;  %v2833_v7 = vld [vmem:[#allocation9 + $0x9e8] sm:$0xff] }
 0x1d3   :  { %5337 = vmatpush1.bf16.msra.mxu1 %v5336_v4  ;;  %5211 = vmatprep.subr.bf16.mxu0 %v5210_v5  ;;  %v2791_v4 = vld [vmem:[#allocation9 + $0x898] sm:$0xff]  ;;  %v5484_v33 = vpack.c.bf16 %v2794_v26, %v2790_v16  ;;  %v5368_v0 = vpack.c.bf16 %v2816_v55, %v2812_v54  ;;  %v2832_v16 = vld [vmem:[#allocation9 + $0x9e0] sm:$0xff]  ;;  %v2854_v55 = vld [vmem:[#allocation9 + $0xa90] sm:$0xff] }
 0x1d4   :  { %5339 = vmatprep.subr.bf16.mxu1 %v5338_v10  ;;  %v2795_v5 = vld [vmem:[#allocation9 + $0x8b8] sm:$0xff]  ;;  %v5352_v10 = vpack.c.bf16 %v2784_v61, %v2780_v60  ;;  %v2821_v60 = vld [vmem:[#allocation9 + $0x988] sm:$0xff] }
 0x1d5   :  { %v2825_v61 = vld [vmem:[#allocation9 + $0x9a8] sm:$0xff] }
 0x1d6   :  { %5213 = vmatpush1.bf16.msra.mxu0 %v5212_v17  ;;  %v5482_v17 = vpack.c.bf16 %v2795_v5, %v2791_v4  ;;  %v5370_v45 = vpack.c.bf16 %v2825_v61, %v2821_v60  ;;  %v2826_v5 = vld [vmem:[#allocation9 + $0x9b0] sm:$0xff]  ;;  %v2865_v60 = vld [vmem:[#allocation9 + $0xae8] sm:$0xff]  ;;  %v2863_v61 = vld [vmem:[#allocation9 + $0xad8] sm:$0xff] }
 0x1d7   :  { %5341 = vmatpush1.bf16.msra.mxu1 %v5340_v24  ;;  %5215 = vmatprep.subr.bf16.mxu0 %v5214_v27  ;;  %v1604_v24 = vsel %vm1575_vm3, %v1602_v28, %v1603_v3  ;;  %v1612_v27 = vrot.slane %v1557_v8, 2  ;;  %v2824_v28 = vld [vmem:[#allocation9 + $0x9a0] sm:$0xff]  ;;  %v2831_v8 = vld [vmem:[#allocation9 + $0x9d8] sm:$0xff] }
 0x1d8   :  { %5343 = vmatprep.subr.bf16.mxu1 %v5342_v32  ;;  %v5356_v32 = vpack.c.bf16 %v2792_v15, %v2788_v59  ;;  %v2828_v15 = vld [vmem:[#allocation9 + $0x9c0] sm:$0xff] }
 0x1d9   :  { %v1613_v36 = vsel %vm1575_vm3, %v1603_v3, %v1612_v27  ;;  %v2822_v3 = vld [vmem:[#allocation9 + $0x990] sm:$0xff]  ;;  %v2839_v27 = vld [vmem:[#allocation9 + $0xa18] sm:$0xff] }
 0x1da   :  { %5217 = vmatpush1.bf16.msra.mxu0 %v5216_v62  ;;  %v5486_v62 = vpack.c.bf16 %v2803_v30, %v2799_v29  ;;  %v2843_v29 = vld [vmem:[#allocation9 + $0xa38] sm:$0xff]  ;;  %v5376_v30 = vpack.c.bf16 %v2832_v16, %v2828_v15  ;;  %v2870_v16 = vld [vmem:[#allocation9 + $0xb10] sm:$0xff] }
 0x1db   :  { %5345 = vmatpush1.bf16.msra.mxu1 %v5344_v35  ;;  %5347 = vmatprep.subr.bf16.mxu0 %v5346_v13  ;;  %v2809_v35 = vld [vmem:[#allocation9 + $0x928] sm:$0xff]  ;;  %v5360_v13 = vpack.c.bf16 %v2800_v39, %v2796_v18  ;;  %v2838_v18 = vld [vmem:[#allocation9 + $0xa10] sm:$0xff]  ;;  %v5506_v39 = vpack.c.bf16 %v2843_v29, %v2839_v27  ;;  %v2883_v29 = vld [vmem:[#allocation9 + $0xb78] sm:$0xff] }
 0x1dc   :  { %5475 = vmatprep.subr.bf16.mxu1 %v5474_v40  ;;  %v5488_v40 = vpack.c.bf16 %v2802_v25, %v2798_v34  ;;  %v5362_v41 = vpack.c.bf16 %v2809_v35, %v2805_v1  ;;  %v2842_v34 = vld [vmem:[#allocation9 + $0xa30] sm:$0xff]  ;;  %v2849_v25 = vld [vmem:[#allocation9 + $0xa68] sm:$0xff]  ;;  %v2847_v1 = vld [vmem:[#allocation9 + $0xa58] sm:$0xff] }
 0x1dd   :  { %2043 = vmatmul.mubr.f32.vlgmr.msra.gmra.mrb[0].mxu0 %v1584_v48  ;;  %v2851_v35 = vld [vmem:[#allocation9 + $0xa78] sm:$0xff]  ;;  %v5508_v37 = vpack.c.bf16 %v2842_v34, %v2838_v18  ;;  %v2882_v18 = vld [vmem:[#allocation9 + $0xb70] sm:$0xff]  ;;  %v2885_v34 = vld [vmem:[#allocation9 + $0xb88] sm:$0xff] }
 0x1de   :  { %2221 = vmatmul.mubr.f32.vlgmr.msra.gmra.mrb[0].mxu1 %v1584_v48  ;;  %2048 = vmatprep.mubr.f32.mxu0 %v1595_v50  ;;  %v2813_v48 = vld [vmem:[#allocation9 + $0x948] sm:$0xff] }
 0x1df   :  { %2226 = vmatprep.mubr.f32.mxu1 %v1595_v50  ;;  %5349 = vmatpush1.bf16.msra.mxu0 %v5348_v56  ;;  %v5364_v50 = vpack.c.bf16 %v2808_v43, %v2804_v42  ;;  %v5366_v53 = vpack.c.bf16 %v2817_v51, %v2813_v48  ;;  %v2814_v56 = vld [vmem:[#allocation9 + $0x950] sm:$0xff]  ;;  %v2857_v48 = vld [vmem:[#allocation9 + $0xaa8] sm:$0xff]  ;;  %v2855_v51 = vld [vmem:[#allocation9 + $0xa98] sm:$0xff] }
 0x1e0   :  { %5477 = vmatpush1.bf16.msra.mxu1 %v5476_v57  ;;  %5351 = vmatprep.subr.bf16.mxu0 %v5350_v58  ;;  %v5494_v57 = vpack.c.bf16 %v2819_v49, %v2815_v21  ;;  %v2818_v58 = vld [vmem:[#allocation9 + $0x970] sm:$0xff]  ;;  %v5386_v21 = vpack.c.bf16 %v2857_v48, %v2853_v47  ;;  %v2859_v49 = vld [vmem:[#allocation9 + $0xab8] sm:$0xff] }
 0x1e1   :  { %2049 = vmatmul.mubr.f32.gmra.mrb[2].mxu0 %v1593_v20  ;;  %5479 = vmatprep.subr.bf16.mxu1 %v5478_v9  ;;  %v2827_v9 = vld [vmem:[#allocation9 + $0x9b8] sm:$0xff]  ;;  %v5496_v2 = vpack.c.bf16 %v2818_v58, %v2814_v56  ;;  %v2846_v42 = vld [vmem:[#allocation9 + $0xa50] sm:$0xff]  ;;  %v2861_v58 = vld [vmem:[#allocation9 + $0xac8] sm:$0xff] }
 0x1e2   :  { %2227 = vmatmul.mubr.f32.gmra.mrb[2].mxu1 %v1593_v20  ;;  %2054 = vmatprep.mubr.f32.mxu0 %v1607_v6  ;;  %v2820_v20 = vld [vmem:[#allocation9 + $0x980] sm:$0xff]  ;;  %v5498_v4 = vpack.c.bf16 %v2827_v9, %v2823_v63  ;;  %v2850_v43 = vld [vmem:[#allocation9 + $0xa70] sm:$0xff]  ;;  %v5390_v63 = vpack.c.bf16 %v2865_v60, %v2861_v58  ;;  %v2867_v9 = vld [vmem:[#allocation9 + $0xaf8] sm:$0xff] }
 0x1e3   :  { %2232 = vmatprep.mubr.f32.mxu1 %v1607_v6  ;;  %5353 = vmatpush1.bf16.msra.mxu0 %v5352_v10  ;;  %v2829_v6 = vld [vmem:[#allocation9 + $0x9c8] sm:$0xff]  ;;  %v2835_v10 = vld [vmem:[#allocation9 + $0x9f8] sm:$0xff]  ;;  %v2858_v56 = vld [vmem:[#allocation9 + $0xab0] sm:$0xff] }
 0x1e4   :  { %5481 = vmatpush1.bf16.msra.mxu1 %v5480_v12  ;;  %5355 = vmatprep.subr.bf16.mxu0 %v5354_v14  ;;  %v5372_v12 = vpack.c.bf16 %v2824_v28, %v2820_v20  ;;  %v5500_v14 = vpack.c.bf16 %v2826_v5, %v2822_v3  ;;  %v5374_v59 = vpack.c.bf16 %v2833_v7, %v2829_v6  ;;  %v2862_v28 = vld [vmem:[#allocation9 + $0xad0] sm:$0xff]  ;;  %v2869_v5 = vld [vmem:[#allocation9 + $0xb08] sm:$0xff]  ;;  %v2871_v7 = vld [vmem:[#allocation9 + $0xb18] sm:$0xff] }
 0x1e5   :  { %2055 = vmatmul.mubr.f32.gmra.mrb[4].mxu0 %v1604_v24  ;;  %5483 = vmatprep.subr.bf16.mxu1 %v5482_v17  ;;  %v2830_v17 = vld [vmem:[#allocation9 + $0x9d0] sm:$0xff]  ;;  %v5502_v26 = vpack.c.bf16 %v2835_v10, %v2831_v8  ;;  %v2873_v6 = vld [vmem:[#allocation9 + $0xb28] sm:$0xff]  ;;  %v2875_v10 = vld [vmem:[#allocation9 + $0xb38] sm:$0xff] }
 0x1e6   :  { %2233 = vmatmul.mubr.f32.gmra.mrb[4].mxu1 %v1604_v24  ;;  %2060 = vmatprep.mubr.f32.mxu0 %v1615_v31  ;;  %v2841_v24 = vld [vmem:[#allocation9 + $0xa28] sm:$0xff]  ;;  %v2866_v3 = vld [vmem:[#allocation9 + $0xaf0] sm:$0xff]  ;;  %v5394_v8 = vpack.c.bf16 %v2873_v6, %v2869_v5  ;;  %v2899_v48 = vld [vmem:[#allocation9 + $0xbf8] sm:$0xff] }
 0x1e7   :  { %2238 = vmatprep.mubr.f32.mxu1 %v1615_v31  ;;  %5357 = vmatpush1.bf16.msra.mxu0 %v5356_v32  ;;  %v5504_v31 = vpack.c.bf16 %v2834_v22, %v2830_v17  ;;  %v5378_v32 = vpack.c.bf16 %v2841_v24, %v2837_v23  ;;  %v2874_v17 = vld [vmem:[#allocation9 + $0xb30] sm:$0xff]  ;;  %v2877_v22 = vld [vmem:[#allocation9 + $0xb48] sm:$0xff]  ;;  %v2879_v24 = vld [vmem:[#allocation9 + $0xb58] sm:$0xff] }
 0x1e8   :  { %5485 = vmatpush1.bf16.msra.mxu1 %v5484_v33  ;;  %5359 = vmatprep.subr.bf16.mxu0 %v5358_v19  ;;  %v2836_v33 = vld [vmem:[#allocation9 + $0xa00] sm:$0xff]  ;;  %v2881_v23 = vld [vmem:[#allocation9 + $0xb68] sm:$0xff]  ;;  %v2907_v60 = vld [vmem:[#allocation9 + $0xc38] sm:$0xff] }
 0x1e9   :  { %2061 = vmatmul.mubr.f32.gmra.mrb[6].mxu0 %v1613_v36  ;;  %5487 = vmatprep.subr.bf16.mxu1 %v5486_v62  ;;  %v2840_v19 = vld [vmem:[#allocation9 + $0xa20] sm:$0xff]  ;;  %v2845_v62 = vld [vmem:[#allocation9 + $0xa48] sm:$0xff]  ;;  %v5398_v27 = vpack.c.bf16 %v2881_v23, %v2877_v22 }
 0x1ea   :  { %2239 = vmatmul.mubr.f32.gmra.mrb[6].mxu1 %v1613_v36  ;;  %v5380_v36 = vpack.c.bf16 %v2840_v19, %v2836_v33  ;;  %v5382_v38 = vpack.c.bf16 %v2849_v25, %v2845_v62  ;;  %v2878_v19 = vld [vmem:[#allocation9 + $0xb50] sm:$0xff]  ;;  %v2889_v62 = vld [vmem:[#allocation9 + $0xba8] sm:$0xff]  ;;  %v2887_v25 = vld [vmem:[#allocation9 + $0xb98] sm:$0xff] }
 0x1eb   :  { %5361 = vmatpush1.bf16.msra.mxu0 %v5360_v13  ;;  %v2844_v13 = vld [vmem:[#allocation9 + $0xa40] sm:$0xff] }
 0x1ec   :  { %5489 = vmatpush1.bf16.msra.mxu1 %v5488_v40  ;;  %5363 = vmatprep.subr.bf16.mxu0 %v5362_v41  ;;  %v2848_v40 = vld [vmem:[#allocation9 + $0xa60] sm:$0xff]  ;;  %v5510_v41 = vpack.c.bf16 %v2851_v35, %v2847_v1  ;;  %v5402_v1 = vpack.c.bf16 %v2889_v62, %v2885_v34  ;;  %v2891_v35 = vld [vmem:[#allocation9 + $0xbb8] sm:$0xff]  ;;  %v6715_v34 = vld [vmem:[#allocation9 + $0xc10] sm:$0xff] }
 0x1ed   :  { %5491 = vmatprep.subr.bf16.mxu1 %v5490_v46  ;;  %v5384_v44 = vpack.c.bf16 %v2848_v40, %v2844_v13  ;;  %v5512_v46 = vpack.c.bf16 %v2850_v43, %v2846_v42  ;;  %v2886_v40 = vld [vmem:[#allocation9 + $0xb90] sm:$0xff]  ;;  %v2893_v43 = vld [vmem:[#allocation9 + $0xbc8] sm:$0xff] }
 0x1ee   :  { %v6717_v62 = vld [vmem:[#allocation9 + $0xc30] sm:$0xff] }
 0x1ef   :  { %5365 = vmatpush1.bf16.msra.mxu0 %v5364_v50  ;;  %v2852_v50 = vld [vmem:[#allocation9 + $0xa80] sm:$0xff] }
 0x1f0   :  { %5493 = vmatpush1.bf16.msra.mxu1 %v5492_v52  ;;  %5367 = vmatprep.subr.bf16.mxu0 %v5366_v53  ;;  %v2856_v52 = vld [vmem:[#allocation9 + $0xaa0] sm:$0xff]  ;;  %v5514_v53 = vpack.c.bf16 %v2859_v49, %v2855_v51 }
 0x1f1   :  { %5495 = vmatprep.subr.bf16.mxu1 %v5494_v57  ;;  %v5388_v54 = vpack.c.bf16 %v2856_v52, %v2852_v50  ;;  %v5516_v57 = vpack.c.bf16 %v2858_v56, %v2854_v55  ;;  %v2892_v51 = vld [vmem:[#allocation9 + $0xbc0] sm:$0xff]  ;;  %v2894_v52 = vld [vmem:[#allocation9 + $0xbd0] sm:$0xff]  ;;  %v2901_v55 = vld [vmem:[#allocation9 + $0xc08] sm:$0xff] }
 0x1f2   :  { %v2905_v56 = vld [vmem:[#allocation9 + $0xc28] sm:$0xff] }
 0x1f3   :  { %5369 = vmatpush1.bf16.msra.mxu0 %v5368_v0  ;;  %v2860_v0 = vld [vmem:[#allocation9 + $0xac0] sm:$0xff]  ;;  %v5410_v58 = vpack.c.bf16 %v2905_v56, %v2901_v55 }
 0x1f4   :  { %5497 = vmatpush1.bf16.msra.mxu1 %v5496_v2  ;;  %5371 = vmatprep.subr.bf16.mxu0 %v5370_v45  ;;  %v2864_v2 = vld [vmem:[#allocation9 + $0xae0] sm:$0xff]  ;;  %v5518_v45 = vpack.c.bf16 %v2867_v9, %v2863_v61 }
 0x1f5   :  { %5499 = vmatprep.subr.bf16.mxu1 %v5498_v4  ;;  %v5392_v20 = vpack.c.bf16 %v2864_v2, %v2860_v0  ;;  %v5520_v4 = vpack.c.bf16 %v2866_v3, %v2862_v28  ;;  %v2261_v0 = vld [vmem:[#allocation8] sm:$0xf] }
 0x1f7   :  { %5373 = vmatpush1.bf16.msra.mxu0 %v5372_v12  ;;  %v2868_v12 = vld [vmem:[#allocation9 + $0xb00] sm:$0xff] }
 0x1f8   :  { %5501 = vmatpush1.bf16.msra.mxu1 %v5500_v14  ;;  %5375 = vmatprep.subr.bf16.mxu0 %v5374_v59  ;;  %v2872_v14 = vld [vmem:[#allocation9 + $0xb20] sm:$0xff]  ;;  %v5522_v59 = vpack.c.bf16 %v2875_v10, %v2871_v7 }
 0x1f9   :  { %5503 = vmatprep.subr.bf16.mxu1 %v5502_v26  ;;  %v5396_v15 = vpack.c.bf16 %v2872_v14, %v2868_v12  ;;  %v5524_v26 = vpack.c.bf16 %v2874_v17, %v2870_v16 }
 0x1fb   :  { %5377 = vmatpush1.bf16.msra.mxu0 %v5376_v30  ;;  %v2876_v30 = vld [vmem:[#allocation9 + $0xb40] sm:$0xff] }
 0x1fc   :  { %5505 = vmatpush1.bf16.msra.mxu1 %v5504_v31  ;;  %5379 = vmatprep.subr.bf16.mxu0 %v5378_v32  ;;  %v2880_v31 = vld [vmem:[#allocation9 + $0xb60] sm:$0xff]  ;;  %v5526_v32 = vpack.c.bf16 %v2883_v29, %v2879_v24 }
 0x1fd   :  { %5507 = vmatprep.subr.bf16.mxu1 %v5506_v39  ;;  %v5400_v33 = vpack.c.bf16 %v2880_v31, %v2876_v30  ;;  %v5528_v39 = vpack.c.bf16 %v2882_v18, %v2878_v19  ;;  %v6709_v30 = vld [vmem:[#allocation9 + $0xc00] sm:$0xff] }
 0x1fe   :  { %v6711_v31 = vld [vmem:[#allocation9 + $0xc20] sm:$0xff] }
 0x1ff   :  { %5381 = vmatpush1.bf16.msra.mxu0 %v5380_v36  ;;  %v2884_v36 = vld [vmem:[#allocation9 + $0xb80] sm:$0xff] }
 0x200   :  { %5509 = vmatpush1.bf16.msra.mxu1 %v5508_v37  ;;  %5383 = vmatprep.subr.bf16.mxu0 %v5382_v38  ;;  %v2888_v37 = vld [vmem:[#allocation9 + $0xba0] sm:$0xff]  ;;  %v5530_v38 = vpack.c.bf16 %v2891_v35, %v2887_v25 }
 0x201   :  { %5511 = vmatprep.subr.bf16.mxu1 %v5510_v41  ;;  %v5404_v13 = vpack.c.bf16 %v2888_v37, %v2884_v36  ;;  %v2890_v41 = vld [vmem:[#allocation9 + $0xbb0] sm:$0xff] }
 0x202   :  { %v5532_v42 = vpack.c.bf16 %v2890_v41, %v2886_v40 }
 0x203   :  { %5385 = vmatpush1.bf16.msra.mxu0 %v5384_v44  ;;  %v2897_v44 = vld [vmem:[#allocation9 + $0xbe8] sm:$0xff] }
 0x204   :  { %5513 = vmatpush1.bf16.msra.mxu1 %v5512_v46  ;;  %5387 = vmatprep.subr.bf16.mxu0 %v5386_v21  ;;  %v2895_v46 = vld [vmem:[#allocation9 + $0xbd8] sm:$0xff]  ;;  %v5406_v47 = vpack.c.bf16 %v2897_v44, %v2893_v43  ;;  %v2896_v21 = vld [vmem:[#allocation9 + $0xbe0] sm:$0xff] }
 0x205   :  { %5515 = vmatprep.subr.bf16.mxu1 %v5514_v53  ;;  %v5534_v49 = vpack.c.bf16 %v2899_v48, %v2895_v46  ;;  %v5408_v50 = vpack.c.bf16 %v2896_v21, %v2892_v51  ;;  %v2898_v53 = vld [vmem:[#allocation9 + $0xbf0] sm:$0xff]  ;;  %v5540_v46 = vpack.c.bf16 %v6717_v62, %v6715_v34 }
 0x207   :  { %5389 = vmatpush1.bf16.msra.mxu0 %v5388_v54  ;;  %v5536_v54 = vpack.c.bf16 %v2898_v53, %v2894_v52 }
 0x208   :  { %5517 = vmatpush1.bf16.msra.mxu1 %v5516_v57  ;;  %5391 = vmatprep.subr.bf16.mxu0 %v5390_v63  ;;  %v2903_v57 = vld [vmem:[#allocation9 + $0xc18] sm:$0xff]  ;;  %v6682_v63 = vshrl.u32 %v85_v11, 7 }
 0x209   :  { %5519 = vmatprep.subr.bf16.mxu1 %v5518_v45  ;;  %v5538_v61 = vpack.c.bf16 %v2907_v60, %v2903_v57 }
 0x20a   :  { %v2265_v9 = vsub.s32 0, %v6682_v63  ;;  %v2273_v2 = vsub.s32 2, %v6682_v63  ;;  %v2269_v45 = vsub.s32 1, %v6682_v63 }
 0x20b   :  { %5393 = vmatpush1.bf16.msra.mxu0 %v5392_v20  ;;  %v2277_v20 = vsub.s32 3, %v6682_v63 }
 0x20c   :  { %5521 = vmatpush1.bf16.msra.mxu1 %v5520_v4  ;;  %5395 = vmatprep.subr.bf16.mxu0 %v5394_v8  ;;  %v6690_v28 = vrot.slane %v2261_v0, %v2265_v9  ;;  %v6694_v3 = vrot.slane %v2261_v0, %v2273_v2  ;;  %v6698_v11 = vrot.slane %v2261_v0, %v2269_v45 }
 0x20d   :  { %5523 = vmatprep.subr.bf16.mxu1 %v5522_v59  ;;  %v6702_v4 = vrot.slane %v2261_v0, %v2277_v20 }
 0x20f   :  { %5397 = vmatpush1.bf16.msra.mxu0 %v5396_v15 }
 0x210   :  { %5525 = vmatpush1.bf16.msra.mxu1 %v5524_v26  ;;  %5399 = vmatprep.subr.bf16.mxu0 %v5398_v27 }
 0x211   :  { %5527 = vmatprep.subr.bf16.mxu1 %v5526_v32 }
 0x213   :  { %5401 = vmatpush1.bf16.msra.mxu0 %v5400_v33 }
 0x214   :  { %5529 = vmatpush1.bf16.msra.mxu1 %v5528_v39  ;;  %5403 = vmatprep.subr.bf16.mxu0 %v5402_v1 }
 0x215   :  { %5531 = vmatprep.subr.bf16.mxu1 %v5530_v38 }
 0x217   :  { %5405 = vmatpush1.bf16.msra.mxu0 %v5404_v13  ;;  %v5412_v13 = vpack.c.bf16 %v6711_v31, %v6709_v30  ;;  %v2925_v31 = vld [vmem:[#allocation9 + $0xcc8] sm:$0xff] }
 0x218   :  { %5533 = vmatpush1.bf16.msra.mxu1 %v5532_v42  ;;  %5407 = vmatprep.subr.bf16.mxu0 %v5406_v47 }
 0x219   :  { %5535 = vmatprep.subr.bf16.mxu1 %v5534_v49 }
 0x21b   :  { %5409 = vmatpush1.bf16.msra.mxu0 %v5408_v50 }
 0x21c   :  { %5537 = vmatpush1.bf16.msra.mxu1 %v5536_v54  ;;  %5411 = vmatprep.subr.bf16.mxu0 %v5410_v58 }
 0x21d   :  { %5539 = vmatprep.subr.bf16.mxu1 %v5538_v61 }
 0x2b0   :  { %v2044_v5 = vpop.f32.mrb[0].mxu0 }
 0x2b1   :  { %v2283_v6 = vadd.f32 %v6690_v28, %v2044_v5  ;;  %v2222_v7 = vpop.f32.mrb[0].mxu1  ;;  %v2046_v8 = vpop.f32.mrb[1].mxu0 }
 0x2b2   :  { %v2285_v10 = vadd.f32 %v6694_v3, %v2222_v7  ;;  %v2284_v12 = vadd.f32 %v6698_v11, %v2046_v8  ;;  %v2224_v14 = vpop.f32.mrb[1].mxu1 }
 0x2b3   :  { %v2299_v59 = vmax.f32 %v2283_v6, 0.0  ;;  %v2286_v15 = vadd.f32 %v6702_v4, %v2224_v14 }
 0x2b4   :  { %v2301_v16 = vmax.f32 %v2285_v10, 0.0  ;;  %v2300_v17 = vmax.f32 %v2284_v12, 0.0  ;;  %v2050_v26 = vpop.f32.mrb[2].mxu0  ;;  %v6744_v10 = vld [vmem:[#allocation9 + $0xc48] sm:$0xff] }
 0x2b5   :  { %v2331_v22 = vrot.slane %v2299_v59, 7  ;;  %v2302_v23 = vmax.f32 %v2286_v15, 0.0  ;;  %v2287_v24 = vadd.f32 %v6690_v28, %v2050_v26  ;;  %v2228_v27 = vpop.f32.mrb[2].mxu1  ;;  %v2052_v29 = vpop.f32.mrb[3].mxu0  ;;  %v6746_v12 = vld [vmem:[#allocation9 + $0xc68] sm:$0xff] }
 0x2b6   :  { %v2333_v32 = vrot.slane %v2301_v16, 7  ;;  %v2332_v33 = vrot.slane %v2300_v17, 7  ;;  %v2289_v19 = vadd.f32 %v6694_v3, %v2228_v27  ;;  %v2288_v18 = vadd.f32 %v6698_v11, %v2052_v29  ;;  %v2230_v39 = vpop.f32.mrb[3].mxu1 }
 0x2b7   :  { %2379 = vst [vmem:[#allocation2] sm:$0xfe] %v2331_v22  ;;  %v2334_v25 = vrot.slane %v2302_v23, 7  ;;  %v2303_v1 = vmax.f32 %v2287_v24, 0.0  ;;  %v2290_v35 = vadd.f32 %v6702_v4, %v2230_v39 }
 0x2b8   :  { %2381 = vst [vmem:[#allocation2 + $0x10] sm:$0xfe] %v2333_v32  ;;  %2380 = vst [vmem:[#allocation2 + $0x8] sm:$0xfe] %v2332_v33  ;;  %v2305_v36 = vmax.f32 %v2289_v19, 0.0  ;;  %v2304_v37 = vmax.f32 %v2288_v18, 0.0 }
 0x2b9   :  { %v2056_v38 = vpop.f32.mrb[4].mxu0  ;;  %2382 = vst [vmem:[#allocation2 + $0x18] sm:$0xfe] %v2334_v25  ;;  %v2335_v40 = vrot.slane %v2303_v1, 7  ;;  %v2306_v41 = vmax.f32 %v2290_v35, 0.0  ;;  %v2234_v43 = vpop.f32.mrb[4].mxu1 }
 0x2ba   :  { %v2291_v42 = vadd.f32 %v6690_v28, %v2056_v38  ;;  %v2058_v44 = vpop.f32.mrb[5].mxu0  ;;  %v2339_v47 = vrot.slane %v2305_v36, 7  ;;  %v2337_v48 = vrot.slane %v2304_v37, 7  ;;  %v2293_v51 = vadd.f32 %v6694_v3, %v2234_v43  ;;  %v2236_v49 = vpop.f32.mrb[5].mxu1  ;;  %v2912_v35 = vld [vmem:[#allocation9 + $0xc60] sm:$0xff]  ;;  %v2910_v36 = vld [vmem:[#allocation9 + $0xc50] sm:$0xff] }
 0x2bb   :  { %v2292_v21 = vadd.f32 %v6698_v11, %v2058_v44  ;;  %v6728_v50 = vsel %vm132_vm0, %v2331_v22, %v2335_v40  ;;  %2387 = vst [vmem:[#allocation2 + $0x40] sm:$0x1] %v2335_v40  ;;  %v2341_v52 = vrot.slane %v2306_v41, 7  ;;  %v2294_v54 = vadd.f32 %v6702_v4, %v2236_v49  ;;  %v6751_v22 = vld [vmem:[#allocation9 + $0xc58] sm:$0xff]  ;;  %v2914_v37 = vld [vmem:[#allocation9 + $0xc70] sm:$0xff]  ;;  %v2917_v44 = vld [vmem:[#allocation9 + $0xc88] sm:$0xff] }
 0x2bc   :  { %v2307_v53 = vmax.f32 %v2291_v42, 0.0  ;;  %2383 = vst [vmem:[#allocation2 + $0x20] sm:$0xff] %v6728_v50  ;;  %v6733_v55 = vsel %vm132_vm0, %v2333_v32, %v2339_v47  ;;  %2389 = vst [vmem:[#allocation2 + $0x50] sm:$0x1] %v2339_v47  ;;  %v6736_v56 = vsel %vm132_vm0, %v2332_v33, %v2337_v48  ;;  %v2309_v57 = vmax.f32 %v2293_v51, 0.0  ;;  %v2062_v60 = vpop.f32.mrb[6].mxu0 }
 0x2bd   :  { %2388 = vst [vmem:[#allocation2 + $0x48] sm:$0x1] %v2337_v48  ;;  %v2308_v58 = vmax.f32 %v2292_v21, 0.0  ;;  %2385 = vst [vmem:[#allocation2 + $0x30] sm:$0xff] %v6733_v55  ;;  %v6741_v61 = vsel %vm132_vm0, %v2334_v25, %v2341_v52  ;;  %v2310_v5 = vmax.f32 %v2294_v54, 0.0  ;;  %v2295_v6 = vadd.f32 %v6690_v28, %v2062_v60  ;;  %v2240_v7 = vpop.f32.mrb[6].mxu1 }
 0x2be   :  { %2384 = vst [vmem:[#allocation2 + $0x28] sm:$0xff] %v6736_v56  ;;  %2390 = vst [vmem:[#allocation2 + $0x58] sm:$0x1] %v2341_v52  ;;  %v2343_v0 = vrot.slane %v2307_v53, 7  ;;  %v2064_v8 = vpop.f32.mrb[7].mxu0  ;;  %v2345_v14 = vrot.slane %v2309_v57, 7  ;;  %v2297_v15 = vadd.f32 %v6694_v3, %v2240_v7 }
 0x2bf   :  { %2386 = vst [vmem:[#allocation2 + $0x38] sm:$0xff] %v6741_v61  ;;  %v2344_v59 = vrot.slane %v2308_v58, 7  ;;  %v2296_v16 = vadd.f32 %v6698_v11, %v2064_v8  ;;  %v2242_v17 = vpop.f32.mrb[7].mxu1  ;;  %v2675_v26 = vld [vmem:[#allocation2] sm:$0xfe]  ;;  %v2346_v28 = vrot.slane %v2310_v5, 7  ;;  %v5544_v5 = vpack.c.bf16 %v2914_v37, %v2910_v36 }
 0x2c0   :  { %2391 = vst [vmem:[#allocation2 + $0x60] sm:$0xfe] %v2343_v0  ;;  %v2311_v23 = vmax.f32 %v2295_v6, 0.0  ;;  %v2298_v24 = vadd.f32 %v6702_v4, %v2242_v17  ;;  %v2676_v27 = vld [vmem:[#allocation2 + $0x8] sm:$0xfe]  ;;  %v2719_v29 = vrot.slane %v6736_v56, 1  ;;  %v5414_v4 = vpack.c.bf16 %v6746_v12, %v6744_v10 }
 0x2c1   :  { %v2915_v32 = vld [vmem:[#allocation9 + $0xc78] sm:$0xff]  ;;  %2393 = vst [vmem:[#allocation2 + $0x70] sm:$0xfe] %v2345_v14  ;;  %2392 = vst [vmem:[#allocation2 + $0x68] sm:$0xfe] %v2344_v59  ;;  %v2313_v33 = vmax.f32 %v2297_v15, 0.0 }
 0x2c2   :  { %v2312_v19 = vmax.f32 %v2296_v16, 0.0  ;;  %v2718_v3 = vrot.slane %v2676_v27, 1  ;;  %v2715_v18 = vrot.slane %v2675_v26, 1  ;;  %v6755_v11 = vld [vmem:[#allocation9 + $0xc40] sm:$0xff]  ;;  %2394 = vst [vmem:[#allocation2 + $0x78] sm:$0xfe] %v2346_v28  ;;  %v5542_v42 = vpack.c.bf16 %v2915_v32, %v6751_v22 }
 0x2c3   :  { %v2347_v39 = vrot.slane %v2311_v23, 7  ;;  %v2314_v25 = vmax.f32 %v2298_v24, 0.0  ;;  %v2716_v1 = vrot.slane %v6728_v50, 1  ;;  %v2351_v38 = vrot.slane %v2313_v33, 7  ;;  %v2679_v43 = vld [vmem:[#allocation2 + $0x40] sm:$0x1] }
 0x2c4   :  { %v2349_v40 = vrot.slane %v2312_v19, 7  ;;  %v2720_v41 = vsel %vm517_vm1, %v2718_v3, %v2719_v29  ;;  %v2921_v47 = vld [vmem:[#allocation9 + $0xca8] sm:$0xff]  ;;  %v2680_v49 = vld [vmem:[#allocation2 + $0x48] sm:$0x1]  ;;  %v2727_v50 = vrot.slane %v2679_v43, 1  ;;  %v2919_v52 = vld [vmem:[#allocation9 + $0xc98] sm:$0xff] }
 0x2c5   :  { %v6763_v48 = vsel %vm132_vm0, %v2343_v0, %v2347_v39  ;;  %2399 = vst [vmem:[#allocation2 + $0xa0] sm:$0x1] %v2347_v39  ;;  %v2353_v51 = vrot.slane %v2314_v25, 7  ;;  %3092 = vmatprep.mubr.f32.mxu0 %v2720_v41  ;;  %3270 = vmatprep.mubr.f32.mxu1 %v2720_v41  ;;  %v2717_v21 = vsel %vm517_vm1, %v2715_v18, %v2716_v1  ;;  %v2923_v53 = vld [vmem:[#allocation9 + $0xcb8] sm:$0xff]  ;;  %2401 = vst [vmem:[#allocation2 + $0xb0] sm:$0x1] %v2351_v38 }
 0x2c6   :  { %2395 = vst [vmem:[#allocation2 + $0x80] sm:$0xff] %v6763_v48  ;;  %v6768_v54 = vsel %vm132_vm0, %v2345_v14, %v2351_v38  ;;  %v6771_v56 = vsel %vm132_vm0, %v2344_v59, %v2349_v40  ;;  %2400 = vst [vmem:[#allocation2 + $0xa8] sm:$0x1] %v2349_v40  ;;  %3093 = vmatmul.mubr.f32.vlgmr.msra.gmra.mrb[8].mxu0 %v2717_v21  ;;  %3271 = vmatmul.mubr.f32.vlgmr.msra.gmra.mrb[8].mxu1 %v2717_v21  ;;  %v2729_v57 = vrot.slane %v2680_v49, 1  ;;  %v2916_v58 = vld [vmem:[#allocation9 + $0xc80] sm:$0xff]  ;;  %v2918_v7 = vld [vmem:[#allocation9 + $0xc90] sm:$0xff] }
 0x2c7   :  { %2397 = vst [vmem:[#allocation2 + $0x90] sm:$0xff] %v6768_v54  ;;  %2396 = vst [vmem:[#allocation2 + $0x88] sm:$0xff] %v6771_v56  ;;  %v6776_v60 = vsel %vm132_vm0, %v2346_v28, %v2353_v51  ;;  %5413 = vmatpush1.bf16.msra.mxu0 %v5412_v13  ;;  %5541 = vmatpush1.bf16.msra.mxu1 %v5540_v46  ;;  %v5416_v0 = vpack.c.bf16 %v2912_v35, %v6755_v11  ;;  %v2920_v6 = vld [vmem:[#allocation9 + $0xca0] sm:$0xff]  ;;  %v2922_v8 = vld [vmem:[#allocation9 + $0xcb0] sm:$0xff]  ;;  %v2739_v17 = vrot.slane %v6771_v56, 1 }
 0x2c8   :  { %2402 = vst [vmem:[#allocation2 + $0xb8] sm:$0x1] %v2353_v51  ;;  %2398 = vst [vmem:[#allocation2 + $0x98] sm:$0xff] %v6776_v60  ;;  %v2730_v10 = vsel %vm517_vm1, %v2719_v29, %v2729_v57  ;;  %5415 = vmatprep.subr.bf16.mxu0 %v5414_v4  ;;  %5543 = vmatprep.subr.bf16.mxu1 %v5542_v42  ;;  %v5418_v12 = vpack.c.bf16 %v2921_v47, %v2917_v44  ;;  %v2683_v30 = vld [vmem:[#allocation2 + $0x60] sm:$0xfe]  ;;  %v2929_v13 = vld [vmem:[#allocation9 + $0xce8] sm:$0xff] }
 0x2c9   :  { %v5546_v14 = vpack.c.bf16 %v2923_v53, %v2919_v52  ;;  %3098 = vmatprep.mubr.f32.mxu0 %v2730_v10  ;;  %3276 = vmatprep.mubr.f32.mxu1 %v2730_v10  ;;  %v2728_v34 = vsel %vm517_vm1, %v2716_v1, %v2727_v50  ;;  %v2684_v62 = vld [vmem:[#allocation2 + $0x68] sm:$0xfe]  ;;  %v2735_v46 = vrot.slane %v2683_v30, 1  ;;  %v2927_v59 = vld [vmem:[#allocation9 + $0xcd8] sm:$0xff]  ;;  %v2736_v26 = vrot.slane %v6763_v48, 1  ;;  %v2926_v27 = vld [vmem:[#allocation9 + $0xcd0] sm:$0xff] }
 0x2ca   :  { %v2931_v15 = vld [vmem:[#allocation9 + $0xcf8] sm:$0xff]  ;;  %3099 = vmatmul.mubr.f32.gmra.mrb[10].mxu0 %v2728_v34  ;;  %3277 = vmatmul.mubr.f32.gmra.mrb[10].mxu1 %v2728_v34  ;;  %v2738_v16 = vrot.slane %v2684_v62, 1  ;;  %v5420_v22 = vpack.c.bf16 %v2920_v6, %v2916_v58  ;;  %v5548_v28 = vpack.c.bf16 %v2922_v8, %v2918_v7  ;;  %v2924_v23 = vld [vmem:[#allocation9 + $0xcc0] sm:$0xff]  ;;  %v5422_v32 = vpack.c.bf16 %v2929_v13, %v2925_v31  ;;  %v2930_v3 = vld [vmem:[#allocation9 + $0xcf0] sm:$0xff] }
 0x2cb   :  { %5417 = vmatpush1.bf16.msra.mxu0 %v5416_v0  ;;  %5545 = vmatpush1.bf16.msra.mxu1 %v5544_v5  ;;  %v2928_v24 = vld [vmem:[#allocation9 + $0xce0] sm:$0xff]  ;;  %v5550_v33 = vpack.c.bf16 %v2931_v15, %v2927_v59  ;;  %v2678_v18 = vld [vmem:[#allocation2 + $0x18] sm:$0xfe]  ;;  %v2737_v11 = vsel %vm517_vm1, %v2735_v46, %v2736_v26  ;;  %v2933_v1 = vld [vmem:[#allocation9 + $0xd08] sm:$0xff]  ;;  %v5552_v40 = vpack.c.bf16 %v2930_v3, %v2926_v27  ;;  %v2725_v49 = vrot.slane %v6741_v61, 1 }
 0x2cc   :  { %v2740_v29 = vsel %vm517_vm1, %v2738_v16, %v2739_v17  ;;  %5419 = vmatprep.subr.bf16.mxu0 %v5418_v12  ;;  %5547 = vmatprep.subr.bf16.mxu1 %v5546_v14  ;;  %v2687_v19 = vld [vmem:[#allocation2 + $0xa0] sm:$0x1]  ;;  %v2937_v35 = vld [vmem:[#allocation9 + $0xd28] sm:$0xff]  ;;  %v5424_v38 = vpack.c.bf16 %v2928_v24, %v2924_v23  ;;  %v2724_v41 = vrot.slane %v2678_v18, 1  ;;  %v2932_v42 = vld [vmem:[#allocation9 + $0xd00] sm:$0xff] }
 0x2cd   :  { %3104 = vmatprep.mubr.f32.mxu0 %v2740_v29  ;;  %3282 = vmatprep.mubr.f32.mxu1 %v2740_v29  ;;  %v2688_v39 = vld [vmem:[#allocation2 + $0xa8] sm:$0x1]  ;;  %v2747_v25 = vrot.slane %v2687_v19, 1  ;;  %v2935_v36 = vld [vmem:[#allocation9 + $0xd18] sm:$0xff]  ;;  %v2934_v47 = vld [vmem:[#allocation9 + $0xd10] sm:$0xff]  ;;  %v5426_v50 = vpack.c.bf16 %v2937_v35, %v2933_v1 }
 0x2ce   :  { %3105 = vmatmul.mubr.f32.gmra.mrb[12].mxu0 %v2737_v11  ;;  %3283 = vmatmul.mubr.f32.gmra.mrb[12].mxu1 %v2737_v11  ;;  %v2749_v4 = vrot.slane %v2688_v39, 1  ;;  %v2939_v37 = vld [vmem:[#allocation9 + $0xd38] sm:$0xff]  ;;  %v2936_v43 = vld [vmem:[#allocation9 + $0xd20] sm:$0xff]  ;;  %v2938_v48 = vld [vmem:[#allocation9 + $0xd30] sm:$0xff]  ;;  %v2726_v58 = vsel %vm517_vm1, %v2724_v41, %v2725_v49 }
 0x2cf   :  { %5421 = vmatpush1.bf16.msra.mxu0 %v5420_v22  ;;  %5549 = vmatpush1.bf16.msra.mxu1 %v5548_v28  ;;  %v2941_v51 = vld [vmem:[#allocation9 + $0xd48] sm:$0xff]  ;;  %v2748_v21 = vsel %vm517_vm1, %v2736_v26, %v2747_v25  ;;  %v5554_v52 = vpack.c.bf16 %v2939_v37, %v2935_v36  ;;  %v2943_v56 = vld [vmem:[#allocation9 + $0xd58] sm:$0xff]  ;;  %v5428_v0 = vpack.c.bf16 %v2936_v43, %v2932_v42  ;;  %v2940_v6 = vld [vmem:[#allocation9 + $0xd40] sm:$0xff] }
 0x2d0   :  { %v2750_v44 = vsel %vm517_vm1, %v2739_v17, %v2749_v4  ;;  %5423 = vmatprep.subr.bf16.mxu0 %v5422_v32  ;;  %5551 = vmatprep.subr.bf16.mxu1 %v5550_v33  ;;  %v2945_v53 = vld [vmem:[#allocation9 + $0xd68] sm:$0xff]  ;;  %v2947_v57 = vld [vmem:[#allocation9 + $0xd78] sm:$0xff]  ;;  %v5556_v5 = vpack.c.bf16 %v2938_v48, %v2934_v47  ;;  %v2944_v7 = vld [vmem:[#allocation9 + $0xd60] sm:$0xff] }
 0x2d1   :  { %3110 = vmatprep.mubr.f32.mxu0 %v2750_v44  ;;  %3288 = vmatprep.mubr.f32.mxu1 %v2750_v44  ;;  %v5430_v8 = vpack.c.bf16 %v2945_v53, %v2941_v51  ;;  %v5558_v10 = vpack.c.bf16 %v2947_v57, %v2943_v56  ;;  %v2942_v12 = vld [vmem:[#allocation9 + $0xd50] sm:$0xff]  ;;  %v2949_v30 = vld [vmem:[#allocation9 + $0xd88] sm:$0xff]  ;;  %v2951_v13 = vld [vmem:[#allocation9 + $0xd98] sm:$0xff]  ;;  %v5432_v62 = vpack.c.bf16 %v2944_v7, %v2940_v6 }
 0x2d2   :  { %3111 = vmatmul.mubr.f32.gmra.mrb[14].mxu0 %v2748_v21  ;;  %3289 = vmatmul.mubr.f32.gmra.mrb[14].mxu1 %v2748_v21  ;;  %v2946_v14 = vld [vmem:[#allocation9 + $0xd70] sm:$0xff]  ;;  %v2953_v31 = vld [vmem:[#allocation9 + $0xda8] sm:$0xff]  ;;  %v2955_v34 = vld [vmem:[#allocation9 + $0xdb8] sm:$0xff] }
 0x2d3   :  { %5425 = vmatpush1.bf16.msra.mxu0 %v5424_v38  ;;  %5553 = vmatpush1.bf16.msra.mxu1 %v5552_v40  ;;  %v5560_v46 = vpack.c.bf16 %v2946_v14, %v2942_v12  ;;  %v2948_v59 = vld [vmem:[#allocation9 + $0xd80] sm:$0xff]  ;;  %v5434_v16 = vpack.c.bf16 %v2953_v31, %v2949_v30  ;;  %v5562_v17 = vpack.c.bf16 %v2955_v34, %v2951_v13  ;;  %v2950_v26 = vld [vmem:[#allocation9 + $0xd90] sm:$0xff]  ;;  %v2957_v28 = vld [vmem:[#allocation9 + $0xdc8] sm:$0xff] }
 0x2d4   :  { %3181 = vmatprep.mubr.f32.mxu0 %v2726_v58  ;;  %3359 = vmatprep.mubr.f32.mxu1 %v2726_v58  ;;  %v2952_v15 = vld [vmem:[#allocation9 + $0xda0] sm:$0xff]  ;;  %v2954_v22 = vld [vmem:[#allocation9 + $0xdb0] sm:$0xff]  ;;  %v2961_v23 = vld [vmem:[#allocation9 + $0xde8] sm:$0xff] }
 0x2d5   :  { %5427 = vmatprep.subr.bf16.mxu0 %v5426_v50  ;;  %5555 = vmatprep.subr.bf16.mxu1 %v5554_v52  ;;  %v2959_v24 = vld [vmem:[#allocation9 + $0xdd8] sm:$0xff]  ;;  %v5436_v29 = vpack.c.bf16 %v2952_v15, %v2948_v59  ;;  %v5564_v32 = vpack.c.bf16 %v2954_v22, %v2950_v26  ;;  %v2956_v33 = vld [vmem:[#allocation9 + $0xdc0] sm:$0xff]  ;;  %v5438_v3 = vpack.c.bf16 %v2961_v23, %v2957_v28  ;;  %v2958_v11 = vld [vmem:[#allocation9 + $0xdd0] sm:$0xff] }
 0x2d6   :  { %v2963_v27 = vld [vmem:[#allocation9 + $0xdf8] sm:$0xff]  ;;  %v2960_v19 = vld [vmem:[#allocation9 + $0xde0] sm:$0xff]  ;;  %v2962_v39 = vld [vmem:[#allocation9 + $0xdf0] sm:$0xff] }
 0x2d7   :  { %5429 = vmatpush1.bf16.msra.mxu0 %v5428_v0  ;;  %5557 = vmatpush1.bf16.msra.mxu1 %v5556_v5  ;;  %v5566_v18 = vpack.c.bf16 %v2963_v27, %v2959_v24  ;;  %v2965_v25 = vld [vmem:[#allocation9 + $0xe08] sm:$0xff]  ;;  %v2967_v4 = vld [vmem:[#allocation9 + $0xe18] sm:$0xff]  ;;  %v5440_v36 = vpack.c.bf16 %v2960_v19, %v2956_v33  ;;  %v5568_v37 = vpack.c.bf16 %v2962_v39, %v2958_v11  ;;  %v2964_v38 = vld [vmem:[#allocation9 + $0xe00] sm:$0xff] }
 0x2d8   :  { %5431 = vmatprep.subr.bf16.mxu0 %v5430_v8  ;;  %5559 = vmatprep.subr.bf16.mxu1 %v5558_v10  ;;  %v2969_v1 = vld [vmem:[#allocation9 + $0xe28] sm:$0xff]  ;;  %v2971_v35 = vld [vmem:[#allocation9 + $0xe38] sm:$0xff]  ;;  %v2968_v40 = vld [vmem:[#allocation9 + $0xe20] sm:$0xff] }
 0x2d9   :  { %v5442_v41 = vpack.c.bf16 %v2969_v1, %v2965_v25  ;;  %v5570_v42 = vpack.c.bf16 %v2971_v35, %v2967_v4  ;;  %v2966_v43 = vld [vmem:[#allocation9 + $0xe10] sm:$0xff]  ;;  %v2973_v47 = vld [vmem:[#allocation9 + $0xe48] sm:$0xff]  ;;  %v2975_v51 = vld [vmem:[#allocation9 + $0xe58] sm:$0xff]  ;;  %v5444_v50 = vpack.c.bf16 %v2968_v40, %v2964_v38 }
 0x2da   :  { %v2970_v44 = vld [vmem:[#allocation9 + $0xe30] sm:$0xff]  ;;  %v2977_v48 = vld [vmem:[#allocation9 + $0xe68] sm:$0xff]  ;;  %v2979_v21 = vld [vmem:[#allocation9 + $0xe78] sm:$0xff] }
 0x2db   :  { %5433 = vmatpush1.bf16.msra.mxu0 %v5432_v62  ;;  %5561 = vmatpush1.bf16.msra.mxu1 %v5560_v46  ;;  %v5572_v52 = vpack.c.bf16 %v2970_v44, %v2966_v43  ;;  %v2972_v53 = vld [vmem:[#allocation9 + $0xe40] sm:$0xff]  ;;  %v5446_v57 = vpack.c.bf16 %v2977_v48, %v2973_v47  ;;  %v5574_v58 = vpack.c.bf16 %v2979_v21, %v2975_v51  ;;  %v2974_v0 = vld [vmem:[#allocation9 + $0xe50] sm:$0xff]  ;;  %v2981_v6 = vld [vmem:[#allocation9 + $0xe88] sm:$0xff] }
 0x2dc   :  { %5435 = vmatprep.subr.bf16.mxu0 %v5434_v16  ;;  %5563 = vmatprep.subr.bf16.mxu1 %v5562_v17  ;;  %v2976_v56 = vld [vmem:[#allocation9 + $0xe60] sm:$0xff]  ;;  %v2978_v5 = vld [vmem:[#allocation9 + $0xe70] sm:$0xff]  ;;  %v2985_v7 = vld [vmem:[#allocation9 + $0xea8] sm:$0xff] }
 0x2dd   :  { %v2983_v8 = vld [vmem:[#allocation9 + $0xe98] sm:$0xff]  ;;  %v5448_v12 = vpack.c.bf16 %v2976_v56, %v2972_v53  ;;  %v5576_v14 = vpack.c.bf16 %v2978_v5, %v2974_v0  ;;  %v2980_v30 = vld [vmem:[#allocation9 + $0xe80] sm:$0xff]  ;;  %v5450_v13 = vpack.c.bf16 %v2985_v7, %v2981_v6  ;;  %v2982_v62 = vld [vmem:[#allocation9 + $0xe90] sm:$0xff] }
 0x2de   :  { %v2987_v10 = vld [vmem:[#allocation9 + $0xeb8] sm:$0xff]  ;;  %v2984_v31 = vld [vmem:[#allocation9 + $0xea0] sm:$0xff]  ;;  %v2986_v46 = vld [vmem:[#allocation9 + $0xeb0] sm:$0xff] }
 0x2df   :  { %5437 = vmatpush1.bf16.msra.mxu0 %v5436_v29  ;;  %5565 = vmatpush1.bf16.msra.mxu1 %v5564_v32  ;;  %v5578_v34 = vpack.c.bf16 %v2987_v10, %v2983_v8  ;;  %v2989_v59 = vld [vmem:[#allocation9 + $0xec8] sm:$0xff]  ;;  %v2991_v16 = vld [vmem:[#allocation9 + $0xed8] sm:$0xff]  ;;  %v5452_v26 = vpack.c.bf16 %v2984_v31, %v2980_v30  ;;  %v5580_v22 = vpack.c.bf16 %v2986_v46, %v2982_v62  ;;  %v2988_v28 = vld [vmem:[#allocation9 + $0xec0] sm:$0xff] }
 0x2e0   :  { %5439 = vmatprep.subr.bf16.mxu0 %v5438_v3  ;;  %5567 = vmatprep.subr.bf16.mxu1 %v5566_v18  ;;  %v2993_v15 = vld [vmem:[#allocation9 + $0xee8] sm:$0xff]  ;;  %v2995_v17 = vld [vmem:[#allocation9 + $0xef8] sm:$0xff]  ;;  %v2992_v23 = vld [vmem:[#allocation9 + $0xee0] sm:$0xff] }
 0x2e1   :  { %v5454_v24 = vpack.c.bf16 %v2993_v15, %v2989_v59  ;;  %v5582_v27 = vpack.c.bf16 %v2995_v17, %v2991_v16  ;;  %v2990_v29 = vld [vmem:[#allocation9 + $0xed0] sm:$0xff]  ;;  %v2997_v33 = vld [vmem:[#allocation9 + $0xf08] sm:$0xff]  ;;  %v2999_v3 = vld [vmem:[#allocation9 + $0xf18] sm:$0xff]  ;;  %v5456_v11 = vpack.c.bf16 %v2992_v23, %v2988_v28 }
 0x2e2   :  { %v2994_v32 = vld [vmem:[#allocation9 + $0xef0] sm:$0xff]  ;;  %v3001_v19 = vld [vmem:[#allocation9 + $0xf28] sm:$0xff]  ;;  %v3003_v18 = vld [vmem:[#allocation9 + $0xf38] sm:$0xff] }
 0x2e3   :  { %5441 = vmatpush1.bf16.msra.mxu0 %v5440_v36  ;;  %5569 = vmatpush1.bf16.msra.mxu1 %v5568_v37  ;;  %v5584_v39 = vpack.c.bf16 %v2994_v32, %v2990_v29  ;;  %v2996_v25 = vld [vmem:[#allocation9 + $0xf00] sm:$0xff]  ;;  %v5458_v4 = vpack.c.bf16 %v3001_v19, %v2997_v33  ;;  %v5586_v35 = vpack.c.bf16 %v3003_v18, %v2999_v3  ;;  %v2998_v36 = vld [vmem:[#allocation9 + $0xf10] sm:$0xff]  ;;  %v3005_v38 = vld [vmem:[#allocation9 + $0xf48] sm:$0xff] }
 0x2e4   :  { %5443 = vmatprep.subr.bf16.mxu0 %v5442_v41  ;;  %5571 = vmatprep.subr.bf16.mxu1 %v5570_v42  ;;  %v3000_v1 = vld [vmem:[#allocation9 + $0xf20] sm:$0xff]  ;;  %v3002_v37 = vld [vmem:[#allocation9 + $0xf30] sm:$0xff]  ;;  %v3009_v40 = vld [vmem:[#allocation9 + $0xf68] sm:$0xff] }
 0x2e5   :  { %v3007_v41 = vld [vmem:[#allocation9 + $0xf58] sm:$0xff]  ;;  %v5460_v43 = vpack.c.bf16 %v3000_v1, %v2996_v25  ;;  %v5588_v44 = vpack.c.bf16 %v3002_v37, %v2998_v36  ;;  %v3004_v47 = vld [vmem:[#allocation9 + $0xf40] sm:$0xff]  ;;  %v5462_v51 = vpack.c.bf16 %v3009_v40, %v3005_v38  ;;  %v3013_v53 = vld [vmem:[#allocation9 + $0xf88] sm:$0xff] }
 0x2e6   :  { %v3011_v42 = vld [vmem:[#allocation9 + $0xf78] sm:$0xff]  ;;  %v3008_v48 = vld [vmem:[#allocation9 + $0xf60] sm:$0xff]  ;;  %v3017_v56 = vld [vmem:[#allocation9 + $0xfa8] sm:$0xff] }
 0x2e7   :  { %5445 = vmatpush1.bf16.msra.mxu0 %v5444_v50  ;;  %5573 = vmatpush1.bf16.msra.mxu1 %v5572_v52  ;;  %v5590_v21 = vpack.c.bf16 %v3011_v42, %v3007_v41  ;;  %v3006_v50 = vld [vmem:[#allocation9 + $0xf50] sm:$0xff]  ;;  %v5464_v0 = vpack.c.bf16 %v3008_v48, %v3004_v47  ;;  %v3012_v6 = vld [vmem:[#allocation9 + $0xf80] sm:$0xff]  ;;  %v5466_v8 = vpack.c.bf16 %v3017_v56, %v3013_v53  ;;  %v3021_v30 = vld [vmem:[#allocation9 + $0xfc8] sm:$0xff]  ;;  %v2722_v42 = vrot.slane %v6733_v55, 1 }
 0x2e8   :  { %5447 = vmatprep.subr.bf16.mxu0 %v5446_v57  ;;  %5575 = vmatprep.subr.bf16.mxu1 %v5574_v58  ;;  %v3010_v52 = vld [vmem:[#allocation9 + $0xf70] sm:$0xff]  ;;  %v3015_v57 = vld [vmem:[#allocation9 + $0xf98] sm:$0xff]  ;;  %v3016_v7 = vld [vmem:[#allocation9 + $0xfa0] sm:$0xff] }
 0x2e9   :  { %v3019_v58 = vld [vmem:[#allocation9 + $0xfb8] sm:$0xff]  ;;  %v5592_v5 = vpack.c.bf16 %v3010_v52, %v3006_v50  ;;  %v3025_v31 = vld [vmem:[#allocation9 + $0xfe8] sm:$0xff]  ;;  %v5468_v62 = vpack.c.bf16 %v3016_v7, %v3012_v6  ;;  %v3020_v59 = vld [vmem:[#allocation9 + $0xfc0] sm:$0xff] }
 0x2ea   :  { %v5594_v10 = vpack.c.bf16 %v3019_v58, %v3015_v57  ;;  %v3024_v15 = vld [vmem:[#allocation9 + $0xfe0] sm:$0xff]  ;;  %v5470_v16 = vpack.c.bf16 %v3025_v31, %v3021_v30  ;;  %v2420_v28 = vld [vmem:[#allocation9 + $0x8] sm:$0xff]  ;;  %v2682_v19 = vld [vmem:[#allocation2 + $0x58] sm:$0x1] }
 0x2eb   :  { %5449 = vmatpush1.bf16.msra.mxu0 %v5448_v12  ;;  %5577 = vmatpush1.bf16.msra.mxu1 %v5576_v14  ;;  %v3014_v12 = vld [vmem:[#allocation9 + $0xf90] sm:$0xff]  ;;  %v2424_v23 = vld [vmem:[#allocation9 + $0x28] sm:$0xff]  ;;  %v5472_v32 = vpack.c.bf16 %v3024_v15, %v3020_v59  ;;  %v2733_v37 = vrot.slane %v2682_v19, 1  ;;  %v2430_v40 = vld [vmem:[#allocation9 + $0x58] sm:$0xff] }
 0x2ec   :  { %5451 = vmatprep.subr.bf16.mxu0 %v5450_v13  ;;  %5579 = vmatprep.subr.bf16.mxu1 %v5578_v34  ;;  %v3018_v14 = vld [vmem:[#allocation9 + $0xfb0] sm:$0xff]  ;;  %v3023_v13 = vld [vmem:[#allocation9 + $0xfd8] sm:$0xff]  ;;  %v5602_v3 = vpack.c.bf16 %v2424_v23, %v2420_v28  ;;  %v2432_v36 = vld [vmem:[#allocation9 + $0x68] sm:$0xff]  ;;  %v2742_v23 = vrot.slane %v6768_v54, 1 }
 0x2ed   :  { %v3027_v34 = vld [vmem:[#allocation9 + $0xff8] sm:$0xff]  ;;  %v5596_v46 = vpack.c.bf16 %v3018_v14, %v3014_v12  ;;  %v2677_v29 = vld [vmem:[#allocation2 + $0x10] sm:$0xfe]  ;;  %v2681_v38 = vld [vmem:[#allocation2 + $0x50] sm:$0x1]  ;;  %v2734_v55 = vsel %vm517_vm1, %v2725_v49, %v2733_v37  ;;  %v2745_v12 = vrot.slane %v6776_v60, 1 }
 0x2ee   :  { %v5598_v17 = vpack.c.bf16 %v3027_v34, %v3023_v13  ;;  %v2421_v25 = vld [vmem:[#allocation9 + $0x10] sm:$0xff]  ;;  %v2721_v1 = vrot.slane %v2677_v29, 1  ;;  %v2434_v41 = vld [vmem:[#allocation9 + $0x78] sm:$0xff]  ;;  %v2427_v48 = vld [vmem:[#allocation9 + $0x40] sm:$0xff]  ;;  %v2731_v52 = vrot.slane %v2681_v38, 1 }
 0x2ef   :  { %5453 = vmatpush1.bf16.msra.mxu0 %v5452_v26  ;;  %5581 = vmatpush1.bf16.msra.mxu1 %v5580_v22  ;;  %v3022_v26 = vld [vmem:[#allocation9 + $0xfd0] sm:$0xff]  ;;  %v5734_v56 = vpack.c.bf16 %v2434_v41, %v2430_v40  ;;  %v2436_v58 = vld [vmem:[#allocation9 + $0x88] sm:$0xff]  ;;  %v2438_v7 = vld [vmem:[#allocation9 + $0x98] sm:$0xff] }
 0x2f0   :  { %5455 = vmatprep.subr.bf16.mxu0 %v5454_v24  ;;  %5583 = vmatprep.subr.bf16.mxu1 %v5582_v27  ;;  %v3026_v22 = vld [vmem:[#allocation9 + $0xff0] sm:$0xff]  ;;  %v2422_v24 = vld [vmem:[#allocation9 + $0x18] sm:$0xff]  ;;  %v2723_v50 = vsel %vm517_vm1, %v2721_v1, %v2722_v42  ;;  %v2435_v31 = vld [vmem:[#allocation9 + $0x80] sm:$0xff]  ;;  %v2732_v61 = vsel %vm517_vm1, %v2722_v42, %v2731_v52 }
 0x2f1   :  { %v2426_v27 = vld [vmem:[#allocation9 + $0x38] sm:$0xff]  ;;  %v5600_v33 = vpack.c.bf16 %v3026_v22, %v3022_v26  ;;  %v2433_v57 = vld [vmem:[#allocation9 + $0x70] sm:$0xff]  ;;  %v2439_v13 = vld [vmem:[#allocation9 + $0xa0] sm:$0xff] }
 0x2f2   :  { %v5730_v18 = vpack.c.bf16 %v2426_v27, %v2422_v24  ;;  %v2685_v6 = vld [vmem:[#allocation2 + $0x70] sm:$0xfe]  ;;  %v2689_v26 = vld [vmem:[#allocation2 + $0xb0] sm:$0x1]  ;;  %v2446_v22 = vld [vmem:[#allocation9 + $0xd8] sm:$0xff]  ;;  %v5612_v24 = vpack.c.bf16 %v2439_v13, %v2435_v31 }
 0x2f3   :  { %5457 = vmatpush1.bf16.msra.mxu0 %v5456_v11  ;;  %5585 = vmatpush1.bf16.msra.mxu1 %v5584_v39  ;;  %v2419_v11 = vld [vmem:[#allocation9] sm:$0xff]  ;;  %v2437_v34 = vld [vmem:[#allocation9 + $0x90] sm:$0xff]  ;;  %v2741_v49 = vrot.slane %v2685_v6, 1  ;;  %v2444_v15 = vld [vmem:[#allocation9 + $0xc8] sm:$0xff]  ;;  %v2751_v19 = vrot.slane %v2689_v26, 1 }
 0x2f4   :  { %5459 = vmatprep.subr.bf16.mxu0 %v5458_v4  ;;  %5587 = vmatprep.subr.bf16.mxu1 %v5586_v35  ;;  %v2423_v39 = vld [vmem:[#allocation9 + $0x20] sm:$0xff]  ;;  %v2425_v4 = vld [vmem:[#allocation9 + $0x30] sm:$0xff]  ;;  %v2428_v35 = vld [vmem:[#allocation9 + $0x48] sm:$0xff] }
 0x2f5   :  { %v5732_v47 = vpack.c.bf16 %v2425_v4, %v2421_v25  ;;  %v5606_v53 = vpack.c.bf16 %v2432_v36, %v2428_v35  ;;  %v2441_v59 = vld [vmem:[#allocation9 + $0xb0] sm:$0xff]  ;;  %v2450_v28 = vld [vmem:[#allocation9 + $0xf8] sm:$0xff]  ;;  %v2443_v29 = vld [vmem:[#allocation9 + $0xc0] sm:$0xff]  ;;  %v2752_v42 = vsel %vm517_vm1, %v2742_v23, %v2751_v19 }
 0x2f6   :  { %v5740_v27 = vpack.c.bf16 %v2441_v59, %v2437_v34  ;;  %v2452_v25 = vld [vmem:[#allocation9 + $0x108] sm:$0xff]  ;;  %v2454_v4 = vld [vmem:[#allocation9 + $0x118] sm:$0xff]  ;;  %v2451_v38 = vld [vmem:[#allocation9 + $0x100] sm:$0xff] }
 0x2f7   :  { %5461 = vmatpush1.bf16.msra.mxu0 %v5460_v43  ;;  %5589 = vmatpush1.bf16.msra.mxu1 %v5588_v44  ;;  %v2686_v43 = vld [vmem:[#allocation2 + $0x78] sm:$0xfe]  ;;  %v5604_v44 = vpack.c.bf16 %v2423_v39, %v2419_v11  ;;  %v2456_v1 = vld [vmem:[#allocation9 + $0x128] sm:$0xff]  ;;  %v2455_v40 = vld [vmem:[#allocation9 + $0x120] sm:$0xff] }
 0x2f8   :  { %5463 = vmatprep.subr.bf16.mxu0 %v5462_v51  ;;  %5591 = vmatprep.subr.bf16.mxu1 %v5590_v21  ;;  %v2431_v51 = vld [vmem:[#allocation9 + $0x60] sm:$0xff]  ;;  %v2429_v21 = vld [vmem:[#allocation9 + $0x50] sm:$0xff]  ;;  %v2458_v35 = vld [vmem:[#allocation9 + $0x138] sm:$0xff] }
 0x2f9   :  { %v5608_v14 = vpack.c.bf16 %v2431_v51, %v2427_v48  ;;  %v5736_v30 = vpack.c.bf16 %v2433_v57, %v2429_v21  ;;  %v2445_v11 = vld [vmem:[#allocation9 + $0xd0] sm:$0xff]  ;;  %v2460_v48 = vld [vmem:[#allocation9 + $0x148] sm:$0xff]  ;;  %v2466_v52 = vld [vmem:[#allocation9 + $0x178] sm:$0xff] }
 0x2fa   :  { %v2449_v39 = vld [vmem:[#allocation9 + $0xf0] sm:$0xff]  ;;  %v2464_v51 = vld [vmem:[#allocation9 + $0x168] sm:$0xff]  ;;  %v2459_v57 = vld [vmem:[#allocation9 + $0x140] sm:$0xff] }
 0x2fb   :  { %5465 = vmatpush1.bf16.msra.mxu0 %v5464_v0  ;;  %5593 = vmatpush1.bf16.msra.mxu1 %v5592_v5  ;;  %v2440_v0 = vld [vmem:[#allocation9 + $0xa8] sm:$0xff]  ;;  %v2744_v5 = vrot.slane %v2686_v43, 1  ;;  %v5744_v37 = vpack.c.bf16 %v2449_v39, %v2445_v11  ;;  %v2453_v41 = vld [vmem:[#allocation9 + $0x110] sm:$0xff]  ;;  %v5618_v43 = vpack.c.bf16 %v2456_v1, %v2452_v25  ;;  %v2467_v31 = vld [vmem:[#allocation9 + $0x180] sm:$0xff] }
 0x2fc   :  { %5467 = vmatprep.subr.bf16.mxu0 %v5466_v8  ;;  %5595 = vmatprep.subr.bf16.mxu1 %v5594_v10  ;;  %v2442_v8 = vld [vmem:[#allocation9 + $0xb8] sm:$0xff]  ;;  %v2690_v10 = vld [vmem:[#allocation2 + $0xb8] sm:$0x1]  ;;  %v2404_v21 = vld [vmem:[#allocation2 + $0x8] sm:$0xff] }
 0x2fd   :  { %v2753_v60 = vrot.slane %v2690_v10, 1  ;;  %v2465_v6 = vld [vmem:[#allocation9 + $0x170] sm:$0xff]  ;;  %v2470_v10 = vld [vmem:[#allocation9 + $0x198] sm:$0xff]  ;;  %v2471_v13 = vld [vmem:[#allocation9 + $0x1a0] sm:$0xff] }
 0x2fe   :  { %v2480_v59 = vld [vmem:[#allocation9 + $0x1e8] sm:$0xff]  ;;  %v2475_v26 = vld [vmem:[#allocation9 + $0x1c0] sm:$0xff]  ;;  %v2490_v19 = vld [vmem:[#allocation9 + $0x238] sm:$0xff] }
 0x2ff   :  { %5469 = vmatpush1.bf16.msra.mxu0 %v5468_v62  ;;  %5597 = vmatpush1.bf16.msra.mxu1 %v5596_v46  ;;  %v5610_v62 = vpack.c.bf16 %v2440_v0, %v2436_v58  ;;  %v5738_v46 = vpack.c.bf16 %v2442_v8, %v2438_v7  ;;  %v2754_v54 = vsel %vm517_vm1, %v2745_v12, %v2753_v60  ;;  %v2463_v58 = vld [vmem:[#allocation9 + $0x160] sm:$0xff]  ;;  %v2468_v7 = vld [vmem:[#allocation9 + $0x188] sm:$0xff]  ;;  %v2485_v1 = vld [vmem:[#allocation9 + $0x210] sm:$0xff] }
 0x300   :  { %5471 = vmatprep.subr.bf16.mxu0 %v5470_v16  ;;  %5599 = vmatprep.subr.bf16.mxu1 %v5598_v17  ;;  %v2448_v16 = vld [vmem:[#allocation9 + $0xe8] sm:$0xff]  ;;  %v2746_v17 = vsel %vm517_vm1, %v2744_v5, %v2745_v12  ;;  %v5622_v0 = vpack.c.bf16 %v2464_v51, %v2460_v48  ;;  %v2461_v5 = vld [vmem:[#allocation9 + $0x150] sm:$0xff]  ;;  %v2474_v12 = vld [vmem:[#allocation9 + $0x1b8] sm:$0xff] }
 0x301   :  { %v2472_v8 = vld [vmem:[#allocation9 + $0x1a8] sm:$0xff]  ;;  %v2483_v11 = vld [vmem:[#allocation9 + $0x200] sm:$0xff]  ;;  %v2493_v48 = vld [vmem:[#allocation9 + $0x250] sm:$0xff] }
 0x302   :  { %v5626_v34 = vpack.c.bf16 %v2472_v8, %v2468_v7  ;;  %v2487_v39 = vld [vmem:[#allocation9 + $0x220] sm:$0xff]  ;;  %v2497_v51 = vld [vmem:[#allocation9 + $0x270] sm:$0xff]  ;;  %v2508_v8 = vld [vmem:[#allocation9 + $0x2c8] sm:$0xff] }
 0x303   :  { %5473 = vmatpush1.bf16.msra.mxu0 %v5472_v32  ;;  %5601 = vmatpush1.bf16.msra.mxu1 %v5600_v33  ;;  %v2447_v32 = vld [vmem:[#allocation9 + $0xe0] sm:$0xff]  ;;  %v2743_v33 = vsel %vm517_vm1, %v2741_v49, %v2742_v23  ;;  %v2469_v49 = vld [vmem:[#allocation9 + $0x190] sm:$0xff] }
 0x304   :  { %5603 = vmatprep.subr.bf16.mxu0 %v5602_v3  ;;  %5731 = vmatprep.subr.bf16.mxu1 %v5730_v18  ;;  %v5614_v3 = vpack.c.bf16 %v2448_v16, %v2444_v15  ;;  %v5742_v18 = vpack.c.bf16 %v2450_v28, %v2446_v22  ;;  %v5616_v36 = vpack.c.bf16 %v2447_v32, %v2443_v29  ;;  %v2478_v15 = vld [vmem:[#allocation9 + $0x1d8] sm:$0xff]  ;;  %v2479_v22 = vld [vmem:[#allocation9 + $0x1e0] sm:$0xff]  ;;  %v2484_v29 = vld [vmem:[#allocation9 + $0x208] sm:$0xff] }
 0x305   :  { %v2482_v16 = vld [vmem:[#allocation9 + $0x1f8] sm:$0xff]  ;;  %v2488_v32 = vld [vmem:[#allocation9 + $0x228] sm:$0xff]  ;;  %v2505_v7 = vld [vmem:[#allocation9 + $0x2b0] sm:$0xff] }
 0x306   :  { %3182 = vmatmul.mubr.f32.vlgmr.msra.gmra.mrb[8].mxu0 %v2723_v50  ;;  %3360 = vmatmul.mubr.f32.vlgmr.msra.gmra.mrb[8].mxu1 %v2723_v50  ;;  %v2462_v50 = vld [vmem:[#allocation9 + $0x158] sm:$0xff]  ;;  %v5758_v23 = vpack.c.bf16 %v2482_v16, %v2478_v15  ;;  %v5634_v25 = vpack.c.bf16 %v2488_v32, %v2484_v29  ;;  %v2520_v15 = vld [vmem:[#allocation9 + $0x328] sm:$0xff]  ;;  %v2521_v29 = vld [vmem:[#allocation9 + $0x330] sm:$0xff] }
 0x307   :  { %3187 = vmatprep.mubr.f32.mxu0 %v2734_v55  ;;  %3365 = vmatprep.mubr.f32.mxu1 %v2734_v55  ;;  %v5750_v55 = vpack.c.bf16 %v2466_v52, %v2462_v50  ;;  %v2504_v50 = vld [vmem:[#allocation9 + $0x2a8] sm:$0xff]  ;;  %v2502_v52 = vld [vmem:[#allocation9 + $0x298] sm:$0xff] }
 0x308   :  { %5605 = vmatpush1.bf16.msra.mxu0 %v5604_v44  ;;  %5733 = vmatpush1.bf16.msra.mxu1 %v5732_v47  ;;  %v5746_v44 = vpack.c.bf16 %v2458_v35, %v2454_v4  ;;  %v2457_v47 = vld [vmem:[#allocation9 + $0x130] sm:$0xff]  ;;  %v2492_v35 = vld [vmem:[#allocation9 + $0x248] sm:$0xff]  ;;  %v2518_v16 = vld [vmem:[#allocation9 + $0x318] sm:$0xff] }
 0x309   :  { %5607 = vmatprep.subr.bf16.mxu0 %v5606_v53  ;;  %5735 = vmatprep.subr.bf16.mxu1 %v5734_v56  ;;  %v5620_v53 = vpack.c.bf16 %v2455_v40, %v2451_v38  ;;  %v5748_v56 = vpack.c.bf16 %v2457_v47, %v2453_v41  ;;  %v2489_v4 = vld [vmem:[#allocation9 + $0x230] sm:$0xff]  ;;  %v2498_v38 = vld [vmem:[#allocation9 + $0x278] sm:$0xff]  ;;  %v5636_v40 = vpack.c.bf16 %v2487_v39, %v2483_v11  ;;  %v2524_v32 = vld [vmem:[#allocation9 + $0x348] sm:$0xff] }
 0x30a   :  { %3188 = vmatmul.mubr.f32.gmra.mrb[10].mxu0 %v2732_v61  ;;  %3366 = vmatmul.mubr.f32.gmra.mrb[10].mxu1 %v2732_v61  ;;  %v5754_v61 = vpack.c.bf16 %v2474_v12, %v2470_v10  ;;  %v5764_v41 = vpack.c.bf16 %v2489_v4, %v2485_v1  ;;  %v2512_v10 = vld [vmem:[#allocation9 + $0x2e8] sm:$0xff]  ;;  %v2510_v12 = vld [vmem:[#allocation9 + $0x2d8] sm:$0xff]  ;;  %v2523_v39 = vld [vmem:[#allocation9 + $0x340] sm:$0xff] }
 0x30b   :  { %3193 = vmatprep.mubr.f32.mxu0 %v2746_v17  ;;  %3371 = vmatprep.mubr.f32.mxu1 %v2746_v17  ;;  %v5628_v17 = vpack.c.bf16 %v2471_v13, %v2467_v31  ;;  %v2507_v13 = vld [vmem:[#allocation9 + $0x2c0] sm:$0xff]  ;;  %v2525_v4 = vld [vmem:[#allocation9 + $0x350] sm:$0xff] }
 0x30c   :  { %5609 = vmatpush1.bf16.msra.mxu0 %v5608_v14  ;;  %5737 = vmatpush1.bf16.msra.mxu1 %v5736_v30  ;;  %v5624_v14 = vpack.c.bf16 %v2463_v58, %v2459_v57  ;;  %v5752_v30 = vpack.c.bf16 %v2465_v6, %v2461_v5  ;;  %v5768_v57 = vpack.c.bf16 %v2497_v51, %v2493_v48  ;;  %v2499_v58 = vld [vmem:[#allocation9 + $0x280] sm:$0xff]  ;;  %v2501_v6 = vld [vmem:[#allocation9 + $0x290] sm:$0xff] }
 0x30d   :  { %5611 = vmatprep.subr.bf16.mxu0 %v5610_v62  ;;  %5739 = vmatprep.subr.bf16.mxu1 %v5738_v46  ;;  %v2473_v62 = vld [vmem:[#allocation9 + $0x1b0] sm:$0xff]  ;;  %v2476_v46 = vld [vmem:[#allocation9 + $0x1c8] sm:$0xff]  ;;  %v5772_v31 = vpack.c.bf16 %v2505_v7, %v2501_v6 }
 0x30e   :  { %3194 = vmatmul.mubr.f32.gmra.mrb[12].mxu0 %v2743_v33  ;;  %3372 = vmatmul.mubr.f32.gmra.mrb[12].mxu1 %v2743_v33  ;;  %v5756_v60 = vpack.c.bf16 %v2473_v62, %v2469_v49  ;;  %v5630_v28 = vpack.c.bf16 %v2480_v59, %v2476_v46  ;;  %v2486_v33 = vld [vmem:[#allocation9 + $0x218] sm:$0xff]  ;;  %v2509_v62 = vld [vmem:[#allocation9 + $0x2d0] sm:$0xff]  ;;  %v2516_v59 = vld [vmem:[#allocation9 + $0x308] sm:$0xff] }
 0x30f   :  { %3199 = vmatprep.mubr.f32.mxu0 %v2754_v54  ;;  %3377 = vmatprep.mubr.f32.mxu1 %v2754_v54  ;;  %v5762_v54 = vpack.c.bf16 %v2490_v19, %v2486_v33  ;;  %v2513_v46 = vld [vmem:[#allocation9 + $0x2f0] sm:$0xff]  ;;  %v2528_v33 = vld [vmem:[#allocation9 + $0x368] sm:$0xff]  ;;  %v2526_v19 = vld [vmem:[#allocation9 + $0x358] sm:$0xff] }
 0x310   :  { %5613 = vmatpush1.bf16.msra.mxu0 %v5612_v24  ;;  %5741 = vmatpush1.bf16.msra.mxu1 %v5740_v27  ;;  %v2477_v24 = vld [vmem:[#allocation9 + $0x1d0] sm:$0xff] }
 0x311   :  { %5615 = vmatprep.subr.bf16.mxu0 %v5614_v3  ;;  %5743 = vmatprep.subr.bf16.mxu1 %v5742_v18  ;;  %v2481_v27 = vld [vmem:[#allocation9 + $0x1f0] sm:$0xff]  ;;  %v5632_v3 = vpack.c.bf16 %v2479_v22, %v2475_v26  ;;  %v5776_v26 = vpack.c.bf16 %v2513_v46, %v2509_v62  ;;  %v2515_v22 = vld [vmem:[#allocation9 + $0x300] sm:$0xff] }
 0x312   :  { %3200 = vmatmul.mubr.f32.gmra.mrb[14].mxu0 %v2752_v42  ;;  %3378 = vmatmul.mubr.f32.gmra.mrb[14].mxu1 %v2752_v42  ;;  %v5760_v18 = vpack.c.bf16 %v2481_v27, %v2477_v24  ;;  %v2491_v42 = vld [vmem:[#allocation9 + $0x240] sm:$0xff]  ;;  %v2517_v27 = vld [vmem:[#allocation9 + $0x310] sm:$0xff] }
 0x313   :  { %3448 = vmatprep.mubr.f32.mxu0 %v2404_v21  ;;  %3626 = vmatprep.mubr.f32.mxu1 %v2404_v21  ;;  %v2500_v21 = vld [vmem:[#allocation9 + $0x288] sm:$0xff]  ;;  %v5780_v11 = vpack.c.bf16 %v2521_v29, %v2517_v27  ;;  %v2533_v51 = vld [vmem:[#allocation9 + $0x390] sm:$0xff]  ;;  %v2551_v62 = vld [vmem:[#allocation9 + $0x420] sm:$0xff] }
 0x314   :  { %5617 = vmatpush1.bf16.msra.mxu0 %v5616_v36  ;;  %5745 = vmatpush1.bf16.msra.mxu1 %v5744_v37  ;;  %v2496_v36 = vld [vmem:[#allocation9 + $0x268] sm:$0xff]  ;;  %v2494_v37 = vld [vmem:[#allocation9 + $0x258] sm:$0xff]  ;;  %v2541_v7 = vld [vmem:[#allocation9 + $0x3d0] sm:$0xff] }
 0x315   :  { %5619 = vmatprep.subr.bf16.mxu0 %v5618_v43  ;;  %5747 = vmatprep.subr.bf16.mxu1 %v5746_v44  ;;  %v2495_v43 = vld [vmem:[#allocation9 + $0x260] sm:$0xff]  ;;  %v5638_v44 = vpack.c.bf16 %v2496_v36, %v2492_v35  ;;  %v5766_v47 = vpack.c.bf16 %v2498_v38, %v2494_v37  ;;  %v2529_v35 = vld [vmem:[#allocation9 + $0x370] sm:$0xff]  ;;  %v2532_v36 = vld [vmem:[#allocation9 + $0x388] sm:$0xff] }
 0x316   :  { %v2536_v37 = vld [vmem:[#allocation9 + $0x3a8] sm:$0xff]  ;;  %v2534_v38 = vld [vmem:[#allocation9 + $0x398] sm:$0xff]  ;;  %v2549_v46 = vld [vmem:[#allocation9 + $0x410] sm:$0xff] }
 0x318   :  { %5621 = vmatpush1.bf16.msra.mxu0 %v5620_v53  ;;  %5749 = vmatpush1.bf16.msra.mxu1 %v5748_v56  ;;  %v2506_v53 = vld [vmem:[#allocation9 + $0x2b8] sm:$0xff]  ;;  %v5640_v56 = vpack.c.bf16 %v2495_v43, %v2491_v42  ;;  %v5784_v42 = vpack.c.bf16 %v2529_v35, %v2525_v4  ;;  %v2531_v43 = vld [vmem:[#allocation9 + $0x380] sm:$0xff] }
 0x319   :  { %5623 = vmatprep.subr.bf16.mxu0 %v5622_v0  ;;  %5751 = vmatprep.subr.bf16.mxu1 %v5750_v55  ;;  %v2503_v0 = vld [vmem:[#allocation9 + $0x2a0] sm:$0xff]  ;;  %v5642_v55 = vpack.c.bf16 %v2504_v50, %v2500_v21  ;;  %v5770_v5 = vpack.c.bf16 %v2506_v53, %v2502_v52  ;;  %v2537_v21 = vld [vmem:[#allocation9 + $0x3b0] sm:$0xff]  ;;  %v2540_v50 = vld [vmem:[#allocation9 + $0x3c8] sm:$0xff] }
 0x31a   :  { %v2544_v52 = vld [vmem:[#allocation9 + $0x3e8] sm:$0xff]  ;;  %v2542_v53 = vld [vmem:[#allocation9 + $0x3d8] sm:$0xff]  ;;  %v2563_v4 = vld [vmem:[#allocation9 + $0x480] sm:$0xff] }
 0x31b   :  { %v2567_v35 = vld [vmem:[#allocation9 + $0x4a0] sm:$0xff] }
 0x31c   :  { %5625 = vmatpush1.bf16.msra.mxu0 %v5624_v14  ;;  %5753 = vmatpush1.bf16.msra.mxu1 %v5752_v30  ;;  %v2514_v14 = vld [vmem:[#allocation9 + $0x2f8] sm:$0xff]  ;;  %v5644_v30 = vpack.c.bf16 %v2503_v0, %v2499_v58  ;;  %v5788_v58 = vpack.c.bf16 %v2537_v21, %v2533_v51  ;;  %v2539_v0 = vld [vmem:[#allocation9 + $0x3c0] sm:$0xff] }
 0x31d   :  { %5627 = vmatprep.subr.bf16.mxu0 %v5626_v34  ;;  %5755 = vmatprep.subr.bf16.mxu1 %v5754_v61  ;;  %v2511_v34 = vld [vmem:[#allocation9 + $0x2e0] sm:$0xff]  ;;  %v5646_v61 = vpack.c.bf16 %v2512_v10, %v2508_v8  ;;  %v5774_v49 = vpack.c.bf16 %v2514_v14, %v2510_v12  ;;  %v2545_v8 = vld [vmem:[#allocation9 + $0x3f0] sm:$0xff]  ;;  %v2548_v10 = vld [vmem:[#allocation9 + $0x408] sm:$0xff] }
 0x31e   :  { %v2552_v12 = vld [vmem:[#allocation9 + $0x428] sm:$0xff]  ;;  %v2550_v14 = vld [vmem:[#allocation9 + $0x418] sm:$0xff] }
 0x31f   :  { %v2411_v51 = vld [vmem:[#allocation2 + $0x60] sm:$0xff] }
 0x320   :  { %5629 = vmatpush1.bf16.msra.mxu0 %v5628_v17  ;;  %5757 = vmatpush1.bf16.msra.mxu1 %v5756_v60  ;;  %v2522_v17 = vld [vmem:[#allocation9 + $0x338] sm:$0xff]  ;;  %v5648_v60 = vpack.c.bf16 %v2511_v34, %v2507_v13  ;;  %v5792_v13 = vpack.c.bf16 %v2545_v8, %v2541_v7  ;;  %v5666_v34 = vpack.c.bf16 %v2552_v12, %v2548_v10  ;;  %v6285_v7 = vld [vmem:[#allocation2 + $0x88] sm:$0xff] }
 0x321   :  { %5631 = vmatprep.subr.bf16.mxu0 %v5630_v28  ;;  %5759 = vmatprep.subr.bf16.mxu1 %v5758_v23  ;;  %v2519_v28 = vld [vmem:[#allocation9 + $0x320] sm:$0xff]  ;;  %v5650_v23 = vpack.c.bf16 %v2520_v15, %v2516_v59  ;;  %v5778_v24 = vpack.c.bf16 %v2522_v17, %v2518_v16  ;;  %v2553_v59 = vld [vmem:[#allocation9 + $0x430] sm:$0xff]  ;;  %v2556_v15 = vld [vmem:[#allocation9 + $0x448] sm:$0xff] }
 0x322   :  { %v2560_v16 = vld [vmem:[#allocation9 + $0x468] sm:$0xff]  ;;  %v2558_v17 = vld [vmem:[#allocation9 + $0x458] sm:$0xff]  ;;  %v2579_v12 = vld [vmem:[#allocation9 + $0x500] sm:$0xff] }
 0x323   :  { %v5670_v27 = vpack.c.bf16 %v2560_v16, %v2556_v15  ;;  %v2594_v15 = vld [vmem:[#allocation9 + $0x578] sm:$0xff] }
 0x324   :  { %5633 = vmatpush1.bf16.msra.mxu0 %v5632_v3  ;;  %5761 = vmatpush1.bf16.msra.mxu1 %v5760_v18  ;;  %v2530_v3 = vld [vmem:[#allocation9 + $0x378] sm:$0xff]  ;;  %v5652_v18 = vpack.c.bf16 %v2519_v28, %v2515_v22  ;;  %v5796_v28 = vpack.c.bf16 %v2553_v59, %v2549_v46 }
 0x325   :  { %5635 = vmatprep.subr.bf16.mxu0 %v5634_v25  ;;  %5763 = vmatprep.subr.bf16.mxu1 %v5762_v54  ;;  %v2527_v25 = vld [vmem:[#allocation9 + $0x360] sm:$0xff]  ;;  %v5654_v54 = vpack.c.bf16 %v2528_v33, %v2524_v32  ;;  %v5782_v1 = vpack.c.bf16 %v2530_v3, %v2526_v19  ;;  %v2557_v32 = vld [vmem:[#allocation9 + $0x450] sm:$0xff]  ;;  %v2564_v19 = vld [vmem:[#allocation9 + $0x488] sm:$0xff] }
 0x326   :  { %v2403_v22 = vld [vmem:[#allocation2] sm:$0xff]  ;;  %v2561_v33 = vld [vmem:[#allocation9 + $0x470] sm:$0xff]  ;;  %v2568_v3 = vld [vmem:[#allocation9 + $0x4a8] sm:$0xff] }
 0x327   :  { %v2406_v46 = vld [vmem:[#allocation2 + $0x18] sm:$0xff] }
 0x328   :  { %5637 = vmatpush1.bf16.msra.mxu0 %v5636_v40  ;;  %5765 = vmatpush1.bf16.msra.mxu1 %v5764_v41  ;;  %v2538_v40 = vld [vmem:[#allocation9 + $0x3b8] sm:$0xff]  ;;  %v5656_v41 = vpack.c.bf16 %v2527_v25, %v2523_v39  ;;  %v6810_v39 = vld [vmem:[#allocation2 + $0x28] sm:$0xff] }
 0x329   :  { %5639 = vmatprep.subr.bf16.mxu0 %v5638_v44  ;;  %5767 = vmatprep.subr.bf16.mxu1 %v5766_v47  ;;  %v2535_v44 = vld [vmem:[#allocation9 + $0x3a0] sm:$0xff]  ;;  %v5658_v47 = vpack.c.bf16 %v2536_v37, %v2532_v36  ;;  %v5786_v48 = vpack.c.bf16 %v2538_v40, %v2534_v38  ;;  %v5674_v36 = vpack.c.bf16 %v2568_v3, %v2564_v19  ;;  %v2565_v38 = vld [vmem:[#allocation9 + $0x490] sm:$0xff]  ;;  %v2590_v59 = vld [vmem:[#allocation9 + $0x558] sm:$0xff] }
 0x32a   :  { %v2569_v40 = vld [vmem:[#allocation9 + $0x4b0] sm:$0xff] }
 0x32b   :  { %v5804_v21 = vpack.c.bf16 %v2569_v40, %v2565_v38  ;;  %v2610_v38 = vld [vmem:[#allocation9 + $0x5f8] sm:$0xff] }
 0x32c   :  { %5641 = vmatpush1.bf16.msra.mxu0 %v5640_v56  ;;  %5769 = vmatpush1.bf16.msra.mxu1 %v5768_v57  ;;  %v2546_v56 = vld [vmem:[#allocation9 + $0x3f8] sm:$0xff]  ;;  %v5660_v57 = vpack.c.bf16 %v2535_v44, %v2531_v43  ;;  %v2576_v43 = vld [vmem:[#allocation9 + $0x4e8] sm:$0xff] }
 0x32d   :  { %5643 = vmatprep.subr.bf16.mxu0 %v5642_v55  ;;  %5771 = vmatprep.subr.bf16.mxu1 %v5770_v5  ;;  %v2543_v55 = vld [vmem:[#allocation9 + $0x3e0] sm:$0xff]  ;;  %v5662_v5 = vpack.c.bf16 %v2544_v52, %v2540_v50  ;;  %v5790_v6 = vpack.c.bf16 %v2546_v56, %v2542_v53  ;;  %v2574_v44 = vld [vmem:[#allocation9 + $0x4d8] sm:$0xff] }
 0x32e   :  { %v2571_v50 = vld [vmem:[#allocation9 + $0x4c0] sm:$0xff] }
 0x32f   :  { %v2575_v52 = vld [vmem:[#allocation9 + $0x4e0] sm:$0xff] }
 0x330   :  { %5645 = vmatpush1.bf16.msra.mxu0 %v5644_v30  ;;  %5773 = vmatpush1.bf16.msra.mxu1 %v5772_v31  ;;  %v2554_v30 = vld [vmem:[#allocation9 + $0x438] sm:$0xff]  ;;  %v5664_v31 = vpack.c.bf16 %v2543_v55, %v2539_v0  ;;  %v2580_v0 = vld [vmem:[#allocation9 + $0x508] sm:$0xff]  ;;  %v5680_v8 = vpack.c.bf16 %v2575_v52, %v2571_v50 }
 0x331   :  { %5647 = vmatprep.subr.bf16.mxu0 %v5646_v61  ;;  %5775 = vmatprep.subr.bf16.mxu1 %v5774_v49  ;;  %v5794_v61 = vpack.c.bf16 %v2554_v30, %v2550_v14  ;;  %v2547_v49 = vld [vmem:[#allocation9 + $0x400] sm:$0xff]  ;;  %v2584_v55 = vld [vmem:[#allocation9 + $0x528] sm:$0xff]  ;;  %v2581_v30 = vld [vmem:[#allocation9 + $0x510] sm:$0xff] }
 0x332   :  { %v2583_v14 = vld [vmem:[#allocation9 + $0x520] sm:$0xff]  ;;  %v2616_v50 = vld [vmem:[#allocation9 + $0x628] sm:$0xff]  ;;  %v2614_v52 = vld [vmem:[#allocation9 + $0x618] sm:$0xff] }
 0x333   :  { %v5684_v16 = vpack.c.bf16 %v2583_v14, %v2579_v12  ;;  %v2622_v12 = vld [vmem:[#allocation9 + $0x658] sm:$0xff] }
 0x334   :  { %5649 = vmatpush1.bf16.msra.mxu0 %v5648_v60  ;;  %5777 = vmatpush1.bf16.msra.mxu1 %v5776_v26  ;;  %v2562_v60 = vld [vmem:[#allocation9 + $0x478] sm:$0xff]  ;;  %v5668_v26 = vpack.c.bf16 %v2551_v62, %v2547_v49  ;;  %v2592_v49 = vld [vmem:[#allocation9 + $0x568] sm:$0xff] }
 0x335   :  { %5651 = vmatprep.subr.bf16.mxu0 %v5650_v23  ;;  %5779 = vmatprep.subr.bf16.mxu1 %v5778_v24  ;;  %v2555_v23 = vld [vmem:[#allocation9 + $0x440] sm:$0xff]  ;;  %v5798_v29 = vpack.c.bf16 %v2562_v60, %v2558_v17  ;;  %v2626_v14 = vld [vmem:[#allocation9 + $0x678] sm:$0xff] }
 0x336   :  { %v2559_v24 = vld [vmem:[#allocation9 + $0x460] sm:$0xff] }
 0x337   :  { %v5672_v25 = vpack.c.bf16 %v2559_v24, %v2555_v23  ;;  %v6286_v62 = vld [vmem:[#allocation2 + $0x80] sm:$0xff]  ;;  %v5814_v23 = vpack.c.bf16 %v2594_v15, %v2590_v59  ;;  %v2593_v24 = vld [vmem:[#allocation9 + $0x570] sm:$0xff]  ;;  %v2628_v59 = vld [vmem:[#allocation9 + $0x688] sm:$0xff] }
 0x338   :  { %5653 = vmatpush1.bf16.msra.mxu0 %v5652_v18  ;;  %5781 = vmatpush1.bf16.msra.mxu1 %v5780_v11  ;;  %v2566_v18 = vld [vmem:[#allocation9 + $0x498] sm:$0xff]  ;;  %v2632_v15 = vld [vmem:[#allocation9 + $0x6a8] sm:$0xff] }
 0x339   :  { %5655 = vmatprep.subr.bf16.mxu0 %v5654_v54  ;;  %5783 = vmatprep.subr.bf16.mxu1 %v5782_v1  ;;  %v2570_v11 = vld [vmem:[#allocation9 + $0x4b8] sm:$0xff]  ;;  %v2412_v54 = vld [vmem:[#allocation2 + $0x68] sm:$0xff]  ;;  %v5800_v1 = vpack.c.bf16 %v2561_v33, %v2557_v32 }
 0x33a   :  { %v5802_v37 = vpack.c.bf16 %v2570_v11, %v2566_v18  ;;  %v2598_v32 = vld [vmem:[#allocation9 + $0x598] sm:$0xff]  ;;  %v2595_v11 = vld [vmem:[#allocation9 + $0x580] sm:$0xff] }
 0x33b   :  { %v2602_v33 = vld [vmem:[#allocation9 + $0x5b8] sm:$0xff] }
 0x33c   :  { %5657 = vmatpush1.bf16.msra.mxu0 %v5656_v41  ;;  %5785 = vmatpush1.bf16.msra.mxu1 %v5784_v42  ;;  %v2572_v41 = vld [vmem:[#allocation9 + $0x4c8] sm:$0xff]  ;;  %v6284_v42 = vld [vmem:[#allocation2 + $0x20] sm:$0xff] }
 0x33d   :  { %5659 = vmatprep.subr.bf16.mxu0 %v5658_v47  ;;  %5787 = vmatprep.subr.bf16.mxu1 %v5786_v48  ;;  %v2578_v47 = vld [vmem:[#allocation9 + $0x4f8] sm:$0xff]  ;;  %v5676_v48 = vpack.c.bf16 %v2567_v35, %v2563_v4  ;;  %v5678_v53 = vpack.c.bf16 %v2576_v43, %v2572_v41  ;;  %v2601_v4 = vld [vmem:[#allocation9 + $0x5b0] sm:$0xff]  ;;  %v2604_v35 = vld [vmem:[#allocation9 + $0x5c8] sm:$0xff] }
 0x33e   :  { %v5806_v56 = vpack.c.bf16 %v2578_v47, %v2574_v44  ;;  %v2603_v43 = vld [vmem:[#allocation9 + $0x5c0] sm:$0xff]  ;;  %v2605_v47 = vld [vmem:[#allocation9 + $0x5d0] sm:$0xff] }
 0x33f   :  { %v2607_v44 = vld [vmem:[#allocation9 + $0x5e0] sm:$0xff] }
 0x340   :  { %5661 = vmatpush1.bf16.msra.mxu0 %v5660_v57  ;;  %5789 = vmatpush1.bf16.msra.mxu1 %v5788_v58  ;;  %v2573_v57 = vld [vmem:[#allocation9 + $0x4d0] sm:$0xff] }
 0x341   :  { %5663 = vmatprep.subr.bf16.mxu0 %v5662_v5  ;;  %5791 = vmatprep.subr.bf16.mxu1 %v5790_v6  ;;  %v2577_v58 = vld [vmem:[#allocation9 + $0x4f0] sm:$0xff]  ;;  %v2582_v5 = vld [vmem:[#allocation9 + $0x518] sm:$0xff] }
 0x342   :  { %v2586_v6 = vld [vmem:[#allocation9 + $0x538] sm:$0xff]  ;;  %v5808_v10 = vpack.c.bf16 %v2577_v58, %v2573_v57 }
 0x344   :  { %5665 = vmatpush1.bf16.msra.mxu0 %v5664_v31  ;;  %5793 = vmatpush1.bf16.msra.mxu1 %v5792_v13  ;;  %v5682_v31 = vpack.c.bf16 %v2584_v55, %v2580_v0  ;;  %v5810_v13 = vpack.c.bf16 %v2586_v6, %v2582_v5  ;;  %v2611_v0 = vld [vmem:[#allocation9 + $0x600] sm:$0xff]  ;;  %v2613_v5 = vld [vmem:[#allocation9 + $0x610] sm:$0xff] }
 0x345   :  { %5667 = vmatprep.subr.bf16.mxu0 %v5666_v34  ;;  %5795 = vmatprep.subr.bf16.mxu1 %v5794_v61  ;;  %v2585_v34 = vld [vmem:[#allocation9 + $0x530] sm:$0xff]  ;;  %v2588_v61 = vld [vmem:[#allocation9 + $0x548] sm:$0xff]  ;;  %v2615_v55 = vld [vmem:[#allocation9 + $0x620] sm:$0xff] }
 0x346   :  { %v5812_v17 = vpack.c.bf16 %v2585_v34, %v2581_v30  ;;  %v5686_v60 = vpack.c.bf16 %v2592_v49, %v2588_v61  ;;  %v5700_v30 = vpack.c.bf16 %v2615_v55, %v2611_v0  ;;  %v2619_v34 = vld [vmem:[#allocation9 + $0x640] sm:$0xff]  ;;  %v2621_v49 = vld [vmem:[#allocation9 + $0x650] sm:$0xff] }
 0x347   :  { %3449 = vmatmul.mubr.f32.vlgmr.msra.gmra.mrb[8].mxu0 %v2403_v22  ;;  %3627 = vmatmul.mubr.f32.vlgmr.msra.gmra.mrb[8].mxu1 %v2403_v22  ;;  %v2591_v22 = vld [vmem:[#allocation9 + $0x560] sm:$0xff] }
 0x348   :  { %3454 = vmatprep.mubr.f32.mxu0 %v6810_v39  ;;  %5669 = vmatpush1.bf16.msra.mxu0 %v5668_v26  ;;  %v2587_v26 = vld [vmem:[#allocation9 + $0x540] sm:$0xff] }
 0x349   :  { %3632 = vmatprep.mubr.f32.mxu1 %v6810_v39  ;;  %5797 = vmatpush1.bf16.msra.mxu1 %v5796_v28  ;;  %v2589_v28 = vld [vmem:[#allocation9 + $0x550] sm:$0xff]  ;;  %v5688_v19 = vpack.c.bf16 %v2591_v22, %v2587_v26  ;;  %v2623_v61 = vld [vmem:[#allocation9 + $0x660] sm:$0xff]  ;;  %v5706_v22 = vpack.c.bf16 %v2632_v15, %v2628_v59 }
 0x34a   :  { %5671 = vmatprep.subr.bf16.mxu0 %v5670_v27  ;;  %5799 = vmatprep.subr.bf16.mxu1 %v5798_v29  ;;  %v2596_v27 = vld [vmem:[#allocation9 + $0x588] sm:$0xff]  ;;  %v5816_v3 = vpack.c.bf16 %v2593_v24, %v2589_v28  ;;  %v2627_v28 = vld [vmem:[#allocation9 + $0x680] sm:$0xff]  ;;  %v2629_v24 = vld [vmem:[#allocation9 + $0x690] sm:$0xff] }
 0x34b   :  { %3455 = vmatmul.mubr.f32.gmra.mrb[10].mxu0 %v6284_v42  ;;  %3633 = vmatmul.mubr.f32.gmra.mrb[10].mxu1 %v6284_v42  ;;  %v2600_v29 = vld [vmem:[#allocation9 + $0x5a8] sm:$0xff]  ;;  %v2665_v15 = vld [vmem:[#allocation9 + $0x7b0] sm:$0xff] }
 0x34c   :  { %3460 = vmatprep.mubr.f32.mxu0 %v2412_v54  ;;  %5673 = vmatpush1.bf16.msra.mxu0 %v5672_v25  ;;  %v5690_v18 = vpack.c.bf16 %v2600_v29, %v2596_v27  ;;  %v2599_v25 = vld [vmem:[#allocation9 + $0x5a0] sm:$0xff]  ;;  %v2633_v29 = vld [vmem:[#allocation9 + $0x6b0] sm:$0xff] }
 0x34d   :  { %3638 = vmatprep.mubr.f32.mxu1 %v2412_v54  ;;  %5801 = vmatpush1.bf16.msra.mxu1 %v5800_v1  ;;  %v2597_v54 = vld [vmem:[#allocation9 + $0x590] sm:$0xff]  ;;  %v5818_v1 = vpack.c.bf16 %v2602_v33, %v2598_v32  ;;  %v5692_v40 = vpack.c.bf16 %v2599_v25, %v2595_v11  ;;  %v2636_v32 = vld [vmem:[#allocation9 + $0x6c8] sm:$0xff]  ;;  %v5836_v11 = vpack.c.bf16 %v2633_v29, %v2629_v24  ;;  %v2667_v24 = vld [vmem:[#allocation9 + $0x7c0] sm:$0xff] }
 0x34e   :  { %5675 = vmatprep.subr.bf16.mxu0 %v5674_v36  ;;  %5803 = vmatprep.subr.bf16.mxu1 %v5802_v37  ;;  %v2608_v36 = vld [vmem:[#allocation9 + $0x5e8] sm:$0xff]  ;;  %v2606_v37 = vld [vmem:[#allocation9 + $0x5d8] sm:$0xff]  ;;  %v5820_v41 = vpack.c.bf16 %v2601_v4, %v2597_v54  ;;  %v2635_v54 = vld [vmem:[#allocation9 + $0x6c0] sm:$0xff] }
 0x34f   :  { %3461 = vmatmul.mubr.f32.gmra.mrb[12].mxu0 %v2411_v51  ;;  %3639 = vmatmul.mubr.f32.gmra.mrb[12].mxu1 %v2411_v51  ;;  %v5694_v42 = vpack.c.bf16 %v2608_v36, %v2604_v35  ;;  %v2609_v51 = vld [vmem:[#allocation9 + $0x5f0] sm:$0xff]  ;;  %v2640_v33 = vld [vmem:[#allocation9 + $0x6e8] sm:$0xff] }
 0x350   :  { %3466 = vmatprep.mubr.f32.mxu0 %v6285_v7  ;;  %5677 = vmatpush1.bf16.msra.mxu0 %v5676_v48  ;;  %v5822_v48 = vpack.c.bf16 %v2610_v38, %v2606_v37  ;;  %v5824_v57 = vpack.c.bf16 %v2609_v51, %v2605_v47  ;;  %v5710_v25 = vpack.c.bf16 %v2640_v33, %v2636_v32  ;;  %v2637_v4 = vld [vmem:[#allocation9 + $0x6d0] sm:$0xff]  ;;  %v2644_v37 = vld [vmem:[#allocation9 + $0x708] sm:$0xff]  ;;  %v2643_v47 = vld [vmem:[#allocation9 + $0x700] sm:$0xff] }
 0x351   :  { %3644 = vmatprep.mubr.f32.mxu1 %v6285_v7  ;;  %5805 = vmatpush1.bf16.msra.mxu1 %v5804_v21  ;;  %v2612_v21 = vld [vmem:[#allocation9 + $0x608] sm:$0xff]  ;;  %v2617_v7 = vld [vmem:[#allocation9 + $0x630] sm:$0xff] }
 0x352   :  { %5679 = vmatprep.subr.bf16.mxu0 %v5678_v53  ;;  %5807 = vmatprep.subr.bf16.mxu1 %v5806_v56  ;;  %v2618_v53 = vld [vmem:[#allocation9 + $0x638] sm:$0xff]  ;;  %v5696_v56 = vpack.c.bf16 %v2607_v44, %v2603_v43  ;;  %v5698_v58 = vpack.c.bf16 %v2616_v50, %v2612_v21  ;;  %v2641_v36 = vld [vmem:[#allocation9 + $0x6f0] sm:$0xff]  ;;  %v2648_v38 = vld [vmem:[#allocation9 + $0x728] sm:$0xff] }
 0x353   :  { %3467 = vmatmul.mubr.f32.gmra.mrb[14].mxu0 %v6286_v62  ;;  %3645 = vmatmul.mubr.f32.gmra.mrb[14].mxu1 %v6286_v62  ;;  %v5826_v6 = vpack.c.bf16 %v2618_v53, %v2614_v52  ;;  %v5830_v62 = vpack.c.bf16 %v2626_v14, %v2622_v12  ;;  %v5840_v43 = vpack.c.bf16 %v2641_v36, %v2637_v4  ;;  %v2645_v51 = vld [vmem:[#allocation9 + $0x710] sm:$0xff]  ;;  %v2652_v52 = vld [vmem:[#allocation9 + $0x748] sm:$0xff]  ;;  %v3833_v36 = vld [vmem:[#allocation9 + $0x1020] sm:$0xff] }
 0x354   :  { %5681 = vmatpush1.bf16.msra.mxu0 %v5680_v8  ;;  %3537 = vmatprep.mubr.f32.mxu0 %v2406_v46  ;;  %v2620_v8 = vld [vmem:[#allocation9 + $0x648] sm:$0xff]  ;;  %v5714_v44 = vpack.c.bf16 %v2648_v38, %v2644_v37  ;;  %v2649_v50 = vld [vmem:[#allocation9 + $0x730] sm:$0xff] }
 0x355   :  { %5809 = vmatpush1.bf16.msra.mxu1 %v5808_v10  ;;  %3715 = vmatprep.mubr.f32.mxu1 %v2406_v46  ;;  %v2624_v10 = vld [vmem:[#allocation9 + $0x668] sm:$0xff]  ;;  %v2625_v46 = vld [vmem:[#allocation9 + $0x670] sm:$0xff]  ;;  %v5844_v0 = vpack.c.bf16 %v2649_v50, %v2645_v51  ;;  %v3841_v50 = vld [vmem:[#allocation9 + $0x1060] sm:$0xff] }
 0x356   :  { %5683 = vmatprep.subr.bf16.mxu0 %v5682_v31  ;;  %5811 = vmatprep.subr.bf16.mxu1 %v5810_v13  ;;  %v5828_v31 = vpack.c.bf16 %v2617_v7, %v2613_v5  ;;  %v5702_v13 = vpack.c.bf16 %v2624_v10, %v2620_v8  ;;  %v5832_v26 = vpack.c.bf16 %v2625_v46, %v2621_v49  ;;  %v2656_v53 = vld [vmem:[#allocation9 + $0x768] sm:$0xff]  ;;  %v2651_v5 = vld [vmem:[#allocation9 + $0x740] sm:$0xff]  ;;  %v2653_v7 = vld [vmem:[#allocation9 + $0x750] sm:$0xff] }
 0x357   :  { %v5718_v55 = vpack.c.bf16 %v2656_v53, %v2652_v52  ;;  %v2657_v10 = vld [vmem:[#allocation9 + $0x770] sm:$0xff]  ;;  %v2660_v12 = vld [vmem:[#allocation9 + $0x788] sm:$0xff]  ;;  %v2659_v49 = vld [vmem:[#allocation9 + $0x780] sm:$0xff] }
 0x358   :  { %5685 = vmatpush1.bf16.msra.mxu0 %v5684_v16  ;;  %v2630_v16 = vld [vmem:[#allocation9 + $0x698] sm:$0xff]  ;;  %v2664_v14 = vld [vmem:[#allocation9 + $0x7a8] sm:$0xff]  ;;  %v2661_v46 = vld [vmem:[#allocation9 + $0x790] sm:$0xff] }
 0x359   :  { %5813 = vmatpush1.bf16.msra.mxu1 %v5812_v17  ;;  %5687 = vmatprep.subr.bf16.mxu0 %v5686_v60  ;;  %v2634_v17 = vld [vmem:[#allocation9 + $0x6b8] sm:$0xff]  ;;  %v5704_v60 = vpack.c.bf16 %v2623_v61, %v2619_v34  ;;  %v5848_v34 = vpack.c.bf16 %v2657_v10, %v2653_v7  ;;  %v5722_v61 = vpack.c.bf16 %v2664_v14, %v2660_v12  ;;  %v2669_v29 = vld [vmem:[#allocation9 + $0x7d0] sm:$0xff]  ;;  %v3845_v12 = vld [vmem:[#allocation9 + $0x1080] sm:$0xff] }
 0x35a   :  { %5815 = vmatprep.subr.bf16.mxu1 %v5814_v23  ;;  %v2631_v23 = vld [vmem:[#allocation9 + $0x6a0] sm:$0xff]  ;;  %v5834_v27 = vpack.c.bf16 %v2634_v17, %v2630_v16  ;;  %v2668_v16 = vld [vmem:[#allocation9 + $0x7c8] sm:$0xff]  ;;  %v2673_v33 = vld [vmem:[#allocation9 + $0x7f0] sm:$0xff] }
 0x35b   :  { %v2672_v17 = vld [vmem:[#allocation9 + $0x7e8] sm:$0xff]  ;;  %v3831_v37 = vld [vmem:[#allocation9 + $0x1010] sm:$0xff]  ;;  %v3849_v14 = vld [vmem:[#allocation9 + $0x10a0] sm:$0xff] }
 0x35c   :  { %5689 = vmatpush1.bf16.msra.mxu0 %v5688_v19  ;;  %v2638_v19 = vld [vmem:[#allocation9 + $0x6d8] sm:$0xff]  ;;  %v3835_v38 = vld [vmem:[#allocation9 + $0x1030] sm:$0xff] }
 0x35d   :  { %5817 = vmatpush1.bf16.msra.mxu1 %v5816_v3  ;;  %5691 = vmatprep.subr.bf16.mxu0 %v5690_v18  ;;  %v2642_v3 = vld [vmem:[#allocation9 + $0x6f8] sm:$0xff]  ;;  %v5708_v18 = vpack.c.bf16 %v2631_v23, %v2627_v28  ;;  %v5852_v28 = vpack.c.bf16 %v2665_v15, %v2661_v46  ;;  %v5726_v23 = vpack.c.bf16 %v2672_v17, %v2668_v16  ;;  %v3839_v52 = vld [vmem:[#allocation9 + $0x1050] sm:$0xff] }
 0x35e   :  { %5819 = vmatprep.subr.bf16.mxu1 %v5818_v1  ;;  %v2639_v1 = vld [vmem:[#allocation9 + $0x6e0] sm:$0xff]  ;;  %v5838_v35 = vpack.c.bf16 %v2642_v3, %v2638_v19  ;;  %v3830_v19 = vld [vmem:[#allocation9 + $0x1008] sm:$0xff]  ;;  %v3860_v46 = vld [vmem:[#allocation9 + $0x10f8] sm:$0xff]  ;;  %v5868_v16 = vpack.c.bf16 %v3849_v14, %v3845_v12 }
 0x35f   :  { %v3834_v3 = vld [vmem:[#allocation9 + $0x1028] sm:$0xff]  ;;  %v3881_v12 = vld [vmem:[#allocation9 + $0x11a0] sm:$0xff]  ;;  %v3879_v14 = vld [vmem:[#allocation9 + $0x1190] sm:$0xff] }
 0x360   :  { %5693 = vmatpush1.bf16.msra.mxu0 %v5692_v40  ;;  %v2646_v40 = vld [vmem:[#allocation9 + $0x718] sm:$0xff]  ;;  %v2413_v15 = vld [vmem:[#allocation2 + $0x70] sm:$0xff] }
 0x361   :  { %5821 = vmatpush1.bf16.msra.mxu1 %v5820_v41  ;;  %5695 = vmatprep.subr.bf16.mxu0 %v5694_v42  ;;  %v2650_v41 = vld [vmem:[#allocation9 + $0x738] sm:$0xff]  ;;  %v5712_v42 = vpack.c.bf16 %v2639_v1, %v2635_v54  ;;  %v5856_v54 = vpack.c.bf16 %v2673_v33, %v2669_v29  ;;  %v5858_v1 = vpack.c.bf16 %v3834_v3, %v3830_v19  ;;  %v3862_v29 = vld [vmem:[#allocation9 + $0x1108] sm:$0xff] }
 0x362   :  { %5823 = vmatprep.subr.bf16.mxu1 %v5822_v48  ;;  %v2647_v48 = vld [vmem:[#allocation9 + $0x720] sm:$0xff]  ;;  %v5842_v21 = vpack.c.bf16 %v2650_v41, %v2646_v40  ;;  %v3838_v40 = vld [vmem:[#allocation9 + $0x1048] sm:$0xff]  ;;  %v6289_v33 = vld [vmem:[#allocation2 + $0x98] sm:$0xff] }
 0x363   :  { %v3842_v41 = vld [vmem:[#allocation9 + $0x1068] sm:$0xff]  ;;  %v3864_v19 = vld [vmem:[#allocation9 + $0x1118] sm:$0xff] }
 0x364   :  { %5697 = vmatpush1.bf16.msra.mxu0 %v5696_v56  ;;  %v2654_v56 = vld [vmem:[#allocation9 + $0x758] sm:$0xff]  ;;  %v5862_v51 = vpack.c.bf16 %v3842_v41, %v3838_v40  ;;  %v3867_v40 = vld [vmem:[#allocation9 + $0x1130] sm:$0xff]  ;;  %v3870_v41 = vld [vmem:[#allocation9 + $0x1148] sm:$0xff] }
 0x365   :  { %5825 = vmatpush1.bf16.msra.mxu1 %v5824_v57  ;;  %5699 = vmatprep.subr.bf16.mxu0 %v5698_v58  ;;  %v2658_v57 = vld [vmem:[#allocation9 + $0x778] sm:$0xff]  ;;  %v5716_v58 = vpack.c.bf16 %v2647_v48, %v2643_v47  ;;  %v5988_v48 = vpack.c.bf16 %v3835_v38, %v3831_v37 }
 0x366   :  { %5827 = vmatprep.subr.bf16.mxu1 %v5826_v6  ;;  %v2655_v6 = vld [vmem:[#allocation9 + $0x760] sm:$0xff]  ;;  %v5846_v8 = vpack.c.bf16 %v2658_v57, %v2654_v56  ;;  %v3843_v56 = vld [vmem:[#allocation9 + $0x1070] sm:$0xff]  ;;  %v3846_v57 = vld [vmem:[#allocation9 + $0x1088] sm:$0xff] }
 0x367   :  { %v3868_v3 = vld [vmem:[#allocation9 + $0x1138] sm:$0xff] }
 0x368   :  { %5701 = vmatpush1.bf16.msra.mxu0 %v5700_v30  ;;  %v2662_v30 = vld [vmem:[#allocation9 + $0x798] sm:$0xff]  ;;  %v6002_v38 = vpack.c.bf16 %v3868_v3, %v3864_v19  ;;  %v3897_v19 = vld [vmem:[#allocation9 + $0x1220] sm:$0xff]  ;;  %v3895_v3 = vld [vmem:[#allocation9 + $0x1210] sm:$0xff] }
 0x369   :  { %5829 = vmatpush1.bf16.msra.mxu1 %v5828_v31  ;;  %5703 = vmatprep.subr.bf16.mxu0 %v5702_v13  ;;  %v2666_v31 = vld [vmem:[#allocation9 + $0x7b8] sm:$0xff]  ;;  %v5720_v13 = vpack.c.bf16 %v2655_v6, %v2651_v5 }
 0x36a   :  { %5831 = vmatprep.subr.bf16.mxu1 %v5830_v62  ;;  %v2663_v62 = vld [vmem:[#allocation9 + $0x7a0] sm:$0xff]  ;;  %v5850_v59 = vpack.c.bf16 %v2666_v31, %v2662_v30  ;;  %v3852_v5 = vld [vmem:[#allocation9 + $0x10b8] sm:$0xff]  ;;  %v3847_v30 = vld [vmem:[#allocation9 + $0x1090] sm:$0xff] }
 0x36b   :  { %v2414_v6 = vld [vmem:[#allocation2 + $0x78] sm:$0xff]  ;;  %v6288_v31 = vld [vmem:[#allocation2 + $0x30] sm:$0xff] }
 0x36c   :  { %5705 = vmatpush1.bf16.msra.mxu0 %v5704_v60  ;;  %v2670_v60 = vld [vmem:[#allocation9 + $0x7d8] sm:$0xff] }
 0x36d   :  { %5833 = vmatpush1.bf16.msra.mxu1 %v5832_v26  ;;  %5707 = vmatprep.subr.bf16.mxu0 %v5706_v22  ;;  %v2674_v26 = vld [vmem:[#allocation9 + $0x7f8] sm:$0xff]  ;;  %v5724_v22 = vpack.c.bf16 %v2663_v62, %v2659_v49  ;;  %v3858_v49 = vld [vmem:[#allocation9 + $0x10e8] sm:$0xff] }
 0x36e   :  { %5835 = vmatprep.subr.bf16.mxu1 %v5834_v27  ;;  %v2671_v27 = vld [vmem:[#allocation9 + $0x7e0] sm:$0xff]  ;;  %v5854_v32 = vpack.c.bf16 %v2674_v26, %v2670_v60  ;;  %v3856_v62 = vld [vmem:[#allocation9 + $0x10d8] sm:$0xff] }
 0x36f   :  { %v3853_v26 = vld [vmem:[#allocation9 + $0x10c0] sm:$0xff] }
 0x370   :  { %5709 = vmatpush1.bf16.msra.mxu0 %v5708_v18  ;;  %v3832_v18 = vld [vmem:[#allocation9 + $0x1018] sm:$0xff] }
 0x371   :  { %5837 = vmatpush1.bf16.msra.mxu1 %v5836_v11  ;;  %5711 = vmatprep.subr.bf16.mxu0 %v5710_v25  ;;  %v3836_v11 = vld [vmem:[#allocation9 + $0x1038] sm:$0xff]  ;;  %v5728_v25 = vpack.c.bf16 %v2671_v27, %v2667_v24  ;;  %v3859_v27 = vld [vmem:[#allocation9 + $0x10f0] sm:$0xff] }
 0x372   :  { %5839 = vmatprep.subr.bf16.mxu1 %v5838_v35  ;;  %v5986_v4 = vpack.c.bf16 %v3836_v11, %v3832_v18  ;;  %v3829_v35 = vld [vmem:[#allocation9 + $0x1000] sm:$0xff]  ;;  %v3776_v11 = vrot.slane %v6810_v39, 2 }
 0x373   :  { %v5860_v47 = vpack.c.bf16 %v3833_v36, %v3829_v35  ;;  %v3863_v35 = vld [vmem:[#allocation9 + $0x1110] sm:$0xff] }
 0x374   :  { %5713 = vmatpush1.bf16.msra.mxu0 %v5712_v42  ;;  %v3840_v42 = vld [vmem:[#allocation9 + $0x1058] sm:$0xff]  ;;  %v6290_v36 = vld [vmem:[#allocation2 + $0x90] sm:$0xff] }
 0x375   :  { %5841 = vmatpush1.bf16.msra.mxu1 %v5840_v43  ;;  %5715 = vmatprep.subr.bf16.mxu0 %v5714_v44  ;;  %v3844_v43 = vld [vmem:[#allocation9 + $0x1078] sm:$0xff]  ;;  %v2405_v44 = vld [vmem:[#allocation2 + $0x10] sm:$0xff] }
 0x376   :  { %5843 = vmatprep.subr.bf16.mxu1 %v5842_v21  ;;  %v3837_v21 = vld [vmem:[#allocation9 + $0x1040] sm:$0xff]  ;;  %v5990_v53 = vpack.c.bf16 %v3844_v43, %v3840_v42  ;;  %v3874_v42 = vld [vmem:[#allocation9 + $0x1168] sm:$0xff]  ;;  %v3872_v43 = vld [vmem:[#allocation9 + $0x1158] sm:$0xff] }
 0x377   :  { %v5864_v7 = vpack.c.bf16 %v3841_v50, %v3837_v21  ;;  %v3869_v21 = vld [vmem:[#allocation9 + $0x1140] sm:$0xff] }
 0x378   :  { %5717 = vmatpush1.bf16.msra.mxu0 %v5716_v58  ;;  %v3850_v58 = vld [vmem:[#allocation9 + $0x10a8] sm:$0xff]  ;;  %v3873_v50 = vld [vmem:[#allocation9 + $0x1160] sm:$0xff] }
 0x379   :  { %5845 = vmatpush1.bf16.msra.mxu1 %v5844_v0  ;;  %5719 = vmatprep.subr.bf16.mxu0 %v5718_v55  ;;  %v6814_v0 = vld [vmem:[#allocation2 + $0x38] sm:$0xff]  ;;  %v5866_v10 = vpack.c.bf16 %v3850_v58, %v3846_v57  ;;  %v3878_v57 = vld [vmem:[#allocation9 + $0x1188] sm:$0xff] }
 0x37a   :  { %5847 = vmatprep.subr.bf16.mxu1 %v5846_v8  ;;  %v3848_v55 = vld [vmem:[#allocation9 + $0x1098] sm:$0xff]  ;;  %v5992_v8 = vpack.c.bf16 %v3843_v56, %v3839_v52  ;;  %v3871_v52 = vld [vmem:[#allocation9 + $0x1150] sm:$0xff]  ;;  %v3882_v58 = vld [vmem:[#allocation9 + $0x11a8] sm:$0xff] }
 0x37b   :  { %v3875_v56 = vld [vmem:[#allocation9 + $0x1170] sm:$0xff] }
 0x37c   :  { %5721 = vmatpush1.bf16.msra.mxu0 %v5720_v13  ;;  %v5994_v13 = vpack.c.bf16 %v3852_v5, %v3848_v55  ;;  %v3880_v55 = vld [vmem:[#allocation9 + $0x1198] sm:$0xff] }
 0x37d   :  { %5849 = vmatpush1.bf16.msra.mxu1 %v5848_v34  ;;  %5723 = vmatprep.subr.bf16.mxu0 %v5722_v61  ;;  %v3851_v34 = vld [vmem:[#allocation9 + $0x10b0] sm:$0xff]  ;;  %v3854_v61 = vld [vmem:[#allocation9 + $0x10c8] sm:$0xff]  ;;  %v3884_v5 = vld [vmem:[#allocation9 + $0x11b8] sm:$0xff] }
 0x37e   :  { %5851 = vmatprep.subr.bf16.mxu1 %v5850_v59  ;;  %v3741_v59 = vld [vmem:[#allocation2 + $0x8] sm:$0xfc]  ;;  %v5996_v17 = vpack.c.bf16 %v3851_v34, %v3847_v30  ;;  %v5870_v60 = vpack.c.bf16 %v3858_v49, %v3854_v61  ;;  %v6010_v30 = vpack.c.bf16 %v3884_v5, %v3880_v55  ;;  %v3888_v61 = vld [vmem:[#allocation9 + $0x11d8] sm:$0xff]  ;;  %v3915_v5 = vld [vmem:[#allocation9 + $0x12b0] sm:$0xff] }
 0x37f   :  { %v3775_v24 = vrot.slane %v3741_v59, 2  ;;  %v3890_v34 = vld [vmem:[#allocation9 + $0x11e8] sm:$0xff]  ;;  %v3892_v49 = vld [vmem:[#allocation9 + $0x11f8] sm:$0xff] }
 0x380   :  { %5725 = vmatpush1.bf16.msra.mxu0 %v5724_v22  ;;  %v3857_v22 = vld [vmem:[#allocation9 + $0x10e0] sm:$0xff] }
 0x381   :  { %5853 = vmatpush1.bf16.msra.mxu1 %v5852_v28  ;;  %5727 = vmatprep.subr.bf16.mxu0 %v5726_v23  ;;  %v3855_v28 = vld [vmem:[#allocation9 + $0x10d0] sm:$0xff]  ;;  %v5998_v23 = vpack.c.bf16 %v3860_v46, %v3856_v62  ;;  %v5872_v18 = vpack.c.bf16 %v3857_v22, %v3853_v26  ;;  %v3777_v37 = vsel %vm1575_vm3, %v3775_v24, %v3776_v11  ;;  %v3894_v22 = vld [vmem:[#allocation9 + $0x1208] sm:$0xff]  ;;  %v3900_v24 = vld [vmem:[#allocation9 + $0x1238] sm:$0xff] }
 0x382   :  { %5855 = vmatprep.subr.bf16.mxu1 %v5854_v32  ;;  %v3866_v32 = vld [vmem:[#allocation9 + $0x1128] sm:$0xff]  ;;  %v3891_v26 = vld [vmem:[#allocation9 + $0x11f0] sm:$0xff] }
 0x384   :  { %5729 = vmatpush1.bf16.msra.mxu0 %v5728_v25  ;;  %v6000_v25 = vpack.c.bf16 %v3859_v27, %v3855_v28  ;;  %v3898_v28 = vld [vmem:[#allocation9 + $0x1228] sm:$0xff] }
 0x385   :  { %5857 = vmatpush1.bf16.msra.mxu1 %v5856_v54  ;;  %5859 = vmatprep.subr.bf16.mxu0 %v5858_v1  ;;  %v5874_v54 = vpack.c.bf16 %v3866_v32, %v3862_v29  ;;  %v3861_v1 = vld [vmem:[#allocation9 + $0x1100] sm:$0xff]  ;;  %v5890_v32 = vpack.c.bf16 %v3898_v28, %v3894_v22  ;;  %v3927_v28 = vld [vmem:[#allocation9 + $0x1310] sm:$0xff] }
 0x386   :  { %5987 = vmatprep.subr.bf16.mxu1 %v5986_v4  ;;  %v3865_v4 = vld [vmem:[#allocation9 + $0x1120] sm:$0xff] }
 0x387   :  { %3538 = vmatmul.mubr.f32.vlgmr.msra.gmra.mrb[8].mxu0 %v2405_v44  ;;  %v3929_v22 = vld [vmem:[#allocation9 + $0x1320] sm:$0xff] }
 0x388   :  { %3716 = vmatmul.mubr.f32.vlgmr.msra.gmra.mrb[8].mxu1 %v2405_v44  ;;  %3543 = vmatprep.mubr.f32.mxu0 %v6814_v0  ;;  %v3876_v44 = vld [vmem:[#allocation9 + $0x1178] sm:$0xff] }
 0x389   :  { %3721 = vmatprep.mubr.f32.mxu1 %v6814_v0  ;;  %5861 = vmatpush1.bf16.msra.mxu0 %v5860_v47  ;;  %v5876_v47 = vpack.c.bf16 %v3865_v4, %v3861_v1  ;;  %v3906_v1 = vld [vmem:[#allocation9 + $0x1268] sm:$0xff]  ;;  %v3904_v4 = vld [vmem:[#allocation9 + $0x1258] sm:$0xff] }
 0x38a   :  { %5989 = vmatpush1.bf16.msra.mxu1 %v5988_v48  ;;  %5863 = vmatprep.subr.bf16.mxu0 %v5862_v51  ;;  %v6004_v48 = vpack.c.bf16 %v3867_v40, %v3863_v35  ;;  %v5878_v51 = vpack.c.bf16 %v3874_v42, %v3870_v41  ;;  %v3908_v35 = vld [vmem:[#allocation9 + $0x1278] sm:$0xff]  ;;  %v3901_v40 = vld [vmem:[#allocation9 + $0x1240] sm:$0xff]  ;;  %v3903_v42 = vld [vmem:[#allocation9 + $0x1250] sm:$0xff] }
 0x38b   :  { %3544 = vmatmul.mubr.f32.gmra.mrb[10].mxu0 %v6288_v31  ;;  %5991 = vmatprep.subr.bf16.mxu1 %v5990_v53  ;;  %v6006_v53 = vpack.c.bf16 %v3876_v44, %v3872_v43  ;;  %v3905_v41 = vld [vmem:[#allocation9 + $0x1260] sm:$0xff]  ;;  %v6022_v43 = vpack.c.bf16 %v3908_v35, %v3904_v4  ;;  %v3907_v44 = vld [vmem:[#allocation9 + $0x1270] sm:$0xff] }
 0x38c   :  { %3722 = vmatmul.mubr.f32.gmra.mrb[10].mxu1 %v6288_v31  ;;  %3549 = vmatprep.mubr.f32.mxu0 %v2414_v6  ;;  %v3883_v31 = vld [vmem:[#allocation9 + $0x11b0] sm:$0xff] }
 0x38d   :  { %3727 = vmatprep.mubr.f32.mxu1 %v2414_v6  ;;  %5865 = vmatpush1.bf16.msra.mxu0 %v5864_v7  ;;  %v5880_v6 = vpack.c.bf16 %v3873_v50, %v3869_v21  ;;  %v6008_v7 = vpack.c.bf16 %v3875_v56, %v3871_v52  ;;  %v6012_v46 = vpack.c.bf16 %v3883_v31, %v3879_v14  ;;  %v3916_v21 = vld [vmem:[#allocation9 + $0x12b8] sm:$0xff]  ;;  %v3909_v56 = vld [vmem:[#allocation9 + $0x1280] sm:$0xff]  ;;  %v3939_v35 = vld [vmem:[#allocation9 + $0x1370] sm:$0xff] }
 0x38e   :  { %5993 = vmatpush1.bf16.msra.mxu1 %v5992_v8  ;;  %5867 = vmatprep.subr.bf16.mxu0 %v5866_v10  ;;  %v5882_v8 = vpack.c.bf16 %v3882_v58, %v3878_v57  ;;  %v3877_v10 = vld [vmem:[#allocation9 + $0x1180] sm:$0xff]  ;;  %v5896_v50 = vpack.c.bf16 %v3905_v41, %v3901_v40  ;;  %v6024_v52 = vpack.c.bf16 %v3907_v44, %v3903_v42  ;;  %v3911_v58 = vld [vmem:[#allocation9 + $0x1290] sm:$0xff]  ;;  %v3948_v40 = vld [vmem:[#allocation9 + $0x13b8] sm:$0xff] }
 0x38f   :  { %3550 = vmatmul.mubr.f32.gmra.mrb[12].mxu0 %v2413_v15  ;;  %5995 = vmatprep.subr.bf16.mxu1 %v5994_v13  ;;  %v3886_v13 = vld [vmem:[#allocation9 + $0x11c8] sm:$0xff]  ;;  %v5884_v62 = vpack.c.bf16 %v3881_v12, %v3877_v10  ;;  %v3913_v57 = vld [vmem:[#allocation9 + $0x12a0] sm:$0xff]  ;;  %v3924_v10 = vld [vmem:[#allocation9 + $0x12f8] sm:$0xff]  ;;  %v6028_v14 = vpack.c.bf16 %v3915_v5, %v3911_v58 }
 0x390   :  { %3728 = vmatmul.mubr.f32.gmra.mrb[12].mxu1 %v2413_v15  ;;  %3555 = vmatprep.mubr.f32.mxu0 %v6289_v33  ;;  %v5886_v59 = vpack.c.bf16 %v3890_v34, %v3886_v13  ;;  %v3885_v15 = vld [vmem:[#allocation9 + $0x11c0] sm:$0xff]  ;;  %v5900_v12 = vpack.c.bf16 %v3913_v57, %v3909_v56  ;;  %v3919_v34 = vld [vmem:[#allocation9 + $0x12d0] sm:$0xff]  ;;  %v3956_v56 = vld [vmem:[#allocation9 + $0x13f8] sm:$0xff] }
 0x391   :  { %3733 = vmatprep.mubr.f32.mxu1 %v6289_v33  ;;  %5869 = vmatpush1.bf16.msra.mxu0 %v5868_v16  ;;  %v3889_v16 = vld [vmem:[#allocation9 + $0x11e0] sm:$0xff] }
 0x392   :  { %5997 = vmatpush1.bf16.msra.mxu1 %v5996_v17  ;;  %5871 = vmatprep.subr.bf16.mxu0 %v5870_v60  ;;  %v3887_v17 = vld [vmem:[#allocation9 + $0x11d0] sm:$0xff]  ;;  %v6014_v60 = vpack.c.bf16 %v3892_v49, %v3888_v61  ;;  %v5888_v27 = vpack.c.bf16 %v3889_v16, %v3885_v15  ;;  %v3893_v33 = vld [vmem:[#allocation9 + $0x1200] sm:$0xff]  ;;  %v3932_v15 = vld [vmem:[#allocation9 + $0x1338] sm:$0xff] }
 0x393   :  { %3556 = vmatmul.mubr.f32.gmra.mrb[14].mxu0 %v6290_v36  ;;  %5999 = vmatprep.subr.bf16.mxu1 %v5998_v23  ;;  %v3896_v23 = vld [vmem:[#allocation9 + $0x1218] sm:$0xff]  ;;  %v6016_v29 = vpack.c.bf16 %v3891_v26, %v3887_v17  ;;  %v3917_v31 = vld [vmem:[#allocation9 + $0x12c0] sm:$0xff]  ;;  %v3923_v49 = vld [vmem:[#allocation9 + $0x12f0] sm:$0xff] }
 0x394   :  { %3734 = vmatmul.mubr.f32.gmra.mrb[14].mxu1 %v6290_v36  ;;  %4149 = vmatprep.mubr.f32.mxu0 %v3777_v37  ;;  %v5892_v36 = vpack.c.bf16 %v3897_v19, %v3893_v33  ;;  %v3921_v13 = vld [vmem:[#allocation9 + $0x12e0] sm:$0xff]  ;;  %v6032_v17 = vpack.c.bf16 %v3923_v49, %v3919_v34  ;;  %v3940_v33 = vld [vmem:[#allocation9 + $0x1378] sm:$0xff] }
 0x395   :  { %5873 = vmatpush1.bf16.msra.mxu0 %v5872_v18  ;;  %4327 = vmatprep.mubr.f32.mxu1 %v3777_v37  ;;  %v6018_v18 = vpack.c.bf16 %v3900_v24, %v3896_v23  ;;  %v5904_v16 = vpack.c.bf16 %v3921_v13, %v3917_v31  ;;  %v3925_v26 = vld [vmem:[#allocation9 + $0x1300] sm:$0xff]  ;;  %v3931_v24 = vld [vmem:[#allocation9 + $0x1330] sm:$0xff]  ;;  %v3960_v31 = vld [vmem:[#allocation9 + $0x1418] sm:$0xff] }
 0x396   :  { %6001 = vmatpush1.bf16.msra.mxu1 %v6000_v25  ;;  %5875 = vmatprep.subr.bf16.mxu0 %v5874_v54  ;;  %v3899_v25 = vld [vmem:[#allocation9 + $0x1230] sm:$0xff]  ;;  %v3902_v54 = vld [vmem:[#allocation9 + $0x1248] sm:$0xff]  ;;  %v5908_v19 = vpack.c.bf16 %v3929_v22, %v3925_v26  ;;  %v3941_v44 = vld [vmem:[#allocation9 + $0x1380] sm:$0xff] }
 0x397   :  { %6003 = vmatprep.subr.bf16.mxu1 %v6002_v38  ;;  %v6020_v37 = vpack.c.bf16 %v3899_v25, %v3895_v3  ;;  %v5894_v38 = vpack.c.bf16 %v3906_v1, %v3902_v54  ;;  %v6036_v3 = vpack.c.bf16 %v3931_v24, %v3927_v28  ;;  %v3933_v25 = vld [vmem:[#allocation9 + $0x1340] sm:$0xff]  ;;  %v3935_v1 = vld [vmem:[#allocation9 + $0x1350] sm:$0xff]  ;;  %v3964_v13 = vld [vmem:[#allocation9 + $0x1438] sm:$0xff] }
 0x398   :  { %v3937_v54 = vld [vmem:[#allocation9 + $0x1360] sm:$0xff]  ;;  %v6040_v42 = vpack.c.bf16 %v3939_v35, %v3935_v1  ;;  %v3963_v22 = vld [vmem:[#allocation9 + $0x1430] sm:$0xff]  ;;  %v3966_v28 = vld [vmem:[#allocation9 + $0x1448] sm:$0xff] }
 0x399   :  { %5877 = vmatpush1.bf16.msra.mxu0 %v5876_v47  ;;  %v3910_v47 = vld [vmem:[#allocation9 + $0x1288] sm:$0xff]  ;;  %v5912_v41 = vpack.c.bf16 %v3937_v54, %v3933_v25  ;;  %v3949_v5 = vld [vmem:[#allocation9 + $0x13c0] sm:$0xff] }
 0x39a   :  { %6005 = vmatpush1.bf16.msra.mxu1 %v6004_v48  ;;  %5879 = vmatprep.subr.bf16.mxu0 %v5878_v51  ;;  %v3914_v48 = vld [vmem:[#allocation9 + $0x12a8] sm:$0xff]  ;;  %v3912_v51 = vld [vmem:[#allocation9 + $0x1298] sm:$0xff]  ;;  %v3969_v35 = vld [vmem:[#allocation9 + $0x1460] sm:$0xff] }
 0x39b   :  { %6007 = vmatprep.subr.bf16.mxu1 %v6006_v53  ;;  %v5898_v53 = vpack.c.bf16 %v3914_v48, %v3910_v47  ;;  %v6026_v55 = vpack.c.bf16 %v3916_v21, %v3912_v51  ;;  %v3945_v47 = vld [vmem:[#allocation9 + $0x13a0] sm:$0xff]  ;;  %v3943_v48 = vld [vmem:[#allocation9 + $0x1390] sm:$0xff] }
 0x39c   :  { %v3947_v21 = vld [vmem:[#allocation9 + $0x13b0] sm:$0xff]  ;;  %v5916_v57 = vpack.c.bf16 %v3945_v47, %v3941_v44  ;;  %v6291_v24 = vld [vmem:[#allocation2 + $0x20] sm:$0xff] }
 0x39d   :  { %5881 = vmatpush1.bf16.msra.mxu0 %v5880_v6  ;;  %v3918_v6 = vld [vmem:[#allocation9 + $0x12c8] sm:$0xff]  ;;  %v6044_v58 = vpack.c.bf16 %v3947_v21, %v3943_v48  ;;  %v3976_v44 = vld [vmem:[#allocation9 + $0x1498] sm:$0xff]  ;;  %v3753_v48 = vld [vmem:[#allocation2 + $0xa8] sm:$0x3] }
 0x39e   :  { %6009 = vmatpush1.bf16.msra.mxu1 %v6008_v7  ;;  %5883 = vmatprep.subr.bf16.mxu0 %v5882_v8  ;;  %v3922_v7 = vld [vmem:[#allocation9 + $0x12e8] sm:$0xff]  ;;  %v3920_v8 = vld [vmem:[#allocation9 + $0x12d8] sm:$0xff] }
 0x39f   :  { %6011 = vmatprep.subr.bf16.mxu1 %v6010_v30  ;;  %v5902_v30 = vpack.c.bf16 %v3922_v7, %v3918_v6  ;;  %v6030_v61 = vpack.c.bf16 %v3924_v10, %v3920_v8  ;;  %v3953_v6 = vld [vmem:[#allocation9 + $0x13e0] sm:$0xff]  ;;  %v3951_v7 = vld [vmem:[#allocation9 + $0x13d0] sm:$0xff]  ;;  %v3980_v47 = vld [vmem:[#allocation9 + $0x14b8] sm:$0xff] }
 0x3a0   :  { %v3955_v10 = vld [vmem:[#allocation9 + $0x13f0] sm:$0xff]  ;;  %v5920_v34 = vpack.c.bf16 %v3953_v6, %v3949_v5  ;;  %v6058_v6 = vpack.c.bf16 %v3980_v47, %v3976_v44  ;;  %v3997_v47 = vld [vmem:[#allocation9 + $0x1540] sm:$0xff] }
 0x3a1   :  { %5885 = vmatpush1.bf16.msra.mxu0 %v5884_v62  ;;  %v3926_v62 = vld [vmem:[#allocation9 + $0x1308] sm:$0xff]  ;;  %v6048_v49 = vpack.c.bf16 %v3955_v10, %v3951_v7  ;;  %v3806_v7 = vrot.slane %v3753_v48, 2  ;;  %v4001_v48 = vld [vmem:[#allocation9 + $0x1560] sm:$0xff] }
 0x3a2   :  { %6013 = vmatpush1.bf16.msra.mxu1 %v6012_v46  ;;  %5887 = vmatprep.subr.bf16.mxu0 %v5886_v59  ;;  %v3930_v46 = vld [vmem:[#allocation9 + $0x1328] sm:$0xff]  ;;  %v3928_v59 = vld [vmem:[#allocation9 + $0x1318] sm:$0xff] }
 0x3a3   :  { %6015 = vmatprep.subr.bf16.mxu1 %v6014_v60  ;;  %v5906_v60 = vpack.c.bf16 %v3930_v46, %v3926_v62  ;;  %v6034_v23 = vpack.c.bf16 %v3932_v15, %v3928_v59  ;;  %v3744_v46 = vld [vmem:[#allocation2 + $0x40] sm:$0x3]  ;;  %v6050_v15 = vpack.c.bf16 %v3964_v13, %v3960_v31  ;;  %v3982_v10 = vld [vmem:[#allocation9 + $0x14c8] sm:$0xff] }
 0x3a4   :  { %v3784_v54 = vrot.slane %v3744_v46, 2  ;;  %v3984_v31 = vld [vmem:[#allocation9 + $0x14d8] sm:$0xff] }
 0x3a5   :  { %5889 = vmatpush1.bf16.msra.mxu0 %v5888_v27  ;;  %v3934_v27 = vld [vmem:[#allocation9 + $0x1348] sm:$0xff]  ;;  %v3988_v13 = vld [vmem:[#allocation9 + $0x14f8] sm:$0xff] }
 0x3a6   :  { %6017 = vmatpush1.bf16.msra.mxu1 %v6016_v29  ;;  %5891 = vmatprep.subr.bf16.mxu0 %v5890_v32  ;;  %v3938_v29 = vld [vmem:[#allocation9 + $0x1368] sm:$0xff]  ;;  %v3936_v32 = vld [vmem:[#allocation9 + $0x1358] sm:$0xff] }
 0x3a7   :  { %6019 = vmatprep.subr.bf16.mxu1 %v6018_v18  ;;  %v5910_v18 = vpack.c.bf16 %v3938_v29, %v3934_v27  ;;  %v6038_v4 = vpack.c.bf16 %v3940_v33, %v3936_v32  ;;  %v3773_v27 = vrot.slane %v6291_v24, 2  ;;  %v3968_v29 = vld [vmem:[#allocation9 + $0x1458] sm:$0xff]  ;;  %v3749_v33 = vld [vmem:[#allocation2 + $0x68] sm:$0xfc] }
 0x3a8   :  { %v3972_v32 = vld [vmem:[#allocation9 + $0x1478] sm:$0xff]  ;;  %v3994_v24 = vld [vmem:[#allocation9 + $0x1528] sm:$0xff] }
 0x3a9   :  { %5893 = vmatpush1.bf16.msra.mxu0 %v5892_v36  ;;  %v3942_v36 = vld [vmem:[#allocation9 + $0x1388] sm:$0xff]  ;;  %v3785_v39 = vsel %vm1575_vm3, %v3773_v27, %v3784_v54  ;;  %v3993_v54 = vld [vmem:[#allocation9 + $0x1520] sm:$0xff] }
 0x3aa   :  { %6021 = vmatpush1.bf16.msra.mxu1 %v6020_v37  ;;  %5895 = vmatprep.subr.bf16.mxu0 %v5894_v38  ;;  %v3946_v37 = vld [vmem:[#allocation9 + $0x13a8] sm:$0xff]  ;;  %v3944_v38 = vld [vmem:[#allocation9 + $0x1398] sm:$0xff] }
 0x3ab   :  { %6023 = vmatprep.subr.bf16.mxu1 %v6022_v43  ;;  %v5914_v43 = vpack.c.bf16 %v3946_v37, %v3942_v36  ;;  %v6042_v51 = vpack.c.bf16 %v3948_v40, %v3944_v38  ;;  %v3967_v36 = vld [vmem:[#allocation9 + $0x1450] sm:$0xff]  ;;  %v6054_v38 = vpack.c.bf16 %v3972_v32, %v3968_v29  ;;  %v3795_v40 = vrot.slane %v3749_v33, 2  ;;  %v3996_v29 = vld [vmem:[#allocation9 + $0x1538] sm:$0xff] }
 0x3ac   :  { %v3782_v33 = vrot.slane %v6814_v0, 2  ;;  %v6296_v0 = vld [vmem:[#allocation2 + $0x90] sm:$0xff] }
 0x3ad   :  { %5897 = vmatpush1.bf16.msra.mxu0 %v5896_v50  ;;  %v3950_v50 = vld [vmem:[#allocation9 + $0x13c8] sm:$0xff] }
 0x3ae   :  { %6025 = vmatpush1.bf16.msra.mxu1 %v6024_v52  ;;  %5899 = vmatprep.subr.bf16.mxu0 %v5898_v53  ;;  %v3954_v52 = vld [vmem:[#allocation9 + $0x13e8] sm:$0xff]  ;;  %v3952_v53 = vld [vmem:[#allocation9 + $0x13d8] sm:$0xff] }
 0x3af   :  { %6027 = vmatprep.subr.bf16.mxu1 %v6026_v55  ;;  %v5918_v55 = vpack.c.bf16 %v3954_v52, %v3950_v50  ;;  %v6046_v8 = vpack.c.bf16 %v3956_v56, %v3952_v53  ;;  %v3752_v52 = vld [vmem:[#allocation2 + $0xa0] sm:$0x3] }
 0x3b0   :  { %v3804_v46 = vrot.slane %v3752_v52, 2  ;;  %v4006_v52 = vld [vmem:[#allocation9 + $0x1588] sm:$0xff] }
 0x3b1   :  { %5901 = vmatpush1.bf16.msra.mxu0 %v5900_v12  ;;  %v3958_v12 = vld [vmem:[#allocation9 + $0x1408] sm:$0xff] }
 0x3b2   :  { %6029 = vmatpush1.bf16.msra.mxu1 %v6028_v14  ;;  %5903 = vmatprep.subr.bf16.mxu0 %v5902_v30  ;;  %v3962_v14 = vld [vmem:[#allocation9 + $0x1428] sm:$0xff]  ;;  %v3740_v30 = vld [vmem:[#allocation2] sm:$0xfc] }
 0x3b3   :  { %6031 = vmatprep.subr.bf16.mxu1 %v6030_v61  ;;  %v3745_v61 = vld [vmem:[#allocation2 + $0x48] sm:$0x3]  ;;  %v5922_v62 = vpack.c.bf16 %v3962_v14, %v3958_v12  ;;  %v3772_v59 = vrot.slane %v3740_v30, 2  ;;  %v3986_v12 = vld [vmem:[#allocation9 + $0x14e8] sm:$0xff]  ;;  %v6293_v14 = vld [vmem:[#allocation2 + $0x80] sm:$0xff] }
 0x3b4   :  { %v3786_v26 = vrot.slane %v3745_v61, 2  ;;  %v3793_v30 = vrot.slane %v6293_v14, 2  ;;  %v4016_v14 = vld [vmem:[#allocation9 + $0x15d8] sm:$0xff] }
 0x3b5   :  { %5905 = vmatpush1.bf16.msra.mxu0 %v5904_v16  ;;  %v3957_v16 = vld [vmem:[#allocation9 + $0x1400] sm:$0xff] }
 0x3b6   :  { %6033 = vmatpush1.bf16.msra.mxu1 %v6032_v17  ;;  %5907 = vmatprep.subr.bf16.mxu0 %v5906_v60  ;;  %v3961_v17 = vld [vmem:[#allocation9 + $0x1420] sm:$0xff]  ;;  %v3959_v60 = vld [vmem:[#allocation9 + $0x1410] sm:$0xff]  ;;  %v3787_v37 = vsel %vm1575_vm3, %v3776_v11, %v3786_v26  ;;  %v6062_v26 = vpack.c.bf16 %v3988_v13, %v3984_v31 }
 0x3b7   :  { %6035 = vmatprep.subr.bf16.mxu1 %v6034_v23  ;;  %v3970_v23 = vld [vmem:[#allocation9 + $0x1468] sm:$0xff]  ;;  %v6052_v25 = vpack.c.bf16 %v3963_v22, %v3959_v60 }
 0x3b8   :  { %v5926_v1 = vpack.c.bf16 %v3970_v23, %v3966_v28  ;;  %v3987_v28 = vld [vmem:[#allocation9 + $0x14f0] sm:$0xff]  ;;  %v3990_v23 = vld [vmem:[#allocation9 + $0x1508] sm:$0xff] }
 0x3b9   :  { %5909 = vmatpush1.bf16.msra.mxu0 %v5908_v19  ;;  %v5924_v19 = vpack.c.bf16 %v3961_v17, %v3957_v16  ;;  %v3985_v16 = vld [vmem:[#allocation9 + $0x14e0] sm:$0xff]  ;;  %v3983_v17 = vld [vmem:[#allocation9 + $0x14d0] sm:$0xff] }
 0x3ba   :  { %6037 = vmatpush1.bf16.msra.mxu1 %v6036_v3  ;;  %5911 = vmatprep.subr.bf16.mxu0 %v5910_v18  ;;  %v3748_v3 = vld [vmem:[#allocation2 + $0x60] sm:$0xfc]  ;;  %v3774_v18 = vsel %vm1575_vm3, %v3772_v59, %v3773_v27  ;;  %v5934_v59 = vpack.c.bf16 %v3986_v12, %v3982_v10  ;;  %v4014_v10 = vld [vmem:[#allocation9 + $0x15c8] sm:$0xff] }
 0x3bb   :  { %6039 = vmatprep.subr.bf16.mxu1 %v6038_v4  ;;  %v3965_v4 = vld [vmem:[#allocation9 + $0x1440] sm:$0xff]  ;;  %v3792_v53 = vrot.slane %v3748_v3, 2  ;;  %v3992_v27 = vld [vmem:[#allocation9 + $0x1518] sm:$0xff]  ;;  %v6064_v3 = vpack.c.bf16 %v3987_v28, %v3983_v17  ;;  %v4018_v12 = vld [vmem:[#allocation9 + $0x15e8] sm:$0xff] }
 0x3bc   :  { %v5928_v50 = vpack.c.bf16 %v3969_v35, %v3965_v4  ;;  %v6066_v35 = vpack.c.bf16 %v3996_v29, %v3992_v27  ;;  %v4024_v17 = vld [vmem:[#allocation9 + $0x1618] sm:$0xff]  ;;  %v4023_v27 = vld [vmem:[#allocation9 + $0x1610] sm:$0xff] }
 0x3bd   :  { %5913 = vmatpush1.bf16.msra.mxu0 %v5912_v41  ;;  %v3971_v41 = vld [vmem:[#allocation9 + $0x1470] sm:$0xff] }
 0x3be   :  { %6041 = vmatpush1.bf16.msra.mxu1 %v6040_v42  ;;  %5915 = vmatprep.subr.bf16.mxu0 %v5914_v43  ;;  %v3974_v42 = vld [vmem:[#allocation9 + $0x1488] sm:$0xff]  ;;  %v6056_v11 = vpack.c.bf16 %v3971_v41, %v3967_v36  ;;  %v3995_v36 = vld [vmem:[#allocation9 + $0x1530] sm:$0xff]  ;;  %v4004_v41 = vld [vmem:[#allocation9 + $0x1578] sm:$0xff] }
 0x3bf   :  { %6043 = vmatprep.subr.bf16.mxu1 %v6042_v51  ;;  %v3978_v43 = vld [vmem:[#allocation9 + $0x14a8] sm:$0xff] }
 0x3c0   :  { %v6292_v51 = vld [vmem:[#allocation2 + $0x88] sm:$0xff]  ;;  %v5930_v56 = vpack.c.bf16 %v3978_v43, %v3974_v42 }
 0x3c1   :  { %5917 = vmatpush1.bf16.msra.mxu0 %v5916_v57  ;;  %v3796_v21 = vrot.slane %v6292_v51, 2  ;;  %v3973_v57 = vld [vmem:[#allocation9 + $0x1480] sm:$0xff]  ;;  %v3999_v51 = vld [vmem:[#allocation9 + $0x1550] sm:$0xff] }
 0x3c2   :  { %6045 = vmatpush1.bf16.msra.mxu1 %v6044_v58  ;;  %5919 = vmatprep.subr.bf16.mxu0 %v5918_v55  ;;  %v3977_v58 = vld [vmem:[#allocation9 + $0x14a0] sm:$0xff]  ;;  %v3975_v55 = vld [vmem:[#allocation9 + $0x1490] sm:$0xff] }
 0x3c3   :  { %6047 = vmatprep.subr.bf16.mxu1 %v6046_v8  ;;  %v3797_v5 = vsel %vm1575_vm3, %v3795_v40, %v3796_v21  ;;  %v3979_v8 = vld [vmem:[#allocation9 + $0x14b0] sm:$0xff]  ;;  %v5932_v61 = vpack.c.bf16 %v3977_v58, %v3973_v57  ;;  %v3807_v60 = vsel %vm1575_vm3, %v3796_v21, %v3806_v7  ;;  %v4000_v40 = vld [vmem:[#allocation9 + $0x1558] sm:$0xff] }
 0x3c4   :  { %v6070_v21 = vpack.c.bf16 %v4004_v41, %v4000_v40  ;;  %v4035_v40 = vld [vmem:[#allocation9 + $0x1670] sm:$0xff]  ;;  %v4038_v41 = vld [vmem:[#allocation9 + $0x1688] sm:$0xff] }
 0x3c5   :  { %5921 = vmatpush1.bf16.msra.mxu0 %v5920_v34  ;;  %v3743_v34 = vld [vmem:[#allocation2 + $0x18] sm:$0xfc] }
 0x3c6   :  { %6049 = vmatpush1.bf16.msra.mxu1 %v6048_v49  ;;  %5923 = vmatprep.subr.bf16.mxu0 %v5922_v62  ;;  %v3794_v49 = vsel %vm1575_vm3, %v3792_v53, %v3793_v30  ;;  %v6060_v62 = vpack.c.bf16 %v3979_v8, %v3975_v55  ;;  %v3781_v22 = vrot.slane %v3743_v34, 2  ;;  %v4012_v53 = vld [vmem:[#allocation9 + $0x15b8] sm:$0xff]  ;;  %v4005_v55 = vld [vmem:[#allocation9 + $0x1580] sm:$0xff]  ;;  %v4011_v8 = vld [vmem:[#allocation9 + $0x15b0] sm:$0xff]  ;;  %v5950_v34 = vpack.c.bf16 %v4018_v12, %v4014_v10 }
 0x3c7   :  { %6051 = vmatprep.subr.bf16.mxu1 %v6050_v15  ;;  %v3981_v15 = vld [vmem:[#allocation9 + $0x14c0] sm:$0xff]  ;;  %v4047_v10 = vld [vmem:[#allocation9 + $0x16d0] sm:$0xff] }
 0x3c8   :  { %4150 = vmatmul.mubr.f32.vlgmr.msra.gmra.mrb[8].mxu0 %v3774_v18  ;;  %v5936_v32 = vpack.c.bf16 %v3985_v16, %v3981_v15  ;;  %v3783_v4 = vsel %vm1575_vm3, %v3781_v22, %v3782_v33  ;;  %v4022_v15 = vld [vmem:[#allocation9 + $0x1608] sm:$0xff] }
 0x3c9   :  { %4328 = vmatmul.mubr.f32.vlgmr.msra.gmra.mrb[8].mxu1 %v3774_v18  ;;  %4155 = vmatprep.mubr.f32.mxu0 %v3787_v37  ;;  %v5938_v18 = vpack.c.bf16 %v3994_v24, %v3990_v23  ;;  %v4026_v16 = vld [vmem:[#allocation9 + $0x1628] sm:$0xff]  ;;  %v4021_v23 = vld [vmem:[#allocation9 + $0x1600] sm:$0xff] }
 0x3ca   :  { %5925 = vmatpush1.bf16.msra.mxu0 %v5924_v19  ;;  %4333 = vmatprep.mubr.f32.mxu1 %v3787_v37  ;;  %v3805_v19 = vsel %vm1575_vm3, %v3793_v30, %v3804_v46  ;;  %v3998_v37 = vld [vmem:[#allocation9 + $0x1548] sm:$0xff]  ;;  %v4020_v30 = vld [vmem:[#allocation9 + $0x15f8] sm:$0xff]  ;;  %v5954_v28 = vpack.c.bf16 %v4026_v16, %v4022_v15  ;;  %v4025_v24 = vld [vmem:[#allocation9 + $0x1620] sm:$0xff] }
 0x3cb   :  { %6053 = vmatpush1.bf16.msra.mxu1 %v6052_v25  ;;  %5927 = vmatprep.subr.bf16.mxu0 %v5926_v1  ;;  %v3989_v25 = vld [vmem:[#allocation9 + $0x1500] sm:$0xff]  ;;  %v3991_v1 = vld [vmem:[#allocation9 + $0x1510] sm:$0xff]  ;;  %v6078_v46 = vpack.c.bf16 %v4020_v30, %v4016_v14  ;;  %v4054_v30 = vld [vmem:[#allocation9 + $0x1708] sm:$0xff] }
 0x3cc   :  { %4156 = vmatmul.mubr.f32.gmra.mrb[10].mxu0 %v3785_v39  ;;  %6055 = vmatprep.subr.bf16.mxu1 %v6054_v38  ;;  %v4002_v38 = vld [vmem:[#allocation9 + $0x1568] sm:$0xff]  ;;  %v5940_v42 = vpack.c.bf16 %v3993_v54, %v3989_v25  ;;  %v6068_v43 = vpack.c.bf16 %v3995_v36, %v3991_v1  ;;  %v4036_v25 = vld [vmem:[#allocation9 + $0x1678] sm:$0xff]  ;;  %v5956_v54 = vpack.c.bf16 %v4025_v24, %v4021_v23  ;;  %v4033_v36 = vld [vmem:[#allocation9 + $0x1660] sm:$0xff] }
 0x3cd   :  { %4334 = vmatmul.mubr.f32.gmra.mrb[10].mxu1 %v3785_v39  ;;  %4161 = vmatprep.mubr.f32.mxu0 %v3797_v5  ;;  %v5942_v44 = vpack.c.bf16 %v4002_v38, %v3998_v37  ;;  %v4010_v39 = vld [vmem:[#allocation9 + $0x15a8] sm:$0xff]  ;;  %v4031_v37 = vld [vmem:[#allocation9 + $0x1650] sm:$0xff] }
 0x3ce   :  { %5929 = vmatpush1.bf16.msra.mxu0 %v5928_v50  ;;  %4339 = vmatprep.mubr.f32.mxu1 %v3797_v5  ;;  %v4003_v50 = vld [vmem:[#allocation9 + $0x1570] sm:$0xff]  ;;  %v5946_v58 = vpack.c.bf16 %v4010_v39, %v4006_v52  ;;  %v4009_v5 = vld [vmem:[#allocation9 + $0x15a0] sm:$0xff] }
 0x3cf   :  { %6057 = vmatpush1.bf16.msra.mxu1 %v6056_v11  ;;  %5931 = vmatprep.subr.bf16.mxu0 %v5930_v56  ;;  %v4008_v11 = vld [vmem:[#allocation9 + $0x1598] sm:$0xff]  ;;  %v5944_v56 = vpack.c.bf16 %v4001_v48, %v3997_v47  ;;  %v6072_v57 = vpack.c.bf16 %v4003_v50, %v3999_v51  ;;  %v5948_v31 = vpack.c.bf16 %v4009_v5, %v4005_v55  ;;  %v4041_v50 = vld [vmem:[#allocation9 + $0x16a0] sm:$0xff]  ;;  %v4039_v52 = vld [vmem:[#allocation9 + $0x1690] sm:$0xff] }
 0x3d0   :  { %4162 = vmatmul.mubr.f32.gmra.mrb[12].mxu0 %v3794_v49  ;;  %6059 = vmatprep.subr.bf16.mxu1 %v6058_v6  ;;  %v4007_v6 = vld [vmem:[#allocation9 + $0x1590] sm:$0xff]  ;;  %v6074_v7 = vpack.c.bf16 %v4012_v53, %v4008_v11  ;;  %v6088_v48 = vpack.c.bf16 %v4035_v40, %v4031_v37  ;;  %v4046_v53 = vld [vmem:[#allocation9 + $0x16c8] sm:$0xff]  ;;  %v4073_v40 = vld [vmem:[#allocation9 + $0x17a0] sm:$0xff] }
 0x3d1   :  { %4340 = vmatmul.mubr.f32.gmra.mrb[12].mxu1 %v3794_v49  ;;  %4167 = vmatprep.mubr.f32.mxu0 %v3807_v60  ;;  %v6076_v13 = vpack.c.bf16 %v4011_v8, %v4007_v6  ;;  %v4017_v49 = vld [vmem:[#allocation9 + $0x15e0] sm:$0xff]  ;;  %v4043_v11 = vld [vmem:[#allocation9 + $0x16b0] sm:$0xff] }
 0x3d2   :  { %5933 = vmatpush1.bf16.msra.mxu0 %v5932_v61  ;;  %4345 = vmatprep.mubr.f32.mxu1 %v3807_v60  ;;  %v4013_v61 = vld [vmem:[#allocation9 + $0x15c0] sm:$0xff]  ;;  %v4028_v60 = vld [vmem:[#allocation9 + $0x1638] sm:$0xff]  ;;  %v6092_v5 = vpack.c.bf16 %v4043_v11, %v4039_v52  ;;  %v4051_v14 = vld [vmem:[#allocation9 + $0x16f0] sm:$0xff] }
 0x3d3   :  { %6061 = vmatpush1.bf16.msra.mxu1 %v6060_v62  ;;  %5935 = vmatprep.subr.bf16.mxu0 %v5934_v59  ;;  %v4015_v62 = vld [vmem:[#allocation9 + $0x15d0] sm:$0xff]  ;;  %v6082_v29 = vpack.c.bf16 %v4028_v60, %v4024_v17  ;;  %v4049_v8 = vld [vmem:[#allocation9 + $0x16e0] sm:$0xff]  ;;  %v4062_v60 = vld [vmem:[#allocation9 + $0x1748] sm:$0xff] }
 0x3d4   :  { %4168 = vmatmul.mubr.f32.gmra.mrb[14].mxu0 %v3805_v19  ;;  %6063 = vmatprep.subr.bf16.mxu1 %v6062_v26  ;;  %v4019_v59 = vld [vmem:[#allocation9 + $0x15f0] sm:$0xff]  ;;  %v5952_v26 = vpack.c.bf16 %v4017_v49, %v4013_v61  ;;  %v6096_v49 = vpack.c.bf16 %v4051_v14, %v4047_v10  ;;  %v4081_v11 = vld [vmem:[#allocation9 + $0x17e0] sm:$0xff]  ;;  %v3746_v10 = vld [vmem:[#allocation2 + $0x50] sm:$0x3] }
 0x3d5   :  { %4346 = vmatmul.mubr.f32.gmra.mrb[14].mxu1 %v3805_v19  ;;  %4238 = vmatprep.mubr.f32.mxu0 %v3783_v4  ;;  %v6080_v22 = vpack.c.bf16 %v4019_v59, %v4015_v62  ;;  %v4030_v19 = vld [vmem:[#allocation9 + $0x1648] sm:$0xff]  ;;  %v4057_v59 = vld [vmem:[#allocation9 + $0x1720] sm:$0xff]  ;;  %v4055_v15 = vld [vmem:[#allocation9 + $0x1710] sm:$0xff] }
 0x3d6   :  { %5937 = vmatpush1.bf16.msra.mxu0 %v5936_v32  ;;  %4416 = vmatprep.mubr.f32.mxu1 %v3783_v4  ;;  %v4027_v32 = vld [vmem:[#allocation9 + $0x1630] sm:$0xff] }
 0x3d7   :  { %6065 = vmatpush1.bf16.msra.mxu1 %v6064_v3  ;;  %5939 = vmatprep.subr.bf16.mxu0 %v5938_v18  ;;  %v4034_v3 = vld [vmem:[#allocation9 + $0x1668] sm:$0xff]  ;;  %v4032_v18 = vld [vmem:[#allocation9 + $0x1658] sm:$0xff]  ;;  %v6084_v1 = vpack.c.bf16 %v4027_v32, %v4023_v27  ;;  %v4059_v17 = vld [vmem:[#allocation9 + $0x1730] sm:$0xff] }
 0x3d8   :  { %6067 = vmatprep.subr.bf16.mxu1 %v6066_v35  ;;  %v5958_v4 = vpack.c.bf16 %v4034_v3, %v4030_v19  ;;  %v4029_v35 = vld [vmem:[#allocation9 + $0x1640] sm:$0xff]  ;;  %v6086_v38 = vpack.c.bf16 %v4036_v25, %v4032_v18  ;;  %v6100_v24 = vpack.c.bf16 %v4059_v17, %v4055_v15  ;;  %v4063_v19 = vld [vmem:[#allocation9 + $0x1750] sm:$0xff]  ;;  %v4070_v25 = vld [vmem:[#allocation9 + $0x1788] sm:$0xff] }
 0x3d9   :  { %v5960_v47 = vpack.c.bf16 %v4033_v36, %v4029_v35  ;;  %v4065_v32 = vld [vmem:[#allocation9 + $0x1760] sm:$0xff]  ;;  %v4067_v18 = vld [vmem:[#allocation9 + $0x1770] sm:$0xff] }
 0x3da   :  { %5941 = vmatpush1.bf16.msra.mxu0 %v5940_v42  ;;  %v4042_v42 = vld [vmem:[#allocation9 + $0x16a8] sm:$0xff]  ;;  %v6104_v36 = vpack.c.bf16 %v4067_v18, %v4063_v19 }
 0x3db   :  { %6069 = vmatpush1.bf16.msra.mxu1 %v6068_v43  ;;  %5943 = vmatprep.subr.bf16.mxu0 %v5942_v44  ;;  %v4040_v43 = vld [vmem:[#allocation9 + $0x1698] sm:$0xff]  ;;  %v5962_v51 = vpack.c.bf16 %v4042_v42, %v4038_v41  ;;  %v4071_v41 = vld [vmem:[#allocation9 + $0x1790] sm:$0xff] }
 0x3dc   :  { %6071 = vmatprep.subr.bf16.mxu1 %v6070_v21  ;;  %v4044_v44 = vld [vmem:[#allocation9 + $0x16b8] sm:$0xff]  ;;  %v4037_v21 = vld [vmem:[#allocation9 + $0x1680] sm:$0xff] }
 0x3dd   :  { %v6090_v39 = vpack.c.bf16 %v4044_v44, %v4040_v43  ;;  %v5964_v55 = vpack.c.bf16 %v4041_v50, %v4037_v21  ;;  %v4075_v43 = vld [vmem:[#allocation9 + $0x17b0] sm:$0xff]  ;;  %v4078_v44 = vld [vmem:[#allocation9 + $0x17c8] sm:$0xff] }
 0x3de   :  { %5945 = vmatpush1.bf16.msra.mxu0 %v5944_v56  ;;  %v4050_v56 = vld [vmem:[#allocation9 + $0x16e8] sm:$0xff]  ;;  %v6108_v50 = vpack.c.bf16 %v4075_v43, %v4071_v41 }
 0x3df   :  { %6073 = vmatpush1.bf16.msra.mxu1 %v6072_v57  ;;  %5947 = vmatprep.subr.bf16.mxu0 %v5946_v58  ;;  %v4048_v57 = vld [vmem:[#allocation9 + $0x16d8] sm:$0xff]  ;;  %v5966_v6 = vpack.c.bf16 %v4050_v56, %v4046_v53  ;;  %v4079_v56 = vld [vmem:[#allocation9 + $0x17d0] sm:$0xff] }
 0x3e0   :  { %6075 = vmatprep.subr.bf16.mxu1 %v6074_v7  ;;  %v4052_v58 = vld [vmem:[#allocation9 + $0x16f8] sm:$0xff]  ;;  %v4045_v7 = vld [vmem:[#allocation9 + $0x16c0] sm:$0xff] }
 0x3e1   :  { %v6094_v12 = vpack.c.bf16 %v4052_v58, %v4048_v57  ;;  %v5968_v61 = vpack.c.bf16 %v4049_v8, %v4045_v7  ;;  %v4083_v57 = vld [vmem:[#allocation9 + $0x17f0] sm:$0xff] }
 0x3e2   :  { %5949 = vmatpush1.bf16.msra.mxu0 %v5948_v31  ;;  %v4058_v31 = vld [vmem:[#allocation9 + $0x1728] sm:$0xff] }
 0x3e3   :  { %6077 = vmatpush1.bf16.msra.mxu1 %v6076_v13  ;;  %5951 = vmatprep.subr.bf16.mxu0 %v5950_v34  ;;  %v4056_v13 = vld [vmem:[#allocation9 + $0x1718] sm:$0xff]  ;;  %v5970_v62 = vpack.c.bf16 %v4058_v31, %v4054_v30  ;;  %v3742_v58 = vld [vmem:[#allocation2 + $0x10] sm:$0xfc] }
 0x3e4   :  { %6079 = vmatprep.subr.bf16.mxu1 %v6078_v46  ;;  %v4060_v34 = vld [vmem:[#allocation9 + $0x1738] sm:$0xff]  ;;  %v4053_v46 = vld [vmem:[#allocation9 + $0x1700] sm:$0xff]  ;;  %v3778_v7 = vrot.slane %v3742_v58, 2 }
 0x3e5   :  { %v6098_v16 = vpack.c.bf16 %v4060_v34, %v4056_v13  ;;  %v5972_v23 = vpack.c.bf16 %v4057_v59, %v4053_v46  ;;  %v3751_v30 = vld [vmem:[#allocation2 + $0x78] sm:$0xfc]  ;;  %v3788_v13 = vrot.slane %v3746_v10, 2  ;;  %v4503_v10 = vld [vmem:[#allocation3 + $0x40] sm:$0xff] }
 0x3e6   :  { %5953 = vmatpush1.bf16.msra.mxu0 %v5952_v26  ;;  %v4066_v26 = vld [vmem:[#allocation9 + $0x1768] sm:$0xff]  ;;  %v6295_v46 = vld [vmem:[#allocation2 + $0x98] sm:$0xff] }
 0x3e7   :  { %6081 = vmatpush1.bf16.msra.mxu1 %v6080_v22  ;;  %5955 = vmatprep.subr.bf16.mxu0 %v5954_v28  ;;  %v4064_v22 = vld [vmem:[#allocation9 + $0x1758] sm:$0xff]  ;;  %v5974_v27 = vpack.c.bf16 %v4066_v26, %v4062_v60  ;;  %v3802_v59 = vrot.slane %v6295_v46, 2  ;;  %v3754_v26 = vld [vmem:[#allocation2 + $0xb0] sm:$0x3] }
 0x3e8   :  { %6083 = vmatprep.subr.bf16.mxu1 %v6082_v29  ;;  %v4068_v28 = vld [vmem:[#allocation9 + $0x1778] sm:$0xff]  ;;  %v4061_v29 = vld [vmem:[#allocation9 + $0x1740] sm:$0xff] }
 0x3e9   :  { %v6102_v3 = vpack.c.bf16 %v4068_v28, %v4064_v22  ;;  %v5976_v35 = vpack.c.bf16 %v4065_v32, %v4061_v29  ;;  %v3808_v28 = vrot.slane %v3754_v26, 2 }
 0x3ea   :  { %5957 = vmatpush1.bf16.msra.mxu0 %v5956_v54  ;;  %v4074_v54 = vld [vmem:[#allocation9 + $0x17a8] sm:$0xff] }
 0x3eb   :  { %6085 = vmatpush1.bf16.msra.mxu1 %v6084_v1  ;;  %5959 = vmatprep.subr.bf16.mxu0 %v5958_v4  ;;  %v4072_v1 = vld [vmem:[#allocation9 + $0x1798] sm:$0xff]  ;;  %v5978_v37 = vpack.c.bf16 %v4074_v54, %v4070_v25 }
 0x3ec   :  { %6087 = vmatprep.subr.bf16.mxu1 %v6086_v38  ;;  %v4076_v4 = vld [vmem:[#allocation9 + $0x17b8] sm:$0xff]  ;;  %v4069_v38 = vld [vmem:[#allocation9 + $0x1780] sm:$0xff] }
 0x3ed   :  { %v6106_v42 = vpack.c.bf16 %v4076_v4, %v4072_v1  ;;  %v5980_v21 = vpack.c.bf16 %v4073_v40, %v4069_v38  ;;  %v4495_v25 = vld [vmem:[#allocation3] sm:$0xff]  ;;  %v4497_v4 = vld [vmem:[#allocation3 + $0x10] sm:$0xff]  ;;  %v4498_v38 = vld [vmem:[#allocation3 + $0x18] sm:$0xff] }
 0x3ee   :  { %5961 = vmatpush1.bf16.msra.mxu0 %v5960_v47  ;;  %v4082_v47 = vld [vmem:[#allocation9 + $0x17e8] sm:$0xff] }
 0x3ef   :  { %6089 = vmatpush1.bf16.msra.mxu1 %v6088_v48  ;;  %5963 = vmatprep.subr.bf16.mxu0 %v5962_v51  ;;  %v4080_v48 = vld [vmem:[#allocation9 + $0x17d8] sm:$0xff]  ;;  %v5982_v52 = vpack.c.bf16 %v4082_v47, %v4078_v44 }
 0x3f0   :  { %6091 = vmatprep.subr.bf16.mxu1 %v6090_v39  ;;  %v4084_v51 = vld [vmem:[#allocation9 + $0x17f8] sm:$0xff]  ;;  %v4077_v39 = vld [vmem:[#allocation9 + $0x17c0] sm:$0xff] }
 0x3f1   :  { %v6110_v53 = vpack.c.bf16 %v4084_v51, %v4080_v48  ;;  %v4501_v51 = vld [vmem:[#allocation3 + $0x30] sm:$0xff] }
 0x3f2   :  { %5965 = vmatpush1.bf16.msra.mxu0 %v5964_v55  ;;  %v5984_v55 = vpack.c.bf16 %v4081_v11, %v4077_v39 }
 0x3f3   :  { %6093 = vmatpush1.bf16.msra.mxu1 %v6092_v5  ;;  %5967 = vmatprep.subr.bf16.mxu0 %v5966_v6  ;;  %v3747_v5 = vld [vmem:[#allocation2 + $0x58] sm:$0x3]  ;;  %v6112_v6 = vpack.c.bf16 %v4083_v57, %v4079_v56 }
 0x3f4   :  { %6095 = vmatprep.subr.bf16.mxu1 %v6094_v12  ;;  %v3790_v8 = vrot.slane %v3747_v5, 2  ;;  %v6294_v12 = vld [vmem:[#allocation2 + $0x30] sm:$0xff]  ;;  %v4502_v57 = vld [vmem:[#allocation3 + $0x38] sm:$0xff] }
 0x3f5   :  { %v3779_v14 = vrot.slane %v6294_v12, 2 }
 0x3f6   :  { %5969 = vmatpush1.bf16.msra.mxu0 %v5968_v61  ;;  %v3791_v34 = vsel %vm1575_vm3, %v3782_v33, %v3790_v8  ;;  %v3801_v61 = vrot.slane %v3751_v30, 2  ;;  %v3799_v33 = vrot.slane %v6296_v0, 2 }
 0x3f7   :  { %6097 = vmatpush1.bf16.msra.mxu1 %v6096_v49  ;;  %5971 = vmatprep.subr.bf16.mxu0 %v5970_v62  ;;  %v3780_v31 = vsel %vm1575_vm3, %v3778_v7, %v3779_v14  ;;  %v3750_v49 = vld [vmem:[#allocation2 + $0x70] sm:$0xfc]  ;;  %v3755_v62 = vld [vmem:[#allocation2 + $0xb8] sm:$0x3]  ;;  %v3789_v15 = vsel %vm1575_vm3, %v3779_v14, %v3788_v13 }
 0x3f8   :  { %6099 = vmatprep.subr.bf16.mxu1 %v6098_v16  ;;  %v3798_v16 = vrot.slane %v3750_v49, 2  ;;  %v3803_v17 = vsel %vm1575_vm3, %v3801_v61, %v3802_v59  ;;  %v3810_v60 = vrot.slane %v3755_v62, 2  ;;  %v4505_v13 = vld [vmem:[#allocation3 + $0x50] sm:$0xff]  ;;  %v4504_v61 = vld [vmem:[#allocation3 + $0x48] sm:$0xff] }
 0x3fa   :  { %5973 = vmatpush1.bf16.msra.mxu0 %v5972_v23  ;;  %v3800_v22 = vsel %vm1575_vm3, %v3798_v16, %v3799_v33  ;;  %v3811_v23 = vsel %vm1575_vm3, %v3802_v59, %v3810_v60  ;;  %v4506_v16 = vld [vmem:[#allocation3 + $0x58] sm:$0xff] }
 0x3fb   :  { %6101 = vmatpush1.bf16.msra.mxu1 %v6100_v24  ;;  %5975 = vmatprep.subr.bf16.mxu0 %v5974_v27  ;;  %v3809_v24 = vsel %vm1575_vm3, %v3799_v33, %v3808_v28  ;;  %v4457_v27 = vld [vmem:[#allocation11] sm:$0xf] }
 0x3fc   :  { %6103 = vmatprep.subr.bf16.mxu1 %v6102_v3  ;;  %v6846_v29 = vrot.slane %v4457_v27, %v2265_v9  ;;  %v6850_v32 = vrot.slane %v4457_v27, %v2273_v2  ;;  %v6854_v19 = vrot.slane %v4457_v27, %v2269_v45  ;;  %v6858_v3 = vrot.slane %v4457_v27, %v2277_v20  ;;  %v4507_v28 = vld [vmem:[#allocation3 + $0x60] sm:$0xff] }
 0x3fe   :  { %5977 = vmatpush1.bf16.msra.mxu0 %v5976_v35  ;;  %v4496_v35 = vld [vmem:[#allocation3 + $0x8] sm:$0xff] }
 0x3ff   :  { %6105 = vmatpush1.bf16.msra.mxu1 %v6104_v36  ;;  %5979 = vmatprep.subr.bf16.mxu0 %v5978_v37 }
 0x400   :  { %6107 = vmatprep.subr.bf16.mxu1 %v6106_v42  ;;  %v4499_v42 = vld [vmem:[#allocation3 + $0x20] sm:$0xff] }
 0x402   :  { %5981 = vmatpush1.bf16.msra.mxu0 %v5980_v21 }
 0x403   :  { %6109 = vmatpush1.bf16.msra.mxu1 %v6108_v50  ;;  %5983 = vmatprep.subr.bf16.mxu0 %v5982_v52  ;;  %v4500_v50 = vld [vmem:[#allocation3 + $0x28] sm:$0xff] }
 0x404   :  { %6111 = vmatprep.subr.bf16.mxu1 %v6110_v53 }
 0x406   :  { %5985 = vmatpush1.bf16.msra.mxu0 %v5984_v55 }
 0x407   :  { %6113 = vmatpush1.bf16.msra.mxu1 %v6112_v6 }
 0x409   :  { %4239 = vmatmul.mubr.f32.vlgmr.msra.gmra.mrb[8].mxu0 %v3780_v31 }
 0x40a   :  { %4417 = vmatmul.mubr.f32.vlgmr.msra.gmra.mrb[8].mxu1 %v3780_v31  ;;  %4244 = vmatprep.mubr.f32.mxu0 %v3791_v34 }
 0x40b   :  { %4422 = vmatprep.mubr.f32.mxu1 %v3791_v34 }
 0x40d   :  { %4245 = vmatmul.mubr.f32.gmra.mrb[10].mxu0 %v3789_v15 }
 0x40e   :  { %4423 = vmatmul.mubr.f32.gmra.mrb[10].mxu1 %v3789_v15  ;;  %4250 = vmatprep.mubr.f32.mxu0 %v3803_v17 }
 0x40f   :  { %4428 = vmatprep.mubr.f32.mxu1 %v3803_v17 }
 0x411   :  { %4251 = vmatmul.mubr.f32.gmra.mrb[12].mxu0 %v3800_v22 }
 0x412   :  { %4429 = vmatmul.mubr.f32.gmra.mrb[12].mxu1 %v3800_v22  ;;  %4256 = vmatprep.mubr.f32.mxu0 %v3811_v23 }
 0x413   :  { %4434 = vmatprep.mubr.f32.mxu1 %v3811_v23 }
 0x415   :  { %4257 = vmatmul.mubr.f32.gmra.mrb[14].mxu0 %v3809_v24 }
 0x416   :  { %4435 = vmatmul.mubr.f32.gmra.mrb[14].mxu1 %v3809_v24 }
 0x4dc   :  { %v4240_v18 = vpop.f32.mrb[8].mxu0 }
 0x4dd   :  { %v4479_v54 = vadd.f32 %v6846_v29, %v4240_v18  ;;  %v4418_v1 = vpop.f32.mrb[8].mxu1  ;;  %v4242_v9 = vpop.f32.mrb[9].mxu0 }
 0x4de   :  { %v4481_v36 = vadd.f32 %v6850_v32, %v4418_v1  ;;  %v4480_v2 = vadd.f32 %v6854_v19, %v4242_v9  ;;  %v4420_v37 = vpop.f32.mrb[9].mxu1  ;;  %v4508_v1 = vld [vmem:[#allocation3 + $0x68] sm:$0xff] }
 0x4df   :  { %v4511_v45 = vadd.f32 %v4495_v25, %v4479_v54  ;;  %v4482_v40 = vadd.f32 %v6858_v3, %v4420_v37  ;;  %v4509_v25 = vld [vmem:[#allocation3 + $0x70] sm:$0xff]  ;;  %v4510_v37 = vld [vmem:[#allocation3 + $0x78] sm:$0xff] }
 0x4e0   :  { %v4513_v63 = vadd.f32 %v4497_v4, %v4481_v36  ;;  %v4512_v20 = vadd.f32 %v4496_v35, %v4480_v2  ;;  %v4246_v41 = vpop.f32.mrb[10].mxu0 }
 0x4e1   :  { %v4527_v43 = vmax.f32 %v4511_v45, 0.0  ;;  %v4514_v44 = vadd.f32 %v4498_v38, %v4482_v40  ;;  %v4483_v47 = vadd.f32 %v6846_v29, %v4246_v41  ;;  %v4424_v48 = vpop.f32.mrb[10].mxu1  ;;  %v4248_v21 = vpop.f32.mrb[11].mxu0 }
 0x4e2   :  { %v4529_v52 = vmax.f32 %v4513_v63, 0.0  ;;  %v4528_v39 = vmax.f32 %v4512_v20, 0.0  ;;  %v4485_v11 = vadd.f32 %v6850_v32, %v4424_v48  ;;  %v4484_v53 = vadd.f32 %v6854_v19, %v4248_v21  ;;  %v4426_v56 = vpop.f32.mrb[11].mxu1 }
 0x4e3   :  { %4543 = vst [vmem:[#allocation12] sm:$0xff] %v4527_v43  ;;  %v4530_v58 = vmax.f32 %v4514_v44, 0.0  ;;  %v4515_v55 = vadd.f32 %v4499_v42, %v4483_v47  ;;  %v4486_v5 = vadd.f32 %v6858_v3, %v4426_v56 }
 0x4e4   :  { %4545 = vst [vmem:[#allocation12 + $0x10] sm:$0xff] %v4529_v52  ;;  %4544 = vst [vmem:[#allocation12 + $0x8] sm:$0xff] %v4528_v39  ;;  %v4517_v6 = vadd.f32 %v4501_v51, %v4485_v11  ;;  %v4516_v7 = vadd.f32 %v4500_v50, %v4484_v53  ;;  %v4252_v8 = vpop.f32.mrb[12].mxu0 }
 0x4e5   :  { %4546 = vst [vmem:[#allocation12 + $0x18] sm:$0xff] %v4530_v58  ;;  %v4531_v12 = vmax.f32 %v4515_v55, 0.0  ;;  %v4518_v14 = vadd.f32 %v4502_v57, %v4486_v5  ;;  %v4487_v30 = vadd.f32 %v6846_v29, %v4252_v8  ;;  %v4430_v31 = vpop.f32.mrb[12].mxu1  ;;  %v4254_v34 = vpop.f32.mrb[13].mxu0 }
 0x4e6   :  { %v4533_v49 = vmax.f32 %v4517_v6, 0.0  ;;  %v4532_v62 = vmax.f32 %v4516_v7, 0.0  ;;  %v4489_v46 = vadd.f32 %v6850_v32, %v4430_v31  ;;  %v4488_v59 = vadd.f32 %v6854_v19, %v4254_v34  ;;  %v4432_v15 = vpop.f32.mrb[13].mxu1 }
 0x4e7   :  { %4547 = vst [vmem:[#allocation12 + $0x20] sm:$0xff] %v4531_v12  ;;  %v4534_v17 = vmax.f32 %v4518_v14, 0.0  ;;  %v4519_v60 = vadd.f32 %v4503_v10, %v4487_v30  ;;  %v4490_v26 = vadd.f32 %v6858_v3, %v4432_v15 }
 0x4e8   :  { %4549 = vst [vmem:[#allocation12 + $0x30] sm:$0xff] %v4533_v49  ;;  %4548 = vst [vmem:[#allocation12 + $0x28] sm:$0xff] %v4532_v62  ;;  %v4521_v0 = vadd.f32 %v4505_v13, %v4489_v46  ;;  %v4520_v33 = vadd.f32 %v4504_v61, %v4488_v59  ;;  %v4258_v22 = vpop.f32.mrb[14].mxu0 }
 0x4e9   :  { %4550 = vst [vmem:[#allocation12 + $0x38] sm:$0xff] %v4534_v17  ;;  %v4535_v23 = vmax.f32 %v4519_v60, 0.0  ;;  %v4522_v24 = vadd.f32 %v4506_v16, %v4490_v26  ;;  %v4491_v27 = vadd.f32 %v6846_v29, %v4258_v22  ;;  %v4436_v18 = vpop.f32.mrb[14].mxu1  ;;  %v4260_v54 = vpop.f32.mrb[15].mxu0 }
 0x4ea   :  { %v4537_v4 = vmax.f32 %v4521_v0, 0.0  ;;  %v4536_v9 = vmax.f32 %v4520_v33, 0.0  ;;  %v4493_v35 = vadd.f32 %v6850_v32, %v4436_v18  ;;  %v4492_v36 = vadd.f32 %v6854_v19, %v4260_v54  ;;  %v4438_v2 = vpop.f32.mrb[15].mxu1 }
 0x4eb   :  { %4551 = vst [vmem:[#allocation12 + $0x40] sm:$0xff] %v4535_v23  ;;  %v4538_v38 = vmax.f32 %v4522_v24, 0.0  ;;  %v4523_v45 = vadd.f32 %v4507_v28, %v4491_v27  ;;  %v4494_v40 = vadd.f32 %v6858_v3, %v4438_v2 }
 0x4ec   :  { %4553 = vst [vmem:[#allocation12 + $0x50] sm:$0xff] %v4537_v4  ;;  %4552 = vst [vmem:[#allocation12 + $0x48] sm:$0xff] %v4536_v9  ;;  %v4525_v29 = vadd.f32 %v4509_v25, %v4493_v35  ;;  %v4524_v63 = vadd.f32 %v4508_v1, %v4492_v36 }
 0x4ed   :  { %4554 = vst [vmem:[#allocation12 + $0x58] sm:$0xff] %v4538_v38  ;;  %v4539_v20 = vmax.f32 %v4523_v45, 0.0  ;;  %v4526_v41 = vadd.f32 %v4510_v37, %v4494_v40 }
 0x4ee   :  { %v4541_v42 = vmax.f32 %v4525_v29, 0.0  ;;  %v4540_v32 = vmax.f32 %v4524_v63, 0.0 }
 0x4ef   :  { %4555 = vst [vmem:[#allocation12 + $0x60] sm:$0xff] %v4539_v20  ;;  %v4542_v19 = vmax.f32 %v4526_v41, 0.0 }
 0x4f0   :  { %4557 = vst [vmem:[#allocation12 + $0x70] sm:$0xff] %v4541_v42  ;;  %4556 = vst [vmem:[#allocation12 + $0x68] sm:$0xff] %v4540_v32 }
 0x4f1   :  { %4558 = vst [vmem:[#allocation12 + $0x78] sm:$0xff] %v4542_v19 }
 0x4f2   :  { %6418 = shalt.err (!%p6415_p2)
}
 0x4f3   :  { %s6419_s7 = scalar_lea.hbm %s6896_s5, 2048 }
 0x4f4   :  { %p6420_p3 = scmp.ne.s32.totalorder %s6896_s5, %s6419_s7  ;;  %p6423_p4 = scmp.lt.u32.totalorder %s6419_s7, %s6896_s5 }
 0x4f6   :  { %p6425_p5 = pnand %p6423_p4, %p6420_p3 }
 0x4f8   :  { %6428 = shalt.err (!%p6425_p5)
}
 0x4f9   :  { %4570 = dma.vmem_to_hbm [thread:$0]  %s4565_s28, 2048, %s6896_s5, [#allocation5], %s6439_s30, %s6439_s30, %s6440_s6  }
 0x4fa   :  { %6435 = dma.done.wait [#allocation5], 2048  }
 0x4fb   :  { %6436 = vsyncadd [#allocation5], 4294965248 }
 0x4fc   :  { %4574 = vsyncpa [#allocation4], 1 }
 0x4fd   :  { %4575 = vsyncpa [#allocation7], 1 }
 0x4fe   :  { %4576 = vsyncpa [#allocation10], 1 }
 0x4ff   :  { %4577 = vsyncpa [#allocation5], 1 }

</bundles_post_ra>
